<compile_context>
chip_gen: v5e
topology: v5e:2x2
jax: 0.10.0
libtpu: 0.0.40
codegen_flags: <defaults>
</compile_context>

<pallas_src>
import jax
import jax.numpy as jnp
from jax.experimental import pallas as pl
from jax.experimental.pallas import tpu as pltpu

# ---------------------------------------------------------------------------
# "constant" module values (chosen so all shape constraints of the module hold:
# LSTM hidden = 2*OBS_DIM + ACT_NUM, HID_CELL_DIM = 2 * hidden,
# image must be 90x160x3 because of the Linear(2*7*64, 64) after Flatten).
# ---------------------------------------------------------------------------
OBS_DIM = 22
ACT_NUM = 20
IMG_H, IMG_W, IMG_C = 90, 160, 3
IMG_DIM = IMG_H * IMG_W * IMG_C                 # 43200
LSTM_DIM = OBS_DIM + OBS_DIM + ACT_NUM          # 64
HID_CELL_DIM = 2 * LSTM_DIM                     # 128 (h ++ c)
IN_DIM = HID_CELL_DIM + OBS_DIM + IMG_DIM + ACT_NUM   # 43370

P1_ROWS = 21 * 38      # pooled conv1 grid, 798 rows (ph1*38 + pw1)
P2_ROWS = 4 * 9        # pooled conv2 grid, 36 rows (ph2*9 + pw2)
K1_COLS = 8 * 8 * 3    # 192  (kh, kw, c)
K2_COLS = 4 * 4 * 32   # 512  (kh, kw, c)


# ---------------------------------------------------------------------------
# XLA glue: im2col patch slabs with the 2x2 maxpool folded in.
# Slab s = dh*2+dw holds the patches of the conv outputs that land in pool
# position (dh, dw); max over the 4 slabs == 2x2 maxpool.
# ---------------------------------------------------------------------------
def build_conv1_patches(img_f32):
    """img: [B, 90, 160, 3] f32 -> [B, 4, 798, 192] bf16 (cols (kh,kw,c))."""
    B = img_f32.shape[0]
    img = img_f32.astype(jnp.bfloat16)
    slabs = []
    for dh in range(2):
        for dw in range(2):
            pieces = []
            for kh in range(8):
                r0 = 2 * dh + kh
                for kw in range(8):
                    w0 = 2 * dw + kw
                    # rows 4*ph1 + r0 (ph1 in [0,21)), cols 4*pw1 + w0 (pw1 in [0,38))
                    pieces.append(img[:, r0:r0 + 81:4, w0:w0 + 149:4, :])
            slab = jnp.concatenate(pieces, axis=-1)        # [B, 21, 38, 192]
            slabs.append(slab.reshape(B, P1_ROWS, K1_COLS))
    return jnp.stack(slabs, axis=1)                        # [B, 4, 798, 192]


def build_conv2_patches(pooled1):
    """pooled1: [B, 798, 32] bf16 -> [B, 4, 36, 512] bf16 (cols (kh,kw,c))."""
    B = pooled1.shape[0]
    g = pooled1.reshape(B, 21, 38, 32)
    slabs = []
    for dh in range(2):
        for dw in range(2):
            pieces = []
            for kh in range(4):
                r0 = 2 * dh + kh
                for kw in range(4):
                    w0 = 2 * dw + kw
                    # rows 4*ph2 + r0 (ph2 in [0,4)), cols 4*pw2 + w0 (pw2 in [0,9))
                    pieces.append(g[:, r0:r0 + 13:4, w0:w0 + 33:4, :])
            slab = jnp.concatenate(pieces, axis=-1)        # [B, 4, 9, 512]
            slabs.append(slab.reshape(B, P2_ROWS, K2_COLS))
    return jnp.stack(slabs, axis=1)                        # [B, 4, 36, 512]


# ---------------------------------------------------------------------------
# Pallas kernel 1: conv1 matmul with fused 2x2 maxpool (max over the 4 slabs),
# bias and ReLU.  One sample per grid step.
# ---------------------------------------------------------------------------
def _conv1_pool_kernel(p_ref, w_ref, b_ref, o_ref):
    w = w_ref[...]
    m = jnp.dot(p_ref[0, 0], w, preferred_element_type=jnp.float32)
    for s in range(1, 4):
        m = jnp.maximum(m, jnp.dot(p_ref[0, s], w,
                                   preferred_element_type=jnp.float32))
    o_ref[0] = jnp.maximum(m + b_ref[...], 0.0).astype(o_ref.dtype)


def conv1_pool1(p1, w, b):
    """p1: [B, 4, 798, 192] bf16 -> pooled1 [B, 798, 32] bf16."""
    B = p1.shape[0]
    return pl.pallas_call(
        _conv1_pool_kernel,
        out_shape=jax.ShapeDtypeStruct((B, P1_ROWS, 32), jnp.bfloat16),
        grid=(B,),
        in_specs=[
            pl.BlockSpec((1, 4, P1_ROWS, K1_COLS), lambda i: (i, 0, 0, 0)),
            pl.BlockSpec((K1_COLS, 32), lambda i: (0, 0)),
            pl.BlockSpec((1, 32), lambda i: (0, 0)),
        ],
        out_specs=pl.BlockSpec((1, P1_ROWS, 32), lambda i: (i, 0, 0)),
        compiler_params=pltpu.CompilerParams(
            dimension_semantics=("parallel",)),
    )(p1, w, b)


# ---------------------------------------------------------------------------
# Pallas kernel 2: fused tail
#   conv2(+pool+relu) -> conv3(+relu) -> fc1/tanh -> fc2/tanh -> LSTM cell ->
#   value head.  One sample per grid step; everything VMEM resident.
# ---------------------------------------------------------------------------
def _tail_kernel(p2_ref, obs_ref, legal_ref, h0_ref, c0_ref,
                 w2_ref, b2_ref, w3_ref, b3_ref,
                 fc1w_ref, fc1b_ref, fc2w_ref, fc2b_ref,
                 wih_obs_ref, wih_img_ref, wih_leg_ref, whh_ref, lstmb_ref,
                 v1w_ref, v1b_ref, v2w_ref, v2b_ref,
                 o_ref):
    f32, bf16 = jnp.float32, jnp.bfloat16

    # ---- conv2 + 2x2 maxpool (max over 4 slabs) + bias + relu -------------
    w2 = w2_ref[...]
    m = jnp.dot(p2_ref[0, 0], w2, preferred_element_type=f32)
    for s in range(1, 4):
        m = jnp.maximum(m, jnp.dot(p2_ref[0, s], w2, preferred_element_type=f32))
    pooled2 = jnp.maximum(m + b2_ref[...], 0.0).astype(bf16)   # [36, 64], row = ph2*9+pw2

    # ---- conv3 (3x3, stride 1) + relu; static row slices of pooled2 -------
    conv3_rows = []
    for oh3 in range(2):
        acc = None
        for k in range(9):
            kh3, kw3 = divmod(k, 3)
            start = (oh3 + kh3) * 9 + kw3
            y = jnp.dot(pooled2[start:start + 7, :], w3_ref[k],
                        preferred_element_type=f32)             # [7, 64]
            acc = y if acc is None else acc + y
        conv3_rows.append(
            jnp.maximum(acc + b3_ref[...], 0.0).astype(bf16))   # [7, 64]

    # ---- fc1 (896 -> 64) + tanh; Flatten folded into per-position dots ----
    acc = None
    for h in range(2):
        for w in range(7):
            pidx = h * 7 + w
            y = jnp.dot(conv3_rows[h][w:w + 1, :], fc1w_ref[pidx],
                        preferred_element_type=f32)             # [1, 64]
            acc = y if acc is None else acc + y
    fc1_out = jnp.tanh(acc + fc1b_ref[...])                     # [1, 64]

    # ---- fc2 (64 -> 22) + tanh --------------------------------------------
    img_out = jnp.tanh(
        jnp.dot(fc1_out.astype(bf16), fc2w_ref[...],
                preferred_element_type=f32) + fc2b_ref[...])    # [1, 22]

    # ---- LSTM cell (PyTorch gate order i,f,g,o; gates in 128-lane groups;
    #      feature concat folded into the row-split W_ih matmuls) -----------
    obs = obs_ref[0]
    legal = legal_ref[0]
    h0 = h0_ref[0]
    c0 = c0_ref[0]
    gates = (jnp.dot(obs.astype(bf16), wih_obs_ref[...], preferred_element_type=f32)
             + jnp.dot(img_out.astype(bf16), wih_img_ref[...], preferred_element_type=f32)
             + jnp.dot(legal.astype(bf16), wih_leg_ref[...], preferred_element_type=f32)
             + jnp.dot(h0.astype(bf16), whh_ref[...], preferred_element_type=f32)
             + lstmb_ref[...])                                   # [1, 512]
    i_g = jax.nn.sigmoid(gates[:, 0:LSTM_DIM])
    f_g = jax.nn.sigmoid(gates[:, 128:128 + LSTM_DIM])
    g_g = jnp.tanh(gates[:, 256:256 + LSTM_DIM])
    o_g = jax.nn.sigmoid(gates[:, 384:384 + LSTM_DIM])
    c1 = f_g * c0 + i_g * g_g
    h1 = o_g * jnp.tanh(c1)                                      # latent (seq_len == 1)

    # ---- value head: Linear(64,16) -> ReLU -> Linear(16,1) -----------------
    v = jnp.maximum(
        jnp.dot(h1.astype(bf16), v1w_ref[...], preferred_element_type=f32)
        + v1b_ref[...], 0.0)                                     # [1, 16]
    val = (jnp.dot(v.astype(bf16), v2w_ref[...], preferred_element_type=f32)
           + v2b_ref[...])                                       # [1, 1]
    o_ref[0] = val.astype(o_ref.dtype)


def _rep_spec(shape):
    """Full-array block, resident across the grid."""
    n = len(shape)
    return pl.BlockSpec(tuple(shape), lambda *args, _n=n: (0,) * _n)


def fused_tail(p2, obs, legal, h0, c0, pp):
    B = p2.shape[0]
    weights = [pp["conv2_wm"], pp["conv2_b"], pp["conv3_wm"], pp["conv3_b"],
               pp["fc1_wm"], pp["fc1_b"], pp["fc2_wm"], pp["fc2_b"],
               pp["wih_obs"], pp["wih_img"], pp["wih_leg"], pp["whh"],
               pp["lstm_b"], pp["v1_wm"], pp["v1_b"], pp["v2_wm"], pp["v2_b"]]
    w_specs = [_rep_spec(w.shape) for w in weights]
    out = pl.pallas_call(
        _tail_kernel,
        out_shape=jax.ShapeDtypeStruct((B, 1, 1), jnp.float32),
        grid=(B,),
        in_specs=[
            pl.BlockSpec((1, 4, P2_ROWS, K2_COLS), lambda i: (i, 0, 0, 0)),
            pl.BlockSpec((1, 1, OBS_DIM), lambda i: (i, 0, 0)),
            pl.BlockSpec((1, 1, ACT_NUM), lambda i: (i, 0, 0)),
            pl.BlockSpec((1, 1, LSTM_DIM), lambda i: (i, 0, 0)),
            pl.BlockSpec((1, 1, LSTM_DIM), lambda i: (i, 0, 0)),
        ] + w_specs,
        out_specs=pl.BlockSpec((1, 1, 1), lambda i: (i, 0, 0)),
        compiler_params=pltpu.CompilerParams(
            dimension_semantics=("parallel",)),
    )(p2,
      obs.reshape(B, 1, OBS_DIM), legal.reshape(B, 1, ACT_NUM),
      h0.reshape(B, 1, LSTM_DIM), c0.reshape(B, 1, LSTM_DIM),
      *weights)
    return out.reshape(B, 1)


# ---------------------------------------------------------------------------
# ValueNet forward
# ---------------------------------------------------------------------------
@jax.jit
def value_net_forward(inp, pp):
    B = inp.shape[0]
    hc = inp[:, :HID_CELL_DIM]
    obs = inp[:, HID_CELL_DIM:HID_CELL_DIM + OBS_DIM]
    img = inp[:, HID_CELL_DIM + OBS_DIM:HID_CELL_DIM + OBS_DIM + IMG_DIM]
    legal = inp[:, HID_CELL_DIM + OBS_DIM + IMG_DIM:]
    h0 = hc[:, :LSTM_DIM]
    c0 = hc[:, LSTM_DIM:]

    # Channel-last image (the torch NCHW permute is compensated once by the
    # weight re-layout in prep_params).
    img = img.reshape(B, IMG_H, IMG_W, IMG_C)

    # conv1 (+pool1+relu) -> pooled1, then conv2 patch slabs for the fused tail.
    p1 = build_conv1_patches(img)                       # [B, 4, 798, 192] bf16
    pooled1 = conv1_pool1(p1, pp["conv1_wm"], pp["conv1_b"])   # [B, 798, 32] bf16
    p2 = build_conv2_patches(pooled1)                   # [B, 4, 36, 512] bf16

    return fused_tail(p2, obs, legal, h0, c0, pp)       # [B, 1]


# ---------------------------------------------------------------------------
# Deterministic synthetic parameters (PyTorch layer shapes) + one-time prep.
# ---------------------------------------------------------------------------
def init_params(key):
    ks = jax.random.split(key, 20)

    def w(k, shape, scale=0.05):
        return (scale * jax.random.normal(k, shape)).astype(jnp.float32)

    return {
        "conv1_w": w(ks[0], (32, 3, 8, 8)),   "conv1_b": w(ks[1], (32,)),
        "conv2_w": w(ks[2], (64, 32, 4, 4)),  "conv2_b": w(ks[3], (64,)),
        "conv3_w": w(ks[4], (64, 64, 3, 3)),  "conv3_b": w(ks[5], (64,)),
        "fc1_w":   w(ks[6], (64, 2 * 7 * 64)), "fc1_b": w(ks[7], (64,)),
        "fc2_w":   w(ks[8], (OBS_DIM, 64)),   "fc2_b": w(ks[9], (OBS_DIM,)),
        "lstm_w_ih": w(ks[10], (4 * LSTM_DIM, LSTM_DIM)),
        "lstm_w_hh": w(ks[11], (4 * LSTM_DIM, LSTM_DIM)),
        "lstm_b_ih": w(ks[12], (4 * LSTM_DIM,)),
        "lstm_b_hh": w(ks[13], (4 * LSTM_DIM,)),
        "v1_w": w(ks[14], (16, LSTM_DIM)), "v1_b": w(ks[15], (16,)),
        "v2_w": w(ks[16], (1, 16)),        "v2_b": w(ks[17], (1,)),
    }


def prep_params(p):
    """One-time weight re-layout; forward pass does no transposes / reshapes."""
    f32, bf16 = jnp.float32, jnp.bfloat16

    def conv_wm(w):  # torch (O, C, KH, KW) -> (KH*KW*C, O), bf16 MXU operand
        O, C, KH, KW = w.shape
        return jnp.transpose(w, (2, 3, 1, 0)).reshape(KH * KW * C, O).astype(bf16)

    def row(b):
        return b.reshape(1, -1).astype(f32)

    # conv3 as 9 per-tap [C_in, C_out] blocks (k = kh*3 + kw).
    conv3_wm = jnp.transpose(p["conv3_w"], (2, 3, 1, 0)).reshape(9, 64, 64).astype(bf16)

    # fc1: torch columns are NCHW-flattened (c, h, w); split into 14 per-(h,w)
    # [C_in, 64] blocks so the Flatten never materializes in-kernel.
    fc1 = p["fc1_w"].reshape(64, 64, 2, 7)                 # [o, c, h, w]
    fc1_wm = jnp.transpose(fc1, (2, 3, 1, 0)).reshape(14, 64, 64).astype(bf16)

    # LSTM: gate g occupies lanes [128g : 128g+64] (vreg-aligned slices),
    # b_ih + b_hh summed, W_ih row-split so the feature concat folds into it.
    def pad_gates(w_t):                                    # [in, 256] -> [in, 512]
        out = jnp.zeros((w_t.shape[0], 512), dtype=w_t.dtype)
        for g in range(4):
            out = out.at[:, 128 * g:128 * g + LSTM_DIM].set(
                w_t[:, LSTM_DIM * g:LSTM_DIM * (g + 1)])
        return out

    wih_pad = pad_gates(p["lstm_w_ih"].T).astype(bf16)     # [64, 512]
    whh_pad = pad_gates(p["lstm_w_hh"].T).astype(bf16)     # [64, 512]
    lstm_b = pad_gates((p["lstm_b_ih"] + p["lstm_b_hh"]).reshape(1, -1)).astype(f32)

    return {
        "conv1_wm": conv_wm(p["conv1_w"]), "conv1_b": row(p["conv1_b"]),
        "conv2_wm": conv_wm(p["conv2_w"]), "conv2_b": row(p["conv2_b"]),
        "conv3_wm": conv3_wm,              "conv3_b": row(p["conv3_b"]),
        "fc1_wm": fc1_wm,                  "fc1_b": row(p["fc1_b"]),
        "fc2_wm": p["fc2_w"].T.astype(bf16), "fc2_b": row(p["fc2_b"]),
        "wih_obs": wih_pad[:OBS_DIM],
        "wih_img": wih_pad[OBS_DIM:2 * OBS_DIM],
        "wih_leg": wih_pad[2 * OBS_DIM:],
        "whh": whh_pad,
        "lstm_b": lstm_b,
        "v1_wm": p["v1_w"].T.astype(bf16), "v1_b": row(p["v1_b"]),
        "v2_wm": p["v2_w"].T.astype(bf16), "v2_b": row(p["v2_b"]),
    }


if __name__ == "__main__":
    key = jax.random.PRNGKey(0)
    params = init_params(key)
    pp = prep_params(params)        # hoisted out of the per-call jit path

    batch = 2
    inp = jax.random.normal(jax.random.fold_in(key, 123),
                            (batch, IN_DIM), dtype=jnp.float32)

    value = value_net_forward(inp, pp)
    jax.block_until_ready(value)
    assert value.shape == (batch, 1), value.shape
    assert bool(jnp.all(jnp.isfinite(value)))
    print("KERNEL_OK")
</pallas_src>

<mosaic_0001>
module attributes {stable_mosaic.version = 11 : i64} {
  func.func @_conv1_pool_kernel(%arg0: i32, %arg1: memref<1x4x798x192xbf16, #tpu.memory_space<vmem>>, %arg2: memref<192x32xbf16, #tpu.memory_space<vmem>>, %arg3: memref<1x32xf32, #tpu.memory_space<vmem>>, %arg4: memref<1x798x32xbf16, #tpu.memory_space<vmem>>) attributes {dimension_semantics = [#tpu.dimension_semantics<parallel>], iteration_bounds = array<i64: 2>, scalar_prefetch = 0 : i64, scratch_operands = 0 : i64, tpu.core_type = #tpu.core_type<tc>, window_params = [{transform_indices = @transform_0, window_bounds = array<i64: 1, 4, 798, 192>}, {pipeline_mode = #tpu.pipeline_mode<synchronous>, transform_indices = @transform_1, window_bounds = array<i64: 192, 32>}, {pipeline_mode = #tpu.pipeline_mode<synchronous>, transform_indices = @transform_2, window_bounds = array<i64: 1, 32>}, {transform_indices = @transform_3, window_bounds = array<i64: 1, 798, 32>}]} {
    %c0 = arith.constant 0 : index
    %c0_0 = arith.constant 0 : index
    %0 = vector.load %arg2[%c0, %c0_0] : memref<192x32xbf16, #tpu.memory_space<vmem>>, vector<192x32xbf16>
    %c0_1 = arith.constant 0 : index
    %c0_2 = arith.constant 0 : index
    %c0_3 = arith.constant 0 : index
    %c0_4 = arith.constant 0 : index
    %1 = vector.load %arg1[%c0_1, %c0_2, %c0_3, %c0_4] : memref<1x4x798x192xbf16, #tpu.memory_space<vmem>>, vector<1x1x798x192xbf16>
    %2 = vector.shape_cast %1 : vector<1x1x798x192xbf16> to vector<798x192xbf16>
    %cst = arith.constant dense<0.000000e+00> : vector<798x32xf32>
    %3 = tpu.matmul %2, %0, %cst {dimension_numbers = #tpu.dot_dimension_numbers<[1], [0], [0], [1], [0, 0, 1, 1], [], []>} : vector<798x192xbf16>, vector<192x32xbf16>, vector<798x32xf32> -> vector<798x32xf32>
    %c0_5 = arith.constant 0 : index
    %c1 = arith.constant 1 : index
    %c0_6 = arith.constant 0 : index
    %c0_7 = arith.constant 0 : index
    %4 = vector.load %arg1[%c0_5, %c1, %c0_6, %c0_7] : memref<1x4x798x192xbf16, #tpu.memory_space<vmem>>, vector<1x1x798x192xbf16>
    %5 = vector.shape_cast %4 : vector<1x1x798x192xbf16> to vector<798x192xbf16>
    %cst_8 = arith.constant dense<0.000000e+00> : vector<798x32xf32>
    %6 = tpu.matmul %5, %0, %cst_8 {dimension_numbers = #tpu.dot_dimension_numbers<[1], [0], [0], [1], [0, 0, 1, 1], [], []>} : vector<798x192xbf16>, vector<192x32xbf16>, vector<798x32xf32> -> vector<798x32xf32>
    %7 = arith.maximumf %3, %6 : vector<798x32xf32>
    %c0_9 = arith.constant 0 : index
    %c2 = arith.constant 2 : index
    %c0_10 = arith.constant 0 : index
    %c0_11 = arith.constant 0 : index
    %8 = vector.load %arg1[%c0_9, %c2, %c0_10, %c0_11] : memref<1x4x798x192xbf16, #tpu.memory_space<vmem>>, vector<1x1x798x192xbf16>
    %9 = vector.shape_cast %8 : vector<1x1x798x192xbf16> to vector<798x192xbf16>
    %cst_12 = arith.constant dense<0.000000e+00> : vector<798x32xf32>
    %10 = tpu.matmul %9, %0, %cst_12 {dimension_numbers = #tpu.dot_dimension_numbers<[1], [0], [0], [1], [0, 0, 1, 1], [], []>} : vector<798x192xbf16>, vector<192x32xbf16>, vector<798x32xf32> -> vector<798x32xf32>
    %11 = arith.maximumf %7, %10 : vector<798x32xf32>
    %c0_13 = arith.constant 0 : index
    %c3 = arith.constant 3 : index
    %c0_14 = arith.constant 0 : index
    %c0_15 = arith.constant 0 : index
    %12 = vector.load %arg1[%c0_13, %c3, %c0_14, %c0_15] : memref<1x4x798x192xbf16, #tpu.memory_space<vmem>>, vector<1x1x798x192xbf16>
    %13 = vector.shape_cast %12 : vector<1x1x798x192xbf16> to vector<798x192xbf16>
    %cst_16 = arith.constant dense<0.000000e+00> : vector<798x32xf32>
    %14 = tpu.matmul %13, %0, %cst_16 {dimension_numbers = #tpu.dot_dimension_numbers<[1], [0], [0], [1], [0, 0, 1, 1], [], []>} : vector<798x192xbf16>, vector<192x32xbf16>, vector<798x32xf32> -> vector<798x32xf32>
    %15 = arith.maximumf %11, %14 : vector<798x32xf32>
    %c0_17 = arith.constant 0 : index
    %c0_18 = arith.constant 0 : index
    %16 = vector.load %arg3[%c0_17, %c0_18] : memref<1x32xf32, #tpu.memory_space<vmem>>, vector<1x32xf32>
    %17 = vector.broadcast %16 : vector<1x32xf32> to vector<798x32xf32>
    %18 = arith.addf %15, %17 : vector<798x32xf32>
    %cst_19 = arith.constant 0.000000e+00 : f32
    %19 = vector.broadcast %cst_19 : f32 to vector<798x32xf32>
    %20 = arith.maximumf %18, %19 : vector<798x32xf32>
    %21 = arith.truncf %20 : vector<798x32xf32> to vector<798x32xbf16>
    %c0_20 = arith.constant 0 : index
    %c0_21 = arith.constant 0 : index
    %c0_22 = arith.constant 0 : index
    %22 = vector.load %arg4[%c0_20, %c0_21, %c0_22] : memref<1x798x32xbf16, #tpu.memory_space<vmem>>, vector<1x798x32xbf16>
    %23 = vector.shape_cast %22 : vector<1x798x32xbf16> to vector<798x32xbf16>
    %24 = vector.shape_cast %21 : vector<798x32xbf16> to vector<1x798x32xbf16>
    tpu.vector_store %arg4[%c0_20, %c0_21, %c0_22], %24 {strides = array<i32>} : memref<1x798x32xbf16, #tpu.memory_space<vmem>>, vector<1x798x32xbf16>,
    return
  }
  func.func @transform_0(%arg0: i32) -> (i32, i32, i32, i32) {
    %c0_i32 = arith.constant 0 : i32
    %c0_i32_0 = arith.constant 0 : i32
    %c0_i32_1 = arith.constant 0 : i32
    %c0_i32_2 = arith.constant 0 : i32
    return %arg0, %c0_i32, %c0_i32_0, %c0_i32_1 : i32, i32, i32, i32
  }
  func.func @transform_1(%arg0: i32) -> (i32, i32) {
    %c0_i32 = arith.constant 0 : i32
    %c0_i32_0 = arith.constant 0 : i32
    %c0_i32_1 = arith.constant 0 : i32
    return %c0_i32, %c0_i32_0 : i32, i32
  }
  func.func @transform_2(%arg0: i32) -> (i32, i32) {
    %c0_i32 = arith.constant 0 : i32
    %c0_i32_0 = arith.constant 0 : i32
    %c0_i32_1 = arith.constant 0 : i32
    return %c0_i32, %c0_i32_0 : i32, i32
  }
  func.func @transform_3(%arg0: i32) -> (i32, i32, i32) {
    %c0_i32 = arith.constant 0 : i32
    %c0_i32_0 = arith.constant 0 : i32
    %c0_i32_1 = arith.constant 0 : i32
    return %arg0, %c0_i32, %c0_i32_0 : i32, i32, i32
  }
}

module attributes {stable_mosaic.version = 11 : i64} {
  func.func @_tail_kernel(%arg0: i32, %arg1: memref<1x4x36x512xbf16, #tpu.memory_space<vmem>>, %arg2: memref<1x1x22xf32, #tpu.memory_space<vmem>>, %arg3: memref<1x1x20xf32, #tpu.memory_space<vmem>>, %arg4: memref<1x1x64xf32, #tpu.memory_space<vmem>>, %arg5: memref<1x1x64xf32, #tpu.memory_space<vmem>>, %arg6: memref<512x64xbf16, #tpu.memory_space<vmem>>, %arg7: memref<1x64xf32, #tpu.memory_space<vmem>>, %arg8: memref<9x64x64xbf16, #tpu.memory_space<vmem>>, %arg9: memref<1x64xf32, #tpu.memory_space<vmem>>, %arg10: memref<14x64x64xbf16, #tpu.memory_space<vmem>>, %arg11: memref<1x64xf32, #tpu.memory_space<vmem>>, %arg12: memref<64x22xbf16, #tpu.memory_space<vmem>>, %arg13: memref<1x22xf32, #tpu.memory_space<vmem>>, %arg14: memref<22x512xbf16, #tpu.memory_space<vmem>>, %arg15: memref<22x512xbf16, #tpu.memory_space<vmem>>, %arg16: memref<20x512xbf16, #tpu.memory_space<vmem>>, %arg17: memref<64x512xbf16, #tpu.memory_space<vmem>>, %arg18: memref<1x512xf32, #tpu.memory_space<vmem>>, %arg19: memref<64x16xbf16, #tpu.memory_space<vmem>>, %arg20: memref<1x16xf32, #tpu.memory_space<vmem>>, %arg21: memref<16x1xbf16, #tpu.memory_space<vmem>>, %arg22: memref<1x1xf32, #tpu.memory_space<vmem>>, %arg23: memref<1x1x1xf32, #tpu.memory_space<vmem>>) attributes {dimension_semantics = [#tpu.dimension_semantics<parallel>], iteration_bounds = array<i64: 2>, scalar_prefetch = 0 : i64, scratch_operands = 0 : i64, tpu.core_type = #tpu.core_type<tc>, window_params = [{transform_indices = @transform_0, window_bounds = array<i64: 1, 4, 36, 512>}, {transform_indices = @transform_1, window_bounds = array<i64: 1, 1, 22>}, {transform_indices = @transform_2, window_bounds = array<i64: 1, 1, 20>}, {transform_indices = @transform_3, window_bounds = array<i64: 1, 1, 64>}, {transform_indices = @transform_4, window_bounds = array<i64: 1, 1, 64>}, {pipeline_mode = #tpu.pipeline_mode<synchronous>, transform_indices = @transform_5, window_bounds = array<i64: 512, 64>}, {pipeline_mode = #tpu.pipeline_mode<synchronous>, transform_indices = @transform_6, window_bounds = array<i64: 1, 64>}, {pipeline_mode = #tpu.pipeline_mode<synchronous>, transform_indices = @transform_7, window_bounds = array<i64: 9, 64, 64>}, {pipeline_mode = #tpu.pipeline_mode<synchronous>, transform_indices = @transform_8, window_bounds = array<i64: 1, 64>}, {pipeline_mode = #tpu.pipeline_mode<synchronous>, transform_indices = @transform_9, window_bounds = array<i64: 14, 64, 64>}, {pipeline_mode = #tpu.pipeline_mode<synchronous>, transform_indices = @transform_10, window_bounds = array<i64: 1, 64>}, {pipeline_mode = #tpu.pipeline_mode<synchronous>, transform_indices = @transform_11, window_bounds = array<i64: 64, 22>}, {pipeline_mode = #tpu.pipeline_mode<synchronous>, transform_indices = @transform_12, window_bounds = array<i64: 1, 22>}, {pipeline_mode = #tpu.pipeline_mode<synchronous>, transform_indices = @transform_13, window_bounds = array<i64: 22, 512>}, {pipeline_mode = #tpu.pipeline_mode<synchronous>, transform_indices = @transform_14, window_bounds = array<i64: 22, 512>}, {pipeline_mode = #tpu.pipeline_mode<synchronous>, transform_indices = @transform_15, window_bounds = array<i64: 20, 512>}, {pipeline_mode = #tpu.pipeline_mode<synchronous>, transform_indices = @transform_16, window_bounds = array<i64: 64, 512>}, {pipeline_mode = #tpu.pipeline_mode<synchronous>, transform_indices = @transform_17, window_bounds = array<i64: 1, 512>}, {pipeline_mode = #tpu.pipeline_mode<synchronous>, transform_indices = @transform_18, window_bounds = array<i64: 64, 16>}, {pipeline_mode = #tpu.pipeline_mode<synchronous>, transform_indices = @transform_19, window_bounds = array<i64: 1, 16>}, {pipeline_mode = #tpu.pipeline_mode<synchronous>, transform_indices = @transform_20, window_bounds = array<i64: 16, 1>}, {pipeline_mode = #tpu.pipeline_mode<synchronous>, transform_indices = @transform_21, window_bounds = array<i64: 1, 1>}, {transform_indices = @transform_22, window_bounds = array<i64: 1, 1, 1>}]} {
    %c0 = arith.constant 0 : index
    %c0_0 = arith.constant 0 : index
    %0 = vector.load %arg6[%c0, %c0_0] : memref<512x64xbf16, #tpu.memory_space<vmem>>, vector<512x64xbf16>
    %c0_1 = arith.constant 0 : index
    %c0_2 = arith.constant 0 : index
    %c0_3 = arith.constant 0 : index
    %c0_4 = arith.constant 0 : index
    %1 = vector.load %arg1[%c0_1, %c0_2, %c0_3, %c0_4] : memref<1x4x36x512xbf16, #tpu.memory_space<vmem>>, vector<1x1x36x512xbf16>
    %2 = vector.shape_cast %1 : vector<1x1x36x512xbf16> to vector<36x512xbf16>
    %cst = arith.constant dense<0.000000e+00> : vector<36x64xf32>
    %3 = tpu.matmul %2, %0, %cst {dimension_numbers = #tpu.dot_dimension_numbers<[1], [0], [0], [1], [0, 0, 1, 1], [], []>} : vector<36x512xbf16>, vector<512x64xbf16>, vector<36x64xf32> -> vector<36x64xf32>
    %c0_5 = arith.constant 0 : index
    %c1 = arith.constant 1 : index
    %c0_6 = arith.constant 0 : index
    %c0_7 = arith.constant 0 : index
    %4 = vector.load %arg1[%c0_5, %c1, %c0_6, %c0_7] : memref<1x4x36x512xbf16, #tpu.memory_space<vmem>>, vector<1x1x36x512xbf16>
    %5 = vector.shape_cast %4 : vector<1x1x36x512xbf16> to vector<36x512xbf16>
    %cst_8 = arith.constant dense<0.000000e+00> : vector<36x64xf32>
    %6 = tpu.matmul %5, %0, %cst_8 {dimension_numbers = #tpu.dot_dimension_numbers<[1], [0], [0], [1], [0, 0, 1, 1], [], []>} : vector<36x512xbf16>, vector<512x64xbf16>, vector<36x64xf32> -> vector<36x64xf32>
    %7 = arith.maximumf %3, %6 : vector<36x64xf32>
    %c0_9 = arith.constant 0 : index
    %c2 = arith.constant 2 : index
    %c0_10 = arith.constant 0 : index
    %c0_11 = arith.constant 0 : index
    %8 = vector.load %arg1[%c0_9, %c2, %c0_10, %c0_11] : memref<1x4x36x512xbf16, #tpu.memory_space<vmem>>, vector<1x1x36x512xbf16>
    %9 = vector.shape_cast %8 : vector<1x1x36x512xbf16> to vector<36x512xbf16>
    %cst_12 = arith.constant dense<0.000000e+00> : vector<36x64xf32>
    %10 = tpu.matmul %9, %0, %cst_12 {dimension_numbers = #tpu.dot_dimension_numbers<[1], [0], [0], [1], [0, 0, 1, 1], [], []>} : vector<36x512xbf16>, vector<512x64xbf16>, vector<36x64xf32> -> vector<36x64xf32>
    %11 = arith.maximumf %7, %10 : vector<36x64xf32>
    %c0_13 = arith.constant 0 : index
    %c3 = arith.constant 3 : index
    %c0_14 = arith.constant 0 : index
    %c0_15 = arith.constant 0 : index
    %12 = vector.load %arg1[%c0_13, %c3, %c0_14, %c0_15] : memref<1x4x36x512xbf16, #tpu.memory_space<vmem>>, vector<1x1x36x512xbf16>
    %13 = vector.shape_cast %12 : vector<1x1x36x512xbf16> to vector<36x512xbf16>
    %cst_16 = arith.constant dense<0.000000e+00> : vector<36x64xf32>
    %14 = tpu.matmul %13, %0, %cst_16 {dimension_numbers = #tpu.dot_dimension_numbers<[1], [0], [0], [1], [0, 0, 1, 1], [], []>} : vector<36x512xbf16>, vector<512x64xbf16>, vector<36x64xf32> -> vector<36x64xf32>
    %15 = arith.maximumf %11, %14 : vector<36x64xf32>
    %c0_17 = arith.constant 0 : index
    %c0_18 = arith.constant 0 : index
    %16 = vector.load %arg7[%c0_17, %c0_18] : memref<1x64xf32, #tpu.memory_space<vmem>>, vector<1x64xf32>
    %17 = vector.broadcast %16 : vector<1x64xf32> to vector<36x64xf32>
    %18 = arith.addf %15, %17 : vector<36x64xf32>
    %cst_19 = arith.constant 0.000000e+00 : f32
    %19 = vector.broadcast %cst_19 : f32 to vector<36x64xf32>
    %20 = arith.maximumf %18, %19 : vector<36x64xf32>
    %21 = arith.truncf %20 : vector<36x64xf32> to vector<36x64xbf16>
    %22 = vector.extract_strided_slice %21 {offsets = [0, 0], sizes = [7, 64], strides = [1, 1]} : vector<36x64xbf16> to vector<7x64xbf16>
    %c0_20 = arith.constant 0 : index
    %c0_21 = arith.constant 0 : index
    %c0_22 = arith.constant 0 : index
    %23 = vector.load %arg8[%c0_20, %c0_21, %c0_22] : memref<9x64x64xbf16, #tpu.memory_space<vmem>>, vector<1x64x64xbf16>
    %24 = vector.shape_cast %23 : vector<1x64x64xbf16> to vector<64x64xbf16>
    %cst_23 = arith.constant dense<0.000000e+00> : vector<7x64xf32>
    %25 = tpu.matmul %22, %24, %cst_23 {dimension_numbers = #tpu.dot_dimension_numbers<[1], [0], [0], [1], [0, 0, 1, 1], [], []>} : vector<7x64xbf16>, vector<64x64xbf16>, vector<7x64xf32> -> vector<7x64xf32>
    %26 = vector.extract_strided_slice %21 {offsets = [1, 0], sizes = [7, 64], strides = [1, 1]} : vector<36x64xbf16> to vector<7x64xbf16>
    %c1_24 = arith.constant 1 : index
    %c0_25 = arith.constant 0 : index
    %c0_26 = arith.constant 0 : index
    %27 = vector.load %arg8[%c1_24, %c0_25, %c0_26] : memref<9x64x64xbf16, #tpu.memory_space<vmem>>, vector<1x64x64xbf16>
    %28 = vector.shape_cast %27 : vector<1x64x64xbf16> to vector<64x64xbf16>
    %cst_27 = arith.constant dense<0.000000e+00> : vector<7x64xf32>
    %29 = tpu.matmul %26, %28, %cst_27 {dimension_numbers = #tpu.dot_dimension_numbers<[1], [0], [0], [1], [0, 0, 1, 1], [], []>} : vector<7x64xbf16>, vector<64x64xbf16>, vector<7x64xf32> -> vector<7x64xf32>
    %30 = arith.addf %25, %29 : vector<7x64xf32>
    %31 = vector.extract_strided_slice %21 {offsets = [2, 0], sizes = [7, 64], strides = [1, 1]} : vector<36x64xbf16> to vector<7x64xbf16>
    %c2_28 = arith.constant 2 : index
    %c0_29 = arith.constant 0 : index
    %c0_30 = arith.constant 0 : index
    %32 = vector.load %arg8[%c2_28, %c0_29, %c0_30] : memref<9x64x64xbf16, #tpu.memory_space<vmem>>, vector<1x64x64xbf16>
    %33 = vector.shape_cast %32 : vector<1x64x64xbf16> to vector<64x64xbf16>
    %cst_31 = arith.constant dense<0.000000e+00> : vector<7x64xf32>
    %34 = tpu.matmul %31, %33, %cst_31 {dimension_numbers = #tpu.dot_dimension_numbers<[1], [0], [0], [1], [0, 0, 1, 1], [], []>} : vector<7x64xbf16>, vector<64x64xbf16>, vector<7x64xf32> -> vector<7x64xf32>
    %35 = arith.addf %30, %34 : vector<7x64xf32>
    %36 = vector.extract_strided_slice %21 {offsets = [9, 0], sizes = [7, 64], strides = [1, 1]} : vector<36x64xbf16> to vector<7x64xbf16>
    %c3_32 = arith.constant 3 : index
    %c0_33 = arith.constant 0 : index
    %c0_34 = arith.constant 0 : index
    %37 = vector.load %arg8[%c3_32, %c0_33, %c0_34] : memref<9x64x64xbf16, #tpu.memory_space<vmem>>, vector<1x64x64xbf16>
    %38 = vector.shape_cast %37 : vector<1x64x64xbf16> to vector<64x64xbf16>
    %cst_35 = arith.constant dense<0.000000e+00> : vector<7x64xf32>
    %39 = tpu.matmul %36, %38, %cst_35 {dimension_numbers = #tpu.dot_dimension_numbers<[1], [0], [0], [1], [0, 0, 1, 1], [], []>} : vector<7x64xbf16>, vector<64x64xbf16>, vector<7x64xf32> -> vector<7x64xf32>
    %40 = arith.addf %35, %39 : vector<7x64xf32>
    %41 = vector.extract_strided_slice %21 {offsets = [10, 0], sizes = [7, 64], strides = [1, 1]} : vector<36x64xbf16> to vector<7x64xbf16>
    %c4 = arith.constant 4 : index
    %c0_36 = arith.constant 0 : index
    %c0_37 = arith.constant 0 : index
    %42 = vector.load %arg8[%c4, %c0_36, %c0_37] : memref<9x64x64xbf16, #tpu.memory_space<vmem>>, vector<1x64x64xbf16>
    %43 = vector.shape_cast %42 : vector<1x64x64xbf16> to vector<64x64xbf16>
    %cst_38 = arith.constant dense<0.000000e+00> : vector<7x64xf32>
    %44 = tpu.matmul %41, %43, %cst_38 {dimension_numbers = #tpu.dot_dimension_numbers<[1], [0], [0], [1], [0, 0, 1, 1], [], []>} : vector<7x64xbf16>, vector<64x64xbf16>, vector<7x64xf32> -> vector<7x64xf32>
    %45 = arith.addf %40, %44 : vector<7x64xf32>
    %46 = vector.extract_strided_slice %21 {offsets = [11, 0], sizes = [7, 64], strides = [1, 1]} : vector<36x64xbf16> to vector<7x64xbf16>
    %c5 = arith.constant 5 : index
    %c0_39 = arith.constant 0 : index
    %c0_40 = arith.constant 0 : index
    %47 = vector.load %arg8[%c5, %c0_39, %c0_40] : memref<9x64x64xbf16, #tpu.memory_space<vmem>>, vector<1x64x64xbf16>
    %48 = vector.shape_cast %47 : vector<1x64x64xbf16> to vector<64x64xbf16>
    %cst_41 = arith.constant dense<0.000000e+00> : vector<7x64xf32>
    %49 = tpu.matmul %46, %48, %cst_41 {dimension_numbers = #tpu.dot_dimension_numbers<[1], [0], [0], [1], [0, 0, 1, 1], [], []>} : vector<7x64xbf16>, vector<64x64xbf16>, vector<7x64xf32> -> vector<7x64xf32>
    %50 = arith.addf %45, %49 : vector<7x64xf32>
    %51 = vector.extract_strided_slice %21 {offsets = [18, 0], sizes = [7, 64], strides = [1, 1]} : vector<36x64xbf16> to vector<7x64xbf16>
    %c6 = arith.constant 6 : index
    %c0_42 = arith.constant 0 : index
    %c0_43 = arith.constant 0 : index
    %52 = vector.load %arg8[%c6, %c0_42, %c0_43] : memref<9x64x64xbf16, #tpu.memory_space<vmem>>, vector<1x64x64xbf16>
    %53 = vector.shape_cast %52 : vector<1x64x64xbf16> to vector<64x64xbf16>
    %cst_44 = arith.constant dense<0.000000e+00> : vector<7x64xf32>
    %54 = tpu.matmul %51, %53, %cst_44 {dimension_numbers = #tpu.dot_dimension_numbers<[1], [0], [0], [1], [0, 0, 1, 1], [], []>} : vector<7x64xbf16>, vector<64x64xbf16>, vector<7x64xf32> -> vector<7x64xf32>
    %55 = arith.addf %50, %54 : vector<7x64xf32>
    %56 = vector.extract_strided_slice %21 {offsets = [19, 0], sizes = [7, 64], strides = [1, 1]} : vector<36x64xbf16> to vector<7x64xbf16>
    %c7 = arith.constant 7 : index
    %c0_45 = arith.constant 0 : index
    %c0_46 = arith.constant 0 : index
    %57 = vector.load %arg8[%c7, %c0_45, %c0_46] : memref<9x64x64xbf16, #tpu.memory_space<vmem>>, vector<1x64x64xbf16>
    %58 = vector.shape_cast %57 : vector<1x64x64xbf16> to vector<64x64xbf16>
    %cst_47 = arith.constant dense<0.000000e+00> : vector<7x64xf32>
    %59 = tpu.matmul %56, %58, %cst_47 {dimension_numbers = #tpu.dot_dimension_numbers<[1], [0], [0], [1], [0, 0, 1, 1], [], []>} : vector<7x64xbf16>, vector<64x64xbf16>, vector<7x64xf32> -> vector<7x64xf32>
    %60 = arith.addf %55, %59 : vector<7x64xf32>
    %61 = vector.extract_strided_slice %21 {offsets = [20, 0], sizes = [7, 64], strides = [1, 1]} : vector<36x64xbf16> to vector<7x64xbf16>
    %c8 = arith.constant 8 : index
    %c0_48 = arith.constant 0 : index
    %c0_49 = arith.constant 0 : index
    %62 = vector.load %arg8[%c8, %c0_48, %c0_49] : memref<9x64x64xbf16, #tpu.memory_space<vmem>>, vector<1x64x64xbf16>
    %63 = vector.shape_cast %62 : vector<1x64x64xbf16> to vector<64x64xbf16>
    %cst_50 = arith.constant dense<0.000000e+00> : vector<7x64xf32>
    %64 = tpu.matmul %61, %63, %cst_50 {dimension_numbers = #tpu.dot_dimension_numbers<[1], [0], [0], [1], [0, 0, 1, 1], [], []>} : vector<7x64xbf16>, vector<64x64xbf16>, vector<7x64xf32> -> vector<7x64xf32>
    %65 = arith.addf %60, %64 : vector<7x64xf32>
    %c0_51 = arith.constant 0 : index
    %c0_52 = arith.constant 0 : index
    %66 = vector.load %arg9[%c0_51, %c0_52] : memref<1x64xf32, #tpu.memory_space<vmem>>, vector<1x64xf32>
    %67 = vector.broadcast %66 : vector<1x64xf32> to vector<7x64xf32>
    %68 = arith.addf %65, %67 : vector<7x64xf32>
    %cst_53 = arith.constant 0.000000e+00 : f32
    %69 = vector.broadcast %cst_53 : f32 to vector<7x64xf32>
    %70 = arith.maximumf %68, %69 : vector<7x64xf32>
    %71 = arith.truncf %70 : vector<7x64xf32> to vector<7x64xbf16>
    %72 = vector.extract_strided_slice %21 {offsets = [9, 0], sizes = [7, 64], strides = [1, 1]} : vector<36x64xbf16> to vector<7x64xbf16>
    %c0_54 = arith.constant 0 : index
    %c0_55 = arith.constant 0 : index
    %c0_56 = arith.constant 0 : index
    %73 = vector.load %arg8[%c0_54, %c0_55, %c0_56] : memref<9x64x64xbf16, #tpu.memory_space<vmem>>, vector<1x64x64xbf16>
    %74 = vector.shape_cast %73 : vector<1x64x64xbf16> to vector<64x64xbf16>
    %cst_57 = arith.constant dense<0.000000e+00> : vector<7x64xf32>
    %75 = tpu.matmul %72, %74, %cst_57 {dimension_numbers = #tpu.dot_dimension_numbers<[1], [0], [0], [1], [0, 0, 1, 1], [], []>} : vector<7x64xbf16>, vector<64x64xbf16>, vector<7x64xf32> -> vector<7x64xf32>
    %76 = vector.extract_strided_slice %21 {offsets = [10, 0], sizes = [7, 64], strides = [1, 1]} : vector<36x64xbf16> to vector<7x64xbf16>
    %c1_58 = arith.constant 1 : index
    %c0_59 = arith.constant 0 : index
    %c0_60 = arith.constant 0 : index
    %77 = vector.load %arg8[%c1_58, %c0_59, %c0_60] : memref<9x64x64xbf16, #tpu.memory_space<vmem>>, vector<1x64x64xbf16>
    %78 = vector.shape_cast %77 : vector<1x64x64xbf16> to vector<64x64xbf16>
    %cst_61 = arith.constant dense<0.000000e+00> : vector<7x64xf32>
    %79 = tpu.matmul %76, %78, %cst_61 {dimension_numbers = #tpu.dot_dimension_numbers<[1], [0], [0], [1], [0, 0, 1, 1], [], []>} : vector<7x64xbf16>, vector<64x64xbf16>, vector<7x64xf32> -> vector<7x64xf32>
    %80 = arith.addf %75, %79 : vector<7x64xf32>
    %81 = vector.extract_strided_slice %21 {offsets = [11, 0], sizes = [7, 64], strides = [1, 1]} : vector<36x64xbf16> to vector<7x64xbf16>
    %c2_62 = arith.constant 2 : index
    %c0_63 = arith.constant 0 : index
    %c0_64 = arith.constant 0 : index
    %82 = vector.load %arg8[%c2_62, %c0_63, %c0_64] : memref<9x64x64xbf16, #tpu.memory_space<vmem>>, vector<1x64x64xbf16>
    %83 = vector.shape_cast %82 : vector<1x64x64xbf16> to vector<64x64xbf16>
    %cst_65 = arith.constant dense<0.000000e+00> : vector<7x64xf32>
    %84 = tpu.matmul %81, %83, %cst_65 {dimension_numbers = #tpu.dot_dimension_numbers<[1], [0], [0], [1], [0, 0, 1, 1], [], []>} : vector<7x64xbf16>, vector<64x64xbf16>, vector<7x64xf32> -> vector<7x64xf32>
    %85 = arith.addf %80, %84 : vector<7x64xf32>
    %86 = vector.extract_strided_slice %21 {offsets = [18, 0], sizes = [7, 64], strides = [1, 1]} : vector<36x64xbf16> to vector<7x64xbf16>
    %c3_66 = arith.constant 3 : index
    %c0_67 = arith.constant 0 : index
    %c0_68 = arith.constant 0 : index
    %87 = vector.load %arg8[%c3_66, %c0_67, %c0_68] : memref<9x64x64xbf16, #tpu.memory_space<vmem>>, vector<1x64x64xbf16>
    %88 = vector.shape_cast %87 : vector<1x64x64xbf16> to vector<64x64xbf16>
    %cst_69 = arith.constant dense<0.000000e+00> : vector<7x64xf32>
    %89 = tpu.matmul %86, %88, %cst_69 {dimension_numbers = #tpu.dot_dimension_numbers<[1], [0], [0], [1], [0, 0, 1, 1], [], []>} : vector<7x64xbf16>, vector<64x64xbf16>, vector<7x64xf32> -> vector<7x64xf32>
    %90 = arith.addf %85, %89 : vector<7x64xf32>
    %91 = vector.extract_strided_slice %21 {offsets = [19, 0], sizes = [7, 64], strides = [1, 1]} : vector<36x64xbf16> to vector<7x64xbf16>
    %c4_70 = arith.constant 4 : index
    %c0_71 = arith.constant 0 : index
    %c0_72 = arith.constant 0 : index
    %92 = vector.load %arg8[%c4_70, %c0_71, %c0_72] : memref<9x64x64xbf16, #tpu.memory_space<vmem>>, vector<1x64x64xbf16>
    %93 = vector.shape_cast %92 : vector<1x64x64xbf16> to vector<64x64xbf16>
    %cst_73 = arith.constant dense<0.000000e+00> : vector<7x64xf32>
    %94 = tpu.matmul %91, %93, %cst_73 {dimension_numbers = #tpu.dot_dimension_numbers<[1], [0], [0], [1], [0, 0, 1, 1], [], []>} : vector<7x64xbf16>, vector<64x64xbf16>, vector<7x64xf32> -> vector<7x64xf32>
    %95 = arith.addf %90, %94 : vector<7x64xf32>
    %96 = vector.extract_strided_slice %21 {offsets = [20, 0], sizes = [7, 64], strides = [1, 1]} : vector<36x64xbf16> to vector<7x64xbf16>
    %c5_74 = arith.constant 5 : index
    %c0_75 = arith.constant 0 : index
    %c0_76 = arith.constant 0 : index
    %97 = vector.load %arg8[%c5_74, %c0_75, %c0_76] : memref<9x64x64xbf16, #tpu.memory_space<vmem>>, vector<1x64x64xbf16>
    %98 = vector.shape_cast %97 : vector<1x64x64xbf16> to vector<64x64xbf16>
    %cst_77 = arith.constant dense<0.000000e+00> : vector<7x64xf32>
    %99 = tpu.matmul %96, %98, %cst_77 {dimension_numbers = #tpu.dot_dimension_numbers<[1], [0], [0], [1], [0, 0, 1, 1], [], []>} : vector<7x64xbf16>, vector<64x64xbf16>, vector<7x64xf32> -> vector<7x64xf32>
    %100 = arith.addf %95, %99 : vector<7x64xf32>
    %101 = vector.extract_strided_slice %21 {offsets = [27, 0], sizes = [7, 64], strides = [1, 1]} : vector<36x64xbf16> to vector<7x64xbf16>
    %c6_78 = arith.constant 6 : index
    %c0_79 = arith.constant 0 : index
    %c0_80 = arith.constant 0 : index
    %102 = vector.load %arg8[%c6_78, %c0_79, %c0_80] : memref<9x64x64xbf16, #tpu.memory_space<vmem>>, vector<1x64x64xbf16>
    %103 = vector.shape_cast %102 : vector<1x64x64xbf16> to vector<64x64xbf16>
    %cst_81 = arith.constant dense<0.000000e+00> : vector<7x64xf32>
    %104 = tpu.matmul %101, %103, %cst_81 {dimension_numbers = #tpu.dot_dimension_numbers<[1], [0], [0], [1], [0, 0, 1, 1], [], []>} : vector<7x64xbf16>, vector<64x64xbf16>, vector<7x64xf32> -> vector<7x64xf32>
    %105 = arith.addf %100, %104 : vector<7x64xf32>
    %106 = vector.extract_strided_slice %21 {offsets = [28, 0], sizes = [7, 64], strides = [1, 1]} : vector<36x64xbf16> to vector<7x64xbf16>
    %c7_82 = arith.constant 7 : index
    %c0_83 = arith.constant 0 : index
    %c0_84 = arith.constant 0 : index
    %107 = vector.load %arg8[%c7_82, %c0_83, %c0_84] : memref<9x64x64xbf16, #tpu.memory_space<vmem>>, vector<1x64x64xbf16>
    %108 = vector.shape_cast %107 : vector<1x64x64xbf16> to vector<64x64xbf16>
    %cst_85 = arith.constant dense<0.000000e+00> : vector<7x64xf32>
    %109 = tpu.matmul %106, %108, %cst_85 {dimension_numbers = #tpu.dot_dimension_numbers<[1], [0], [0], [1], [0, 0, 1, 1], [], []>} : vector<7x64xbf16>, vector<64x64xbf16>, vector<7x64xf32> -> vector<7x64xf32>
    %110 = arith.addf %105, %109 : vector<7x64xf32>
    %111 = vector.extract_strided_slice %21 {offsets = [29, 0], sizes = [7, 64], strides = [1, 1]} : vector<36x64xbf16> to vector<7x64xbf16>
    %c8_86 = arith.constant 8 : index
    %c0_87 = arith.constant 0 : index
    %c0_88 = arith.constant 0 : index
    %112 = vector.load %arg8[%c8_86, %c0_87, %c0_88] : memref<9x64x64xbf16, #tpu.memory_space<vmem>>, vector<1x64x64xbf16>
    %113 = vector.shape_cast %112 : vector<1x64x64xbf16> to vector<64x64xbf16>
    %cst_89 = arith.constant dense<0.000000e+00> : vector<7x64xf32>
    %114 = tpu.matmul %111, %113, %cst_89 {dimension_numbers = #tpu.dot_dimension_numbers<[1], [0], [0], [1], [0, 0, 1, 1], [], []>} : vector<7x64xbf16>, vector<64x64xbf16>, vector<7x64xf32> -> vector<7x64xf32>
    %115 = arith.addf %110, %114 : vector<7x64xf32>
    %c0_90 = arith.constant 0 : index
    %c0_91 = arith.constant 0 : index
    %116 = vector.load %arg9[%c0_90, %c0_91] : memref<1x64xf32, #tpu.memory_space<vmem>>, vector<1x64xf32>
    %117 = vector.broadcast %116 : vector<1x64xf32> to vector<7x64xf32>
    %118 = arith.addf %115, %117 : vector<7x64xf32>
    %cst_92 = arith.constant 0.000000e+00 : f32
    %119 = vector.broadcast %cst_92 : f32 to vector<7x64xf32>
    %120 = arith.maximumf %118, %119 : vector<7x64xf32>
    %121 = arith.truncf %120 : vector<7x64xf32> to vector<7x64xbf16>
    %122 = vector.extract_strided_slice %71 {offsets = [0, 0], sizes = [1, 64], strides = [1, 1]} : vector<7x64xbf16> to vector<1x64xbf16>
    %c0_93 = arith.constant 0 : index
    %c0_94 = arith.constant 0 : index
    %c0_95 = arith.constant 0 : index
    %123 = vector.load %arg10[%c0_93, %c0_94, %c0_95] : memref<14x64x64xbf16, #tpu.memory_space<vmem>>, vector<1x64x64xbf16>
    %124 = vector.shape_cast %123 : vector<1x64x64xbf16> to vector<64x64xbf16>
    %cst_96 = arith.constant dense<0.000000e+00> : vector<1x64xf32>
    %125 = tpu.matmul %122, %124, %cst_96 {dimension_numbers = #tpu.dot_dimension_numbers<[1], [0], [0], [1], [0, 0, 1, 1], [], []>} : vector<1x64xbf16>, vector<64x64xbf16>, vector<1x64xf32> -> vector<1x64xf32>
    %126 = vector.extract_strided_slice %71 {offsets = [1, 0], sizes = [1, 64], strides = [1, 1]} : vector<7x64xbf16> to vector<1x64xbf16>
    %c1_97 = arith.constant 1 : index
    %c0_98 = arith.constant 0 : index
    %c0_99 = arith.constant 0 : index
    %127 = vector.load %arg10[%c1_97, %c0_98, %c0_99] : memref<14x64x64xbf16, #tpu.memory_space<vmem>>, vector<1x64x64xbf16>
    %128 = vector.shape_cast %127 : vector<1x64x64xbf16> to vector<64x64xbf16>
    %cst_100 = arith.constant dense<0.000000e+00> : vector<1x64xf32>
    %129 = tpu.matmul %126, %128, %cst_100 {dimension_numbers = #tpu.dot_dimension_numbers<[1], [0], [0], [1], [0, 0, 1, 1], [], []>} : vector<1x64xbf16>, vector<64x64xbf16>, vector<1x64xf32> -> vector<1x64xf32>
    %130 = arith.addf %125, %129 : vector<1x64xf32>
    %131 = vector.extract_strided_slice %71 {offsets = [2, 0], sizes = [1, 64], strides = [1, 1]} : vector<7x64xbf16> to vector<1x64xbf16>
    %c2_101 = arith.constant 2 : index
    %c0_102 = arith.constant 0 : index
    %c0_103 = arith.constant 0 : index
    %132 = vector.load %arg10[%c2_101, %c0_102, %c0_103] : memref<14x64x64xbf16, #tpu.memory_space<vmem>>, vector<1x64x64xbf16>
    %133 = vector.shape_cast %132 : vector<1x64x64xbf16> to vector<64x64xbf16>
    %cst_104 = arith.constant dense<0.000000e+00> : vector<1x64xf32>
    %134 = tpu.matmul %131, %133, %cst_104 {dimension_numbers = #tpu.dot_dimension_numbers<[1], [0], [0], [1], [0, 0, 1, 1], [], []>} : vector<1x64xbf16>, vector<64x64xbf16>, vector<1x64xf32> -> vector<1x64xf32>
    %135 = arith.addf %130, %134 : vector<1x64xf32>
    %136 = vector.extract_strided_slice %71 {offsets = [3, 0], sizes = [1, 64], strides = [1, 1]} : vector<7x64xbf16> to vector<1x64xbf16>
    %c3_105 = arith.constant 3 : index
    %c0_106 = arith.constant 0 : index
    %c0_107 = arith.constant 0 : index
    %137 = vector.load %arg10[%c3_105, %c0_106, %c0_107] : memref<14x64x64xbf16, #tpu.memory_space<vmem>>, vector<1x64x64xbf16>
    %138 = vector.shape_cast %137 : vector<1x64x64xbf16> to vector<64x64xbf16>
    %cst_108 = arith.constant dense<0.000000e+00> : vector<1x64xf32>
    %139 = tpu.matmul %136, %138, %cst_108 {dimension_numbers = #tpu.dot_dimension_numbers<[1], [0], [0], [1], [0, 0, 1, 1], [], []>} : vector<1x64xbf16>, vector<64x64xbf16>, vector<1x64xf32> -> vector<1x64xf32>
    %140 = arith.addf %135, %139 : vector<1x64xf32>
    %141 = vector.extract_strided_slice %71 {offsets = [4, 0], sizes = [1, 64], strides = [1, 1]} : vector<7x64xbf16> to vector<1x64xbf16>
    %c4_109 = arith.constant 4 : index
    %c0_110 = arith.constant 0 : index
    %c0_111 = arith.constant 0 : index
    %142 = vector.load %arg10[%c4_109, %c0_110, %c0_111] : memref<14x64x64xbf16, #tpu.memory_space<vmem>>, vector<1x64x64xbf16>
    %143 = vector.shape_cast %142 : vector<1x64x64xbf16> to vector<64x64xbf16>
    %cst_112 = arith.constant dense<0.000000e+00> : vector<1x64xf32>
    %144 = tpu.matmul %141, %143, %cst_112 {dimension_numbers = #tpu.dot_dimension_numbers<[1], [0], [0], [1], [0, 0, 1, 1], [], []>} : vector<1x64xbf16>, vector<64x64xbf16>, vector<1x64xf32> -> vector<1x64xf32>
    %145 = arith.addf %140, %144 : vector<1x64xf32>
    %146 = vector.extract_strided_slice %71 {offsets = [5, 0], sizes = [1, 64], strides = [1, 1]} : vector<7x64xbf16> to vector<1x64xbf16>
    %c5_113 = arith.constant 5 : index
    %c0_114 = arith.constant 0 : index
    %c0_115 = arith.constant 0 : index
    %147 = vector.load %arg10[%c5_113, %c0_114, %c0_115] : memref<14x64x64xbf16, #tpu.memory_space<vmem>>, vector<1x64x64xbf16>
    %148 = vector.shape_cast %147 : vector<1x64x64xbf16> to vector<64x64xbf16>
    %cst_116 = arith.constant dense<0.000000e+00> : vector<1x64xf32>
    %149 = tpu.matmul %146, %148, %cst_116 {dimension_numbers = #tpu.dot_dimension_numbers<[1], [0], [0], [1], [0, 0, 1, 1], [], []>} : vector<1x64xbf16>, vector<64x64xbf16>, vector<1x64xf32> -> vector<1x64xf32>
    %150 = arith.addf %145, %149 : vector<1x64xf32>
    %151 = vector.extract_strided_slice %71 {offsets = [6, 0], sizes = [1, 64], strides = [1, 1]} : vector<7x64xbf16> to vector<1x64xbf16>
    %c6_117 = arith.constant 6 : index
    %c0_118 = arith.constant 0 : index
    %c0_119 = arith.constant 0 : index
    %152 = vector.load %arg10[%c6_117, %c0_118, %c0_119] : memref<14x64x64xbf16, #tpu.memory_space<vmem>>, vector<1x64x64xbf16>
    %153 = vector.shape_cast %152 : vector<1x64x64xbf16> to vector<64x64xbf16>
    %cst_120 = arith.constant dense<0.000000e+00> : vector<1x64xf32>
    %154 = tpu.matmul %151, %153, %cst_120 {dimension_numbers = #tpu.dot_dimension_numbers<[1], [0], [0], [1], [0, 0, 1, 1], [], []>} : vector<1x64xbf16>, vector<64x64xbf16>, vector<1x64xf32> -> vector<1x64xf32>
    %155 = arith.addf %150, %154 : vector<1x64xf32>
    %156 = vector.extract_strided_slice %121 {offsets = [0, 0], sizes = [1, 64], strides = [1, 1]} : vector<7x64xbf16> to vector<1x64xbf16>
    %c7_121 = arith.constant 7 : index
    %c0_122 = arith.constant 0 : index
    %c0_123 = arith.constant 0 : index
    %157 = vector.load %arg10[%c7_121, %c0_122, %c0_123] : memref<14x64x64xbf16, #tpu.memory_space<vmem>>, vector<1x64x64xbf16>
    %158 = vector.shape_cast %157 : vector<1x64x64xbf16> to vector<64x64xbf16>
    %cst_124 = arith.constant dense<0.000000e+00> : vector<1x64xf32>
    %159 = tpu.matmul %156, %158, %cst_124 {dimension_numbers = #tpu.dot_dimension_numbers<[1], [0], [0], [1], [0, 0, 1, 1], [], []>} : vector<1x64xbf16>, vector<64x64xbf16>, vector<1x64xf32> -> vector<1x64xf32>
    %160 = arith.addf %155, %159 : vector<1x64xf32>
    %161 = vector.extract_strided_slice %121 {offsets = [1, 0], sizes = [1, 64], strides = [1, 1]} : vector<7x64xbf16> to vector<1x64xbf16>
    %c8_125 = arith.constant 8 : index
    %c0_126 = arith.constant 0 : index
    %c0_127 = arith.constant 0 : index
    %162 = vector.load %arg10[%c8_125, %c0_126, %c0_127] : memref<14x64x64xbf16, #tpu.memory_space<vmem>>, vector<1x64x64xbf16>
    %163 = vector.shape_cast %162 : vector<1x64x64xbf16> to vector<64x64xbf16>
    %cst_128 = arith.constant dense<0.000000e+00> : vector<1x64xf32>
    %164 = tpu.matmul %161, %163, %cst_128 {dimension_numbers = #tpu.dot_dimension_numbers<[1], [0], [0], [1], [0, 0, 1, 1], [], []>} : vector<1x64xbf16>, vector<64x64xbf16>, vector<1x64xf32> -> vector<1x64xf32>
    %165 = arith.addf %160, %164 : vector<1x64xf32>
    %166 = vector.extract_strided_slice %121 {offsets = [2, 0], sizes = [1, 64], strides = [1, 1]} : vector<7x64xbf16> to vector<1x64xbf16>
    %c9 = arith.constant 9 : index
    %c0_129 = arith.constant 0 : index
    %c0_130 = arith.constant 0 : index
    %167 = vector.load %arg10[%c9, %c0_129, %c0_130] : memref<14x64x64xbf16, #tpu.memory_space<vmem>>, vector<1x64x64xbf16>
    %168 = vector.shape_cast %167 : vector<1x64x64xbf16> to vector<64x64xbf16>
    %cst_131 = arith.constant dense<0.000000e+00> : vector<1x64xf32>
    %169 = tpu.matmul %166, %168, %cst_131 {dimension_numbers = #tpu.dot_dimension_numbers<[1], [0], [0], [1], [0, 0, 1, 1], [], []>} : vector<1x64xbf16>, vector<64x64xbf16>, vector<1x64xf32> -> vector<1x64xf32>
    %170 = arith.addf %165, %169 : vector<1x64xf32>
    %171 = vector.extract_strided_slice %121 {offsets = [3, 0], sizes = [1, 64], strides = [1, 1]} : vector<7x64xbf16> to vector<1x64xbf16>
    %c10 = arith.constant 10 : index
    %c0_132 = arith.constant 0 : index
    %c0_133 = arith.constant 0 : index
    %172 = vector.load %arg10[%c10, %c0_132, %c0_133] : memref<14x64x64xbf16, #tpu.memory_space<vmem>>, vector<1x64x64xbf16>
    %173 = vector.shape_cast %172 : vector<1x64x64xbf16> to vector<64x64xbf16>
    %cst_134 = arith.constant dense<0.000000e+00> : vector<1x64xf32>
    %174 = tpu.matmul %171, %173, %cst_134 {dimension_numbers = #tpu.dot_dimension_numbers<[1], [0], [0], [1], [0, 0, 1, 1], [], []>} : vector<1x64xbf16>, vector<64x64xbf16>, vector<1x64xf32> -> vector<1x64xf32>
    %175 = arith.addf %170, %174 : vector<1x64xf32>
    %176 = vector.extract_strided_slice %121 {offsets = [4, 0], sizes = [1, 64], strides = [1, 1]} : vector<7x64xbf16> to vector<1x64xbf16>
    %c11 = arith.constant 11 : index
    %c0_135 = arith.constant 0 : index
    %c0_136 = arith.constant 0 : index
    %177 = vector.load %arg10[%c11, %c0_135, %c0_136] : memref<14x64x64xbf16, #tpu.memory_space<vmem>>, vector<1x64x64xbf16>
    %178 = vector.shape_cast %177 : vector<1x64x64xbf16> to vector<64x64xbf16>
    %cst_137 = arith.constant dense<0.000000e+00> : vector<1x64xf32>
    %179 = tpu.matmul %176, %178, %cst_137 {dimension_numbers = #tpu.dot_dimension_numbers<[1], [0], [0], [1], [0, 0, 1, 1], [], []>} : vector<1x64xbf16>, vector<64x64xbf16>, vector<1x64xf32> -> vector<1x64xf32>
    %180 = arith.addf %175, %179 : vector<1x64xf32>
    %181 = vector.extract_strided_slice %121 {offsets = [5, 0], sizes = [1, 64], strides = [1, 1]} : vector<7x64xbf16> to vector<1x64xbf16>
    %c12 = arith.constant 12 : index
    %c0_138 = arith.constant 0 : index
    %c0_139 = arith.constant 0 : index
    %182 = vector.load %arg10[%c12, %c0_138, %c0_139] : memref<14x64x64xbf16, #tpu.memory_space<vmem>>, vector<1x64x64xbf16>
    %183 = vector.shape_cast %182 : vector<1x64x64xbf16> to vector<64x64xbf16>
    %cst_140 = arith.constant dense<0.000000e+00> : vector<1x64xf32>
    %184 = tpu.matmul %181, %183, %cst_140 {dimension_numbers = #tpu.dot_dimension_numbers<[1], [0], [0], [1], [0, 0, 1, 1], [], []>} : vector<1x64xbf16>, vector<64x64xbf16>, vector<1x64xf32> -> vector<1x64xf32>
    %185 = arith.addf %180, %184 : vector<1x64xf32>
    %186 = vector.extract_strided_slice %121 {offsets = [6, 0], sizes = [1, 64], strides = [1, 1]} : vector<7x64xbf16> to vector<1x64xbf16>
    %c13 = arith.constant 13 : index
    %c0_141 = arith.constant 0 : index
    %c0_142 = arith.constant 0 : index
    %187 = vector.load %arg10[%c13, %c0_141, %c0_142] : memref<14x64x64xbf16, #tpu.memory_space<vmem>>, vector<1x64x64xbf16>
    %188 = vector.shape_cast %187 : vector<1x64x64xbf16> to vector<64x64xbf16>
    %cst_143 = arith.constant dense<0.000000e+00> : vector<1x64xf32>
    %189 = tpu.matmul %186, %188, %cst_143 {dimension_numbers = #tpu.dot_dimension_numbers<[1], [0], [0], [1], [0, 0, 1, 1], [], []>} : vector<1x64xbf16>, vector<64x64xbf16>, vector<1x64xf32> -> vector<1x64xf32>
    %190 = arith.addf %185, %189 : vector<1x64xf32>
    %c0_144 = arith.constant 0 : index
    %c0_145 = arith.constant 0 : index
    %191 = vector.load %arg11[%c0_144, %c0_145] : memref<1x64xf32, #tpu.memory_space<vmem>>, vector<1x64xf32>
    %192 = arith.addf %190, %191 : vector<1x64xf32>
    %193 = math.tanh %192 : vector<1x64xf32>
    %194 = arith.truncf %193 : vector<1x64xf32> to vector<1x64xbf16>
    %c0_146 = arith.constant 0 : index
    %c0_147 = arith.constant 0 : index
    %195 = vector.load %arg12[%c0_146, %c0_147] : memref<64x22xbf16, #tpu.memory_space<vmem>>, vector<64x22xbf16>
    %cst_148 = arith.constant dense<0.000000e+00> : vector<1x22xf32>
    %196 = tpu.matmul %194, %195, %cst_148 {dimension_numbers = #tpu.dot_dimension_numbers<[1], [0], [0], [1], [0, 0, 1, 1], [], []>} : vector<1x64xbf16>, vector<64x22xbf16>, vector<1x22xf32> -> vector<1x22xf32>
    %c0_149 = arith.constant 0 : index
    %c0_150 = arith.constant 0 : index
    %197 = vector.load %arg13[%c0_149, %c0_150] : memref<1x22xf32, #tpu.memory_space<vmem>>, vector<1x22xf32>
    %198 = arith.addf %196, %197 : vector<1x22xf32>
    %199 = math.tanh %198 : vector<1x22xf32>
    %c0_151 = arith.constant 0 : index
    %c0_152 = arith.constant 0 : index
    %c0_153 = arith.constant 0 : index
    %200 = vector.load %arg2[%c0_151, %c0_152, %c0_153] : memref<1x1x22xf32, #tpu.memory_space<vmem>>, vector<1x1x22xf32>
    %201 = vector.shape_cast %200 : vector<1x1x22xf32> to vector<1x22xf32>
    %c0_154 = arith.constant 0 : index
    %c0_155 = arith.constant 0 : index
    %c0_156 = arith.constant 0 : index
    %202 = vector.load %arg3[%c0_154, %c0_155, %c0_156] : memref<1x1x20xf32, #tpu.memory_space<vmem>>, vector<1x1x20xf32>
    %203 = vector.shape_cast %202 : vector<1x1x20xf32> to vector<1x20xf32>
    %c0_157 = arith.constant 0 : index
    %c0_158 = arith.constant 0 : index
    %c0_159 = arith.constant 0 : index
    %204 = vector.load %arg4[%c0_157, %c0_158, %c0_159] : memref<1x1x64xf32, #tpu.memory_space<vmem>>, vector<1x1x64xf32>
    %205 = vector.shape_cast %204 : vector<1x1x64xf32> to vector<1x64xf32>
    %c0_160 = arith.constant 0 : index
    %c0_161 = arith.constant 0 : index
    %c0_162 = arith.constant 0 : index
    %206 = vector.load %arg5[%c0_160, %c0_161, %c0_162] : memref<1x1x64xf32, #tpu.memory_space<vmem>>, vector<1x1x64xf32>
    %207 = vector.shape_cast %206 : vector<1x1x64xf32> to vector<1x64xf32>
    %208 = arith.truncf %201 : vector<1x22xf32> to vector<1x22xbf16>
    %c0_163 = arith.constant 0 : index
    %c0_164 = arith.constant 0 : index
    %209 = vector.load %arg14[%c0_163, %c0_164] : memref<22x512xbf16, #tpu.memory_space<vmem>>, vector<22x512xbf16>
    %cst_165 = arith.constant dense<0.000000e+00> : vector<1x512xf32>
    %210 = tpu.matmul %208, %209, %cst_165 {dimension_numbers = #tpu.dot_dimension_numbers<[1], [0], [0], [1], [0, 0, 1, 1], [], []>} : vector<1x22xbf16>, vector<22x512xbf16>, vector<1x512xf32> -> vector<1x512xf32>
    %211 = arith.truncf %199 : vector<1x22xf32> to vector<1x22xbf16>
    %c0_166 = arith.constant 0 : index
    %c0_167 = arith.constant 0 : index
    %212 = vector.load %arg15[%c0_166, %c0_167] : memref<22x512xbf16, #tpu.memory_space<vmem>>, vector<22x512xbf16>
    %cst_168 = arith.constant dense<0.000000e+00> : vector<1x512xf32>
    %213 = tpu.matmul %211, %212, %cst_168 {dimension_numbers = #tpu.dot_dimension_numbers<[1], [0], [0], [1], [0, 0, 1, 1], [], []>} : vector<1x22xbf16>, vector<22x512xbf16>, vector<1x512xf32> -> vector<1x512xf32>
    %214 = arith.addf %210, %213 : vector<1x512xf32>
    %215 = arith.truncf %203 : vector<1x20xf32> to vector<1x20xbf16>
    %c0_169 = arith.constant 0 : index
    %c0_170 = arith.constant 0 : index
    %216 = vector.load %arg16[%c0_169, %c0_170] : memref<20x512xbf16, #tpu.memory_space<vmem>>, vector<20x512xbf16>
    %cst_171 = arith.constant dense<0.000000e+00> : vector<1x512xf32>
    %217 = tpu.matmul %215, %216, %cst_171 {dimension_numbers = #tpu.dot_dimension_numbers<[1], [0], [0], [1], [0, 0, 1, 1], [], []>} : vector<1x20xbf16>, vector<20x512xbf16>, vector<1x512xf32> -> vector<1x512xf32>
    %218 = arith.addf %214, %217 : vector<1x512xf32>
    %219 = arith.truncf %205 : vector<1x64xf32> to vector<1x64xbf16>
    %c0_172 = arith.constant 0 : index
    %c0_173 = arith.constant 0 : index
    %220 = vector.load %arg17[%c0_172, %c0_173] : memref<64x512xbf16, #tpu.memory_space<vmem>>, vector<64x512xbf16>
    %cst_174 = arith.constant dense<0.000000e+00> : vector<1x512xf32>
    %221 = tpu.matmul %219, %220, %cst_174 {dimension_numbers = #tpu.dot_dimension_numbers<[1], [0], [0], [1], [0, 0, 1, 1], [], []>} : vector<1x64xbf16>, vector<64x512xbf16>, vector<1x512xf32> -> vector<1x512xf32>
    %222 = arith.addf %218, %221 : vector<1x512xf32>
    %c0_175 = arith.constant 0 : index
    %c0_176 = arith.constant 0 : index
    %223 = vector.load %arg18[%c0_175, %c0_176] : memref<1x512xf32, #tpu.memory_space<vmem>>, vector<1x512xf32>
    %224 = arith.addf %222, %223 : vector<1x512xf32>
    %225 = vector.extract_strided_slice %224 {offsets = [0, 0], sizes = [1, 64], strides = [1, 1]} : vector<1x512xf32> to vector<1x64xf32>
    %226 = arith.negf %225 : vector<1x64xf32>
    %227 = math.exp %226 : vector<1x64xf32>
    %cst_177 = arith.constant 1.000000e+00 : f32
    %228 = vector.broadcast %cst_177 : f32 to vector<1x64xf32>
    %229 = arith.addf %228, %227 : vector<1x64xf32>
    %230 = arith.divf %228, %229 : vector<1x64xf32>
    %231 = vector.extract_strided_slice %224 {offsets = [0, 128], sizes = [1, 64], strides = [1, 1]} : vector<1x512xf32> to vector<1x64xf32>
    %232 = arith.negf %231 : vector<1x64xf32>
    %233 = math.exp %232 : vector<1x64xf32>
    %cst_178 = arith.constant 1.000000e+00 : f32
    %234 = vector.broadcast %cst_178 : f32 to vector<1x64xf32>
    %235 = arith.addf %234, %233 : vector<1x64xf32>
    %236 = arith.divf %234, %235 : vector<1x64xf32>
    %237 = vector.extract_strided_slice %224 {offsets = [0, 256], sizes = [1, 64], strides = [1, 1]} : vector<1x512xf32> to vector<1x64xf32>
    %238 = math.tanh %237 : vector<1x64xf32>
    %239 = vector.extract_strided_slice %224 {offsets = [0, 384], sizes = [1, 64], strides = [1, 1]} : vector<1x512xf32> to vector<1x64xf32>
    %240 = arith.negf %239 : vector<1x64xf32>
    %241 = math.exp %240 : vector<1x64xf32>
    %cst_179 = arith.constant 1.000000e+00 : f32
    %242 = vector.broadcast %cst_179 : f32 to vector<1x64xf32>
    %243 = arith.addf %242, %241 : vector<1x64xf32>
    %244 = arith.divf %242, %243 : vector<1x64xf32>
    %245 = arith.mulf %236, %207 : vector<1x64xf32>
    %246 = arith.mulf %230, %238 : vector<1x64xf32>
    %247 = arith.addf %245, %246 : vector<1x64xf32>
    %248 = math.tanh %247 : vector<1x64xf32>
    %249 = arith.mulf %244, %248 : vector<1x64xf32>
    %250 = arith.truncf %249 : vector<1x64xf32> to vector<1x64xbf16>
    %c0_180 = arith.constant 0 : index
    %c0_181 = arith.constant 0 : index
    %251 = vector.load %arg19[%c0_180, %c0_181] : memref<64x16xbf16, #tpu.memory_space<vmem>>, vector<64x16xbf16>
    %cst_182 = arith.constant dense<0.000000e+00> : vector<1x16xf32>
    %252 = tpu.matmul %250, %251, %cst_182 {dimension_numbers = #tpu.dot_dimension_numbers<[1], [0], [0], [1], [0, 0, 1, 1], [], []>} : vector<1x64xbf16>, vector<64x16xbf16>, vector<1x16xf32> -> vector<1x16xf32>
    %c0_183 = arith.constant 0 : index
    %c0_184 = arith.constant 0 : index
    %253 = vector.load %arg20[%c0_183, %c0_184] : memref<1x16xf32, #tpu.memory_space<vmem>>, vector<1x16xf32>
    %254 = arith.addf %252, %253 : vector<1x16xf32>
    %cst_185 = arith.constant 0.000000e+00 : f32
    %255 = vector.broadcast %cst_185 : f32 to vector<1x16xf32>
    %256 = arith.maximumf %254, %255 : vector<1x16xf32>
    %257 = arith.truncf %256 : vector<1x16xf32> to vector<1x16xbf16>
    %c0_186 = arith.constant 0 : index
    %c0_187 = arith.constant 0 : index
    %258 = vector.load %arg21[%c0_186, %c0_187] : memref<16x1xbf16, #tpu.memory_space<vmem>>, vector<16x1xbf16>
    %cst_188 = arith.constant dense<0.000000e+00> : vector<1x1xf32>
    %259 = tpu.matmul %257, %258, %cst_188 {dimension_numbers = #tpu.dot_dimension_numbers<[1], [0], [0], [1], [0, 0, 1, 1], [], []>} : vector<1x16xbf16>, vector<16x1xbf16>, vector<1x1xf32> -> vector<1x1xf32>
    %c0_189 = arith.constant 0 : index
    %c0_190 = arith.constant 0 : index
    %260 = vector.load %arg22[%c0_189, %c0_190] : memref<1x1xf32, #tpu.memory_space<vmem>>, vector<1x1xf32>
    %261 = arith.addf %259, %260 : vector<1x1xf32>
    %c0_191 = arith.constant 0 : index
    %c0_192 = arith.constant 0 : index
    %c0_193 = arith.constant 0 : index
    %262 = vector.load %arg23[%c0_191, %c0_192, %c0_193] : memref<1x1x1xf32, #tpu.memory_space<vmem>>, vector<1x1x1xf32>
    %263 = vector.shape_cast %262 : vector<1x1x1xf32> to vector<1x1xf32>
    %264 = vector.shape_cast %261 : vector<1x1xf32> to vector<1x1x1xf32>
    tpu.vector_store %arg23[%c0_191, %c0_192, %c0_193], %264 {strides = array<i32>} : memref<1x1x1xf32, #tpu.memory_space<vmem>>, vector<1x1x1xf32>,
    return
  }
  func.func @transform_0(%arg0: i32) -> (i32, i32, i32, i32) {
    %c0_i32 = arith.constant 0 : i32
    %c0_i32_0 = arith.constant 0 : i32
    %c0_i32_1 = arith.constant 0 : i32
    %c0_i32_2 = arith.constant 0 : i32
    return %arg0, %c0_i32, %c0_i32_0, %c0_i32_1 : i32, i32, i32, i32
  }
  func.func @transform_1(%arg0: i32) -> (i32, i32, i32) {
    %c0_i32 = arith.constant 0 : i32
    %c0_i32_0 = arith.constant 0 : i32
    %c0_i32_1 = arith.constant 0 : i32
    return %arg0, %c0_i32, %c0_i32_0 : i32, i32, i32
  }
  func.func @transform_2(%arg0: i32) -> (i32, i32, i32) {
    %c0_i32 = arith.constant 0 : i32
    %c0_i32_0 = arith.constant 0 : i32
    %c0_i32_1 = arith.constant 0 : i32
    return %arg0, %c0_i32, %c0_i32_0 : i32, i32, i32
  }
  func.func @transform_3(%arg0: i32) -> (i32, i32, i32) {
    %c0_i32 = arith.constant 0 : i32
    %c0_i32_0 = arith.constant 0 : i32
    %c0_i32_1 = arith.constant 0 : i32
    return %arg0, %c0_i32, %c0_i32_0 : i32, i32, i32
  }
  func.func @transform_4(%arg0: i32) -> (i32, i32, i32) {
    %c0_i32 = arith.constant 0 : i32
    %c0_i32_0 = arith.constant 0 : i32
    %c0_i32_1 = arith.constant 0 : i32
    return %arg0, %c0_i32, %c0_i32_0 : i32, i32, i32
  }
  func.func @transform_5(%arg0: i32) -> (i32, i32) {
    %c0_i32 = arith.constant 0 : i32
    %c0_i32_0 = arith.constant 0 : i32
    %c0_i32_1 = arith.constant 0 : i32
    return %c0_i32, %c0_i32_0 : i32, i32
  }
  func.func @transform_6(%arg0: i32) -> (i32, i32) {
    %c0_i32 = arith.constant 0 : i32
    %c0_i32_0 = arith.constant 0 : i32
    %c0_i32_1 = arith.constant 0 : i32
    return %c0_i32, %c0_i32_0 : i32, i32
  }
  func.func @transform_7(%arg0: i32) -> (i32, i32, i32) {
    %c0_i32 = arith.constant 0 : i32
    %c0_i32_0 = arith.constant 0 : i32
    %c0_i32_1 = arith.constant 0 : i32
    %c0_i32_2 = arith.constant 0 : i32
    return %c0_i32, %c0_i32_0, %c0_i32_1 : i32, i32, i32
  }
  func.func @transform_8(%arg0: i32) -> (i32, i32) {
    %c0_i32 = arith.constant 0 : i32
    %c0_i32_0 = arith.constant 0 : i32
    %c0_i32_1 = arith.constant 0 : i32
    return %c0_i32, %c0_i32_0 : i32, i32
  }
  func.func @transform_9(%arg0: i32) -> (i32, i32, i32) {
    %c0_i32 = arith.constant 0 : i32
    %c0_i32_0 = arith.constant 0 : i32
    %c0_i32_1 = arith.constant 0 : i32
    %c0_i32_2 = arith.constant 0 : i32
    return %c0_i32, %c0_i32_0, %c0_i32_1 : i32, i32, i32
  }
  func.func @transform_10(%arg0: i32) -> (i32, i32) {
    %c0_i32 = arith.constant 0 : i32
    %c0_i32_0 = arith.constant 0 : i32
    %c0_i32_1 = arith.constant 0 : i32
    return %c0_i32, %c0_i32_0 : i32, i32
  }
  func.func @transform_11(%arg0: i32) -> (i32, i32) {
    %c0_i32 = arith.constant 0 : i32
    %c0_i32_0 = arith.constant 0 : i32
    %c0_i32_1 = arith.constant 0 : i32
    return %c0_i32, %c0_i32_0 : i32, i32
  }
  func.func @transform_12(%arg0: i32) -> (i32, i32) {
    %c0_i32 = arith.constant 0 : i32
    %c0_i32_0 = arith.constant 0 : i32
    %c0_i32_1 = arith.constant 0 : i32
    return %c0_i32, %c0_i32_0 : i32, i32
  }
  func.func @transform_13(%arg0: i32) -> (i32, i32) {
    %c0_i32 = arith.constant 0 : i32
    %c0_i32_0 = arith.constant 0 : i32
    %c0_i32_1 = arith.constant 0 : i32
    return %c0_i32, %c0_i32_0 : i32, i32
  }
  func.func @transform_14(%arg0: i32) -> (i32, i32) {
    %c0_i32 = arith.constant 0 : i32
    %c0_i32_0 = arith.constant 0 : i32
    %c0_i32_1 = arith.constant 0 : i32
    return %c0_i32, %c0_i32_0 : i32, i32
  }
  func.func @transform_15(%arg0: i32) -> (i32, i32) {
    %c0_i32 = arith.constant 0 : i32
    %c0_i32_0 = arith.constant 0 : i32
    %c0_i32_1 = arith.constant 0 : i32
    return %c0_i32, %c0_i32_0 : i32, i32
  }
  func.func @transform_16(%arg0: i32) -> (i32, i32) {
    %c0_i32 = arith.constant 0 : i32
    %c0_i32_0 = arith.constant 0 : i32
    %c0_i32_1 = arith.constant 0 : i32
    return %c0_i32, %c0_i32_0 : i32, i32
  }
  func.func @transform_17(%arg0: i32) -> (i32, i32) {
    %c0_i32 = arith.constant 0 : i32
    %c0_i32_0 = arith.constant 0 : i32
    %c0_i32_1 = arith.constant 0 : i32
    return %c0_i32, %c0_i32_0 : i32, i32
  }
  func.func @transform_18(%arg0: i32) -> (i32, i32) {
    %c0_i32 = arith.constant 0 : i32
    %c0_i32_0 = arith.constant 0 : i32
    %c0_i32_1 = arith.constant 0 : i32
    return %c0_i32, %c0_i32_0 : i32, i32
  }
  func.func @transform_19(%arg0: i32) -> (i32, i32) {
    %c0_i32 = arith.constant 0 : i32
    %c0_i32_0 = arith.constant 0 : i32
    %c0_i32_1 = arith.constant 0 : i32
    return %c0_i32, %c0_i32_0 : i32, i32
  }
  func.func @transform_20(%arg0: i32) -> (i32, i32) {
    %c0_i32 = arith.constant 0 : i32
    %c0_i32_0 = arith.constant 0 : i32
    %c0_i32_1 = arith.constant 0 : i32
    return %c0_i32, %c0_i32_0 : i32, i32
  }
  func.func @transform_21(%arg0: i32) -> (i32, i32) {
    %c0_i32 = arith.constant 0 : i32
    %c0_i32_0 = arith.constant 0 : i32
    %c0_i32_1 = arith.constant 0 : i32
    return %c0_i32, %c0_i32_0 : i32, i32
  }
  func.func @transform_22(%arg0: i32) -> (i32, i32, i32) {
    %c0_i32 = arith.constant 0 : i32
    %c0_i32_0 = arith.constant 0 : i32
    %c0_i32_1 = arith.constant 0 : i32
    return %arg0, %c0_i32, %c0_i32_0 : i32, i32, i32
  }
}

</mosaic_0001>

<bundles_post_ra>
// kernel: value_net_forward.2
= control target key start
LH: loop header
LB: loop body
LE: loop exit
PB: predicated region body
PF: predicated region fallthrough
CT: control target
= control target key end

     0   :  { %s8516_s12 = smov 0   ;;  %s10850_s0 = inlined_call_operand.vmem [shape: bf16[2,4,798,192], index: 0, kind: input, shape index: {}]   ;;  %s10851_s1 = inlined_call_operand.vmem [shape: bf16[192,32], index: 1, kind: input, shape index: {}]   ;;  %s10852_s2 = inlined_call_operand.vmem [shape: f32[1,32], index: 2, kind: input, shape index: {}]   ;;  %s10853_s3 = inlined_call_operand.vmem [shape: bf16[2,798,32], index: 3, kind: output, shape index: {}]  }
   0x1 LB: > { %s5905_s13 = sadd.s32 4294967295, %s8494_s12   ;;  %p5909_p0 = scmp.ge.s32.totalorder %s8494_s12, 1  ;;  %s8494_s12 = sphi %s8516_s12, %s13_s12  }
   0x2   : > { %p137_p1 = scmp.lt.s32.totalorder %s8494_s12, 3 }
   0x4   : > { %p138_p2 = pnand %p5909_p0, %p137_p1 }
   0x6   : > { %141 = sbr.rel (%p138_p2) target bundleno = 1780 (0x6f4), region = 32 }
   0xb   : > { %v8527_v0 = vld [vmem:[%s10851_s1 + $0x38] sm:$0xff]  ;;  %p161_p3 = scmp.lt.s32.totalorder %s5905_s13, 1  ;;  %v8539_v2 = vld [vmem:[%s10851_s1 + $0x30] sm:$0xff]  ;;  %v8556_v4 = vld [vmem:[%s10851_s1 + $0x28] sm:$0xff]  ;;  %vm818_vm0 = vcmask 523264   ;;  %vm5748_vm1 = vcmask 257024  }
   0xc   : > { %v8532_v1 = vld [vmem:[%s10851_s1 + $0x58] sm:$0xff]  ;;  %969 = vmatpush.bf16.msra.mxu0 %v8527_v0  ;;  %2188 = vmatpush.bf16.msra.mxu2 %v8527_v0  ;;  %v8547_v3 = vld [vmem:[%s10851_s1 + $0x50] sm:$0xff]  ;;  %v8562_v5 = vld [vmem:[%s10851_s1 + $0x48] sm:$0xff]  ;;  %vm5848_vm2 = vcmask 256000  }
   0xd   : > { %s11444_s13 = smov (!%p161_p3, %s5905_s13), 1  ;;  %2451 = vmatpush.bf16.msra.mxu3 %v8532_v1  ;;  %1232 = vmatpush.bf16.msra.mxu1 %v8532_v1  ;;  %v8575_v6 = vld [vmem:[%s10851_s1 + $0x20] sm:$0xff]  ;;  %v8593_v13 = vld [vmem:[%s10851_s1 + $0x18] sm:$0xff]  ;;  %v8064_v15 = vld [vmem:[%s10851_s1 + $0x10] sm:$0xff] }
   0xe   : > { %s8474_s22 = smul.u32 3200, %s11444_s13  ;;  %v8581_v7 = vld [vmem:[%s10851_s1 + $0x40] sm:$0xff]  ;;  %v8063_v16 = vld [vmem:[%s10851_s1 + $0x8] sm:$0xff] }
   0xf   : > { %v8062_v17 = vld [vmem:[%s10851_s1] sm:$0xff]  ;;  %s8475_s19 = smul.u32 400, %s11444_s13 }
  0x10   : > { %970 = vmatpush.bf16.msra.mxu0 %v8539_v2  ;;  %2189 = vmatpush.bf16.msra.mxu2 %v8539_v2  ;;  %s8568_s29 = scalar_lea.vmem %s10850_s0, %s8474_s22 }
  0x11   : > { %2452 = vmatpush.bf16.msra.mxu3 %v8547_v3  ;;  %1233 = vmatpush.bf16.msra.mxu1 %v8547_v3  ;;  %v8174_v8 = vld [vmem:[%s8568_s29 + $0x324] sm:$0xf]  ;;  %v6514_v9 = vld [vmem:[%s8568_s29 + $0x328] sm:$0xf0]  ;;  %v5914_v18 = vld [vmem:[%s8568_s29] sm:$0xf]  ;;  %s9838_s22 = scalar_lea.vmem %s10853_s3, %s8475_s19 }
  0x12   : > { %v8074_v10 = vld [vmem:[%s8568_s29 + $0x4] sm:$0xf]  ;;  %v5916_v11 = vld [vmem:[%s8568_s29 + $0x8] sm:$0xf0]  ;;  %v6517_v12 = vor.u32 %v8174_v8, %v6514_v9  ;;  %v8075_v19 = vld [vmem:[%s8568_s29 + $0x4] sm:$0xf0] }
  0x13   : > { %v5919_v14 = vor.u32 %v8074_v10, %v5916_v11  ;;  %v6512_v20 = vld [vmem:[%s8568_s29 + $0x320] sm:$0xf]  ;;  %v8175_v21 = vld [vmem:[%s8568_s29 + $0x324] sm:$0xf0]  ;;  %v8176_v22 = vld [vmem:[%s8568_s29 + $0x334] sm:$0xf]  ;;  %v5915_v26 = vor.u32 %v8075_v19, %v5914_v18 }
  0x14   : > { %971 = vmatpush.bf16.msra.mxu0 %v8556_v4  ;;  %2190 = vmatpush.bf16.msra.mxu2 %v8556_v4  ;;  %v6522_v23 = vld [vmem:[%s8568_s29 + $0x338] sm:$0xf0]  ;;  %v8076_v24 = vld [vmem:[%s8568_s29 + $0x14] sm:$0xf]  ;;  %v6513_v27 = vor.u32 %v8175_v21, %v6512_v20  ;;  %v5922_v30 = vld [vmem:[%s8568_s29 + $0x10] sm:$0xf] }
  0x15   : > { %2453 = vmatpush.bf16.msra.mxu3 %v8562_v5  ;;  %1234 = vmatpush.bf16.msra.mxu1 %v8562_v5  ;;  %v5924_v25 = vld [vmem:[%s8568_s29 + $0x18] sm:$0xf0]  ;;  %v6525_v28 = vor.u32 %v8176_v22, %v6522_v23  ;;  %v8077_v31 = vld [vmem:[%s8568_s29 + $0x14] sm:$0xf0]  ;;  %v6520_v32 = vld [vmem:[%s8568_s29 + $0x330] sm:$0xf] }
  0x16   : > { %v5927_v29 = vor.u32 %v8076_v24, %v5924_v25  ;;  %v8177_v33 = vld [vmem:[%s8568_s29 + $0x334] sm:$0xf0]  ;;  %v8178_v34 = vld [vmem:[%s8568_s29 + $0x344] sm:$0xf]  ;;  %v6530_v35 = vld [vmem:[%s8568_s29 + $0x348] sm:$0xf0]  ;;  %v5923_v38 = vor.u32 %v8077_v31, %v5922_v30 }
  0x17   : > { %v8078_v36 = vld [vmem:[%s8568_s29 + $0x24] sm:$0xf]  ;;  %v5932_v37 = vld [vmem:[%s8568_s29 + $0x28] sm:$0xf0]  ;;  %v6521_v39 = vor.u32 %v8177_v33, %v6520_v32  ;;  %v6533_v40 = vor.u32 %v8178_v34, %v6530_v35  ;;  %v5930_v42 = vld [vmem:[%s8568_s29 + $0x20] sm:$0xf] }
  0x18   : > { %972 = vmatpush.bf16.msra.mxu0 %v8575_v6  ;;  %2191 = vmatpush.bf16.msra.mxu2 %v8575_v6  ;;  %v5935_v41 = vor.u32 %v8078_v36, %v5932_v37  ;;  %v8079_v43 = vld [vmem:[%s8568_s29 + $0x24] sm:$0xf0]  ;;  %v6528_v44 = vld [vmem:[%s8568_s29 + $0x340] sm:$0xf]  ;;  %v8180_v46 = vld [vmem:[%s8568_s29 + $0x354] sm:$0xf] }
  0x19   : > { %2454 = vmatpush.bf16.msra.mxu3 %v8581_v7  ;;  %1235 = vmatpush.bf16.msra.mxu1 %v8581_v7  ;;  %v8179_v45 = vld [vmem:[%s8568_s29 + $0x344] sm:$0xf0]  ;;  %v6538_v47 = vld [vmem:[%s8568_s29 + $0x358] sm:$0xf0]  ;;  %v8080_v48 = vld [vmem:[%s8568_s29 + $0x34] sm:$0xf]  ;;  %v5931_v50 = vor.u32 %v8079_v43, %v5930_v42 }
  0x1a   : > { %v5940_v49 = vld [vmem:[%s8568_s29 + $0x38] sm:$0xf0]  ;;  %v6529_v51 = vor.u32 %v8179_v45, %v6528_v44  ;;  %v6541_v52 = vor.u32 %v8180_v46, %v6538_v47  ;;  %v5938_v54 = vld [vmem:[%s8568_s29 + $0x30] sm:$0xf]  ;;  %v8081_v55 = vld [vmem:[%s8568_s29 + $0x34] sm:$0xf0] }
  0x1b   : > { %v5943_v53 = vor.u32 %v8080_v48, %v5940_v49  ;;  %v6536_v56 = vld [vmem:[%s8568_s29 + $0x350] sm:$0xf]  ;;  %v8181_v57 = vld [vmem:[%s8568_s29 + $0x354] sm:$0xf0]  ;;  %v8182_v58 = vld [vmem:[%s8568_s29 + $0x364] sm:$0xf]  ;;  %v5939_v62 = vor.u32 %v8081_v55, %v5938_v54 }
  0x1c   : > { %6910 = vmatmul.msk.bf16.vlgmr.msra.gmra.mxu3 %vm818_vm0, %v6517_v12  ;;  %973 = vmatpush.bf16.msra.mxu0 %v8593_v13  ;;  %v6546_v59 = vld [vmem:[%s8568_s29 + $0x368] sm:$0xf0]  ;;  %v8082_v60 = vld [vmem:[%s8568_s29 + $0x44] sm:$0xf]  ;;  %v6537_v63 = vor.u32 %v8181_v57, %v6536_v56  ;;  %v8084_v8 = vld [vmem:[%s8568_s29 + $0x54] sm:$0xf] }
  0x1d   : > { %3770 = vmatpush.bf16.msrb.mxu3 %v8532_v1  ;;  %3507 = vmatpush.bf16.msrb.mxu1 %v8527_v0  ;;  %v5948_v61 = vld [vmem:[%s8568_s29 + $0x48] sm:$0xf0]  ;;  %v5956_v9 = vld [vmem:[%s8568_s29 + $0x58] sm:$0xf0]  ;;  %v8186_v18 = vld [vmem:[%s8568_s29 + $0x384] sm:$0xf] }
  0x1e   : > { %2192 = vmatpush.bf16.msra.mxu2 %v8593_v13  ;;  %6360 = vmatmul.msk.bf16.vlgmr.msra.gmra.mxu1 %vm818_vm0, %v5919_v14  ;;  %v5954_v14 = vld [vmem:[%s8568_s29 + $0x50] sm:$0xf]  ;;  %v6562_v19 = vld [vmem:[%s8568_s29 + $0x388] sm:$0xf0]  ;;  %v8086_v20 = vld [vmem:[%s8568_s29 + $0x64] sm:$0xf] }
  0x1f   : > { %v5964_v21 = vld [vmem:[%s8568_s29 + $0x68] sm:$0xf0]  ;;  %v6565_v24 = vor.u32 %v8186_v18, %v6562_v19  ;;  %v8188_v30 = vld [vmem:[%s8568_s29 + $0x394] sm:$0xf]  ;;  %v6570_v31 = vld [vmem:[%s8568_s29 + $0x398] sm:$0xf0] }
  0x20   : > { %974 = vmatpush.bf16.msra.mxu0 %v8064_v15  ;;  %v5967_v25 = vor.u32 %v8086_v20, %v5964_v21  ;;  %v8088_v32 = vld [vmem:[%s8568_s29 + $0x74] sm:$0xf]  ;;  %v5972_v33 = vld [vmem:[%s8568_s29 + $0x78] sm:$0xf0]  ;;  %v6573_v36 = vor.u32 %v8188_v30, %v6570_v31  ;;  %v8190_v42 = vld [vmem:[%s8568_s29 + $0x3a4] sm:$0xf] }
  0x21   : > { %3508 = vmatpush.bf16.msrb.mxu1 %v8539_v2  ;;  %3771 = vmatpush.bf16.msrb.mxu3 %v8547_v3  ;;  %v5975_v37 = vor.u32 %v8088_v32, %v5972_v33  ;;  %v6578_v43 = vld [vmem:[%s8568_s29 + $0x3a8] sm:$0xf0]  ;;  %v8090_v44 = vld [vmem:[%s8568_s29 + $0x84] sm:$0xf]  ;;  %v8091_v54 = vld [vmem:[%s8568_s29 + $0x84] sm:$0xf0] }
  0x22   : > { %2193 = vmatpush.bf16.msra.mxu2 %v8064_v15  ;;  %v5980_v45 = vld [vmem:[%s8568_s29 + $0x88] sm:$0xf0]  ;;  %v6581_v48 = vor.u32 %v8190_v42, %v6578_v43  ;;  %v6576_v55 = vld [vmem:[%s8568_s29 + $0x3a0] sm:$0xf]  ;;  %v8191_v56 = vld [vmem:[%s8568_s29 + $0x3a4] sm:$0xf0] }
  0x23   : > { %v5983_v49 = vor.u32 %v8090_v44, %v5980_v45  ;;  %v8192_v57 = vld [vmem:[%s8568_s29 + $0x3b4] sm:$0xf]  ;;  %v8094_v18 = vld [vmem:[%s8568_s29 + $0xa4] sm:$0xf]  ;;  %v5996_v19 = vld [vmem:[%s8568_s29 + $0xa8] sm:$0xf0] }
  0x24   : > { %975 = vmatpush.bf16.msra.mxu0 %v8063_v16  ;;  %v8196_v42 = vld [vmem:[%s8568_s29 + $0x3d4] sm:$0xf]  ;;  %v6602_v43 = vld [vmem:[%s8568_s29 + $0x3d8] sm:$0xf0] }
  0x25   : > { %3509 = vmatpush.bf16.msrb.mxu1 %v8556_v4  ;;  %3772 = vmatpush.bf16.msrb.mxu3 %v8562_v5  ;;  %v8096_v44 = vld [vmem:[%s8568_s29 + $0xb4] sm:$0xf]  ;;  %v6004_v45 = vld [vmem:[%s8568_s29 + $0xb8] sm:$0xf0] }
  0x26   : > { %2194 = vmatpush.bf16.msra.mxu2 %v8063_v16 }
  0x28   : > { %976 = vmatpush.bf16.msra.mxu0 %v8062_v17 }
  0x29   : > { %3510 = vmatpush.bf16.msrb.mxu1 %v8575_v6  ;;  %3773 = vmatpush.bf16.msrb.mxu3 %v8581_v7 }
  0x2a   : > { %2195 = vmatpush.bf16.msra.mxu2 %v8062_v17 }
  0x2b   : > { %977 = vmatmul.bf16.vlgmr.msra.gmra.mxu0 %v5915_v26  ;;  %v5962_v26 = vld [vmem:[%s8568_s29 + $0x60] sm:$0xf] }
  0x2c   : > { %4826 = vmatpush.bf16.msrb.mxu0 %v8527_v0  ;;  %6911 = vmatmul.msk.bf16.gmra.mxu3 %vm818_vm0, %v6525_v28  ;;  %v6549_v0 = vor.u32 %v8182_v58, %v6546_v59  ;;  %v6560_v28 = vld [vmem:[%s8568_s29 + $0x380] sm:$0xf]  ;;  %v6586_v58 = vld [vmem:[%s8568_s29 + $0x3b8] sm:$0xf0]  ;;  %v8092_v59 = vld [vmem:[%s8568_s29 + $0x94] sm:$0xf] }
  0x2d   : > { %3511 = vmatpush.bf16.msrb.mxu1 %v8593_v13  ;;  %2196 = vmatmul.bf16.vlgmr.msra.gmra.mxu2 %v6513_v27  ;;  %v8087_v27 = vld [vmem:[%s8568_s29 + $0x64] sm:$0xf0] }
  0x2e   : > { %5089 = vmatpush.bf16.msrb.mxu2 %v8532_v1  ;;  %6361 = vmatmul.msk.bf16.gmra.mxu1 %vm818_vm0, %v5927_v29  ;;  %v5951_v1 = vor.u32 %v8082_v60, %v5948_v61  ;;  %v8187_v29 = vld [vmem:[%s8568_s29 + $0x384] sm:$0xf0]  ;;  %v5963_v34 = vor.u32 %v8087_v27, %v5962_v26  ;;  %v5988_v60 = vld [vmem:[%s8568_s29 + $0x98] sm:$0xf0] }
  0x2f   : > { %v6561_v35 = vor.u32 %v8187_v29, %v6560_v28  ;;  %v5999_v28 = vor.u32 %v8094_v18, %v5996_v19 }
  0x30   : > { %4827 = vmatpush.bf16.msrb.mxu0 %v8539_v2  ;;  %v5946_v2 = vld [vmem:[%s8568_s29 + $0x40] sm:$0xf] }
  0x31   : > { %3512 = vmatpush.bf16.msrb.mxu1 %v8064_v15 }
  0x32   : > { %5090 = vmatpush.bf16.msrb.mxu2 %v8547_v3  ;;  %v8083_v3 = vld [vmem:[%s8568_s29 + $0x44] sm:$0xf0] }
  0x33   : > { %v5947_v10 = vor.u32 %v8083_v3, %v5946_v2  ;;  %v5991_v3 = vor.u32 %v8092_v59, %v5988_v60 }
  0x34   : > { %4828 = vmatpush.bf16.msrb.mxu0 %v8556_v4  ;;  %v6544_v4 = vld [vmem:[%s8568_s29 + $0x360] sm:$0xf] }
  0x35   : > { %3513 = vmatpush.bf16.msrb.mxu1 %v8063_v16 }
  0x36   : > { %5091 = vmatpush.bf16.msrb.mxu2 %v8562_v5  ;;  %v8183_v5 = vld [vmem:[%s8568_s29 + $0x364] sm:$0xf0] }
  0x37   : > { %v6545_v11 = vor.u32 %v8183_v5, %v6544_v4 }
  0x38   : > { %4829 = vmatpush.bf16.msrb.mxu0 %v8575_v6  ;;  %v8184_v6 = vld [vmem:[%s8568_s29 + $0x374] sm:$0xf] }
  0x39   : > { %3514 = vmatpush.bf16.msrb.mxu1 %v8062_v17 }
  0x3a   : > { %5092 = vmatpush.bf16.msrb.mxu2 %v8581_v7  ;;  %v6554_v7 = vld [vmem:[%s8568_s29 + $0x378] sm:$0xf0] }
  0x3b   : > { %982 = vmatmul.bf16.gmra.mxu0 %v5923_v38  ;;  %v6557_v12 = vor.u32 %v8184_v6, %v6554_v7  ;;  %v5970_v38 = vld [vmem:[%s8568_s29 + $0x70] sm:$0xf] }
  0x3c   : > { %4830 = vmatpush.bf16.msrb.mxu0 %v8593_v13  ;;  %6912 = vmatmul.msk.bf16.gmra.mxu3 %vm818_vm0, %v6533_v40  ;;  %v5959_v13 = vor.u32 %v8084_v8, %v5956_v9  ;;  %v6568_v40 = vld [vmem:[%s8568_s29 + $0x390] sm:$0xf] }
  0x3d   : > { %2201 = vmatmul.bf16.gmra.mxu2 %v6521_v39  ;;  %v8089_v39 = vld [vmem:[%s8568_s29 + $0x74] sm:$0xf0] }
  0x3e   : > { %6362 = vmatmul.msk.bf16.gmra.mxu1 %vm818_vm0, %v5935_v41  ;;  %v8189_v41 = vld [vmem:[%s8568_s29 + $0x394] sm:$0xf0]  ;;  %v5971_v46 = vor.u32 %v8089_v39, %v5970_v38  ;;  %v5994_v38 = vld [vmem:[%s8568_s29 + $0xa0] sm:$0xf]  ;;  %v8095_v39 = vld [vmem:[%s8568_s29 + $0xa4] sm:$0xf0] }
  0x3f   : > { %v6569_v47 = vor.u32 %v8189_v41, %v6568_v40  ;;  %v6592_v40 = vld [vmem:[%s8568_s29 + $0x3c0] sm:$0xf]  ;;  %v8195_v41 = vld [vmem:[%s8568_s29 + $0x3c4] sm:$0xf0] }
  0x40   : > { %4831 = vmatpush.bf16.msrb.mxu0 %v8064_v15  ;;  %v8085_v15 = vld [vmem:[%s8568_s29 + $0x54] sm:$0xf0] }
  0x41   : > { %v5955_v22 = vor.u32 %v8085_v15, %v5954_v14  ;;  %v6584_v14 = vld [vmem:[%s8568_s29 + $0x3b0] sm:$0xf]  ;;  %v8193_v15 = vld [vmem:[%s8568_s29 + $0x3b4] sm:$0xf0] }
  0x44   : > { %4832 = vmatpush.bf16.msrb.mxu0 %v8063_v16  ;;  %v6552_v16 = vld [vmem:[%s8568_s29 + $0x370] sm:$0xf] }
  0x48   : > { %4833 = vmatpush.bf16.msrb.mxu0 %v8062_v17  ;;  %v8185_v17 = vld [vmem:[%s8568_s29 + $0x374] sm:$0xf0] }
  0x49   : > { %v6553_v23 = vor.u32 %v8185_v17, %v6552_v16  ;;  %v8194_v16 = vld [vmem:[%s8568_s29 + $0x3c4] sm:$0xf]  ;;  %v6594_v17 = vld [vmem:[%s8568_s29 + $0x3c8] sm:$0xf0] }
  0x4a   : > { %v6597_v26 = vor.u32 %v8194_v16, %v6594_v17 }
  0x4b   : > { %987 = vmatmul.bf16.gmra.mxu0 %v5931_v50 }
  0x4c   : > { %6913 = vmatmul.msk.bf16.gmra.mxu3 %vm818_vm0, %v6541_v52 }
  0x4d   : > { %2206 = vmatmul.bf16.gmra.mxu2 %v6529_v51 }
  0x4e   : > { %6363 = vmatmul.msk.bf16.gmra.mxu1 %vm818_vm0, %v5943_v53  ;;  %v5978_v53 = vld [vmem:[%s8568_s29 + $0x80] sm:$0xf] }
  0x5b   : > { %992 = vmatmul.bf16.gmra.mxu0 %v5939_v62  ;;  %v5979_v62 = vor.u32 %v8091_v54, %v5978_v53  ;;  %v6007_v54 = vor.u32 %v8096_v44, %v6004_v45 }
  0x5c   : > { %6914 = vmatmul.msk.bf16.gmra.mxu3 %vm818_vm0, %v6549_v0  ;;  %v6577_v0 = vor.u32 %v8191_v56, %v6576_v55 }
  0x5d   : > { %2211 = vmatmul.bf16.gmra.mxu2 %v6537_v63 }
  0x5e   : > { %6364 = vmatmul.msk.bf16.gmra.mxu1 %vm818_vm0, %v5951_v1  ;;  %v6589_v1 = vor.u32 %v8192_v57, %v6586_v58 }
  0x6b   : > { %997 = vmatmul.bf16.gmra.mxu0 %v5947_v10 }
  0x6c   : > { %6915 = vmatmul.msk.bf16.gmra.mxu3 %vm818_vm0, %v6557_v12  ;;  %v5986_v12 = vld [vmem:[%s8568_s29 + $0x90] sm:$0xf] }
  0x6d   : > { %2216 = vmatmul.bf16.gmra.mxu2 %v6545_v11 }
  0x6e   : > { %6365 = vmatmul.msk.bf16.gmra.mxu1 %vm818_vm0, %v5959_v13  ;;  %v8093_v13 = vld [vmem:[%s8568_s29 + $0x94] sm:$0xf0] }
  0x7b   : > { %1002 = vmatmul.bf16.gmra.mxu0 %v5955_v22  ;;  %v5987_v22 = vor.u32 %v8093_v13, %v5986_v12 }
  0x7c   : > { %6916 = vmatmul.msk.bf16.gmra.mxu3 %vm818_vm0, %v6565_v24 }
  0x7d   : > { %2221 = vmatmul.bf16.gmra.mxu2 %v6553_v23 }
  0x7e   : > { %6366 = vmatmul.msk.bf16.gmra.mxu1 %vm818_vm0, %v5967_v25  ;;  %v6585_v25 = vor.u32 %v8193_v15, %v6584_v14 }
  0x8b   : > { %1007 = vmatmul.bf16.gmra.mxu0 %v5963_v34 }
  0x8c   : > { %6917 = vmatmul.msk.bf16.gmra.mxu3 %vm818_vm0, %v6573_v36 }
  0x8d   : > { %2226 = vmatmul.bf16.gmra.mxu2 %v6561_v35 }
  0x8e   : > { %6367 = vmatmul.msk.bf16.gmra.mxu1 %vm818_vm0, %v5975_v37 }
  0x9b   : > { %v1237_v50 = vpop.f32.mrf.mxu1  ;;  %1012 = vmatmul.bf16.gmra.mxu0 %v5971_v46 }
  0x9c   : > { %6918 = vmatmul.msk.bf16.gmra.mxu3 %vm818_vm0, %v6581_v48  ;;  %v5995_v48 = vor.u32 %v8095_v39, %v5994_v38  ;;  %v6608_v38 = vld [vmem:[%s8568_s29 + $0x3e0] sm:$0xf]  ;;  %v8199_v39 = vld [vmem:[%s8568_s29 + $0x3e4] sm:$0xf0] }
  0x9d   : > { %2231 = vmatmul.bf16.gmra.mxu2 %v6569_v47 }
  0x9e   : > { %6368 = vmatmul.msk.bf16.gmra.mxu1 %vm818_vm0, %v5983_v49 }
  0x9f   : > { %v2456_v51 = vpop.f32.mrf.mxu3 }
  0xa3   : > { %v1239_v52 = vpop.f32.mrf.mxu1 }
  0xa7   : > { %v2458_v61 = vpop.f32.mrf.mxu3 }
  0xa8   : > { %v978_v63 = vpop.f32.mrf.mxu0 }
  0xa9   : > { %v8716_v2 = vadd.f32 %v1237_v50, %v978_v63 }
  0xab   : > { %v1242_v4 = vpop.f32.mrf.mxu1  ;;  %1017 = vmatmul.bf16.gmra.mxu0 %v5979_v62 }
  0xac   : > { %6919 = vmatmul.msk.bf16.gmra.mxu3 %vm818_vm0, %v6589_v1  ;;  %v8097_v1 = vld [vmem:[%s8568_s29 + $0xb4] sm:$0xf0] }
  0xad   : > { %2236 = vmatmul.bf16.gmra.mxu2 %v6577_v0  ;;  %v6002_v0 = vld [vmem:[%s8568_s29 + $0xb0] sm:$0xf] }
  0xae   : > { %6369 = vmatmul.msk.bf16.gmra.mxu1 %vm818_vm0, %v5991_v3  ;;  %v6600_v3 = vld [vmem:[%s8568_s29 + $0x3d0] sm:$0xf]  ;;  %v6003_v14 = vor.u32 %v8097_v1, %v6002_v0 }
  0xaf   : > { %v2461_v6 = vpop.f32.mrf.mxu3 }
  0xb0   : > { %v2197_v5 = vpop.f32.mrf.mxu2  ;;  %v980_v8 = vpop.f32.mrf.mxu0 }
  0xb1   : > { %v8720_v7 = vadd.f32 %v2456_v51, %v2197_v5  ;;  %v8722_v9 = vadd.f32 %v1239_v52, %v980_v8  ;;  %v6593_v51 = vor.u32 %v8195_v41, %v6592_v40  ;;  %v6605_v52 = vor.u32 %v8196_v42, %v6602_v43  ;;  %v8198_v5 = vld [vmem:[%s8568_s29 + $0x3e4] sm:$0xf]  ;;  %v8200_v40 = vld [vmem:[%s8568_s29 + $0x3f4] sm:$0xf]  ;;  %v6618_v41 = vld [vmem:[%s8568_s29 + $0x3f8] sm:$0xf0] }
  0xb2   : > { %v8098_v8 = vld [vmem:[%s8568_s29 + $0xc4] sm:$0xf]  ;;  %v8100_v42 = vld [vmem:[%s8568_s29 + $0xd4] sm:$0xf]  ;;  %v6020_v43 = vld [vmem:[%s8568_s29 + $0xd8] sm:$0xf0] }
  0xb3   : > { %v1244_v11 = vpop.f32.mrf.mxu1 }
  0xb7   : > { %v2463_v21 = vpop.f32.mrf.mxu3 }
  0xb8   : > { %v2199_v20 = vpop.f32.mrf.mxu2  ;;  %v983_v24 = vpop.f32.mrf.mxu0 }
  0xb9   : > { %v8734_v23 = vadd.f32 %v2458_v61, %v2199_v20  ;;  %v8736_v27 = vadd.f32 %v1242_v4, %v983_v24  ;;  %v8197_v4 = vld [vmem:[%s8568_s29 + $0x3d4] sm:$0xf0] }
  0xba   : > { %v6601_v17 = vor.u32 %v8197_v4, %v6600_v3 }
  0xbb   : > { %v1247_v30 = vpop.f32.mrf.mxu1  ;;  %1022 = vmatmul.bf16.gmra.mxu0 %v5987_v22 }
  0xbc   : > { %6920 = vmatmul.msk.bf16.gmra.mxu3 %vm818_vm0, %v6597_v26 }
  0xbd   : > { %2241 = vmatmul.bf16.gmra.mxu2 %v6585_v25 }
  0xbe   : > { %6370 = vmatmul.msk.bf16.gmra.mxu1 %vm818_vm0, %v5999_v28 }
  0xbf   : > { %v2466_v32 = vpop.f32.mrf.mxu3 }
  0xc0   : > { %v2202_v31 = vpop.f32.mrf.mxu2  ;;  %v985_v34 = vpop.f32.mrf.mxu0 }
  0xc1   : > { %v8742_v33 = vadd.f32 %v2461_v6, %v2202_v31  ;;  %v8744_v35 = vadd.f32 %v1244_v11, %v985_v34  ;;  %v6610_v6 = vld [vmem:[%s8568_s29 + $0x3e8] sm:$0xf0]  ;;  %v6010_v34 = vld [vmem:[%s8568_s29 + $0xc0] sm:$0xf] }
  0xc2   : > { %v6012_v11 = vld [vmem:[%s8568_s29 + $0xc8] sm:$0xf0]  ;;  %v6613_v18 = vor.u32 %v8198_v5, %v6610_v6  ;;  %v6018_v5 = vld [vmem:[%s8568_s29 + $0xd0] sm:$0xf]  ;;  %v8101_v6 = vld [vmem:[%s8568_s29 + $0xd4] sm:$0xf0] }
  0xc3   : > { %v1249_v37 = vpop.f32.mrf.mxu1  ;;  %v6015_v20 = vor.u32 %v8098_v8, %v6012_v11  ;;  %v6616_v8 = vld [vmem:[%s8568_s29 + $0x3f0] sm:$0xf]  ;;  %v8201_v11 = vld [vmem:[%s8568_s29 + $0x3f4] sm:$0xf0] }
  0xc7   : > { %v2468_v47 = vpop.f32.mrf.mxu3 }
  0xc8   : > { %v2204_v46 = vpop.f32.mrf.mxu2  ;;  %v988_v50 = vpop.f32.mrf.mxu0 }
  0xc9   : > { %v8756_v49 = vadd.f32 %v2463_v21, %v2204_v46  ;;  %v8758_v53 = vadd.f32 %v1247_v30, %v988_v50  ;;  %v6609_v50 = vor.u32 %v8199_v39, %v6608_v38 }
  0xcb   : > { %v1252_v56 = vpop.f32.mrf.mxu1  ;;  %1027 = vmatmul.bf16.gmra.mxu0 %v5995_v48 }
  0xcc   : > { %6921 = vmatmul.msk.bf16.gmra.mxu3 %vm818_vm0, %v6605_v52 }
  0xcd   : > { %2246 = vmatmul.bf16.gmra.mxu2 %v6593_v51  ;;  %v6621_v51 = vor.u32 %v8200_v40, %v6618_v41 }
  0xce   : > { %6371 = vmatmul.msk.bf16.gmra.mxu1 %vm818_vm0, %v6007_v54  ;;  %v6023_v54 = vor.u32 %v8100_v42, %v6020_v43 }
  0xcf   : > { %v2471_v58 = vpop.f32.mrf.mxu3 }
  0xd0   : > { %v2207_v57 = vpop.f32.mrf.mxu2  ;;  %v990_v60 = vpop.f32.mrf.mxu0 }
  0xd1   : > { %v8764_v59 = vadd.f32 %v2466_v32, %v2207_v57  ;;  %v8766_v61 = vadd.f32 %v1249_v37, %v990_v60  ;;  %v8099_v37 = vld [vmem:[%s8568_s29 + $0xc4] sm:$0xf0] }
  0xd2   : > { %v6011_v46 = vor.u32 %v8099_v37, %v6010_v34 }
  0xd3   : > { %v1254_v63 = vpop.f32.mrf.mxu1 }
  0xd7   : > { %v2473_v13 = vpop.f32.mrf.mxu3 }
  0xd8   : > { %v2209_v12 = vpop.f32.mrf.mxu2  ;;  %v993_v16 = vpop.f32.mrf.mxu0 }
  0xd9   : > { %v8778_v15 = vadd.f32 %v2468_v47, %v2209_v12  ;;  %v8780_v19 = vadd.f32 %v1252_v56, %v993_v16  ;;  %v8202_v12 = vld [vmem:[%s8568_s29 + $0x404] sm:$0xf]  ;;  %v6028_v16 = vld [vmem:[%s8568_s29 + $0xe8] sm:$0xf0] }
  0xdb   : > { %v1257_v22 = vpop.f32.mrf.mxu1  ;;  %1032 = vmatmul.bf16.gmra.mxu0 %v6003_v14  ;;  %v8102_v14 = vld [vmem:[%s8568_s29 + $0xe4] sm:$0xf] }
  0xdc   : > { %6922 = vmatmul.msk.bf16.gmra.mxu3 %vm818_vm0, %v6613_v18  ;;  %v6031_v34 = vor.u32 %v8102_v14, %v6028_v16 }
  0xdd   : > { %2251 = vmatmul.bf16.gmra.mxu2 %v6601_v17 }
  0xde   : > { %6372 = vmatmul.msk.bf16.gmra.mxu1 %vm818_vm0, %v6015_v20  ;;  %v6019_v20 = vor.u32 %v8101_v6, %v6018_v5 }
  0xdf   : > { %v2476_v25 = vpop.f32.mrf.mxu3 }
  0xe0   : > { %v2212_v24 = vpop.f32.mrf.mxu2  ;;  %v995_v28 = vpop.f32.mrf.mxu0 }
  0xe1   : > { %v8786_v26 = vadd.f32 %v2471_v58, %v2212_v24  ;;  %v8788_v30 = vadd.f32 %v1254_v63, %v995_v28 }
  0xe3   : > { %v1259_v32 = vpop.f32.mrf.mxu1 }
  0xe7   : > { %v2478_v45 = vpop.f32.mrf.mxu3 }
  0xe8   : > { %v2214_v44 = vpop.f32.mrf.mxu2  ;;  %v998_v48 = vpop.f32.mrf.mxu0 }
  0xe9   : > { %v8800_v47 = vadd.f32 %v2473_v13, %v2214_v44  ;;  %v8802_v52 = vadd.f32 %v1257_v22, %v998_v48  ;;  %v6626_v13 = vld [vmem:[%s8568_s29 + $0x408] sm:$0xf0]  ;;  %v8103_v48 = vld [vmem:[%s8568_s29 + $0xe4] sm:$0xf0] }
  0xea   : > { %v6629_v28 = vor.u32 %v8202_v12, %v6626_v13 }
  0xeb   : > { %v1262_v57 = vpop.f32.mrf.mxu1  ;;  %1037 = vmatmul.bf16.gmra.mxu0 %v6011_v46  ;;  %v6026_v46 = vld [vmem:[%s8568_s29 + $0xe0] sm:$0xf] }
  0xec   : > { %6923 = vmatmul.msk.bf16.gmra.mxu3 %vm818_vm0, %v6621_v51  ;;  %v8203_v51 = vld [vmem:[%s8568_s29 + $0x404] sm:$0xf0] }
  0xed   : > { %2256 = vmatmul.bf16.gmra.mxu2 %v6609_v50  ;;  %v6624_v50 = vld [vmem:[%s8568_s29 + $0x400] sm:$0xf] }
  0xee   : > { %6373 = vmatmul.msk.bf16.gmra.mxu1 %vm818_vm0, %v6023_v54  ;;  %v8204_v54 = vld [vmem:[%s8568_s29 + $0x414] sm:$0xf] }
  0xef   : > { %v2481_v60 = vpop.f32.mrf.mxu3 }
  0xf0   : > { %v2217_v58 = vpop.f32.mrf.mxu2  ;;  %v1000_v0 = vpop.f32.mrf.mxu0 }
  0xf1   : > { %v8808_v63 = vadd.f32 %v2476_v25, %v2217_v58  ;;  %v8810_v1 = vadd.f32 %v1259_v32, %v1000_v0  ;;  %v6617_v25 = vor.u32 %v8201_v11, %v6616_v8  ;;  %v8104_v58 = vld [vmem:[%s8568_s29 + $0xf4] sm:$0xf]  ;;  %v6036_v0 = vld [vmem:[%s8568_s29 + $0xf8] sm:$0xf0]  ;;  %v6027_v8 = vor.u32 %v8103_v48, %v6026_v46  ;;  %v6632_v46 = vld [vmem:[%s8568_s29 + $0x410] sm:$0xf] }
  0xf2   : > { %v6039_v14 = vor.u32 %v8104_v58, %v6036_v0  ;;  %v8205_v48 = vld [vmem:[%s8568_s29 + $0x414] sm:$0xf0] }
  0xf3   : > { %v1264_v4 = vpop.f32.mrf.mxu1 }
  0xf7   : > { %v2483_v18 = vpop.f32.mrf.mxu3 }
  0xf8   : > { %v2219_v17 = vpop.f32.mrf.mxu2  ;;  %v1003_v24 = vpop.f32.mrf.mxu0 }
  0xf9   : > { %v8822_v22 = vadd.f32 %v2478_v45, %v2219_v17  ;;  %v8824_v32 = vadd.f32 %v1262_v57, %v1003_v24  ;;  %v6634_v57 = vld [vmem:[%s8568_s29 + $0x418] sm:$0xf0] }
  0xfa   : > { %v6637_v12 = vor.u32 %v8204_v54, %v6634_v57  ;;  %v8106_v54 = vld [vmem:[%s8568_s29 + $0x104] sm:$0xf]  ;;  %v6044_v57 = vld [vmem:[%s8568_s29 + $0x108] sm:$0xf0] }
  0xfb   : > { %v1267_v38 = vpop.f32.mrf.mxu1  ;;  %1042 = vmatmul.bf16.gmra.mxu0 %v6019_v20 }
  0xfc   : > { %6924 = vmatmul.msk.bf16.gmra.mxu3 %vm818_vm0, %v6629_v28 }
  0xfd   : > { %2261 = vmatmul.bf16.gmra.mxu2 %v6617_v25 }
  0xfe   : > { %6374 = vmatmul.msk.bf16.gmra.mxu1 %vm818_vm0, %v6031_v34 }
  0xff   : > { %v2486_v40 = vpop.f32.mrf.mxu3 }
 0x100   : > { %v2222_v39 = vpop.f32.mrf.mxu2  ;;  %v1005_v42 = vpop.f32.mrf.mxu0 }
 0x101   : > { %v8830_v41 = vadd.f32 %v2481_v60, %v2222_v39  ;;  %v8832_v43 = vadd.f32 %v1264_v4, %v1005_v42  ;;  %v6625_v4 = vor.u32 %v8203_v51, %v6624_v50  ;;  %v6034_v39 = vld [vmem:[%s8568_s29 + $0xf0] sm:$0xf]  ;;  %v8105_v42 = vld [vmem:[%s8568_s29 + $0xf4] sm:$0xf0]  ;;  %v8206_v50 = vld [vmem:[%s8568_s29 + $0x424] sm:$0xf] }
 0x102   : > { %v6642_v51 = vld [vmem:[%s8568_s29 + $0x428] sm:$0xf0] }
 0x103   : > { %v1269_v45 = vpop.f32.mrf.mxu1 }
 0x107   : > { %v2488_v6 = vpop.f32.mrf.mxu3 }
 0x108   : > { %v2224_v5 = vpop.f32.mrf.mxu2  ;;  %v1008_v11 = vpop.f32.mrf.mxu0 }
 0x109   : > { %v8844_v60 = vadd.f32 %v2483_v18, %v2224_v5  ;;  %v8846_v13 = vadd.f32 %v1267_v38, %v1008_v11  ;;  %v6035_v5 = vor.u32 %v8105_v42, %v6034_v39  ;;  %v6645_v11 = vor.u32 %v8206_v50, %v6642_v51  ;;  %v6042_v50 = vld [vmem:[%s8568_s29 + $0x100] sm:$0xf]  ;;  %v8107_v51 = vld [vmem:[%s8568_s29 + $0x104] sm:$0xf0] }
 0x10b   : > { %v1272_v17 = vpop.f32.mrf.mxu1  ;;  %1047 = vmatmul.bf16.gmra.mxu0 %v6027_v8 }
 0x10c   : > { %6925 = vmatmul.msk.bf16.gmra.mxu3 %vm818_vm0, %v6637_v12  ;;  %v6047_v12 = vor.u32 %v8106_v54, %v6044_v57  ;;  %v6640_v54 = vld [vmem:[%s8568_s29 + $0x420] sm:$0xf]  ;;  %v8207_v57 = vld [vmem:[%s8568_s29 + $0x424] sm:$0xf0] }
 0x10d   : > { %2266 = vmatmul.bf16.gmra.mxu2 %v6625_v4 }
 0x10e   : > { %6375 = vmatmul.msk.bf16.gmra.mxu1 %vm818_vm0, %v6039_v14  ;;  %v6043_v14 = vor.u32 %v8107_v51, %v6042_v50 }
 0x10f   : > { %v2491_v20 = vpop.f32.mrf.mxu3 }
 0x110   : > { %v2227_v18 = vpop.f32.mrf.mxu2  ;;  %v1010_v25 = vpop.f32.mrf.mxu0 }
 0x111   : > { %v8852_v24 = vadd.f32 %v2486_v40, %v2227_v18  ;;  %v8854_v28 = vadd.f32 %v1269_v45, %v1010_v25  ;;  %v6633_v45 = vor.u32 %v8205_v48, %v6632_v46 }
 0x113   : > { %v1274_v38 = vpop.f32.mrf.mxu1 }
 0x117   : > { %v2493_v0 = vpop.f32.mrf.mxu3 }
 0x118   : > { %v2229_v58 = vpop.f32.mrf.mxu2  ;;  %v1013_v8 = vpop.f32.mrf.mxu0 }
 0x119   : > { %v8866_v40 = vadd.f32 %v2488_v6, %v2229_v58  ;;  %v8868_v4 = vadd.f32 %v1272_v17, %v1013_v8  ;;  %v8208_v58 = vld [vmem:[%s8568_s29 + $0x434] sm:$0xf] }
 0x11a   : > { %v8108_v8 = vld [vmem:[%s8568_s29 + $0x114] sm:$0xf] }
 0x11b   : > { %v1277_v18 = vpop.f32.mrf.mxu1  ;;  %1052 = vmatmul.bf16.gmra.mxu0 %v6035_v5  ;;  %v6650_v5 = vld [vmem:[%s8568_s29 + $0x438] sm:$0xf0] }
 0x11c   : > { %6926 = vmatmul.msk.bf16.gmra.mxu3 %vm818_vm0, %v6645_v11 }
 0x11d   : > { %2271 = vmatmul.bf16.gmra.mxu2 %v6633_v45  ;;  %v6052_v45 = vld [vmem:[%s8568_s29 + $0x118] sm:$0xf0] }
 0x11e   : > { %6376 = vmatmul.msk.bf16.gmra.mxu1 %vm818_vm0, %v6047_v12  ;;  %v6055_v46 = vor.u32 %v8108_v8, %v6052_v45  ;;  %v6648_v8 = vld [vmem:[%s8568_s29 + $0x430] sm:$0xf]  ;;  %v8209_v45 = vld [vmem:[%s8568_s29 + $0x434] sm:$0xf0] }
 0x11f   : > { %v2496_v17 = vpop.f32.mrf.mxu3 }
 0x120   : > { %v2232_v6 = vpop.f32.mrf.mxu2  ;;  %v1015_v39 = vpop.f32.mrf.mxu0 }
 0x121   : > { %v8874_v25 = vadd.f32 %v2491_v20, %v2232_v6  ;;  %v8876_v42 = vadd.f32 %v1274_v38, %v1015_v39  ;;  %v6641_v38 = vor.u32 %v8207_v57, %v6640_v54  ;;  %v6653_v39 = vor.u32 %v8208_v58, %v6650_v5  ;;  %v8109_v5 = vld [vmem:[%s8568_s29 + $0x114] sm:$0xf0] }
 0x123   : > { %v1279_v48 = vpop.f32.mrf.mxu1 }
 0x127   : > { %v2498_v12 = vpop.f32.mrf.mxu3 }
 0x128   : > { %v2234_v11 = vpop.f32.mrf.mxu2  ;;  %v1018_v6 = vpop.f32.mrf.mxu0 }
 0x129   : > { %v8888_v20 = vadd.f32 %v2493_v0, %v2234_v11  ;;  %v8890_v34 = vadd.f32 %v1277_v18, %v1018_v6  ;;  %v8210_v11 = vld [vmem:[%s8568_s29 + $0x444] sm:$0xf]  ;;  %v6658_v6 = vld [vmem:[%s8568_s29 + $0x448] sm:$0xf0] }
 0x12b   : > { %v1282_v44 = vpop.f32.mrf.mxu1  ;;  %1057 = vmatmul.bf16.gmra.mxu0 %v6043_v14  ;;  %v6050_v14 = vld [vmem:[%s8568_s29 + $0x110] sm:$0xf] }
 0x12c   : > { %6927 = vmatmul.msk.bf16.gmra.mxu3 %vm818_vm0, %v6653_v39  ;;  %v6060_v39 = vld [vmem:[%s8568_s29 + $0x128] sm:$0xf0]  ;;  %v6051_v37 = vor.u32 %v8109_v5, %v6050_v14 }
 0x12d   : > { %2276 = vmatmul.bf16.gmra.mxu2 %v6641_v38  ;;  %v8110_v38 = vld [vmem:[%s8568_s29 + $0x124] sm:$0xf] }
 0x12e   : > { %6377 = vmatmul.msk.bf16.gmra.mxu1 %vm818_vm0, %v6055_v46  ;;  %v6063_v57 = vor.u32 %v8110_v38, %v6060_v39  ;;  %v6656_v38 = vld [vmem:[%s8568_s29 + $0x440] sm:$0xf]  ;;  %v8211_v39 = vld [vmem:[%s8568_s29 + $0x444] sm:$0xf0] }
 0x12f   : > { %v2501_v18 = vpop.f32.mrf.mxu3 }
 0x130   : > { %v2237_v0 = vpop.f32.mrf.mxu2  ;;  %v1020_v51 = vpop.f32.mrf.mxu0 }
 0x131   : > { %v8896_v50 = vadd.f32 %v2496_v17, %v2237_v0  ;;  %v8898_v54 = vadd.f32 %v1279_v48, %v1020_v51  ;;  %v6649_v48 = vor.u32 %v8209_v45, %v6648_v8  ;;  %v6661_v51 = vor.u32 %v8210_v11, %v6658_v6  ;;  %v8111_v6 = vld [vmem:[%s8568_s29 + $0x124] sm:$0xf0] }
 0x133   : > { %v1284_v58 = vpop.f32.mrf.mxu1 }
 0x137   : > { %v2503_v16 = vpop.f32.mrf.mxu3 }
 0x138   : > { %v2239_v46 = vpop.f32.mrf.mxu2  ;;  %v1023_v0 = vpop.f32.mrf.mxu0 }
 0x139   : > { %v8910_v17 = vadd.f32 %v2498_v12, %v2239_v46  ;;  %v8912_v3 = vadd.f32 %v1282_v44, %v1023_v0  ;;  %v8212_v46 = vld [vmem:[%s8568_s29 + $0x454] sm:$0xf]  ;;  %v6666_v0 = vld [vmem:[%s8568_s29 + $0x458] sm:$0xf0] }
 0x13b   : > { %v1287_v31 = vpop.f32.mrf.mxu1  ;;  %1062 = vmatmul.bf16.gmra.mxu0 %v6051_v37  ;;  %v6058_v37 = vld [vmem:[%s8568_s29 + $0x120] sm:$0xf] }
 0x13c   : > { %6928 = vmatmul.msk.bf16.gmra.mxu3 %vm818_vm0, %v6661_v51  ;;  %v6068_v51 = vld [vmem:[%s8568_s29 + $0x138] sm:$0xf0]  ;;  %v6059_v21 = vor.u32 %v8111_v6, %v6058_v37 }
 0x13d   : > { %2281 = vmatmul.bf16.gmra.mxu2 %v6649_v48  ;;  %v8112_v48 = vld [vmem:[%s8568_s29 + $0x134] sm:$0xf] }
 0x13e   : > { %6378 = vmatmul.msk.bf16.gmra.mxu1 %vm818_vm0, %v6063_v57  ;;  %v6071_v45 = vor.u32 %v8112_v48, %v6068_v51  ;;  %v6664_v48 = vld [vmem:[%s8568_s29 + $0x450] sm:$0xf]  ;;  %v8213_v51 = vld [vmem:[%s8568_s29 + $0x454] sm:$0xf0] }
 0x13f   : > { %v2506_v12 = vpop.f32.mrf.mxu3 }
 0x140   : > { %v2242_v44 = vpop.f32.mrf.mxu2  ;;  %v1025_v5 = vpop.f32.mrf.mxu0 }
 0x141   : > { %v8918_v14 = vadd.f32 %v2501_v18, %v2242_v44  ;;  %v8920_v8 = vadd.f32 %v1284_v58, %v1025_v5  ;;  %v6657_v58 = vor.u32 %v8211_v39, %v6656_v38  ;;  %v6669_v5 = vor.u32 %v8212_v46, %v6666_v0  ;;  %v8113_v0 = vld [vmem:[%s8568_s29 + $0x134] sm:$0xf0] }
 0x143   : > { %11017 = vst [vmem:[#allocation2_spill] sm:$0xff] %v8918_v14  ;;  %v1289_v11 = vpop.f32.mrf.mxu1 }
 0x144   : > { %11018 = vst [vmem:[#allocation3_spill] sm:$0xff] %v8920_v8 }
 0x147   : > { %v2508_v56 = vpop.f32.mrf.mxu3 }
 0x148   : > { %v2244_v57 = vpop.f32.mrf.mxu2  ;;  %v1028_v44 = vpop.f32.mrf.mxu0 }
 0x149   : > { %v8932_v18 = vadd.f32 %v2503_v16, %v2244_v57  ;;  %v8934_v62 = vadd.f32 %v1287_v31, %v1028_v44  ;;  %v8214_v57 = vld [vmem:[%s8568_s29 + $0x464] sm:$0xf]  ;;  %v6674_v44 = vld [vmem:[%s8568_s29 + $0x468] sm:$0xf0] }
 0x14b   : > { %11019 = vst [vmem:[#allocation4_spill] sm:$0xff] %v8932_v18  ;;  %v1292_v36 = vpop.f32.mrf.mxu1  ;;  %1067 = vmatmul.bf16.gmra.mxu0 %v6059_v21  ;;  %v6066_v21 = vld [vmem:[%s8568_s29 + $0x130] sm:$0xf] }
 0x14c   : > { %11020 = vst [vmem:[#allocation5_spill] sm:$0xff] %v8934_v62  ;;  %6929 = vmatmul.msk.bf16.gmra.mxu3 %vm818_vm0, %v6669_v5  ;;  %v6076_v5 = vld [vmem:[%s8568_s29 + $0x148] sm:$0xf0]  ;;  %v6067_v29 = vor.u32 %v8113_v0, %v6066_v21 }
 0x14d   : > { %2286 = vmatmul.bf16.gmra.mxu2 %v6657_v58  ;;  %v8114_v58 = vld [vmem:[%s8568_s29 + $0x144] sm:$0xf] }
 0x14e   : > { %6379 = vmatmul.msk.bf16.gmra.mxu1 %vm818_vm0, %v6071_v45  ;;  %v6079_v39 = vor.u32 %v8114_v58, %v6076_v5  ;;  %v6672_v58 = vld [vmem:[%s8568_s29 + $0x460] sm:$0xf]  ;;  %v8215_v5 = vld [vmem:[%s8568_s29 + $0x464] sm:$0xf0] }
 0x14f   : > { %v2511_v16 = vpop.f32.mrf.mxu3 }
 0x150   : > { %v2247_v31 = vpop.f32.mrf.mxu2  ;;  %v1030_v6 = vpop.f32.mrf.mxu0 }
 0x151   : > { %v8940_v37 = vadd.f32 %v2506_v12, %v2247_v31  ;;  %v8942_v38 = vadd.f32 %v1289_v11, %v1030_v6  ;;  %v6665_v11 = vor.u32 %v8213_v51, %v6664_v48  ;;  %v6677_v6 = vor.u32 %v8214_v57, %v6674_v44  ;;  %v8115_v44 = vld [vmem:[%s8568_s29 + $0x144] sm:$0xf0] }
 0x153   : > { %11021 = vst [vmem:[#allocation6_spill] sm:$0xff] %v8940_v37  ;;  %v1294_v46 = vpop.f32.mrf.mxu1 }
 0x154   : > { %11022 = vst [vmem:[#allocation7_spill] sm:$0xff] %v8942_v38 }
 0x157   : > { %v2513_v55 = vpop.f32.mrf.mxu3 }
 0x158   : > { %v2249_v45 = vpop.f32.mrf.mxu2  ;;  %v1033_v31 = vpop.f32.mrf.mxu0 }
 0x159   : > { %v8954_v12 = vadd.f32 %v2508_v56, %v2249_v45  ;;  %v8956_v10 = vadd.f32 %v1292_v36, %v1033_v31  ;;  %v8216_v45 = vld [vmem:[%s8568_s29 + $0x474] sm:$0xf]  ;;  %v6682_v31 = vld [vmem:[%s8568_s29 + $0x478] sm:$0xf0] }
 0x15b   : > { %11023 = vst [vmem:[#allocation8_spill] sm:$0xff] %v8954_v12  ;;  %v1297_v62 = vpop.f32.mrf.mxu1  ;;  %1072 = vmatmul.bf16.gmra.mxu0 %v6067_v29  ;;  %v6074_v29 = vld [vmem:[%s8568_s29 + $0x140] sm:$0xf] }
 0x15c   : > { %11024 = vst [vmem:[#allocation9_spill] sm:$0xff] %v8956_v10  ;;  %6930 = vmatmul.msk.bf16.gmra.mxu3 %vm818_vm0, %v6677_v6  ;;  %v6084_v6 = vld [vmem:[%s8568_s29 + $0x158] sm:$0xf0]  ;;  %v6075_v12 = vor.u32 %v8115_v44, %v6074_v29 }
 0x15d   : > { %2291 = vmatmul.bf16.gmra.mxu2 %v6665_v11  ;;  %v8116_v11 = vld [vmem:[%s8568_s29 + $0x154] sm:$0xf] }
 0x15e   : > { %6380 = vmatmul.msk.bf16.gmra.mxu1 %vm818_vm0, %v6079_v39  ;;  %v6087_v51 = vor.u32 %v8116_v11, %v6084_v6  ;;  %v6680_v11 = vld [vmem:[%s8568_s29 + $0x470] sm:$0xf]  ;;  %v8217_v6 = vld [vmem:[%s8568_s29 + $0x474] sm:$0xf0] }
 0x15f   : > { %v2516_v56 = vpop.f32.mrf.mxu3 }
 0x160   : > { %v2252_v36 = vpop.f32.mrf.mxu2  ;;  %v1035_v0 = vpop.f32.mrf.mxu0 }
 0x161   : > { %v8962_v21 = vadd.f32 %v2511_v16, %v2252_v36  ;;  %v8964_v48 = vadd.f32 %v1294_v46, %v1035_v0  ;;  %v6673_v46 = vor.u32 %v8215_v5, %v6672_v58  ;;  %v6685_v0 = vor.u32 %v8216_v45, %v6682_v31  ;;  %v8117_v31 = vld [vmem:[%s8568_s29 + $0x154] sm:$0xf0] }
 0x163   : > { %11025 = vst [vmem:[#allocation10_spill] sm:$0xff] %v8962_v21  ;;  %v1299_v57 = vpop.f32.mrf.mxu1 }
 0x164   : > { %11026 = vst [vmem:[#allocation11_spill] sm:$0xff] %v8964_v48 }
 0x167   : > { %v2518_v37 = vpop.f32.mrf.mxu3 }
 0x168   : > { %v2254_v39 = vpop.f32.mrf.mxu2  ;;  %v1038_v36 = vpop.f32.mrf.mxu0 }
 0x169   : > { %v8976_v16 = vadd.f32 %v2513_v55, %v2254_v39  ;;  %v8978_v38 = vadd.f32 %v1297_v62, %v1038_v36  ;;  %v8218_v39 = vld [vmem:[%s8568_s29 + $0x484] sm:$0xf]  ;;  %v6690_v36 = vld [vmem:[%s8568_s29 + $0x488] sm:$0xf0] }
 0x16b   : > { %11027 = vst [vmem:[#allocation12_spill] sm:$0xff] %v8976_v16  ;;  %v1302_v10 = vpop.f32.mrf.mxu1  ;;  %1077 = vmatmul.bf16.gmra.mxu0 %v6075_v12  ;;  %v6082_v12 = vld [vmem:[%s8568_s29 + $0x150] sm:$0xf] }
 0x16c   : > { %11028 = vst [vmem:[#allocation13_spill] sm:$0xff] %v8978_v38  ;;  %6931 = vmatmul.msk.bf16.gmra.mxu3 %vm818_vm0, %v6685_v0  ;;  %v6092_v0 = vld [vmem:[%s8568_s29 + $0x168] sm:$0xf0]  ;;  %v6083_v16 = vor.u32 %v8117_v31, %v6082_v12 }
 0x16d   : > { %2296 = vmatmul.bf16.gmra.mxu2 %v6673_v46  ;;  %v8118_v46 = vld [vmem:[%s8568_s29 + $0x164] sm:$0xf] }
 0x16e   : > { %6381 = vmatmul.msk.bf16.gmra.mxu1 %vm818_vm0, %v6087_v51  ;;  %v6095_v5 = vor.u32 %v8118_v46, %v6092_v0  ;;  %v6688_v46 = vld [vmem:[%s8568_s29 + $0x480] sm:$0xf]  ;;  %v8219_v0 = vld [vmem:[%s8568_s29 + $0x484] sm:$0xf0] }
 0x16f   : > { %v2521_v62 = vpop.f32.mrf.mxu3 }
 0x170   : > { %v2257_v55 = vpop.f32.mrf.mxu2  ;;  %v1040_v44 = vpop.f32.mrf.mxu0 }
 0x171   : > { %v8984_v29 = vadd.f32 %v2516_v56, %v2257_v55  ;;  %v8986_v58 = vadd.f32 %v1299_v57, %v1040_v44  ;;  %v6681_v57 = vor.u32 %v8217_v6, %v6680_v11  ;;  %v6693_v44 = vor.u32 %v8218_v39, %v6690_v36  ;;  %v8119_v36 = vld [vmem:[%s8568_s29 + $0x164] sm:$0xf0] }
 0x173   : > { %11029 = vst [vmem:[#allocation14_spill] sm:$0xff] %v8984_v29  ;;  %v1304_v45 = vpop.f32.mrf.mxu1 }
 0x174   : > { %11030 = vst [vmem:[#allocation15_spill] sm:$0xff] %v8986_v58 }
 0x177   : > { %v2523_v21 = vpop.f32.mrf.mxu3 }
 0x178   : > { %v2259_v51 = vpop.f32.mrf.mxu2  ;;  %v1043_v55 = vpop.f32.mrf.mxu0 }
 0x179   : > { %v8998_v56 = vadd.f32 %v2518_v37, %v2259_v51  ;;  %v9000_v48 = vadd.f32 %v1302_v10, %v1043_v55  ;;  %v8220_v51 = vld [vmem:[%s8568_s29 + $0x494] sm:$0xf]  ;;  %v6698_v55 = vld [vmem:[%s8568_s29 + $0x498] sm:$0xf0] }
 0x17b   : > { %11031 = vst [vmem:[#allocation16_spill] sm:$0xff] %v8998_v56  ;;  %v1307_v38 = vpop.f32.mrf.mxu1  ;;  %1082 = vmatmul.bf16.gmra.mxu0 %v6083_v16  ;;  %v6090_v16 = vld [vmem:[%s8568_s29 + $0x160] sm:$0xf] }
 0x17c   : > { %11032 = vst [vmem:[#allocation17_spill] sm:$0xff] %v9000_v48  ;;  %6932 = vmatmul.msk.bf16.gmra.mxu3 %vm818_vm0, %v6693_v44  ;;  %v6100_v44 = vld [vmem:[%s8568_s29 + $0x178] sm:$0xf0]  ;;  %v6091_v56 = vor.u32 %v8119_v36, %v6090_v16 }
 0x17d   : > { %2301 = vmatmul.bf16.gmra.mxu2 %v6681_v57  ;;  %v8120_v57 = vld [vmem:[%s8568_s29 + $0x174] sm:$0xf] }
 0x17e   : > { %6382 = vmatmul.msk.bf16.gmra.mxu1 %vm818_vm0, %v6095_v5  ;;  %v6103_v6 = vor.u32 %v8120_v57, %v6100_v44  ;;  %v6696_v57 = vld [vmem:[%s8568_s29 + $0x490] sm:$0xf]  ;;  %v8221_v44 = vld [vmem:[%s8568_s29 + $0x494] sm:$0xf0] }
 0x17f   : > { %v2526_v37 = vpop.f32.mrf.mxu3 }
 0x180   : > { %v2262_v10 = vpop.f32.mrf.mxu2  ;;  %v1045_v31 = vpop.f32.mrf.mxu0 }
 0x181   : > { %v9006_v12 = vadd.f32 %v2521_v62, %v2262_v10  ;;  %v9008_v11 = vadd.f32 %v1304_v45, %v1045_v31  ;;  %v6689_v45 = vor.u32 %v8219_v0, %v6688_v46  ;;  %v6701_v31 = vor.u32 %v8220_v51, %v6698_v55  ;;  %v8121_v55 = vld [vmem:[%s8568_s29 + $0x174] sm:$0xf0] }
 0x183   : > { %11033 = vst [vmem:[#allocation18_spill] sm:$0xff] %v9006_v12  ;;  %v1309_v39 = vpop.f32.mrf.mxu1 }
 0x184   : > { %11034 = vst [vmem:[#allocation19_spill] sm:$0xff] %v9008_v11 }
 0x187   : > { %v2528_v29 = vpop.f32.mrf.mxu3 }
 0x188   : > { %v2264_v5 = vpop.f32.mrf.mxu2  ;;  %v1048_v10 = vpop.f32.mrf.mxu0 }
 0x189   : > { %v9020_v62 = vadd.f32 %v2523_v21, %v2264_v5  ;;  %v9022_v58 = vadd.f32 %v1307_v38, %v1048_v10  ;;  %v8222_v5 = vld [vmem:[%s8568_s29 + $0x4a4] sm:$0xf]  ;;  %v6706_v10 = vld [vmem:[%s8568_s29 + $0x4a8] sm:$0xf0] }
 0x18b   : > { %11035 = vst [vmem:[#allocation20_spill] sm:$0xff] %v9020_v62  ;;  %v1312_v48 = vpop.f32.mrf.mxu1  ;;  %1087 = vmatmul.bf16.gmra.mxu0 %v6091_v56  ;;  %v6098_v56 = vld [vmem:[%s8568_s29 + $0x170] sm:$0xf] }
 0x18c   : > { %11036 = vst [vmem:[#allocation21_spill] sm:$0xff] %v9022_v58  ;;  %6933 = vmatmul.msk.bf16.gmra.mxu3 %vm818_vm0, %v6701_v31  ;;  %v6108_v31 = vld [vmem:[%s8568_s29 + $0x188] sm:$0xf0]  ;;  %v6099_v62 = vor.u32 %v8121_v55, %v6098_v56 }
 0x18d   : > { %2306 = vmatmul.bf16.gmra.mxu2 %v6689_v45  ;;  %v8122_v45 = vld [vmem:[%s8568_s29 + $0x184] sm:$0xf] }
 0x18e   : > { %6383 = vmatmul.msk.bf16.gmra.mxu1 %vm818_vm0, %v6103_v6  ;;  %v6111_v0 = vor.u32 %v8122_v45, %v6108_v31  ;;  %v6704_v45 = vld [vmem:[%s8568_s29 + $0x4a0] sm:$0xf]  ;;  %v8223_v31 = vld [vmem:[%s8568_s29 + $0x4a4] sm:$0xf0] }
 0x18f   : > { %v2531_v21 = vpop.f32.mrf.mxu3 }
 0x190   : > { %v2267_v38 = vpop.f32.mrf.mxu2  ;;  %v1050_v36 = vpop.f32.mrf.mxu0 }
 0x191   : > { %v9028_v16 = vadd.f32 %v2526_v37, %v2267_v38  ;;  %v9030_v46 = vadd.f32 %v1309_v39, %v1050_v36  ;;  %v6697_v39 = vor.u32 %v8221_v44, %v6696_v57  ;;  %v6709_v36 = vor.u32 %v8222_v5, %v6706_v10  ;;  %v8123_v10 = vld [vmem:[%s8568_s29 + $0x184] sm:$0xf0] }
 0x193   : > { %11037 = vst [vmem:[#allocation22_spill] sm:$0xff] %v9028_v16  ;;  %v1314_v51 = vpop.f32.mrf.mxu1 }
 0x194   : > { %11038 = vst [vmem:[#allocation23_spill] sm:$0xff] %v9030_v46 }
 0x197   : > { %v2533_v12 = vpop.f32.mrf.mxu3 }
 0x198   : > { %v2269_v6 = vpop.f32.mrf.mxu2  ;;  %v1053_v38 = vpop.f32.mrf.mxu0 }
 0x199   : > { %v9042_v37 = vadd.f32 %v2528_v29, %v2269_v6  ;;  %v9044_v11 = vadd.f32 %v1312_v48, %v1053_v38  ;;  %v8224_v6 = vld [vmem:[%s8568_s29 + $0x4b4] sm:$0xf]  ;;  %v6714_v38 = vld [vmem:[%s8568_s29 + $0x4b8] sm:$0xf0] }
 0x19b   : > { %11039 = vst [vmem:[#allocation24_spill] sm:$0xff] %v9042_v37  ;;  %v1317_v58 = vpop.f32.mrf.mxu1  ;;  %1092 = vmatmul.bf16.gmra.mxu0 %v6099_v62  ;;  %v6106_v62 = vld [vmem:[%s8568_s29 + $0x180] sm:$0xf] }
 0x19c   : > { %11040 = vst [vmem:[#allocation25_spill] sm:$0xff] %v9044_v11  ;;  %6934 = vmatmul.msk.bf16.gmra.mxu3 %vm818_vm0, %v6709_v36  ;;  %v6116_v36 = vld [vmem:[%s8568_s29 + $0x198] sm:$0xf0]  ;;  %v6107_v37 = vor.u32 %v8123_v10, %v6106_v62 }
 0x19d   : > { %2311 = vmatmul.bf16.gmra.mxu2 %v6697_v39  ;;  %v8124_v39 = vld [vmem:[%s8568_s29 + $0x194] sm:$0xf] }
 0x19e   : > { %6384 = vmatmul.msk.bf16.gmra.mxu1 %vm818_vm0, %v6111_v0  ;;  %v6119_v44 = vor.u32 %v8124_v39, %v6116_v36  ;;  %v6712_v39 = vld [vmem:[%s8568_s29 + $0x4b0] sm:$0xf]  ;;  %v8225_v36 = vld [vmem:[%s8568_s29 + $0x4b4] sm:$0xf0] }
 0x19f   : > { %v2536_v29 = vpop.f32.mrf.mxu3 }
 0x1a0   : > { %v2272_v48 = vpop.f32.mrf.mxu2  ;;  %v1055_v55 = vpop.f32.mrf.mxu0 }
 0x1a1   : > { %v9050_v56 = vadd.f32 %v2531_v21, %v2272_v48  ;;  %v9052_v57 = vadd.f32 %v1314_v51, %v1055_v55  ;;  %v6705_v51 = vor.u32 %v8223_v31, %v6704_v45  ;;  %v6717_v55 = vor.u32 %v8224_v6, %v6714_v38  ;;  %v8125_v38 = vld [vmem:[%s8568_s29 + $0x194] sm:$0xf0] }
 0x1a3   : > { %11041 = vst [vmem:[#allocation26_spill] sm:$0xff] %v9050_v56  ;;  %v1319_v5 = vpop.f32.mrf.mxu1 }
 0x1a4   : > { %11042 = vst [vmem:[#allocation27_spill] sm:$0xff] %v9052_v57 }
 0x1a7   : > { %v2538_v16 = vpop.f32.mrf.mxu3 }
 0x1a8   : > { %v2274_v0 = vpop.f32.mrf.mxu2  ;;  %v1058_v48 = vpop.f32.mrf.mxu0 }
 0x1a9   : > { %v9064_v21 = vadd.f32 %v2533_v12, %v2274_v0  ;;  %v9066_v46 = vadd.f32 %v1317_v58, %v1058_v48  ;;  %v8226_v0 = vld [vmem:[%s8568_s29 + $0x4c4] sm:$0xf]  ;;  %v6722_v48 = vld [vmem:[%s8568_s29 + $0x4c8] sm:$0xf0] }
 0x1ab   : > { %11043 = vst [vmem:[#allocation28_spill] sm:$0xff] %v9064_v21  ;;  %v1322_v11 = vpop.f32.mrf.mxu1  ;;  %1097 = vmatmul.bf16.gmra.mxu0 %v6107_v37  ;;  %v6114_v37 = vld [vmem:[%s8568_s29 + $0x190] sm:$0xf] }
 0x1ac   : > { %11044 = vst [vmem:[#allocation29_spill] sm:$0xff] %v9066_v46  ;;  %6935 = vmatmul.msk.bf16.gmra.mxu3 %vm818_vm0, %v6717_v55  ;;  %v6124_v55 = vld [vmem:[%s8568_s29 + $0x1a8] sm:$0xf0]  ;;  %v6115_v21 = vor.u32 %v8125_v38, %v6114_v37 }
 0x1ad   : > { %2316 = vmatmul.bf16.gmra.mxu2 %v6705_v51  ;;  %v8126_v51 = vld [vmem:[%s8568_s29 + $0x1a4] sm:$0xf] }
 0x1ae   : > { %6385 = vmatmul.msk.bf16.gmra.mxu1 %vm818_vm0, %v6119_v44  ;;  %v6127_v31 = vor.u32 %v8126_v51, %v6124_v55  ;;  %v6720_v51 = vld [vmem:[%s8568_s29 + $0x4c0] sm:$0xf]  ;;  %v8227_v55 = vld [vmem:[%s8568_s29 + $0x4c4] sm:$0xf0] }
 0x1af   : > { %v2541_v12 = vpop.f32.mrf.mxu3 }
 0x1b0   : > { %v2277_v58 = vpop.f32.mrf.mxu2  ;;  %v1060_v10 = vpop.f32.mrf.mxu0 }
 0x1b1   : > { %v9072_v62 = vadd.f32 %v2536_v29, %v2277_v58  ;;  %v9074_v45 = vadd.f32 %v1319_v5, %v1060_v10  ;;  %v6713_v5 = vor.u32 %v8225_v36, %v6712_v39  ;;  %v6725_v10 = vor.u32 %v8226_v0, %v6722_v48  ;;  %v8127_v48 = vld [vmem:[%s8568_s29 + $0x1a4] sm:$0xf0] }
 0x1b3   : > { %11045 = vst [vmem:[#allocation30_spill] sm:$0xff] %v9072_v62  ;;  %v1324_v6 = vpop.f32.mrf.mxu1 }
 0x1b4   : > { %11046 = vst [vmem:[#allocation31_spill] sm:$0xff] %v9074_v45 }
 0x1b7   : > { %v2543_v56 = vpop.f32.mrf.mxu3 }
 0x1b8   : > { %v2279_v44 = vpop.f32.mrf.mxu2  ;;  %v1063_v58 = vpop.f32.mrf.mxu0 }
 0x1b9   : > { %v9086_v29 = vadd.f32 %v2538_v16, %v2279_v44  ;;  %v9088_v57 = vadd.f32 %v1322_v11, %v1063_v58  ;;  %v8228_v44 = vld [vmem:[%s8568_s29 + $0x4d4] sm:$0xf]  ;;  %v6730_v58 = vld [vmem:[%s8568_s29 + $0x4d8] sm:$0xf0] }
 0x1bb   : > { %11047 = vst [vmem:[#allocation32_spill] sm:$0xff] %v9086_v29  ;;  %v1327_v46 = vpop.f32.mrf.mxu1  ;;  %1102 = vmatmul.bf16.gmra.mxu0 %v6115_v21  ;;  %v6122_v21 = vld [vmem:[%s8568_s29 + $0x1a0] sm:$0xf] }
 0x1bc   : > { %11048 = vst [vmem:[#allocation33_spill] sm:$0xff] %v9088_v57  ;;  %6936 = vmatmul.msk.bf16.gmra.mxu3 %vm818_vm0, %v6725_v10  ;;  %v6132_v10 = vld [vmem:[%s8568_s29 + $0x1b8] sm:$0xf0]  ;;  %v6123_v29 = vor.u32 %v8127_v48, %v6122_v21 }
 0x1bd   : > { %2321 = vmatmul.bf16.gmra.mxu2 %v6713_v5  ;;  %v8128_v5 = vld [vmem:[%s8568_s29 + $0x1b4] sm:$0xf] }
 0x1be   : > { %6386 = vmatmul.msk.bf16.gmra.mxu1 %vm818_vm0, %v6127_v31  ;;  %v6135_v36 = vor.u32 %v8128_v5, %v6132_v10  ;;  %v6728_v5 = vld [vmem:[%s8568_s29 + $0x4d0] sm:$0xf]  ;;  %v8229_v10 = vld [vmem:[%s8568_s29 + $0x4d4] sm:$0xf0] }
 0x1bf   : > { %v2546_v16 = vpop.f32.mrf.mxu3 }
 0x1c0   : > { %v2282_v11 = vpop.f32.mrf.mxu2  ;;  %v1065_v38 = vpop.f32.mrf.mxu0 }
 0x1c1   : > { %v9094_v37 = vadd.f32 %v2541_v12, %v2282_v11  ;;  %v9096_v39 = vadd.f32 %v1324_v6, %v1065_v38  ;;  %v6721_v6 = vor.u32 %v8227_v55, %v6720_v51  ;;  %v6733_v38 = vor.u32 %v8228_v44, %v6730_v58  ;;  %v8129_v58 = vld [vmem:[%s8568_s29 + $0x1b4] sm:$0xf0] }
 0x1c3   : > { %11049 = vst [vmem:[#allocation34_spill] sm:$0xff] %v9094_v37  ;;  %v1329_v0 = vpop.f32.mrf.mxu1 }
 0x1c4   : > { %11050 = vst [vmem:[#allocation35_spill] sm:$0xff] %v9096_v39 }
 0x1c7   : > { %v2548_v62 = vpop.f32.mrf.mxu3 }
 0x1c8   : > { %v2284_v31 = vpop.f32.mrf.mxu2  ;;  %v1068_v11 = vpop.f32.mrf.mxu0 }
 0x1c9   : > { %v9108_v12 = vadd.f32 %v2543_v56, %v2284_v31  ;;  %v9110_v45 = vadd.f32 %v1327_v46, %v1068_v11  ;;  %v8230_v31 = vld [vmem:[%s8568_s29 + $0x4e4] sm:$0xf]  ;;  %v6738_v11 = vld [vmem:[%s8568_s29 + $0x4e8] sm:$0xf0] }
 0x1cb   : > { %11051 = vst [vmem:[#allocation36_spill] sm:$0xff] %v9108_v12  ;;  %v1332_v57 = vpop.f32.mrf.mxu1  ;;  %1107 = vmatmul.bf16.gmra.mxu0 %v6123_v29  ;;  %v6130_v29 = vld [vmem:[%s8568_s29 + $0x1b0] sm:$0xf] }
 0x1cc   : > { %11052 = vst [vmem:[#allocation37_spill] sm:$0xff] %v9110_v45  ;;  %6937 = vmatmul.msk.bf16.gmra.mxu3 %vm818_vm0, %v6733_v38  ;;  %v6140_v38 = vld [vmem:[%s8568_s29 + $0x1c8] sm:$0xf0]  ;;  %v6131_v12 = vor.u32 %v8129_v58, %v6130_v29 }
 0x1cd   : > { %2326 = vmatmul.bf16.gmra.mxu2 %v6721_v6  ;;  %v8130_v6 = vld [vmem:[%s8568_s29 + $0x1c4] sm:$0xf] }
 0x1ce   : > { %6387 = vmatmul.msk.bf16.gmra.mxu1 %vm818_vm0, %v6135_v36  ;;  %v6143_v55 = vor.u32 %v8130_v6, %v6140_v38  ;;  %v6736_v6 = vld [vmem:[%s8568_s29 + $0x4e0] sm:$0xf]  ;;  %v8231_v38 = vld [vmem:[%s8568_s29 + $0x4e4] sm:$0xf0] }
 0x1cf   : > { %v2551_v56 = vpop.f32.mrf.mxu3 }
 0x1d0   : > { %v2287_v46 = vpop.f32.mrf.mxu2  ;;  %v1070_v48 = vpop.f32.mrf.mxu0 }
 0x1d1   : > { %v9116_v21 = vadd.f32 %v2546_v16, %v2287_v46  ;;  %v9118_v51 = vadd.f32 %v1329_v0, %v1070_v48  ;;  %v6729_v0 = vor.u32 %v8229_v10, %v6728_v5  ;;  %v6741_v48 = vor.u32 %v8230_v31, %v6738_v11  ;;  %v8131_v11 = vld [vmem:[%s8568_s29 + $0x1c4] sm:$0xf0] }
 0x1d3   : > { %11053 = vst [vmem:[#allocation38_spill] sm:$0xff] %v9116_v21  ;;  %v1334_v44 = vpop.f32.mrf.mxu1 }
 0x1d4   : > { %11054 = vst [vmem:[#allocation39_spill] sm:$0xff] %v9118_v51 }
 0x1d7   : > { %v2553_v37 = vpop.f32.mrf.mxu3 }
 0x1d8   : > { %v2289_v36 = vpop.f32.mrf.mxu2  ;;  %v1073_v46 = vpop.f32.mrf.mxu0 }
 0x1d9   : > { %v9130_v16 = vadd.f32 %v2548_v62, %v2289_v36  ;;  %v9132_v39 = vadd.f32 %v1332_v57, %v1073_v46  ;;  %v8232_v36 = vld [vmem:[%s8568_s29 + $0x4f4] sm:$0xf]  ;;  %v6746_v46 = vld [vmem:[%s8568_s29 + $0x4f8] sm:$0xf0] }
 0x1db   : > { %11055 = vst [vmem:[#allocation40_spill] sm:$0xff] %v9130_v16  ;;  %v1337_v45 = vpop.f32.mrf.mxu1  ;;  %1112 = vmatmul.bf16.gmra.mxu0 %v6131_v12  ;;  %v6138_v12 = vld [vmem:[%s8568_s29 + $0x1c0] sm:$0xf] }
 0x1dc   : > { %11056 = vst [vmem:[#allocation41_spill] sm:$0xff] %v9132_v39  ;;  %6938 = vmatmul.msk.bf16.gmra.mxu3 %vm818_vm0, %v6741_v48  ;;  %v6148_v48 = vld [vmem:[%s8568_s29 + $0x1d8] sm:$0xf0]  ;;  %v6139_v16 = vor.u32 %v8131_v11, %v6138_v12 }
 0x1dd   : > { %2331 = vmatmul.bf16.gmra.mxu2 %v6729_v0  ;;  %v8132_v0 = vld [vmem:[%s8568_s29 + $0x1d4] sm:$0xf] }
 0x1de   : > { %6388 = vmatmul.msk.bf16.gmra.mxu1 %vm818_vm0, %v6143_v55  ;;  %v6151_v10 = vor.u32 %v8132_v0, %v6148_v48  ;;  %v6744_v0 = vld [vmem:[%s8568_s29 + $0x4f0] sm:$0xf]  ;;  %v8233_v48 = vld [vmem:[%s8568_s29 + $0x4f4] sm:$0xf0] }
 0x1df   : > { %v2556_v62 = vpop.f32.mrf.mxu3 }
 0x1e0   : > { %v2292_v57 = vpop.f32.mrf.mxu2  ;;  %v1075_v58 = vpop.f32.mrf.mxu0 }
 0x1e1   : > { %v9138_v29 = vadd.f32 %v2551_v56, %v2292_v57  ;;  %v9140_v5 = vadd.f32 %v1334_v44, %v1075_v58  ;;  %v6737_v44 = vor.u32 %v8231_v38, %v6736_v6  ;;  %v6749_v58 = vor.u32 %v8232_v36, %v6746_v46  ;;  %v8133_v46 = vld [vmem:[%s8568_s29 + $0x1d4] sm:$0xf0] }
 0x1e3   : > { %11057 = vst [vmem:[#allocation42_spill] sm:$0xff] %v9138_v29  ;;  %v1339_v31 = vpop.f32.mrf.mxu1 }
 0x1e4   : > { %11058 = vst [vmem:[#allocation43_spill] sm:$0xff] %v9140_v5 }
 0x1e7   : > { %v2558_v21 = vpop.f32.mrf.mxu3 }
 0x1e8   : > { %v2294_v55 = vpop.f32.mrf.mxu2  ;;  %v1078_v57 = vpop.f32.mrf.mxu0 }
 0x1e9   : > { %v9152_v56 = vadd.f32 %v2553_v37, %v2294_v55  ;;  %v9154_v51 = vadd.f32 %v1337_v45, %v1078_v57  ;;  %v8234_v55 = vld [vmem:[%s8568_s29 + $0x504] sm:$0xf]  ;;  %v6754_v57 = vld [vmem:[%s8568_s29 + $0x508] sm:$0xf0] }
 0x1eb   : > { %11059 = vst [vmem:[#allocation44_spill] sm:$0xff] %v9152_v56  ;;  %v1342_v39 = vpop.f32.mrf.mxu1  ;;  %1117 = vmatmul.bf16.gmra.mxu0 %v6139_v16  ;;  %v6146_v16 = vld [vmem:[%s8568_s29 + $0x1d0] sm:$0xf] }
 0x1ec   : > { %11060 = vst [vmem:[#allocation45_spill] sm:$0xff] %v9154_v51  ;;  %6939 = vmatmul.msk.bf16.gmra.mxu3 %vm818_vm0, %v6749_v58  ;;  %v6156_v58 = vld [vmem:[%s8568_s29 + $0x1e8] sm:$0xf0]  ;;  %v6147_v56 = vor.u32 %v8133_v46, %v6146_v16 }
 0x1ed   : > { %2336 = vmatmul.bf16.gmra.mxu2 %v6737_v44  ;;  %v8134_v44 = vld [vmem:[%s8568_s29 + $0x1e4] sm:$0xf] }
 0x1ee   : > { %6389 = vmatmul.msk.bf16.gmra.mxu1 %vm818_vm0, %v6151_v10  ;;  %v6159_v38 = vor.u32 %v8134_v44, %v6156_v58  ;;  %v6752_v44 = vld [vmem:[%s8568_s29 + $0x500] sm:$0xf]  ;;  %v8235_v58 = vld [vmem:[%s8568_s29 + $0x504] sm:$0xf0] }
 0x1ef   : > { %v2561_v37 = vpop.f32.mrf.mxu3 }
 0x1f0   : > { %v2297_v45 = vpop.f32.mrf.mxu2  ;;  %v1080_v11 = vpop.f32.mrf.mxu0 }
 0x1f1   : > { %v9160_v12 = vadd.f32 %v2556_v62, %v2297_v45  ;;  %v9162_v6 = vadd.f32 %v1339_v31, %v1080_v11  ;;  %v6745_v31 = vor.u32 %v8233_v48, %v6744_v0  ;;  %v6757_v11 = vor.u32 %v8234_v55, %v6754_v57  ;;  %v8135_v57 = vld [vmem:[%s8568_s29 + $0x1e4] sm:$0xf0] }
 0x1f3   : > { %11061 = vst [vmem:[#allocation46_spill] sm:$0xff] %v9160_v12  ;;  %v1344_v36 = vpop.f32.mrf.mxu1 }
 0x1f4   : > { %11062 = vst [vmem:[#allocation47_spill] sm:$0xff] %v9162_v6 }
 0x1f7   : > { %v2563_v29 = vpop.f32.mrf.mxu3 }
 0x1f8   : > { %v2299_v10 = vpop.f32.mrf.mxu2  ;;  %v1083_v45 = vpop.f32.mrf.mxu0 }
 0x1f9   : > { %v9174_v62 = vadd.f32 %v2558_v21, %v2299_v10  ;;  %v9176_v5 = vadd.f32 %v1342_v39, %v1083_v45  ;;  %v8236_v10 = vld [vmem:[%s8568_s29 + $0x514] sm:$0xf]  ;;  %v6762_v45 = vld [vmem:[%s8568_s29 + $0x518] sm:$0xf0] }
 0x1fb   : > { %11063 = vst [vmem:[#allocation48_spill] sm:$0xff] %v9174_v62  ;;  %v1347_v51 = vpop.f32.mrf.mxu1  ;;  %1122 = vmatmul.bf16.gmra.mxu0 %v6147_v56  ;;  %v6154_v56 = vld [vmem:[%s8568_s29 + $0x1e0] sm:$0xf] }
 0x1fc   : > { %11064 = vst [vmem:[#allocation49_spill] sm:$0xff] %v9176_v5  ;;  %6940 = vmatmul.msk.bf16.gmra.mxu3 %vm818_vm0, %v6757_v11  ;;  %v6164_v11 = vld [vmem:[%s8568_s29 + $0x1f8] sm:$0xf0]  ;;  %v6155_v62 = vor.u32 %v8135_v57, %v6154_v56 }
 0x1fd   : > { %2341 = vmatmul.bf16.gmra.mxu2 %v6745_v31  ;;  %v8136_v31 = vld [vmem:[%s8568_s29 + $0x1f4] sm:$0xf] }
 0x1fe   : > { %6390 = vmatmul.msk.bf16.gmra.mxu1 %vm818_vm0, %v6159_v38  ;;  %v6167_v48 = vor.u32 %v8136_v31, %v6164_v11  ;;  %v6760_v31 = vld [vmem:[%s8568_s29 + $0x510] sm:$0xf]  ;;  %v8237_v11 = vld [vmem:[%s8568_s29 + $0x514] sm:$0xf0] }
 0x1ff   : > { %v2566_v21 = vpop.f32.mrf.mxu3 }
 0x200   : > { %v2302_v39 = vpop.f32.mrf.mxu2  ;;  %v1085_v46 = vpop.f32.mrf.mxu0 }
 0x201   : > { %v9182_v16 = vadd.f32 %v2561_v37, %v2302_v39  ;;  %v9184_v0 = vadd.f32 %v1344_v36, %v1085_v46  ;;  %v6753_v36 = vor.u32 %v8235_v58, %v6752_v44  ;;  %v6765_v46 = vor.u32 %v8236_v10, %v6762_v45  ;;  %v8137_v45 = vld [vmem:[%s8568_s29 + $0x1f4] sm:$0xf0] }
 0x203   : > { %11065 = vst [vmem:[#allocation50_spill] sm:$0xff] %v9182_v16  ;;  %v1349_v55 = vpop.f32.mrf.mxu1 }
 0x204   : > { %11066 = vst [vmem:[#allocation51_spill] sm:$0xff] %v9184_v0 }
 0x207   : > { %v2568_v12 = vpop.f32.mrf.mxu3 }
 0x208   : > { %v2304_v38 = vpop.f32.mrf.mxu2  ;;  %v1088_v39 = vpop.f32.mrf.mxu0 }
 0x209   : > { %v9196_v37 = vadd.f32 %v2563_v29, %v2304_v38  ;;  %v9198_v6 = vadd.f32 %v1347_v51, %v1088_v39  ;;  %v8238_v38 = vld [vmem:[%s8568_s29 + $0x524] sm:$0xf]  ;;  %v6770_v39 = vld [vmem:[%s8568_s29 + $0x528] sm:$0xf0] }
 0x20b   : > { %11067 = vst [vmem:[#allocation52_spill] sm:$0xff] %v9196_v37  ;;  %v1352_v5 = vpop.f32.mrf.mxu1  ;;  %1127 = vmatmul.bf16.gmra.mxu0 %v6155_v62  ;;  %v6162_v62 = vld [vmem:[%s8568_s29 + $0x1f0] sm:$0xf] }
 0x20c   : > { %11068 = vst [vmem:[#allocation53_spill] sm:$0xff] %v9198_v6  ;;  %6941 = vmatmul.msk.bf16.gmra.mxu3 %vm818_vm0, %v6765_v46  ;;  %v6172_v46 = vld [vmem:[%s8568_s29 + $0x208] sm:$0xf0]  ;;  %v6163_v37 = vor.u32 %v8137_v45, %v6162_v62 }
 0x20d   : > { %2346 = vmatmul.bf16.gmra.mxu2 %v6753_v36  ;;  %v8138_v36 = vld [vmem:[%s8568_s29 + $0x204] sm:$0xf] }
 0x20e   : > { %6391 = vmatmul.msk.bf16.gmra.mxu1 %vm818_vm0, %v6167_v48  ;;  %v6175_v58 = vor.u32 %v8138_v36, %v6172_v46  ;;  %v6768_v36 = vld [vmem:[%s8568_s29 + $0x520] sm:$0xf]  ;;  %v8239_v46 = vld [vmem:[%s8568_s29 + $0x524] sm:$0xf0] }
 0x20f   : > { %v2571_v29 = vpop.f32.mrf.mxu3 }
 0x210   : > { %v2307_v51 = vpop.f32.mrf.mxu2  ;;  %v1090_v57 = vpop.f32.mrf.mxu0 }
 0x211   : > { %v9204_v56 = vadd.f32 %v2566_v21, %v2307_v51  ;;  %v9206_v44 = vadd.f32 %v1349_v55, %v1090_v57  ;;  %v6761_v55 = vor.u32 %v8237_v11, %v6760_v31  ;;  %v6773_v57 = vor.u32 %v8238_v38, %v6770_v39  ;;  %v8139_v39 = vld [vmem:[%s8568_s29 + $0x204] sm:$0xf0] }
 0x213   : > { %11069 = vst [vmem:[#allocation54_spill] sm:$0xff] %v9204_v56  ;;  %v1354_v10 = vpop.f32.mrf.mxu1 }
 0x214   : > { %11070 = vst [vmem:[#allocation55_spill] sm:$0xff] %v9206_v44 }
 0x217   : > { %v2573_v16 = vpop.f32.mrf.mxu3 }
 0x218   : > { %v2309_v48 = vpop.f32.mrf.mxu2  ;;  %v1093_v51 = vpop.f32.mrf.mxu0 }
 0x219   : > { %v9218_v21 = vadd.f32 %v2568_v12, %v2309_v48  ;;  %v9220_v0 = vadd.f32 %v1352_v5, %v1093_v51  ;;  %v8240_v48 = vld [vmem:[%s8568_s29 + $0x534] sm:$0xf]  ;;  %v6778_v51 = vld [vmem:[%s8568_s29 + $0x538] sm:$0xf0] }
 0x21b   : > { %11071 = vst [vmem:[#allocation56_spill] sm:$0xff] %v9218_v21  ;;  %v1357_v6 = vpop.f32.mrf.mxu1  ;;  %1132 = vmatmul.bf16.gmra.mxu0 %v6163_v37  ;;  %v6170_v37 = vld [vmem:[%s8568_s29 + $0x200] sm:$0xf] }
 0x21c   : > { %11072 = vst [vmem:[#allocation57_spill] sm:$0xff] %v9220_v0  ;;  %6942 = vmatmul.msk.bf16.gmra.mxu3 %vm818_vm0, %v6773_v57  ;;  %v6180_v57 = vld [vmem:[%s8568_s29 + $0x218] sm:$0xf0]  ;;  %v6171_v21 = vor.u32 %v8139_v39, %v6170_v37 }
 0x21d   : > { %2351 = vmatmul.bf16.gmra.mxu2 %v6761_v55  ;;  %v8140_v55 = vld [vmem:[%s8568_s29 + $0x214] sm:$0xf] }
 0x21e   : > { %6392 = vmatmul.msk.bf16.gmra.mxu1 %vm818_vm0, %v6175_v58  ;;  %v6183_v11 = vor.u32 %v8140_v55, %v6180_v57  ;;  %v6776_v55 = vld [vmem:[%s8568_s29 + $0x530] sm:$0xf]  ;;  %v8241_v57 = vld [vmem:[%s8568_s29 + $0x534] sm:$0xf0] }
 0x21f   : > { %v2576_v12 = vpop.f32.mrf.mxu3 }
 0x220   : > { %v2312_v5 = vpop.f32.mrf.mxu2  ;;  %v1095_v45 = vpop.f32.mrf.mxu0 }
 0x221   : > { %v9226_v62 = vadd.f32 %v2571_v29, %v2312_v5  ;;  %v9228_v31 = vadd.f32 %v1354_v10, %v1095_v45  ;;  %v6769_v10 = vor.u32 %v8239_v46, %v6768_v36  ;;  %v6781_v45 = vor.u32 %v8240_v48, %v6778_v51  ;;  %v8141_v51 = vld [vmem:[%s8568_s29 + $0x214] sm:$0xf0] }
 0x223   : > { %11073 = vst [vmem:[#allocation58_spill] sm:$0xff] %v9226_v62  ;;  %v1359_v38 = vpop.f32.mrf.mxu1 }
 0x224   : > { %11074 = vst [vmem:[#allocation59_spill] sm:$0xff] %v9228_v31 }
 0x227   : > { %v2578_v56 = vpop.f32.mrf.mxu3 }
 0x228   : > { %v2314_v58 = vpop.f32.mrf.mxu2  ;;  %v1098_v5 = vpop.f32.mrf.mxu0 }
 0x229   : > { %v9240_v29 = vadd.f32 %v2573_v16, %v2314_v58  ;;  %v9242_v44 = vadd.f32 %v1357_v6, %v1098_v5  ;;  %v8242_v58 = vld [vmem:[%s8568_s29 + $0x544] sm:$0xf]  ;;  %v6786_v5 = vld [vmem:[%s8568_s29 + $0x548] sm:$0xf0] }
 0x22b   : > { %11075 = vst [vmem:[#allocation60_spill] sm:$0xff] %v9240_v29  ;;  %v1362_v0 = vpop.f32.mrf.mxu1  ;;  %1137 = vmatmul.bf16.gmra.mxu0 %v6171_v21  ;;  %v6178_v21 = vld [vmem:[%s8568_s29 + $0x210] sm:$0xf] }
 0x22c   : > { %11076 = vst [vmem:[#allocation61_spill] sm:$0xff] %v9242_v44  ;;  %6943 = vmatmul.msk.bf16.gmra.mxu3 %vm818_vm0, %v6781_v45  ;;  %v6188_v45 = vld [vmem:[%s8568_s29 + $0x228] sm:$0xf0]  ;;  %v6179_v29 = vor.u32 %v8141_v51, %v6178_v21 }
 0x22d   : > { %2356 = vmatmul.bf16.gmra.mxu2 %v6769_v10  ;;  %v8142_v10 = vld [vmem:[%s8568_s29 + $0x224] sm:$0xf] }
 0x22e   : > { %6393 = vmatmul.msk.bf16.gmra.mxu1 %vm818_vm0, %v6183_v11  ;;  %v6191_v46 = vor.u32 %v8142_v10, %v6188_v45  ;;  %v6784_v10 = vld [vmem:[%s8568_s29 + $0x540] sm:$0xf]  ;;  %v8243_v45 = vld [vmem:[%s8568_s29 + $0x544] sm:$0xf0] }
 0x22f   : > { %v2581_v16 = vpop.f32.mrf.mxu3 }
 0x230   : > { %v2317_v6 = vpop.f32.mrf.mxu2  ;;  %v1100_v39 = vpop.f32.mrf.mxu0 }
 0x231   : > { %v9248_v37 = vadd.f32 %v2576_v12, %v2317_v6  ;;  %v9250_v36 = vadd.f32 %v1359_v38, %v1100_v39  ;;  %v6777_v38 = vor.u32 %v8241_v57, %v6776_v55  ;;  %v6789_v39 = vor.u32 %v8242_v58, %v6786_v5  ;;  %v8143_v5 = vld [vmem:[%s8568_s29 + $0x224] sm:$0xf0] }
 0x233   : > { %11077 = vst [vmem:[#allocation62_spill] sm:$0xff] %v9248_v37  ;;  %v1364_v48 = vpop.f32.mrf.mxu1 }
 0x234   : > { %11078 = vst [vmem:[#allocation63_spill] sm:$0xff] %v9250_v36 }
 0x237   : > { %v2583_v62 = vpop.f32.mrf.mxu3 }
 0x238   : > { %v2319_v11 = vpop.f32.mrf.mxu2  ;;  %v1103_v6 = vpop.f32.mrf.mxu0 }
 0x239   : > { %v9262_v12 = vadd.f32 %v2578_v56, %v2319_v11  ;;  %v9264_v31 = vadd.f32 %v1362_v0, %v1103_v6  ;;  %v8244_v11 = vld [vmem:[%s8568_s29 + $0x554] sm:$0xf]  ;;  %v6794_v6 = vld [vmem:[%s8568_s29 + $0x558] sm:$0xf0] }
 0x23b   : > { %11079 = vst [vmem:[#allocation64_spill] sm:$0xff] %v9262_v12  ;;  %v1367_v44 = vpop.f32.mrf.mxu1  ;;  %1142 = vmatmul.bf16.gmra.mxu0 %v6179_v29  ;;  %v6186_v29 = vld [vmem:[%s8568_s29 + $0x220] sm:$0xf] }
 0x23c   : > { %11080 = vst [vmem:[#allocation65_spill] sm:$0xff] %v9264_v31  ;;  %6944 = vmatmul.msk.bf16.gmra.mxu3 %vm818_vm0, %v6789_v39  ;;  %v6196_v39 = vld [vmem:[%s8568_s29 + $0x238] sm:$0xf0]  ;;  %v6187_v12 = vor.u32 %v8143_v5, %v6186_v29 }
 0x23d   : > { %2361 = vmatmul.bf16.gmra.mxu2 %v6777_v38  ;;  %v8144_v38 = vld [vmem:[%s8568_s29 + $0x234] sm:$0xf] }
 0x23e   : > { %6394 = vmatmul.msk.bf16.gmra.mxu1 %vm818_vm0, %v6191_v46  ;;  %v6199_v57 = vor.u32 %v8144_v38, %v6196_v39  ;;  %v6792_v38 = vld [vmem:[%s8568_s29 + $0x550] sm:$0xf]  ;;  %v8245_v39 = vld [vmem:[%s8568_s29 + $0x554] sm:$0xf0] }
 0x23f   : > { %v2586_v56 = vpop.f32.mrf.mxu3 }
 0x240   : > { %v2322_v0 = vpop.f32.mrf.mxu2  ;;  %v1105_v51 = vpop.f32.mrf.mxu0 }
 0x241   : > { %v9270_v21 = vadd.f32 %v2581_v16, %v2322_v0  ;;  %v9272_v55 = vadd.f32 %v1364_v48, %v1105_v51  ;;  %v6785_v48 = vor.u32 %v8243_v45, %v6784_v10  ;;  %v6797_v51 = vor.u32 %v8244_v11, %v6794_v6  ;;  %v8145_v6 = vld [vmem:[%s8568_s29 + $0x234] sm:$0xf0] }
 0x243   : > { %11081 = vst [vmem:[#allocation66_spill] sm:$0xff] %v9270_v21  ;;  %v1369_v58 = vpop.f32.mrf.mxu1 }
 0x244   : > { %11082 = vst [vmem:[#allocation67_spill] sm:$0xff] %v9272_v55 }
 0x247   : > { %v2588_v37 = vpop.f32.mrf.mxu3 }
 0x248   : > { %v2324_v46 = vpop.f32.mrf.mxu2  ;;  %v1108_v0 = vpop.f32.mrf.mxu0 }
 0x249   : > { %v9284_v16 = vadd.f32 %v2583_v62, %v2324_v46  ;;  %v9286_v36 = vadd.f32 %v1367_v44, %v1108_v0  ;;  %v8246_v46 = vld [vmem:[%s8568_s29 + $0x564] sm:$0xf]  ;;  %v6802_v0 = vld [vmem:[%s8568_s29 + $0x568] sm:$0xf0] }
 0x24b   : > { %11083 = vst [vmem:[#allocation68_spill] sm:$0xff] %v9284_v16  ;;  %v1372_v31 = vpop.f32.mrf.mxu1  ;;  %1147 = vmatmul.bf16.gmra.mxu0 %v6187_v12  ;;  %v6194_v12 = vld [vmem:[%s8568_s29 + $0x230] sm:$0xf] }
 0x24c   : > { %11084 = vst [vmem:[#allocation69_spill] sm:$0xff] %v9286_v36  ;;  %6945 = vmatmul.msk.bf16.gmra.mxu3 %vm818_vm0, %v6797_v51  ;;  %v6204_v51 = vld [vmem:[%s8568_s29 + $0x248] sm:$0xf0]  ;;  %v6195_v16 = vor.u32 %v8145_v6, %v6194_v12 }
 0x24d   : > { %2366 = vmatmul.bf16.gmra.mxu2 %v6785_v48  ;;  %v8146_v48 = vld [vmem:[%s8568_s29 + $0x244] sm:$0xf] }
 0x24e   : > { %6395 = vmatmul.msk.bf16.gmra.mxu1 %vm818_vm0, %v6199_v57  ;;  %v6207_v45 = vor.u32 %v8146_v48, %v6204_v51  ;;  %v6800_v48 = vld [vmem:[%s8568_s29 + $0x560] sm:$0xf]  ;;  %v8247_v51 = vld [vmem:[%s8568_s29 + $0x564] sm:$0xf0] }
 0x24f   : > { %v2591_v62 = vpop.f32.mrf.mxu3 }
 0x250   : > { %v2327_v44 = vpop.f32.mrf.mxu2  ;;  %v1110_v5 = vpop.f32.mrf.mxu0 }
 0x251   : > { %v9292_v29 = vadd.f32 %v2586_v56, %v2327_v44  ;;  %v9294_v10 = vadd.f32 %v1369_v58, %v1110_v5  ;;  %v6793_v58 = vor.u32 %v8245_v39, %v6792_v38  ;;  %v6805_v5 = vor.u32 %v8246_v46, %v6802_v0  ;;  %v8147_v0 = vld [vmem:[%s8568_s29 + $0x244] sm:$0xf0] }
 0x253   : > { %11085 = vst [vmem:[#allocation70_spill] sm:$0xff] %v9292_v29  ;;  %v1374_v11 = vpop.f32.mrf.mxu1 }
 0x254   : > { %11086 = vst [vmem:[#allocation71_spill] sm:$0xff] %v9294_v10 }
 0x257   : > { %v2593_v21 = vpop.f32.mrf.mxu3 }
 0x258   : > { %v2329_v57 = vpop.f32.mrf.mxu2  ;;  %v1113_v44 = vpop.f32.mrf.mxu0 }
 0x259   : > { %v9306_v56 = vadd.f32 %v2588_v37, %v2329_v57  ;;  %v9308_v55 = vadd.f32 %v1372_v31, %v1113_v44  ;;  %v8248_v57 = vld [vmem:[%s8568_s29 + $0x574] sm:$0xf]  ;;  %v6810_v44 = vld [vmem:[%s8568_s29 + $0x578] sm:$0xf0] }
 0x25b   : > { %11087 = vst [vmem:[#allocation72_spill] sm:$0xff] %v9306_v56  ;;  %v1377_v36 = vpop.f32.mrf.mxu1  ;;  %1152 = vmatmul.bf16.gmra.mxu0 %v6195_v16  ;;  %v6202_v16 = vld [vmem:[%s8568_s29 + $0x240] sm:$0xf] }
 0x25c   : > { %11088 = vst [vmem:[#allocation73_spill] sm:$0xff] %v9308_v55  ;;  %6946 = vmatmul.msk.bf16.gmra.mxu3 %vm818_vm0, %v6805_v5  ;;  %v6212_v5 = vld [vmem:[%s8568_s29 + $0x258] sm:$0xf0]  ;;  %v6203_v56 = vor.u32 %v8147_v0, %v6202_v16 }
 0x25d   : > { %2371 = vmatmul.bf16.gmra.mxu2 %v6793_v58  ;;  %v8148_v58 = vld [vmem:[%s8568_s29 + $0x254] sm:$0xf] }
 0x25e   : > { %6396 = vmatmul.msk.bf16.gmra.mxu1 %vm818_vm0, %v6207_v45  ;;  %v6215_v39 = vor.u32 %v8148_v58, %v6212_v5  ;;  %v6808_v58 = vld [vmem:[%s8568_s29 + $0x570] sm:$0xf]  ;;  %v8249_v5 = vld [vmem:[%s8568_s29 + $0x574] sm:$0xf0] }
 0x25f   : > { %v2596_v37 = vpop.f32.mrf.mxu3 }
 0x260   : > { %v2332_v31 = vpop.f32.mrf.mxu2  ;;  %v1115_v6 = vpop.f32.mrf.mxu0 }
 0x261   : > { %v9314_v12 = vadd.f32 %v2591_v62, %v2332_v31  ;;  %v9316_v38 = vadd.f32 %v1374_v11, %v1115_v6  ;;  %v6801_v11 = vor.u32 %v8247_v51, %v6800_v48  ;;  %v6813_v6 = vor.u32 %v8248_v57, %v6810_v44  ;;  %v8149_v44 = vld [vmem:[%s8568_s29 + $0x254] sm:$0xf0] }
 0x263   : > { %11089 = vst [vmem:[#allocation74_spill] sm:$0xff] %v9314_v12  ;;  %v1379_v46 = vpop.f32.mrf.mxu1 }
 0x264   : > { %11090 = vst [vmem:[#allocation75_spill] sm:$0xff] %v9316_v38 }
 0x267   : > { %v2598_v29 = vpop.f32.mrf.mxu3 }
 0x268   : > { %v2334_v45 = vpop.f32.mrf.mxu2  ;;  %v1118_v31 = vpop.f32.mrf.mxu0 }
 0x269   : > { %v9328_v62 = vadd.f32 %v2593_v21, %v2334_v45  ;;  %v9330_v10 = vadd.f32 %v1377_v36, %v1118_v31  ;;  %v8250_v45 = vld [vmem:[%s8568_s29 + $0x584] sm:$0xf]  ;;  %v6818_v31 = vld [vmem:[%s8568_s29 + $0x588] sm:$0xf0] }
 0x26b   : > { %11091 = vst [vmem:[#allocation76_spill] sm:$0xff] %v9328_v62  ;;  %v1382_v55 = vpop.f32.mrf.mxu1  ;;  %1157 = vmatmul.bf16.gmra.mxu0 %v6203_v56  ;;  %v6210_v56 = vld [vmem:[%s8568_s29 + $0x250] sm:$0xf] }
 0x26c   : > { %11092 = vst [vmem:[#allocation77_spill] sm:$0xff] %v9330_v10  ;;  %6947 = vmatmul.msk.bf16.gmra.mxu3 %vm818_vm0, %v6813_v6  ;;  %v6220_v6 = vld [vmem:[%s8568_s29 + $0x268] sm:$0xf0]  ;;  %v6211_v62 = vor.u32 %v8149_v44, %v6210_v56 }
 0x26d   : > { %2376 = vmatmul.bf16.gmra.mxu2 %v6801_v11  ;;  %v8150_v11 = vld [vmem:[%s8568_s29 + $0x264] sm:$0xf] }
 0x26e   : > { %6397 = vmatmul.msk.bf16.gmra.mxu1 %vm818_vm0, %v6215_v39  ;;  %v6223_v51 = vor.u32 %v8150_v11, %v6220_v6  ;;  %v6816_v11 = vld [vmem:[%s8568_s29 + $0x580] sm:$0xf]  ;;  %v8251_v6 = vld [vmem:[%s8568_s29 + $0x584] sm:$0xf0] }
 0x26f   : > { %v2601_v21 = vpop.f32.mrf.mxu3 }
 0x270   : > { %v2337_v36 = vpop.f32.mrf.mxu2  ;;  %v1120_v0 = vpop.f32.mrf.mxu0 }
 0x271   : > { %v9336_v16 = vadd.f32 %v2596_v37, %v2337_v36  ;;  %v9338_v48 = vadd.f32 %v1379_v46, %v1120_v0  ;;  %v6809_v46 = vor.u32 %v8249_v5, %v6808_v58  ;;  %v6821_v0 = vor.u32 %v8250_v45, %v6818_v31  ;;  %v8151_v31 = vld [vmem:[%s8568_s29 + $0x264] sm:$0xf0] }
 0x273   : > { %11093 = vst [vmem:[#allocation78_spill] sm:$0xff] %v9336_v16  ;;  %v1384_v57 = vpop.f32.mrf.mxu1 }
 0x274   : > { %11094 = vst [vmem:[#allocation79_spill] sm:$0xff] %v9338_v48 }
 0x277   : > { %v2603_v12 = vpop.f32.mrf.mxu3 }
 0x278   : > { %v2339_v39 = vpop.f32.mrf.mxu2  ;;  %v1123_v36 = vpop.f32.mrf.mxu0 }
 0x279   : > { %v9350_v37 = vadd.f32 %v2598_v29, %v2339_v39  ;;  %v9352_v38 = vadd.f32 %v1382_v55, %v1123_v36  ;;  %v8252_v39 = vld [vmem:[%s8568_s29 + $0x594] sm:$0xf]  ;;  %v6826_v36 = vld [vmem:[%s8568_s29 + $0x598] sm:$0xf0] }
 0x27b   : > { %11095 = vst [vmem:[#allocation80_spill] sm:$0xff] %v9350_v37  ;;  %v1387_v10 = vpop.f32.mrf.mxu1  ;;  %1162 = vmatmul.bf16.gmra.mxu0 %v6211_v62  ;;  %v6218_v62 = vld [vmem:[%s8568_s29 + $0x260] sm:$0xf] }
 0x27c   : > { %11096 = vst [vmem:[#allocation81_spill] sm:$0xff] %v9352_v38  ;;  %6948 = vmatmul.msk.bf16.gmra.mxu3 %vm818_vm0, %v6821_v0  ;;  %v6228_v0 = vld [vmem:[%s8568_s29 + $0x278] sm:$0xf0]  ;;  %v6219_v37 = vor.u32 %v8151_v31, %v6218_v62 }
 0x27d   : > { %2381 = vmatmul.bf16.gmra.mxu2 %v6809_v46  ;;  %v8152_v46 = vld [vmem:[%s8568_s29 + $0x274] sm:$0xf] }
 0x27e   : > { %6398 = vmatmul.msk.bf16.gmra.mxu1 %vm818_vm0, %v6223_v51  ;;  %v6231_v5 = vor.u32 %v8152_v46, %v6228_v0  ;;  %v6824_v46 = vld [vmem:[%s8568_s29 + $0x590] sm:$0xf]  ;;  %v8253_v0 = vld [vmem:[%s8568_s29 + $0x594] sm:$0xf0] }
 0x27f   : > { %v2606_v29 = vpop.f32.mrf.mxu3 }
 0x280   : > { %v2342_v55 = vpop.f32.mrf.mxu2  ;;  %v1125_v44 = vpop.f32.mrf.mxu0 }
 0x281   : > { %v9358_v56 = vadd.f32 %v2601_v21, %v2342_v55  ;;  %v9360_v58 = vadd.f32 %v1384_v57, %v1125_v44  ;;  %v6817_v57 = vor.u32 %v8251_v6, %v6816_v11  ;;  %v6829_v44 = vor.u32 %v8252_v39, %v6826_v36  ;;  %v8153_v36 = vld [vmem:[%s8568_s29 + $0x274] sm:$0xf0] }
 0x283   : > { %11097 = vst [vmem:[#allocation82_spill] sm:$0xff] %v9358_v56  ;;  %v1389_v45 = vpop.f32.mrf.mxu1 }
 0x284   : > { %11098 = vst [vmem:[#allocation83_spill] sm:$0xff] %v9360_v58 }
 0x287   : > { %v2608_v16 = vpop.f32.mrf.mxu3 }
 0x288   : > { %v2344_v51 = vpop.f32.mrf.mxu2  ;;  %v1128_v55 = vpop.f32.mrf.mxu0 }
 0x289   : > { %v9372_v21 = vadd.f32 %v2603_v12, %v2344_v51  ;;  %v9374_v48 = vadd.f32 %v1387_v10, %v1128_v55  ;;  %v8254_v51 = vld [vmem:[%s8568_s29 + $0x5a4] sm:$0xf]  ;;  %v6834_v55 = vld [vmem:[%s8568_s29 + $0x5a8] sm:$0xf0] }
 0x28b   : > { %11099 = vst [vmem:[#allocation84_spill] sm:$0xff] %v9372_v21  ;;  %v1392_v38 = vpop.f32.mrf.mxu1  ;;  %1167 = vmatmul.bf16.gmra.mxu0 %v6219_v37  ;;  %v6226_v37 = vld [vmem:[%s8568_s29 + $0x270] sm:$0xf] }
 0x28c   : > { %11100 = vst [vmem:[#allocation85_spill] sm:$0xff] %v9374_v48  ;;  %6949 = vmatmul.msk.bf16.gmra.mxu3 %vm818_vm0, %v6829_v44  ;;  %v6236_v44 = vld [vmem:[%s8568_s29 + $0x288] sm:$0xf0]  ;;  %v6227_v21 = vor.u32 %v8153_v36, %v6226_v37 }
 0x28d   : > { %2386 = vmatmul.bf16.gmra.mxu2 %v6817_v57  ;;  %v8154_v57 = vld [vmem:[%s8568_s29 + $0x284] sm:$0xf] }
 0x28e   : > { %6399 = vmatmul.msk.bf16.gmra.mxu1 %vm818_vm0, %v6231_v5  ;;  %v6239_v6 = vor.u32 %v8154_v57, %v6236_v44  ;;  %v6832_v57 = vld [vmem:[%s8568_s29 + $0x5a0] sm:$0xf]  ;;  %v8255_v44 = vld [vmem:[%s8568_s29 + $0x5a4] sm:$0xf0] }
 0x28f   : > { %v2611_v12 = vpop.f32.mrf.mxu3 }
 0x290   : > { %v2347_v10 = vpop.f32.mrf.mxu2  ;;  %v1130_v31 = vpop.f32.mrf.mxu0 }
 0x291   : > { %v9380_v62 = vadd.f32 %v2606_v29, %v2347_v10  ;;  %v9382_v11 = vadd.f32 %v1389_v45, %v1130_v31  ;;  %v6825_v45 = vor.u32 %v8253_v0, %v6824_v46  ;;  %v6837_v31 = vor.u32 %v8254_v51, %v6834_v55  ;;  %v8155_v55 = vld [vmem:[%s8568_s29 + $0x284] sm:$0xf0] }
 0x293   : > { %11101 = vst [vmem:[#allocation86_spill] sm:$0xff] %v9380_v62  ;;  %v1394_v39 = vpop.f32.mrf.mxu1 }
 0x294   : > { %11102 = vst [vmem:[#allocation87_spill] sm:$0xff] %v9382_v11 }
 0x297   : > { %v2613_v56 = vpop.f32.mrf.mxu3 }
 0x298   : > { %v2349_v5 = vpop.f32.mrf.mxu2  ;;  %v1133_v10 = vpop.f32.mrf.mxu0 }
 0x299   : > { %v9394_v29 = vadd.f32 %v2608_v16, %v2349_v5  ;;  %v9396_v58 = vadd.f32 %v1392_v38, %v1133_v10  ;;  %v8256_v5 = vld [vmem:[%s8568_s29 + $0x5b4] sm:$0xf]  ;;  %v6842_v10 = vld [vmem:[%s8568_s29 + $0x5b8] sm:$0xf0] }
 0x29b   : > { %11103 = vst [vmem:[#allocation88_spill] sm:$0xff] %v9394_v29  ;;  %v1397_v48 = vpop.f32.mrf.mxu1  ;;  %1172 = vmatmul.bf16.gmra.mxu0 %v6227_v21  ;;  %v6234_v21 = vld [vmem:[%s8568_s29 + $0x280] sm:$0xf] }
 0x29c   : > { %11104 = vst [vmem:[#allocation89_spill] sm:$0xff] %v9396_v58  ;;  %6950 = vmatmul.msk.bf16.gmra.mxu3 %vm818_vm0, %v6837_v31  ;;  %v6244_v31 = vld [vmem:[%s8568_s29 + $0x298] sm:$0xf0]  ;;  %v6235_v29 = vor.u32 %v8155_v55, %v6234_v21 }
 0x29d   : > { %2391 = vmatmul.bf16.gmra.mxu2 %v6825_v45  ;;  %v8156_v45 = vld [vmem:[%s8568_s29 + $0x294] sm:$0xf] }
 0x29e   : > { %6400 = vmatmul.msk.bf16.gmra.mxu1 %vm818_vm0, %v6239_v6  ;;  %v6247_v0 = vor.u32 %v8156_v45, %v6244_v31  ;;  %v6840_v45 = vld [vmem:[%s8568_s29 + $0x5b0] sm:$0xf]  ;;  %v8257_v31 = vld [vmem:[%s8568_s29 + $0x5b4] sm:$0xf0] }
 0x29f   : > { %v2616_v16 = vpop.f32.mrf.mxu3 }
 0x2a0   : > { %v2352_v38 = vpop.f32.mrf.mxu2  ;;  %v1135_v36 = vpop.f32.mrf.mxu0 }
 0x2a1   : > { %v9402_v37 = vadd.f32 %v2611_v12, %v2352_v38  ;;  %v9404_v46 = vadd.f32 %v1394_v39, %v1135_v36  ;;  %v6833_v39 = vor.u32 %v8255_v44, %v6832_v57  ;;  %v6845_v36 = vor.u32 %v8256_v5, %v6842_v10  ;;  %v8157_v10 = vld [vmem:[%s8568_s29 + $0x294] sm:$0xf0] }
 0x2a3   : > { %11105 = vst [vmem:[#allocation90_spill] sm:$0xff] %v9402_v37  ;;  %v1399_v51 = vpop.f32.mrf.mxu1 }
 0x2a4   : > { %11106 = vst [vmem:[#allocation91_spill] sm:$0xff] %v9404_v46 }
 0x2a7   : > { %v2618_v62 = vpop.f32.mrf.mxu3 }
 0x2a8   : > { %v2354_v6 = vpop.f32.mrf.mxu2  ;;  %v1138_v38 = vpop.f32.mrf.mxu0 }
 0x2a9   : > { %v9416_v12 = vadd.f32 %v2613_v56, %v2354_v6  ;;  %v9418_v11 = vadd.f32 %v1397_v48, %v1138_v38  ;;  %v8258_v6 = vld [vmem:[%s8568_s29 + $0x5c4] sm:$0xf]  ;;  %v6850_v38 = vld [vmem:[%s8568_s29 + $0x5c8] sm:$0xf0] }
 0x2ab   : > { %11107 = vst [vmem:[#allocation92_spill] sm:$0xff] %v9416_v12  ;;  %v1402_v58 = vpop.f32.mrf.mxu1  ;;  %1177 = vmatmul.bf16.gmra.mxu0 %v6235_v29  ;;  %v6242_v29 = vld [vmem:[%s8568_s29 + $0x290] sm:$0xf] }
 0x2ac   : > { %11108 = vst [vmem:[#allocation93_spill] sm:$0xff] %v9418_v11  ;;  %6951 = vmatmul.msk.bf16.gmra.mxu3 %vm818_vm0, %v6845_v36  ;;  %v6252_v36 = vld [vmem:[%s8568_s29 + $0x2a8] sm:$0xf0]  ;;  %v6243_v12 = vor.u32 %v8157_v10, %v6242_v29 }
 0x2ad   : > { %2396 = vmatmul.bf16.gmra.mxu2 %v6833_v39  ;;  %v8158_v39 = vld [vmem:[%s8568_s29 + $0x2a4] sm:$0xf] }
 0x2ae   : > { %6401 = vmatmul.msk.bf16.gmra.mxu1 %vm818_vm0, %v6247_v0  ;;  %v6255_v44 = vor.u32 %v8158_v39, %v6252_v36  ;;  %v6848_v39 = vld [vmem:[%s8568_s29 + $0x5c0] sm:$0xf]  ;;  %v8259_v36 = vld [vmem:[%s8568_s29 + $0x5c4] sm:$0xf0] }
 0x2af   : > { %v2621_v56 = vpop.f32.mrf.mxu3 }
 0x2b0   : > { %v2357_v48 = vpop.f32.mrf.mxu2  ;;  %v1140_v55 = vpop.f32.mrf.mxu0 }
 0x2b1   : > { %v9424_v21 = vadd.f32 %v2616_v16, %v2357_v48  ;;  %v9426_v57 = vadd.f32 %v1399_v51, %v1140_v55  ;;  %v6841_v51 = vor.u32 %v8257_v31, %v6840_v45  ;;  %v6853_v55 = vor.u32 %v8258_v6, %v6850_v38  ;;  %v8159_v38 = vld [vmem:[%s8568_s29 + $0x2a4] sm:$0xf0] }
 0x2b3   : > { %11109 = vst [vmem:[#allocation94_spill] sm:$0xff] %v9424_v21  ;;  %v1404_v5 = vpop.f32.mrf.mxu1 }
 0x2b4   : > { %11110 = vst [vmem:[#allocation95_spill] sm:$0xff] %v9426_v57 }
 0x2b7   : > { %v2623_v37 = vpop.f32.mrf.mxu3 }
 0x2b8   : > { %v2359_v0 = vpop.f32.mrf.mxu2  ;;  %v1143_v48 = vpop.f32.mrf.mxu0 }
 0x2b9   : > { %v9438_v16 = vadd.f32 %v2618_v62, %v2359_v0  ;;  %v9440_v46 = vadd.f32 %v1402_v58, %v1143_v48  ;;  %v8260_v0 = vld [vmem:[%s8568_s29 + $0x5d4] sm:$0xf]  ;;  %v6858_v48 = vld [vmem:[%s8568_s29 + $0x5d8] sm:$0xf0] }
 0x2bb   : > { %11111 = vst [vmem:[#allocation96_spill] sm:$0xff] %v9438_v16  ;;  %v1407_v11 = vpop.f32.mrf.mxu1  ;;  %1182 = vmatmul.bf16.gmra.mxu0 %v6243_v12  ;;  %v6250_v12 = vld [vmem:[%s8568_s29 + $0x2a0] sm:$0xf] }
 0x2bc   : > { %11112 = vst [vmem:[#allocation97_spill] sm:$0xff] %v9440_v46  ;;  %6952 = vmatmul.msk.bf16.gmra.mxu3 %vm818_vm0, %v6853_v55  ;;  %v6260_v55 = vld [vmem:[%s8568_s29 + $0x2b8] sm:$0xf0]  ;;  %v6251_v16 = vor.u32 %v8159_v38, %v6250_v12 }
 0x2bd   : > { %2401 = vmatmul.bf16.gmra.mxu2 %v6841_v51  ;;  %v8160_v51 = vld [vmem:[%s8568_s29 + $0x2b4] sm:$0xf] }
 0x2be   : > { %6402 = vmatmul.msk.bf16.gmra.mxu1 %vm818_vm0, %v6255_v44  ;;  %v6263_v31 = vor.u32 %v8160_v51, %v6260_v55  ;;  %v6856_v51 = vld [vmem:[%s8568_s29 + $0x5d0] sm:$0xf]  ;;  %v8261_v55 = vld [vmem:[%s8568_s29 + $0x5d4] sm:$0xf0] }
 0x2bf   : > { %v2626_v62 = vpop.f32.mrf.mxu3 }
 0x2c0   : > { %v2362_v58 = vpop.f32.mrf.mxu2  ;;  %v1145_v10 = vpop.f32.mrf.mxu0 }
 0x2c1   : > { %v9446_v29 = vadd.f32 %v2621_v56, %v2362_v58  ;;  %v9448_v45 = vadd.f32 %v1404_v5, %v1145_v10  ;;  %v6849_v5 = vor.u32 %v8259_v36, %v6848_v39  ;;  %v6861_v10 = vor.u32 %v8260_v0, %v6858_v48  ;;  %v8161_v48 = vld [vmem:[%s8568_s29 + $0x2b4] sm:$0xf0] }
 0x2c3   : > { %11113 = vst [vmem:[#allocation98_spill] sm:$0xff] %v9446_v29  ;;  %v1409_v6 = vpop.f32.mrf.mxu1 }
 0x2c4   : > { %11114 = vst [vmem:[#allocation99_spill] sm:$0xff] %v9448_v45 }
 0x2c7   : > { %v2628_v21 = vpop.f32.mrf.mxu3 }
 0x2c8   : > { %v2364_v44 = vpop.f32.mrf.mxu2  ;;  %v1148_v58 = vpop.f32.mrf.mxu0 }
 0x2c9   : > { %v9460_v56 = vadd.f32 %v2623_v37, %v2364_v44  ;;  %v9462_v57 = vadd.f32 %v1407_v11, %v1148_v58  ;;  %v8262_v44 = vld [vmem:[%s8568_s29 + $0x5e4] sm:$0xf]  ;;  %v6866_v58 = vld [vmem:[%s8568_s29 + $0x5e8] sm:$0xf0] }
 0x2cb   : > { %11115 = vst [vmem:[#allocation100_spill] sm:$0xff] %v9460_v56  ;;  %v1412_v46 = vpop.f32.mrf.mxu1  ;;  %1187 = vmatmul.bf16.gmra.mxu0 %v6251_v16  ;;  %v6258_v16 = vld [vmem:[%s8568_s29 + $0x2b0] sm:$0xf] }
 0x2cc   : > { %11116 = vst [vmem:[#allocation101_spill] sm:$0xff] %v9462_v57  ;;  %6953 = vmatmul.msk.bf16.gmra.mxu3 %vm818_vm0, %v6861_v10  ;;  %v6268_v10 = vld [vmem:[%s8568_s29 + $0x2c8] sm:$0xf0]  ;;  %v6259_v56 = vor.u32 %v8161_v48, %v6258_v16 }
 0x2cd   : > { %2406 = vmatmul.bf16.gmra.mxu2 %v6849_v5  ;;  %v8162_v5 = vld [vmem:[%s8568_s29 + $0x2c4] sm:$0xf] }
 0x2ce   : > { %6403 = vmatmul.msk.bf16.gmra.mxu1 %vm818_vm0, %v6263_v31  ;;  %v6271_v36 = vor.u32 %v8162_v5, %v6268_v10  ;;  %v6864_v5 = vld [vmem:[%s8568_s29 + $0x5e0] sm:$0xf]  ;;  %v8263_v10 = vld [vmem:[%s8568_s29 + $0x5e4] sm:$0xf0] }
 0x2cf   : > { %v2631_v37 = vpop.f32.mrf.mxu3 }
 0x2d0   : > { %v2367_v11 = vpop.f32.mrf.mxu2  ;;  %v1150_v38 = vpop.f32.mrf.mxu0 }
 0x2d1   : > { %v9468_v12 = vadd.f32 %v2626_v62, %v2367_v11  ;;  %v9470_v39 = vadd.f32 %v1409_v6, %v1150_v38  ;;  %v6857_v6 = vor.u32 %v8261_v55, %v6856_v51  ;;  %v6869_v38 = vor.u32 %v8262_v44, %v6866_v58  ;;  %v8163_v58 = vld [vmem:[%s8568_s29 + $0x2c4] sm:$0xf0] }
 0x2d3   : > { %11117 = vst [vmem:[#allocation102_spill] sm:$0xff] %v9468_v12  ;;  %v1414_v0 = vpop.f32.mrf.mxu1 }
 0x2d4   : > { %11118 = vst [vmem:[#allocation103_spill] sm:$0xff] %v9470_v39 }
 0x2d7   : > { %v2633_v29 = vpop.f32.mrf.mxu3 }
 0x2d8   : > { %v2369_v31 = vpop.f32.mrf.mxu2  ;;  %v1153_v11 = vpop.f32.mrf.mxu0 }
 0x2d9   : > { %v9482_v62 = vadd.f32 %v2628_v21, %v2369_v31  ;;  %v9484_v45 = vadd.f32 %v1412_v46, %v1153_v11  ;;  %v8264_v31 = vld [vmem:[%s8568_s29 + $0x5f4] sm:$0xf]  ;;  %v6874_v11 = vld [vmem:[%s8568_s29 + $0x5f8] sm:$0xf0] }
 0x2db   : > { %11119 = vst [vmem:[#allocation104_spill] sm:$0xff] %v9482_v62  ;;  %v1417_v57 = vpop.f32.mrf.mxu1  ;;  %1192 = vmatmul.bf16.gmra.mxu0 %v6259_v56  ;;  %v6266_v56 = vld [vmem:[%s8568_s29 + $0x2c0] sm:$0xf] }
 0x2dc   : > { %11120 = vst [vmem:[#allocation105_spill] sm:$0xff] %v9484_v45  ;;  %6954 = vmatmul.msk.bf16.gmra.mxu3 %vm818_vm0, %v6869_v38  ;;  %v6276_v38 = vld [vmem:[%s8568_s29 + $0x2d8] sm:$0xf0]  ;;  %v6267_v62 = vor.u32 %v8163_v58, %v6266_v56 }
 0x2dd   : > { %2411 = vmatmul.bf16.gmra.mxu2 %v6857_v6  ;;  %v8164_v6 = vld [vmem:[%s8568_s29 + $0x2d4] sm:$0xf] }
 0x2de   : > { %6404 = vmatmul.msk.bf16.gmra.mxu1 %vm818_vm0, %v6271_v36  ;;  %v6279_v55 = vor.u32 %v8164_v6, %v6276_v38  ;;  %v6872_v6 = vld [vmem:[%s8568_s29 + $0x5f0] sm:$0xf]  ;;  %v8265_v38 = vld [vmem:[%s8568_s29 + $0x5f4] sm:$0xf0] }
 0x2df   : > { %v2636_v21 = vpop.f32.mrf.mxu3 }
 0x2e0   : > { %v2372_v46 = vpop.f32.mrf.mxu2  ;;  %v1155_v48 = vpop.f32.mrf.mxu0 }
 0x2e1   : > { %v9490_v16 = vadd.f32 %v2631_v37, %v2372_v46  ;;  %v9492_v51 = vadd.f32 %v1414_v0, %v1155_v48  ;;  %v6865_v0 = vor.u32 %v8263_v10, %v6864_v5  ;;  %v6877_v48 = vor.u32 %v8264_v31, %v6874_v11  ;;  %v8165_v11 = vld [vmem:[%s8568_s29 + $0x2d4] sm:$0xf0] }
 0x2e3   : > { %11121 = vst [vmem:[#allocation106_spill] sm:$0xff] %v9490_v16  ;;  %v1419_v44 = vpop.f32.mrf.mxu1 }
 0x2e4   : > { %11122 = vst [vmem:[#allocation107_spill] sm:$0xff] %v9492_v51 }
 0x2e7   : > { %v2638_v12 = vpop.f32.mrf.mxu3 }
 0x2e8   : > { %v2374_v36 = vpop.f32.mrf.mxu2  ;;  %v1158_v46 = vpop.f32.mrf.mxu0 }
 0x2e9   : > { %v9504_v37 = vadd.f32 %v2633_v29, %v2374_v36  ;;  %v9506_v39 = vadd.f32 %v1417_v57, %v1158_v46  ;;  %v8266_v36 = vld [vmem:[%s8568_s29 + $0x604] sm:$0xf]  ;;  %v6882_v46 = vld [vmem:[%s8568_s29 + $0x608] sm:$0xf0] }
 0x2eb   : > { %11123 = vst [vmem:[#allocation108_spill] sm:$0xff] %v9504_v37  ;;  %v1422_v45 = vpop.f32.mrf.mxu1  ;;  %1197 = vmatmul.bf16.gmra.mxu0 %v6267_v62  ;;  %v6274_v62 = vld [vmem:[%s8568_s29 + $0x2d0] sm:$0xf] }
 0x2ec   : > { %11124 = vst [vmem:[#allocation109_spill] sm:$0xff] %v9506_v39  ;;  %6955 = vmatmul.msk.bf16.gmra.mxu3 %vm818_vm0, %v6877_v48  ;;  %v6284_v48 = vld [vmem:[%s8568_s29 + $0x2e8] sm:$0xf0]  ;;  %v6275_v37 = vor.u32 %v8165_v11, %v6274_v62 }
 0x2ed   : > { %2416 = vmatmul.bf16.gmra.mxu2 %v6865_v0  ;;  %v8166_v0 = vld [vmem:[%s8568_s29 + $0x2e4] sm:$0xf] }
 0x2ee   : > { %6405 = vmatmul.msk.bf16.gmra.mxu1 %vm818_vm0, %v6279_v55  ;;  %v6287_v10 = vor.u32 %v8166_v0, %v6284_v48  ;;  %v6880_v0 = vld [vmem:[%s8568_s29 + $0x600] sm:$0xf]  ;;  %v8267_v48 = vld [vmem:[%s8568_s29 + $0x604] sm:$0xf0] }
 0x2ef   : > { %v2641_v29 = vpop.f32.mrf.mxu3 }
 0x2f0   : > { %v2377_v57 = vpop.f32.mrf.mxu2  ;;  %v1160_v58 = vpop.f32.mrf.mxu0 }
 0x2f1   : > { %v9512_v56 = vadd.f32 %v2636_v21, %v2377_v57  ;;  %v9514_v5 = vadd.f32 %v1419_v44, %v1160_v58  ;;  %v6873_v44 = vor.u32 %v8265_v38, %v6872_v6  ;;  %v6885_v58 = vor.u32 %v8266_v36, %v6882_v46  ;;  %v8167_v46 = vld [vmem:[%s8568_s29 + $0x2e4] sm:$0xf0] }
 0x2f3   : > { %11125 = vst [vmem:[#allocation110_spill] sm:$0xff] %v9512_v56  ;;  %v1424_v31 = vpop.f32.mrf.mxu1 }
 0x2f4   : > { %11126 = vst [vmem:[#allocation111_spill] sm:$0xff] %v9514_v5 }
 0x2f7   : > { %v2643_v16 = vpop.f32.mrf.mxu3 }
 0x2f8   : > { %v2379_v55 = vpop.f32.mrf.mxu2  ;;  %v1163_v57 = vpop.f32.mrf.mxu0 }
 0x2f9   : > { %v9526_v21 = vadd.f32 %v2638_v12, %v2379_v55  ;;  %v9528_v51 = vadd.f32 %v1422_v45, %v1163_v57  ;;  %v8268_v55 = vld [vmem:[%s8568_s29 + $0x614] sm:$0xf]  ;;  %v6890_v57 = vld [vmem:[%s8568_s29 + $0x618] sm:$0xf0] }
 0x2fb   : > { %11127 = vst [vmem:[#allocation112_spill] sm:$0xff] %v9526_v21  ;;  %v1427_v39 = vpop.f32.mrf.mxu1  ;;  %1202 = vmatmul.bf16.gmra.mxu0 %v6275_v37  ;;  %v6282_v37 = vld [vmem:[%s8568_s29 + $0x2e0] sm:$0xf] }
 0x2fc   : > { %11128 = vst [vmem:[#allocation113_spill] sm:$0xff] %v9528_v51  ;;  %6956 = vmatmul.msk.bf16.gmra.mxu3 %vm818_vm0, %v6885_v58  ;;  %v6292_v58 = vld [vmem:[%s8568_s29 + $0x2f8] sm:$0xf0]  ;;  %v6283_v21 = vor.u32 %v8167_v46, %v6282_v37 }
 0x2fd   : > { %2421 = vmatmul.bf16.gmra.mxu2 %v6873_v44  ;;  %v8168_v44 = vld [vmem:[%s8568_s29 + $0x2f4] sm:$0xf] }
 0x2fe   : > { %6406 = vmatmul.msk.bf16.gmra.mxu1 %vm818_vm0, %v6287_v10  ;;  %v6295_v38 = vor.u32 %v8168_v44, %v6292_v58  ;;  %v6888_v44 = vld [vmem:[%s8568_s29 + $0x610] sm:$0xf]  ;;  %v8269_v58 = vld [vmem:[%s8568_s29 + $0x614] sm:$0xf0] }
 0x2ff   : > { %v2646_v12 = vpop.f32.mrf.mxu3 }
 0x300   : > { %v2382_v45 = vpop.f32.mrf.mxu2  ;;  %v1165_v11 = vpop.f32.mrf.mxu0 }
 0x301   : > { %v9534_v62 = vadd.f32 %v2641_v29, %v2382_v45  ;;  %v9536_v6 = vadd.f32 %v1424_v31, %v1165_v11  ;;  %v6881_v31 = vor.u32 %v8267_v48, %v6880_v0  ;;  %v6893_v11 = vor.u32 %v8268_v55, %v6890_v57  ;;  %v8169_v57 = vld [vmem:[%s8568_s29 + $0x2f4] sm:$0xf0] }
 0x303   : > { %11129 = vst [vmem:[#allocation114_spill] sm:$0xff] %v9534_v62  ;;  %v1429_v36 = vpop.f32.mrf.mxu1 }
 0x304   : > { %11130 = vst [vmem:[#allocation115_spill] sm:$0xff] %v9536_v6 }
 0x307   : > { %v2648_v56 = vpop.f32.mrf.mxu3 }
 0x308   : > { %v2384_v10 = vpop.f32.mrf.mxu2  ;;  %v1168_v45 = vpop.f32.mrf.mxu0 }
 0x309   : > { %v9548_v29 = vadd.f32 %v2643_v16, %v2384_v10  ;;  %v9550_v5 = vadd.f32 %v1427_v39, %v1168_v45  ;;  %v8270_v10 = vld [vmem:[%s8568_s29 + $0x624] sm:$0xf]  ;;  %v6898_v45 = vld [vmem:[%s8568_s29 + $0x628] sm:$0xf0] }
 0x30b   : > { %11131 = vst [vmem:[#allocation116_spill] sm:$0xff] %v9548_v29  ;;  %v1432_v51 = vpop.f32.mrf.mxu1  ;;  %1207 = vmatmul.bf16.gmra.mxu0 %v6283_v21  ;;  %v6290_v21 = vld [vmem:[%s8568_s29 + $0x2f0] sm:$0xf] }
 0x30c   : > { %11132 = vst [vmem:[#allocation117_spill] sm:$0xff] %v9550_v5  ;;  %6957 = vmatmul.msk.bf16.gmra.mxu3 %vm818_vm0, %v6893_v11  ;;  %v6300_v11 = vld [vmem:[%s8568_s29 + $0x308] sm:$0xf0]  ;;  %v6291_v29 = vor.u32 %v8169_v57, %v6290_v21 }
 0x30d   : > { %2426 = vmatmul.bf16.gmra.mxu2 %v6881_v31  ;;  %v8170_v31 = vld [vmem:[%s8568_s29 + $0x304] sm:$0xf] }
 0x30e   : > { %6407 = vmatmul.msk.bf16.gmra.mxu1 %vm818_vm0, %v6295_v38  ;;  %v6303_v48 = vor.u32 %v8170_v31, %v6300_v11  ;;  %v6896_v31 = vld [vmem:[%s8568_s29 + $0x620] sm:$0xf]  ;;  %v8271_v11 = vld [vmem:[%s8568_s29 + $0x624] sm:$0xf0] }
 0x30f   : > { %v2651_v16 = vpop.f32.mrf.mxu3 }
 0x310   : > { %v2387_v39 = vpop.f32.mrf.mxu2  ;;  %v1170_v46 = vpop.f32.mrf.mxu0 }
 0x311   : > { %v9556_v37 = vadd.f32 %v2646_v12, %v2387_v39  ;;  %v9558_v0 = vadd.f32 %v1429_v36, %v1170_v46  ;;  %v6889_v36 = vor.u32 %v8269_v58, %v6888_v44  ;;  %v6901_v46 = vor.u32 %v8270_v10, %v6898_v45  ;;  %v8171_v45 = vld [vmem:[%s8568_s29 + $0x304] sm:$0xf0] }
 0x313   : > { %11133 = vst [vmem:[#allocation118_spill] sm:$0xff] %v9556_v37  ;;  %v1434_v55 = vpop.f32.mrf.mxu1 }
 0x314   : > { %11134 = vst [vmem:[#allocation119_spill] sm:$0xff] %v9558_v0 }
 0x317   : > { %v2653_v62 = vpop.f32.mrf.mxu3 }
 0x318   : > { %v2389_v38 = vpop.f32.mrf.mxu2  ;;  %v1173_v39 = vpop.f32.mrf.mxu0 }
 0x319   : > { %v9570_v12 = vadd.f32 %v2648_v56, %v2389_v38  ;;  %v9572_v6 = vadd.f32 %v1432_v51, %v1173_v39  ;;  %v8272_v38 = vld [vmem:[%s8568_s29 + $0x634] sm:$0xf]  ;;  %v6906_v39 = vld [vmem:[%s8568_s29 + $0x638] sm:$0x70] }
 0x31b   : > { %11135 = vst [vmem:[#allocation120_spill] sm:$0xff] %v9570_v12  ;;  %v1437_v5 = vpop.f32.mrf.mxu1  ;;  %1212 = vmatmul.bf16.gmra.mxu0 %v6291_v29  ;;  %v6298_v29 = vld [vmem:[%s8568_s29 + $0x300] sm:$0xf] }
 0x31c   : > { %11136 = vst [vmem:[#allocation121_spill] sm:$0xff] %v9572_v6  ;;  %6958 = vmatmul.msk.bf16.gmra.mxu3 %vm818_vm0, %v6901_v46  ;;  %v6308_v46 = vld [vmem:[%s8568_s29 + $0x318] sm:$0x70]  ;;  %v6299_v12 = vor.u32 %v8171_v45, %v6298_v29 }
 0x31d   : > { %2431 = vmatmul.bf16.gmra.mxu2 %v6889_v36  ;;  %v8172_v36 = vld [vmem:[%s8568_s29 + $0x314] sm:$0xf] }
 0x31e   : > { %6408 = vmatmul.msk.bf16.gmra.mxu1 %vm818_vm0, %v6303_v48  ;;  %v6311_v58 = vor.u32 %v8172_v36, %v6308_v46  ;;  %v6904_v36 = vld [vmem:[%s8568_s29 + $0x630] sm:$0xf]  ;;  %v8273_v46 = vld [vmem:[%s8568_s29 + $0x634] sm:$0x70] }
 0x31f   : > { %v2656_v56 = vpop.f32.mrf.mxu3 }
 0x320   : > { %v2392_v51 = vpop.f32.mrf.mxu2  ;;  %v1175_v57 = vpop.f32.mrf.mxu0 }
 0x321   : > { %v9578_v21 = vadd.f32 %v2651_v16, %v2392_v51  ;;  %v9580_v44 = vadd.f32 %v1434_v55, %v1175_v57  ;;  %v6897_v55 = vor.u32 %v8271_v11, %v6896_v31  ;;  %v6909_v57 = vor.u32 %v8272_v38, %v6906_v39  ;;  %v8173_v39 = vld [vmem:[%s8568_s29 + $0x314] sm:$0x70] }
 0x323   : > { %11137 = vst [vmem:[#allocation122_spill] sm:$0xff] %v9578_v21  ;;  %v1439_v10 = vpop.f32.mrf.mxu1 }
 0x324   : > { %11138 = vst [vmem:[#allocation123_spill] sm:$0xff] %v9580_v44 }
 0x327   : > { %v2658_v37 = vpop.f32.mrf.mxu3 }
 0x328   : > { %v2394_v48 = vpop.f32.mrf.mxu2  ;;  %v1178_v51 = vpop.f32.mrf.mxu0 }
 0x329   : > { %v9592_v16 = vadd.f32 %v2653_v62, %v2394_v48  ;;  %v9594_v0 = vadd.f32 %v1437_v5, %v1178_v51  ;;  %v8274_v48 = vld [vmem:[%s8568_s29 + $0x644] sm:$0xf]  ;;  %v7064_v51 = vld [vmem:[%s8568_s29 + $0x648] sm:$0xf0] }
 0x32b   : > { %11139 = vst [vmem:[#allocation124_spill] sm:$0xff] %v9592_v16  ;;  %v1442_v6 = vpop.f32.mrf.mxu1  ;;  %1217 = vmatmul.bf16.gmra.mxu0 %v6299_v12  ;;  %v6306_v12 = vld [vmem:[%s8568_s29 + $0x310] sm:$0xf] }
 0x32c   : > { %11140 = vst [vmem:[#allocation125_spill] sm:$0xff] %v9594_v0  ;;  %6959 = vmatmul.msk.bf16.gmra.mxu3 %vm818_vm0, %v6909_v57  ;;  %v8275_v57 = vld [vmem:[%s8568_s29 + $0x644] sm:$0xf0]  ;;  %v6307_v16 = vor.u32 %v8173_v39, %v6306_v12 }
 0x32d   : > { %2436 = vmatmul.bf16.gmra.mxu2 %v6897_v55  ;;  %v7062_v55 = vld [vmem:[%s8568_s29 + $0x640] sm:$0xf] }
 0x32e   : > { %6409 = vmatmul.msk.bf16.gmra.mxu1 %vm818_vm0, %v6311_v58  ;;  %v7063_v11 = vor.u32 %v8275_v57, %v7062_v55  ;;  %v8375_v55 = vld [vmem:[%s8568_s29 + $0x964] sm:$0xf0]  ;;  %v7072_v57 = vld [vmem:[%s8568_s29 + $0x658] sm:$0xf0] }
 0x32f   : > { %v2661_v62 = vpop.f32.mrf.mxu3 }
 0x330   : > { %v2397_v5 = vpop.f32.mrf.mxu2  ;;  %v1180_v45 = vpop.f32.mrf.mxu0 }
 0x331   : > { %v9600_v29 = vadd.f32 %v2656_v56, %v2397_v5  ;;  %v9602_v31 = vadd.f32 %v1439_v10, %v1180_v45  ;;  %v6905_v10 = vor.u32 %v8273_v46, %v6904_v36  ;;  %v7067_v45 = vor.u32 %v8274_v48, %v7064_v51  ;;  %v8276_v51 = vld [vmem:[%s8568_s29 + $0x654] sm:$0xf] }
 0x333   : > { %11141 = vst [vmem:[#allocation126_spill] sm:$0xff] %v9600_v29  ;;  %v1444_v38 = vpop.f32.mrf.mxu1 }
 0x334   : > { %11142 = vst [vmem:[#allocation127_spill] sm:$0xff] %v9602_v31 }
 0x337   : > { %v2663_v21 = vpop.f32.mrf.mxu3 }
 0x338   : > { %v2399_v58 = vpop.f32.mrf.mxu2  ;;  %v1183_v5 = vpop.f32.mrf.mxu0 }
 0x339   : > { %v9614_v56 = vadd.f32 %v2658_v37, %v2399_v58  ;;  %v9616_v44 = vadd.f32 %v1442_v6, %v1183_v5  ;;  %v8374_v58 = vld [vmem:[%s8568_s29 + $0x964] sm:$0xf]  ;;  %v7614_v5 = vld [vmem:[%s8568_s29 + $0x968] sm:$0xf0] }
 0x33b   : > { %11143 = vst [vmem:[#allocation128_spill] sm:$0xff] %v9614_v56  ;;  %v1447_v0 = vpop.f32.mrf.mxu1  ;;  %1222 = vmatmul.bf16.gmra.mxu0 %v6307_v16  ;;  %v7612_v16 = vld [vmem:[%s8568_s29 + $0x960] sm:$0xf] }
 0x33c   : > { %11144 = vst [vmem:[#allocation129_spill] sm:$0xff] %v9616_v44  ;;  %7460 = vmatmul.msk.bf16.vlgmr.msrb.gmra.mxu3 %vm818_vm0, %v7067_v45  ;;  %v8277_v45 = vld [vmem:[%s8568_s29 + $0x654] sm:$0xf0]  ;;  %v7613_v56 = vor.u32 %v8375_v55, %v7612_v16 }
 0x33d   : > { %2441 = vmatmul.bf16.gmra.mxu2 %v6905_v10  ;;  %v7070_v10 = vld [vmem:[%s8568_s29 + $0x650] sm:$0xf] }
 0x33e   : > { %3515 = vmatmul.bf16.vlgmr.msrb.gmra.mxu1 %v7063_v11  ;;  %v7071_v46 = vor.u32 %v8277_v45, %v7070_v10  ;;  %v8377_v10 = vld [vmem:[%s8568_s29 + $0x974] sm:$0xf0]  ;;  %v7080_v45 = vld [vmem:[%s8568_s29 + $0x668] sm:$0xf0] }
 0x33f   : > { %v2666_v6 = vpop.f32.mrf.mxu3 }
 0x340   : > { %v2402_v37 = vpop.f32.mrf.mxu2  ;;  %v1185_v39 = vpop.f32.mrf.mxu0 }
 0x341   : > { %v9621_v12 = vadd.f32 %v2661_v62, %v2402_v37  ;;  %v9623_v36 = vadd.f32 %v1444_v38, %v1185_v39  ;;  %v7075_v38 = vor.u32 %v8276_v51, %v7072_v57  ;;  %v7617_v39 = vor.u32 %v8374_v58, %v7614_v5  ;;  %v7620_v5 = vld [vmem:[%s8568_s29 + $0x970] sm:$0xf] }
 0x343   : > { %11145 = vst [vmem:[#allocation130_spill] sm:$0xff] %v9621_v12  ;;  %v1449_v48 = vpop.f32.mrf.mxu1 }
 0x344   : > { %11146 = vst [vmem:[#allocation131_spill] sm:$0xff] %v9623_v36 }
 0x347   : > { %v2668_v29 = vpop.f32.mrf.mxu3 }
 0x348   : > { %v2404_v11 = vpop.f32.mrf.mxu2  ;;  %v1188_v37 = vpop.f32.mrf.mxu0 }
 0x349   : > { %v9635_v62 = vadd.f32 %v2663_v21, %v2404_v11  ;;  %v9637_v31 = vadd.f32 %v1447_v0, %v1188_v37  ;;  %v8376_v11 = vld [vmem:[%s8568_s29 + $0x974] sm:$0xf]  ;;  %v7622_v37 = vld [vmem:[%s8568_s29 + $0x978] sm:$0xf0] }
 0x34b   : > { %11147 = vst [vmem:[#allocation132_spill] sm:$0xff] %v9635_v62  ;;  %v1452_v44 = vpop.f32.mrf.mxu1  ;;  %4834 = vmatmul.bf16.vlgmr.msrb.gmra.mxu0 %v7613_v56  ;;  %v8278_v56 = vld [vmem:[%s8568_s29 + $0x664] sm:$0xf]  ;;  %v7621_v62 = vor.u32 %v8377_v10, %v7620_v5 }
 0x34c   : > { %11148 = vst [vmem:[#allocation133_spill] sm:$0xff] %v9637_v31  ;;  %7461 = vmatmul.msk.bf16.gmra.mxu3 %vm818_vm0, %v7075_v38  ;;  %v7078_v38 = vld [vmem:[%s8568_s29 + $0x660] sm:$0xf] }
 0x34d   : > { %8010 = vmatmul.msk.bf16.vlgmr.msrb.gmra.mxu2 %vm818_vm0, %v7617_v39  ;;  %v8279_v39 = vld [vmem:[%s8568_s29 + $0x664] sm:$0xf0] }
 0x34e   : > { %3520 = vmatmul.bf16.gmra.mxu1 %v7071_v46  ;;  %v7079_v57 = vor.u32 %v8279_v39, %v7078_v38  ;;  %v8379_v38 = vld [vmem:[%s8568_s29 + $0x984] sm:$0xf0]  ;;  %v7088_v39 = vld [vmem:[%s8568_s29 + $0x678] sm:$0xf0] }
 0x34f   : > { %v2671_v21 = vpop.f32.mrf.mxu3 }
 0x350   : > { %v2407_v0 = vpop.f32.mrf.mxu2  ;;  %v1190_v16 = vpop.f32.mrf.mxu0 }
 0x351   : > { %v9643_v51 = vadd.f32 %v2666_v6, %v2407_v0  ;;  %v9645_v55 = vadd.f32 %v1449_v48, %v1190_v16  ;;  %v7083_v48 = vor.u32 %v8278_v56, %v7080_v45  ;;  %v7625_v16 = vor.u32 %v8376_v11, %v7622_v37  ;;  %v7628_v37 = vld [vmem:[%s8568_s29 + $0x980] sm:$0xf] }
 0x353   : > { %11149 = vst [vmem:[#allocation134_spill] sm:$0xff] %v9643_v51  ;;  %v1454_v58 = vpop.f32.mrf.mxu1 }
 0x354   : > { %11150 = vst [vmem:[#allocation135_spill] sm:$0xff] %v9645_v55 }
 0x357   : > { %v2673_v12 = vpop.f32.mrf.mxu3 }
 0x358   : > { %v2409_v46 = vpop.f32.mrf.mxu2  ;;  %v1193_v0 = vpop.f32.mrf.mxu0 }
 0x359   : > { %v9657_v6 = vadd.f32 %v2668_v29, %v2409_v46  ;;  %v9659_v36 = vadd.f32 %v1452_v44, %v1193_v0  ;;  %v8378_v46 = vld [vmem:[%s8568_s29 + $0x984] sm:$0xf]  ;;  %v7630_v0 = vld [vmem:[%s8568_s29 + $0x988] sm:$0xf0] }
 0x35b   : > { %11151 = vst [vmem:[#allocation136_spill] sm:$0xff] %v9657_v6  ;;  %v1457_v31 = vpop.f32.mrf.mxu1  ;;  %4839 = vmatmul.bf16.gmra.mxu0 %v7621_v62  ;;  %v8280_v62 = vld [vmem:[%s8568_s29 + $0x674] sm:$0xf]  ;;  %v7629_v6 = vor.u32 %v8379_v38, %v7628_v37 }
 0x35c   : > { %11152 = vst [vmem:[#allocation137_spill] sm:$0xff] %v9659_v36  ;;  %7462 = vmatmul.msk.bf16.gmra.mxu3 %vm818_vm0, %v7083_v48  ;;  %v7086_v48 = vld [vmem:[%s8568_s29 + $0x670] sm:$0xf] }
 0x35d   : > { %8011 = vmatmul.msk.bf16.gmra.mxu2 %vm818_vm0, %v7625_v16  ;;  %v8281_v16 = vld [vmem:[%s8568_s29 + $0x674] sm:$0xf0] }
 0x35e   : > { %3525 = vmatmul.bf16.gmra.mxu1 %v7079_v57  ;;  %v7087_v45 = vor.u32 %v8281_v16, %v7086_v48  ;;  %v8381_v48 = vld [vmem:[%s8568_s29 + $0x994] sm:$0xf0]  ;;  %v7096_v16 = vld [vmem:[%s8568_s29 + $0x688] sm:$0xf0] }
 0x35f   : > { %v2676_v29 = vpop.f32.mrf.mxu3 }
 0x360   : > { %v2412_v44 = vpop.f32.mrf.mxu2  ;;  %v1195_v5 = vpop.f32.mrf.mxu0 }
 0x361   : > { %v9665_v56 = vadd.f32 %v2671_v21, %v2412_v44  ;;  %v9667_v10 = vadd.f32 %v1454_v58, %v1195_v5  ;;  %v7091_v58 = vor.u32 %v8280_v62, %v7088_v39  ;;  %v7633_v5 = vor.u32 %v8378_v46, %v7630_v0  ;;  %v7636_v0 = vld [vmem:[%s8568_s29 + $0x990] sm:$0xf] }
 0x363   : > { %11153 = vst [vmem:[#allocation138_spill] sm:$0xff] %v9665_v56  ;;  %v1459_v11 = vpop.f32.mrf.mxu1 }
 0x364   : > { %11154 = vst [vmem:[#allocation139_spill] sm:$0xff] %v9667_v10 }
 0x367   : > { %v2678_v51 = vpop.f32.mrf.mxu3 }
 0x368   : > { %v2414_v57 = vpop.f32.mrf.mxu2  ;;  %v1198_v44 = vpop.f32.mrf.mxu0 }
 0x369   : > { %v9679_v21 = vadd.f32 %v2673_v12, %v2414_v57  ;;  %v9681_v55 = vadd.f32 %v1457_v31, %v1198_v44  ;;  %v8380_v57 = vld [vmem:[%s8568_s29 + $0x994] sm:$0xf]  ;;  %v7638_v44 = vld [vmem:[%s8568_s29 + $0x998] sm:$0xf0] }
 0x36b   : > { %11155 = vst [vmem:[#allocation140_spill] sm:$0xff] %v9679_v21  ;;  %v1462_v36 = vpop.f32.mrf.mxu1  ;;  %4844 = vmatmul.bf16.gmra.mxu0 %v7629_v6  ;;  %v8282_v6 = vld [vmem:[%s8568_s29 + $0x684] sm:$0xf]  ;;  %v7637_v21 = vor.u32 %v8381_v48, %v7636_v0 }
 0x36c   : > { %11156 = vst [vmem:[#allocation141_spill] sm:$0xff] %v9681_v55  ;;  %7463 = vmatmul.msk.bf16.gmra.mxu3 %vm818_vm0, %v7091_v58  ;;  %v7094_v58 = vld [vmem:[%s8568_s29 + $0x680] sm:$0xf] }
 0x36d   : > { %8012 = vmatmul.msk.bf16.gmra.mxu2 %vm818_vm0, %v7633_v5  ;;  %v8283_v5 = vld [vmem:[%s8568_s29 + $0x684] sm:$0xf0] }
 0x36e   : > { %3530 = vmatmul.bf16.gmra.mxu1 %v7087_v45  ;;  %v7095_v39 = vor.u32 %v8283_v5, %v7094_v58  ;;  %v8383_v58 = vld [vmem:[%s8568_s29 + $0x9a4] sm:$0xf0]  ;;  %v7104_v5 = vld [vmem:[%s8568_s29 + $0x698] sm:$0xf0] }
 0x36f   : > { %v2681_v12 = vpop.f32.mrf.mxu3 }
 0x370   : > { %v2417_v31 = vpop.f32.mrf.mxu2  ;;  %v1200_v37 = vpop.f32.mrf.mxu0 }
 0x371   : > { %v9687_v62 = vadd.f32 %v2676_v29, %v2417_v31  ;;  %v9689_v38 = vadd.f32 %v1459_v11, %v1200_v37  ;;  %v7099_v11 = vor.u32 %v8282_v6, %v7096_v16  ;;  %v7641_v37 = vor.u32 %v8380_v57, %v7638_v44  ;;  %v7644_v44 = vld [vmem:[%s8568_s29 + $0x9a0] sm:$0xf] }
 0x373   : > { %11157 = vst [vmem:[#allocation142_spill] sm:$0xff] %v9687_v62  ;;  %v1464_v46 = vpop.f32.mrf.mxu1 }
 0x374   : > { %11158 = vst [vmem:[#allocation143_spill] sm:$0xff] %v9689_v38 }
 0x377   : > { %v2683_v56 = vpop.f32.mrf.mxu3 }
 0x378   : > { %v2419_v45 = vpop.f32.mrf.mxu2  ;;  %v1203_v31 = vpop.f32.mrf.mxu0 }
 0x379   : > { %v9701_v29 = vadd.f32 %v2678_v51, %v2419_v45  ;;  %v9703_v10 = vadd.f32 %v1462_v36, %v1203_v31  ;;  %v8382_v45 = vld [vmem:[%s8568_s29 + $0x9a4] sm:$0xf]  ;;  %v7646_v31 = vld [vmem:[%s8568_s29 + $0x9a8] sm:$0xf0] }
 0x37b   : > { %11159 = vst [vmem:[#allocation144_spill] sm:$0xff] %v9701_v29  ;;  %v1467_v55 = vpop.f32.mrf.mxu1  ;;  %4849 = vmatmul.bf16.gmra.mxu0 %v7637_v21  ;;  %v8284_v21 = vld [vmem:[%s8568_s29 + $0x694] sm:$0xf]  ;;  %v7645_v29 = vor.u32 %v8383_v58, %v7644_v44 }
 0x37c   : > { %11160 = vst [vmem:[#allocation145_spill] sm:$0xff] %v9703_v10  ;;  %7464 = vmatmul.msk.bf16.gmra.mxu3 %vm818_vm0, %v7099_v11  ;;  %v7102_v11 = vld [vmem:[%s8568_s29 + $0x690] sm:$0xf] }
 0x37d   : > { %8013 = vmatmul.msk.bf16.gmra.mxu2 %vm818_vm0, %v7641_v37  ;;  %v8285_v37 = vld [vmem:[%s8568_s29 + $0x694] sm:$0xf0] }
 0x37e   : > { %3535 = vmatmul.bf16.gmra.mxu1 %v7095_v39  ;;  %v7103_v16 = vor.u32 %v8285_v37, %v7102_v11  ;;  %v8385_v11 = vld [vmem:[%s8568_s29 + $0x9b4] sm:$0xf0]  ;;  %v7112_v37 = vld [vmem:[%s8568_s29 + $0x6a8] sm:$0xf0] }
 0x37f   : > { %v2686_v51 = vpop.f32.mrf.mxu3 }
 0x380   : > { %v2422_v36 = vpop.f32.mrf.mxu2  ;;  %v1205_v0 = vpop.f32.mrf.mxu0 }
 0x381   : > { %v9709_v6 = vadd.f32 %v2681_v12, %v2422_v36  ;;  %v9711_v48 = vadd.f32 %v1464_v46, %v1205_v0  ;;  %v7107_v46 = vor.u32 %v8284_v21, %v7104_v5  ;;  %v7649_v0 = vor.u32 %v8382_v45, %v7646_v31  ;;  %v7652_v31 = vld [vmem:[%s8568_s29 + $0x9b0] sm:$0xf] }
 0x383   : > { %11161 = vst [vmem:[#allocation146_spill] sm:$0xff] %v9709_v6  ;;  %v1469_v57 = vpop.f32.mrf.mxu1 }
 0x384   : > { %11162 = vst [vmem:[#allocation147_spill] sm:$0xff] %v9711_v48 }
 0x387   : > { %v2688_v62 = vpop.f32.mrf.mxu3 }
 0x388   : > { %v2424_v39 = vpop.f32.mrf.mxu2  ;;  %v1208_v36 = vpop.f32.mrf.mxu0 }
 0x389   : > { %v9723_v12 = vadd.f32 %v2683_v56, %v2424_v39  ;;  %v9725_v38 = vadd.f32 %v1467_v55, %v1208_v36  ;;  %v8384_v39 = vld [vmem:[%s8568_s29 + $0x9b4] sm:$0xf]  ;;  %v7654_v36 = vld [vmem:[%s8568_s29 + $0x9b8] sm:$0xf0] }
 0x38b   : > { %11163 = vst [vmem:[#allocation148_spill] sm:$0xff] %v9723_v12  ;;  %v1472_v10 = vpop.f32.mrf.mxu1  ;;  %4854 = vmatmul.bf16.gmra.mxu0 %v7645_v29  ;;  %v8286_v29 = vld [vmem:[%s8568_s29 + $0x6a4] sm:$0xf]  ;;  %v7653_v12 = vor.u32 %v8385_v11, %v7652_v31 }
 0x38c   : > { %11164 = vst [vmem:[#allocation149_spill] sm:$0xff] %v9725_v38  ;;  %7465 = vmatmul.msk.bf16.gmra.mxu3 %vm818_vm0, %v7107_v46  ;;  %v7110_v46 = vld [vmem:[%s8568_s29 + $0x6a0] sm:$0xf] }
 0x38d   : > { %8014 = vmatmul.msk.bf16.gmra.mxu2 %vm818_vm0, %v7649_v0  ;;  %v8287_v0 = vld [vmem:[%s8568_s29 + $0x6a4] sm:$0xf0] }
 0x38e   : > { %3540 = vmatmul.bf16.gmra.mxu1 %v7103_v16  ;;  %v7111_v5 = vor.u32 %v8287_v0, %v7110_v46  ;;  %v8387_v46 = vld [vmem:[%s8568_s29 + $0x9c4] sm:$0xf0]  ;;  %v7120_v0 = vld [vmem:[%s8568_s29 + $0x6b8] sm:$0xf0] }
 0x38f   : > { %v2691_v56 = vpop.f32.mrf.mxu3 }
 0x390   : > { %v2427_v55 = vpop.f32.mrf.mxu2  ;;  %v1210_v44 = vpop.f32.mrf.mxu0 }
 0x391   : > { %v9731_v21 = vadd.f32 %v2686_v51, %v2427_v55  ;;  %v9733_v58 = vadd.f32 %v1469_v57, %v1210_v44  ;;  %v7115_v57 = vor.u32 %v8286_v29, %v7112_v37  ;;  %v7657_v44 = vor.u32 %v8384_v39, %v7654_v36  ;;  %v7660_v36 = vld [vmem:[%s8568_s29 + $0x9c0] sm:$0xf] }
 0x393   : > { %11165 = vst [vmem:[#allocation150_spill] sm:$0xff] %v9731_v21  ;;  %v1474_v45 = vpop.f32.mrf.mxu1 }
 0x394   : > { %11166 = vst [vmem:[#allocation151_spill] sm:$0xff] %v9733_v58 }
 0x397   : > { %v2693_v6 = vpop.f32.mrf.mxu3 }
 0x398   : > { %v2429_v16 = vpop.f32.mrf.mxu2  ;;  %v1213_v55 = vpop.f32.mrf.mxu0 }
 0x399   : > { %v9745_v51 = vadd.f32 %v2688_v62, %v2429_v16  ;;  %v9747_v48 = vadd.f32 %v1472_v10, %v1213_v55  ;;  %v8386_v16 = vld [vmem:[%s8568_s29 + $0x9c4] sm:$0xf]  ;;  %v7662_v55 = vld [vmem:[%s8568_s29 + $0x9c8] sm:$0xf0] }
 0x39b   : > { %11167 = vst [vmem:[#allocation152_spill] sm:$0xff] %v9745_v51  ;;  %v1477_v38 = vpop.f32.mrf.mxu1  ;;  %4859 = vmatmul.bf16.gmra.mxu0 %v7653_v12  ;;  %v8288_v12 = vld [vmem:[%s8568_s29 + $0x6b4] sm:$0xf]  ;;  %v7661_v51 = vor.u32 %v8387_v46, %v7660_v36 }
 0x39c   : > { %11168 = vst [vmem:[#allocation153_spill] sm:$0xff] %v9747_v48  ;;  %7466 = vmatmul.msk.bf16.gmra.mxu3 %vm818_vm0, %v7115_v57  ;;  %v7118_v57 = vld [vmem:[%s8568_s29 + $0x6b0] sm:$0xf] }
 0x39d   : > { %8015 = vmatmul.msk.bf16.gmra.mxu2 %vm818_vm0, %v7657_v44  ;;  %v8289_v44 = vld [vmem:[%s8568_s29 + $0x6b4] sm:$0xf0] }
 0x39e   : > { %3545 = vmatmul.bf16.gmra.mxu1 %v7111_v5  ;;  %v7119_v37 = vor.u32 %v8289_v44, %v7118_v57  ;;  %v8389_v57 = vld [vmem:[%s8568_s29 + $0x9d4] sm:$0xf0]  ;;  %v7128_v44 = vld [vmem:[%s8568_s29 + $0x6c8] sm:$0xf0] }
 0x39f   : > { %v2696_v62 = vpop.f32.mrf.mxu3 }
 0x3a0   : > { %v2432_v10 = vpop.f32.mrf.mxu2  ;;  %v1215_v31 = vpop.f32.mrf.mxu0 }
 0x3a1   : > { %v9753_v29 = vadd.f32 %v2691_v56, %v2432_v10  ;;  %v9755_v11 = vadd.f32 %v1474_v45, %v1215_v31  ;;  %v7123_v45 = vor.u32 %v8288_v12, %v7120_v0  ;;  %v7665_v31 = vor.u32 %v8386_v16, %v7662_v55  ;;  %v7668_v55 = vld [vmem:[%s8568_s29 + $0x9d0] sm:$0xf] }
 0x3a3   : > { %11169 = vst [vmem:[#allocation154_spill] sm:$0xff] %v9753_v29  ;;  %v1479_v39 = vpop.f32.mrf.mxu1 }
 0x3a4   : > { %11170 = vst [vmem:[#allocation155_spill] sm:$0xff] %v9755_v11 }
 0x3a7   : > { %v2698_v21 = vpop.f32.mrf.mxu3 }
 0x3a8   : > { %v2434_v5 = vpop.f32.mrf.mxu2  ;;  %v1218_v10 = vpop.f32.mrf.mxu0 }
 0x3a9   : > { %v9767_v56 = vadd.f32 %v2693_v6, %v2434_v5  ;;  %v9769_v58 = vadd.f32 %v1477_v38, %v1218_v10  ;;  %v8388_v5 = vld [vmem:[%s8568_s29 + $0x9d4] sm:$0xf]  ;;  %v7670_v10 = vld [vmem:[%s8568_s29 + $0x9d8] sm:$0xf0] }
 0x3ab   : > { %11171 = vst [vmem:[#allocation156_spill] sm:$0xff] %v9767_v56  ;;  %v1482_v48 = vpop.f32.mrf.mxu1  ;;  %4864 = vmatmul.bf16.gmra.mxu0 %v7661_v51  ;;  %v8290_v51 = vld [vmem:[%s8568_s29 + $0x6c4] sm:$0xf]  ;;  %v7669_v56 = vor.u32 %v8389_v57, %v7668_v55 }
 0x3ac   : > { %11172 = vst [vmem:[#allocation157_spill] sm:$0xff] %v9769_v58  ;;  %7467 = vmatmul.msk.bf16.gmra.mxu3 %vm818_vm0, %v7123_v45  ;;  %v7126_v45 = vld [vmem:[%s8568_s29 + $0x6c0] sm:$0xf] }
 0x3ad   : > { %8016 = vmatmul.msk.bf16.gmra.mxu2 %vm818_vm0, %v7665_v31  ;;  %v8291_v31 = vld [vmem:[%s8568_s29 + $0x6c4] sm:$0xf0] }
 0x3ae   : > { %3550 = vmatmul.bf16.gmra.mxu1 %v7119_v37  ;;  %v7127_v0 = vor.u32 %v8291_v31, %v7126_v45  ;;  %v8391_v45 = vld [vmem:[%s8568_s29 + $0x9e4] sm:$0xf0]  ;;  %v7136_v31 = vld [vmem:[%s8568_s29 + $0x6d8] sm:$0xf0] }
 0x3af   : > { %v2701_v6 = vpop.f32.mrf.mxu3 }
 0x3b0   : > { %v2437_v38 = vpop.f32.mrf.mxu2  ;;  %v1220_v36 = vpop.f32.mrf.mxu0 }
 0x3b1   : > { %v9775_v12 = vadd.f32 %v2696_v62, %v2437_v38  ;;  %v9777_v46 = vadd.f32 %v1479_v39, %v1220_v36  ;;  %v7131_v39 = vor.u32 %v8290_v51, %v7128_v44  ;;  %v7673_v36 = vor.u32 %v8388_v5, %v7670_v10  ;;  %v7676_v10 = vld [vmem:[%s8568_s29 + $0x9e0] sm:$0xf] }
 0x3b3   : > { %11173 = vst [vmem:[#allocation158_spill] sm:$0xff] %v9775_v12  ;;  %v1484_v16 = vpop.f32.mrf.mxu1 }
 0x3b4   : > { %11174 = vst [vmem:[#allocation159_spill] sm:$0xff] %v9777_v46 }
 0x3b7   : > { %v2703_v29 = vpop.f32.mrf.mxu3 }
 0x3b8   : > { %v2439_v37 = vpop.f32.mrf.mxu2  ;;  %v1223_v38 = vpop.f32.mrf.mxu0 }
 0x3b9   : > { %v9789_v62 = vadd.f32 %v2698_v21, %v2439_v37  ;;  %v9791_v11 = vadd.f32 %v1482_v48, %v1223_v38  ;;  %v8390_v37 = vld [vmem:[%s8568_s29 + $0x9e4] sm:$0xf]  ;;  %v7678_v38 = vld [vmem:[%s8568_s29 + $0x9e8] sm:$0xf0] }
 0x3bb   : > { %11175 = vst [vmem:[#allocation160_spill] sm:$0xff] %v9789_v62  ;;  %v3516_v58 = vpop.f32.mrf.mxu1  ;;  %4869 = vmatmul.bf16.gmra.mxu0 %v7669_v56  ;;  %v8292_v56 = vld [vmem:[%s8568_s29 + $0x6d4] sm:$0xf]  ;;  %v7677_v62 = vor.u32 %v8391_v45, %v7676_v10  ;;  %v11180_v10 = vmax.f32 %v8716_v2, %v8720_v7  ;;  %v8393_v2 = vld [vmem:[%s8568_s29 + $0x9f4] sm:$0xf0] }
 0x3bc   : > { %11176 = vst [vmem:[#allocation161_spill] sm:$0xff] %v9791_v11  ;;  %7468 = vmatmul.msk.bf16.gmra.mxu3 %vm818_vm0, %v7131_v39  ;;  %v7134_v39 = vld [vmem:[%s8568_s29 + $0x6d0] sm:$0xf]  ;;  %v8392_v7 = vld [vmem:[%s8568_s29 + $0x9f4] sm:$0xf] }
 0x3bd   : > { %8017 = vmatmul.msk.bf16.gmra.mxu2 %vm818_vm0, %v7673_v36  ;;  %v8293_v36 = vld [vmem:[%s8568_s29 + $0x6d4] sm:$0xf0] }
 0x3be   : > { %3555 = vmatmul.bf16.gmra.mxu1 %v7127_v0  ;;  %v7135_v46 = vor.u32 %v8293_v36, %v7134_v39  ;;  %v7144_v36 = vld [vmem:[%s8568_s29 + $0x6e8] sm:$0xf0] }
 0x3bf   : > { %v3775_v21 = vpop.f32.mrf.mxu3 }
 0x3c0   : > { %v2442_v48 = vpop.f32.mrf.mxu2  ;;  %v1225_v55 = vpop.f32.mrf.mxu0  ;;  %v3776_v11 = vadd.f32 %v3775_v21, %v3516_v58  ;;  %v9823_v58 = vld [vmem:[%s10852_s2] ss:$0 sm:$0xff] }
 0x3c1   : > { %v9797_v51 = vadd.f32 %v2701_v6, %v2442_v48  ;;  %v9799_v57 = vadd.f32 %v1484_v16, %v1225_v55  ;;  %v7139_v16 = vor.u32 %v8292_v56, %v7136_v31  ;;  %v7681_v55 = vor.u32 %v8390_v37, %v7678_v38 }
 0x3c2   : > { %v4025_v45 = vmax.f32 %v11180_v10, %v3776_v11  ;;  %v7686_v11 = vld [vmem:[%s8568_s29 + $0x9f8] sm:$0xf0] }
 0x3c3   : > { %11177 = vst [vmem:[#allocation162_spill] sm:$0xff] %v9797_v51  ;;  %v3518_v5 = vpop.f32.mrf.mxu1 }
 0x3c4   : > { %11178 = vst [vmem:[#allocation163_spill] sm:$0xff] %v9799_v57 }
 0x3c7   : > { %v3777_v12 = vpop.f32.mrf.mxu3 }
 0x3c8   : > { %v2444_v0 = vpop.f32.mrf.mxu2  ;;  %v4835_v48 = vpop.f32.mrf.mxu0  ;;  %v3778_v38 = vadd.f32 %v3777_v12, %v3518_v5 }
 0x3c9   : > { %v9811_v6 = vadd.f32 %v2703_v29, %v2444_v0  ;;  %v7684_v0 = vld [vmem:[%s8568_s29 + $0x9f0] sm:$0xf] }
 0x3ca   : > { %v7685_v5 = vor.u32 %v8393_v2, %v7684_v0 }
 0x3cb   : > { %11179 = vst [vmem:[#allocation164_spill] sm:$0xff] %v9811_v6  ;;  %v3521_v51 = vpop.f32.mrf.mxu1  ;;  %4874 = vmatmul.bf16.gmra.mxu0 %v7677_v62  ;;  %v7689_v6 = vor.u32 %v8392_v7, %v7686_v11  ;;  %v7152_v7 = vld [vmem:[%s8568_s29 + $0x6f8] sm:$0xf0]  ;;  %v7692_v11 = vld [vmem:[%s8568_s29 + $0xa00] sm:$0xf] }
 0x3cc   : > { %7469 = vmatmul.msk.bf16.gmra.mxu3 %vm818_vm0, %v7139_v16  ;;  %v7142_v16 = vld [vmem:[%s8568_s29 + $0x6e0] sm:$0xf] }
 0x3cd   : > { %8018 = vmatmul.msk.bf16.gmra.mxu2 %vm818_vm0, %v7681_v55  ;;  %v8295_v55 = vld [vmem:[%s8568_s29 + $0x6e4] sm:$0xf0] }
 0x3ce   : > { %3560 = vmatmul.bf16.gmra.mxu1 %v7135_v46  ;;  %v8294_v46 = vld [vmem:[%s8568_s29 + $0x6e4] sm:$0xf]  ;;  %v7143_v57 = vor.u32 %v8295_v55, %v7142_v16  ;;  %v8297_v55 = vld [vmem:[%s8568_s29 + $0x6f4] sm:$0xf0] }
 0x3cf   : > { %v3780_v29 = vpop.f32.mrf.mxu3  ;;  %v7147_v12 = vor.u32 %v8294_v46, %v7144_v36  ;;  %v8394_v16 = vld [vmem:[%s8568_s29 + $0xa04] sm:$0xf] }
 0x3d0   : > { %v5094_v56 = vpop.f32.mrf.mxu2  ;;  %v4837_v62 = vpop.f32.mrf.mxu0  ;;  %v3781_v14 = vadd.f32 %v3780_v29, %v3521_v51 }
 0x3d1   : > { %v5095_v31 = vadd.f32 %v5094_v56, %v4835_v48 }
 0x3d3   : > { %v5344_v21 = vmax.f32 %v4025_v45, %v5095_v31  ;;  %v3523_v37 = vpop.f32.mrf.mxu1  ;;  %v11181_v45 = vmax.f32 %v8722_v9, %v8734_v23 }
 0x3d5   : > { %v5448_v39 = vadd.f32 %v9823_v58, %v5344_v21  ;;  %v4026_v31 = vmax.f32 %v11181_v45, %v3778_v38 }
 0x3d7   : > { %v5548_v48 = vmax.f32 %v5448_v39, 0.0  ;;  %v3782_v56 = vpop.f32.mrf.mxu3 }
 0x3d8   : > { %v5096_v10 = vpop.f32.mrf.mxu2  ;;  %v4840_v39 = vpop.f32.mrf.mxu0  ;;  %v3783_v0 = vadd.f32 %v3782_v56, %v3523_v37 }
 0x3d9   : > { %v5648_v21 = vpack.c.bf16 %v5548_v48, %v5548_v48  ;;  %v5097_v44 = vadd.f32 %v5096_v10, %v4837_v62  ;;  %v8395_v48 = vld [vmem:[%s8568_s29 + $0xa04] sm:$0xf0] }
 0x3da   : > { %v7693_v45 = vor.u32 %v8395_v48, %v7692_v11 }
 0x3db   : > { %5749 = vst.msk [vmem:[%s9838_s22] sm:$0xf] %vm5748_vm1, %v5648_v21  ;;  %v5345_v18 = vmax.f32 %v4026_v31, %v5097_v44  ;;  %v3526_v8 = vpop.f32.mrf.mxu1  ;;  %4879 = vmatmul.bf16.gmra.mxu0 %v7685_v5  ;;  %v11182_v44 = vmax.f32 %v8736_v27, %v8742_v33  ;;  %v7694_v27 = vld [vmem:[%s8568_s29 + $0xa08] sm:$0xf0]  ;;  %v11183_v31 = vmax.f32 %v8744_v35, %v8756_v49 }
 0x3dc   : > { %7470 = vmatmul.msk.bf16.gmra.mxu3 %vm818_vm0, %v7147_v12 }
 0x3dd   : > { %v5449_v46 = vadd.f32 %v9823_v58, %v5345_v18  ;;  %8019 = vmatmul.msk.bf16.gmra.mxu2 %vm818_vm0, %v7689_v6  ;;  %v4027_v38 = vmax.f32 %v11182_v44, %v3781_v14  ;;  %v7150_v14 = vld [vmem:[%s8568_s29 + $0x6f0] sm:$0xf]  ;;  %v4028_v21 = vmax.f32 %v11183_v31, %v3783_v0 }
 0x3de   : > { %3565 = vmatmul.bf16.gmra.mxu1 %v7143_v57  ;;  %v8296_v57 = vld [vmem:[%s8568_s29 + $0x6f4] sm:$0xf] }
 0x3df   : > { %v5549_v9 = vmax.f32 %v5449_v46, 0.0  ;;  %v3785_v23 = vpop.f32.mrf.mxu3  ;;  %v7155_v5 = vor.u32 %v8296_v57, %v7152_v7  ;;  %v7697_v46 = vor.u32 %v8394_v16, %v7694_v27  ;;  %v8298_v7 = vld [vmem:[%s8568_s29 + $0x704] sm:$0xf]  ;;  %v7160_v16 = vld [vmem:[%s8568_s29 + $0x708] sm:$0xf0] }
 0x3e0   : > { %v5099_v62 = vpop.f32.mrf.mxu2  ;;  %v4842_v29 = vpop.f32.mrf.mxu0  ;;  %v7700_v27 = vld [vmem:[%s8568_s29 + $0xa10] sm:$0xf]  ;;  %v7163_v31 = vor.u32 %v8298_v7, %v7160_v16  ;;  %v7708_v16 = vld [vmem:[%s8568_s29 + $0xa20] sm:$0xf] }
 0x3e1   : > { %v5649_v51 = vpack.c.bf16 %v5549_v9, %v5549_v9  ;;  %v5100_v18 = vadd.f32 %v5099_v62, %v4840_v39  ;;  %v7151_v9 = vor.u32 %v8297_v55, %v7150_v14  ;;  %v8396_v14 = vld [vmem:[%s8568_s29 + $0xa14] sm:$0xf]  ;;  %v7158_v55 = vld [vmem:[%s8568_s29 + $0x700] sm:$0xf] }
 0x3e3   : > { %5750 = vst.msk [vmem:[%s9838_s22 + $0x4] sm:$0xf] %vm5748_vm1, %v5649_v51  ;;  %v5346_v6 = vmax.f32 %v4027_v38, %v5100_v18  ;;  %v3528_v36 = vpop.f32.mrf.mxu1  ;;  %v3786_v38 = vadd.f32 %v3785_v23, %v3526_v8 }
 0x3e5   : > { %v5450_v2 = vadd.f32 %v9823_v58, %v5346_v6 }
 0x3e7   : > { %v5550_v33 = vmax.f32 %v5450_v2, 0.0  ;;  %v3787_v10 = vpop.f32.mrf.mxu3 }
 0x3e8   : > { %v5101_v12 = vpop.f32.mrf.mxu2  ;;  %v4845_v39 = vpop.f32.mrf.mxu0  ;;  %v3788_v11 = vadd.f32 %v3787_v10, %v3528_v36 }
 0x3e9   : > { %v5650_v37 = vpack.c.bf16 %v5550_v33, %v5550_v33  ;;  %v5102_v56 = vadd.f32 %v5101_v12, %v4842_v29  ;;  %v11184_v29 = vmax.f32 %v8758_v53, %v8764_v59  ;;  %v8397_v33 = vld [vmem:[%s8568_s29 + $0xa14] sm:$0xf0]  ;;  %v7702_v53 = vld [vmem:[%s8568_s29 + $0xa18] sm:$0xf0]  ;;  %v8299_v12 = vld [vmem:[%s8568_s29 + $0x704] sm:$0xf0] }
 0x3eb   : > { %5751 = vst.msk [vmem:[%s9838_s22 + $0x8] sm:$0xf] %vm5748_vm1, %v5650_v37  ;;  %v5347_v62 = vmax.f32 %v4028_v21, %v5102_v56  ;;  %v3531_v44 = vpop.f32.mrf.mxu1  ;;  %4884 = vmatmul.bf16.gmra.mxu0 %v7693_v45  ;;  %v4029_v6 = vmax.f32 %v11184_v29, %v3786_v38  ;;  %v7701_v21 = vor.u32 %v8397_v33, %v7700_v27  ;;  %v8399_v27 = vld [vmem:[%s8568_s29 + $0xa24] sm:$0xf0]  ;;  %v8398_v33 = vld [vmem:[%s8568_s29 + $0xa24] sm:$0xf] }
 0x3ec   : > { %7471 = vmatmul.msk.bf16.gmra.mxu3 %vm818_vm0, %v7155_v5  ;;  %v11185_v37 = vmax.f32 %v8766_v61, %v8778_v15  ;;  %v11186_v29 = vmax.f32 %v8780_v19, %v8786_v26  ;;  %v7710_v19 = vld [vmem:[%s8568_s29 + $0xa28] sm:$0xf0] }
 0x3ed   : > { %v5451_v51 = vadd.f32 %v9823_v58, %v5347_v62  ;;  %8020 = vmatmul.msk.bf16.gmra.mxu2 %vm818_vm0, %v7697_v46  ;;  %v7705_v46 = vor.u32 %v8396_v14, %v7702_v53  ;;  %v7166_v14 = vld [vmem:[%s8568_s29 + $0x710] sm:$0xf]  ;;  %v8301_v53 = vld [vmem:[%s8568_s29 + $0x714] sm:$0xf0] }
 0x3ee   : > { %3570 = vmatmul.bf16.gmra.mxu1 %v7151_v9  ;;  %v4030_v56 = vmax.f32 %v11185_v37, %v3788_v11  ;;  %v7159_v9 = vor.u32 %v8299_v12, %v7158_v55 }
 0x3ef   : > { %v5551_v35 = vmax.f32 %v5451_v51, 0.0  ;;  %v3790_v49 = vpop.f32.mrf.mxu3 }
 0x3f0   : > { %v5104_v18 = vpop.f32.mrf.mxu2  ;;  %v4847_v57 = vpop.f32.mrf.mxu0  ;;  %v3791_v51 = vadd.f32 %v3790_v49, %v3531_v44 }
 0x3f1   : > { %v5651_v8 = vpack.c.bf16 %v5551_v35, %v5551_v35  ;;  %v5105_v23 = vadd.f32 %v5104_v18, %v4845_v39 }
 0x3f3   : > { %5752 = vst.msk [vmem:[%s9838_s22 + $0xc] sm:$0xf] %vm5748_vm1, %v5651_v8  ;;  %v5348_v0 = vmax.f32 %v4029_v6, %v5105_v23  ;;  %v3533_v2 = vpop.f32.mrf.mxu1  ;;  %v4031_v6 = vmax.f32 %v11186_v29, %v3791_v51  ;;  %v11188_v51 = vmax.f32 %v8802_v52, %v8808_v63  ;;  %v7718_v52 = vld [vmem:[%s8568_s29 + $0xa38] sm:$0xf0] }
 0x3f5   : > { %v5452_v48 = vadd.f32 %v9823_v58, %v5348_v0  ;;  %v8300_v0 = vld [vmem:[%s8568_s29 + $0x714] sm:$0xf] }
 0x3f7   : > { %v5552_v59 = vmax.f32 %v5452_v48, 0.0  ;;  %v3792_v5 = vpop.f32.mrf.mxu3  ;;  %v7168_v48 = vld [vmem:[%s8568_s29 + $0x718] sm:$0xf0] }
 0x3f8   : > { %v5106_v45 = vpop.f32.mrf.mxu2  ;;  %v4850_v39 = vpop.f32.mrf.mxu0  ;;  %v3793_v7 = vadd.f32 %v3792_v5, %v3533_v2  ;;  %v7171_v12 = vor.u32 %v8300_v0, %v7168_v48  ;;  %v8401_v0 = vld [vmem:[%s8568_s29 + $0xa34] sm:$0xf0]  ;;  %v8303_v48 = vld [vmem:[%s8568_s29 + $0x724] sm:$0xf0] }
 0x3f9   : > { %v5652_v36 = vpack.c.bf16 %v5552_v59, %v5552_v59  ;;  %v5107_v10 = vadd.f32 %v5106_v45, %v4847_v57  ;;  %v7709_v45 = vor.u32 %v8399_v27, %v7708_v16 }
 0x3fb   : > { %5753 = vst.msk [vmem:[%s9838_s22 + $0x10] sm:$0xf] %vm5748_vm1, %v5652_v36  ;;  %v5349_v62 = vmax.f32 %v4030_v56, %v5107_v10  ;;  %v3536_v38 = vpop.f32.mrf.mxu1  ;;  %4889 = vmatmul.bf16.gmra.mxu0 %v7701_v21  ;;  %v7713_v56 = vor.u32 %v8398_v33, %v7710_v19  ;;  %v7167_v36 = vor.u32 %v8301_v53, %v7166_v14 }
 0x3fc   : > { %7472 = vmatmul.msk.bf16.gmra.mxu3 %vm818_vm0, %v7163_v31  ;;  %v11187_v31 = vmax.f32 %v8788_v30, %v8800_v47 }
 0x3fd   : > { %v5453_v35 = vadd.f32 %v9823_v58, %v5349_v62  ;;  %8021 = vmatmul.msk.bf16.gmra.mxu2 %vm818_vm0, %v7705_v46 }
 0x3fe   : > { %3575 = vmatmul.bf16.gmra.mxu1 %v7159_v9  ;;  %v4032_v21 = vmax.f32 %v11187_v31, %v3793_v7  ;;  %v8400_v7 = vld [vmem:[%s8568_s29 + $0xa34] sm:$0xf] }
 0x3ff   : > { %v5553_v61 = vmax.f32 %v5453_v35, 0.0  ;;  %v3795_v15 = vpop.f32.mrf.mxu3 }
 0x400   : > { %v5109_v18 = vpop.f32.mrf.mxu2  ;;  %v4852_v8 = vpop.f32.mrf.mxu0  ;;  %v3796_v46 = vadd.f32 %v3795_v15, %v3536_v38 }
 0x401   : > { %v5653_v44 = vpack.c.bf16 %v5553_v61, %v5553_v61  ;;  %v5110_v49 = vadd.f32 %v5109_v18, %v4850_v39 }
 0x402   : > { %v4033_v35 = vmax.f32 %v11188_v51, %v3796_v46  ;;  %v7184_v51 = vld [vmem:[%s8568_s29 + $0x738] sm:$0xf0] }
 0x403   : > { %5754 = vst.msk [vmem:[%s9838_s22 + $0x14] sm:$0xf] %vm5748_vm1, %v5653_v44  ;;  %v5350_v23 = vmax.f32 %v4031_v6, %v5110_v49  ;;  %v3538_v57 = vpop.f32.mrf.mxu1  ;;  %v8302_v6 = vld [vmem:[%s8568_s29 + $0x724] sm:$0xf] }
 0x405   : > { %v5454_v11 = vadd.f32 %v9823_v58, %v5350_v23  ;;  %v7716_v23 = vld [vmem:[%s8568_s29 + $0xa30] sm:$0xf] }
 0x406   : > { %v7717_v19 = vor.u32 %v8401_v0, %v7716_v23  ;;  %v11191_v23 = vmax.f32 %v8832_v43, %v8844_v60 }
 0x407   : > { %v5554_v26 = vmax.f32 %v5454_v11, 0.0  ;;  %v3797_v59 = vpop.f32.mrf.mxu3  ;;  %v7174_v11 = vld [vmem:[%s8568_s29 + $0x720] sm:$0xf] }
 0x408   : > { %v5111_v55 = vpop.f32.mrf.mxu2  ;;  %v4855_v37 = vpop.f32.mrf.mxu0  ;;  %v3798_v44 = vadd.f32 %v3797_v59, %v3538_v57 }
 0x409   : > { %v5654_v2 = vpack.c.bf16 %v5554_v26, %v5554_v26  ;;  %v5112_v5 = vadd.f32 %v5111_v55, %v4852_v8  ;;  %v7176_v8 = vld [vmem:[%s8568_s29 + $0x728] sm:$0xf0]  ;;  %v11189_v26 = vmax.f32 %v8810_v1, %v8822_v22  ;;  %v7721_v55 = vor.u32 %v8400_v7, %v7718_v52 }
 0x40a   : > { %v7179_v33 = vor.u32 %v8302_v6, %v7176_v8 }
 0x40b   : > { %5755 = vst.msk [vmem:[%s9838_s22 + $0x18] sm:$0xf] %vm5748_vm1, %v5654_v2  ;;  %v5351_v10 = vmax.f32 %v4032_v21, %v5112_v5  ;;  %v3541_v39 = vpop.f32.mrf.mxu1  ;;  %4894 = vmatmul.bf16.gmra.mxu0 %v7709_v45  ;;  %v4034_v14 = vmax.f32 %v11189_v26, %v3798_v44  ;;  %v11192_v26 = vmax.f32 %v8846_v13, %v8852_v24  ;;  %v7734_v13 = vld [vmem:[%s8568_s29 + $0xa58] sm:$0xf0] }
 0x40c   : > { %7473 = vmatmul.msk.bf16.gmra.mxu3 %vm818_vm0, %v7171_v12  ;;  %v7175_v12 = vor.u32 %v8303_v48, %v7174_v11 }
 0x40d   : > { %v5455_v9 = vadd.f32 %v9823_v58, %v5351_v10  ;;  %8022 = vmatmul.msk.bf16.gmra.mxu2 %vm818_vm0, %v7713_v56 }
 0x40e   : > { %3580 = vmatmul.bf16.gmra.mxu1 %v7167_v36 }
 0x40f   : > { %v5555_v30 = vmax.f32 %v5455_v9, 0.0  ;;  %v3800_v47 = vpop.f32.mrf.mxu3 }
 0x410   : > { %v5114_v62 = vpop.f32.mrf.mxu2  ;;  %v4857_v15 = vpop.f32.mrf.mxu0  ;;  %v3801_v21 = vadd.f32 %v3800_v47, %v3541_v39 }
 0x411   : > { %v5655_v38 = vpack.c.bf16 %v5555_v30, %v5555_v30  ;;  %v5115_v61 = vadd.f32 %v5114_v62, %v4855_v37  ;;  %v11190_v37 = vmax.f32 %v8824_v32, %v8830_v41  ;;  %v8304_v30 = vld [vmem:[%s8568_s29 + $0x734] sm:$0xf]  ;;  %v7726_v32 = vld [vmem:[%s8568_s29 + $0xa48] sm:$0xf0] }
 0x413   : > { %5756 = vst.msk [vmem:[%s9838_s22 + $0x1c] sm:$0xf] %vm5748_vm1, %v5655_v38  ;;  %v5352_v18 = vmax.f32 %v4033_v35, %v5115_v61  ;;  %v3543_v29 = vpop.f32.mrf.mxu1  ;;  %v4035_v56 = vmax.f32 %v11190_v37, %v3801_v21  ;;  %v7724_v35 = vld [vmem:[%s8568_s29 + $0xa40] sm:$0xf]  ;;  %v8403_v38 = vld [vmem:[%s8568_s29 + $0xa44] sm:$0xf0] }
 0x414   : > { %v8402_v61 = vld [vmem:[%s8568_s29 + $0xa44] sm:$0xf]  ;;  %v7725_v8 = vor.u32 %v8403_v38, %v7724_v35  ;;  %v7190_v37 = vld [vmem:[%s8568_s29 + $0x740] sm:$0xf] }
 0x415   : > { %v5456_v49 = vadd.f32 %v9823_v58, %v5352_v18  ;;  %v8305_v18 = vld [vmem:[%s8568_s29 + $0x734] sm:$0xf0] }
 0x417   : > { %v5556_v63 = vmax.f32 %v5456_v49, 0.0  ;;  %v3802_v16 = vpop.f32.mrf.mxu3  ;;  %v7187_v49 = vor.u32 %v8304_v30, %v7184_v51  ;;  %v11193_v30 = vmax.f32 %v8854_v28, %v8866_v40 }
 0x418   : > { %v5116_v27 = vpop.f32.mrf.mxu2  ;;  %v4860_v59 = vpop.f32.mrf.mxu0  ;;  %v3803_v47 = vadd.f32 %v3802_v16, %v3543_v29 }
 0x419   : > { %v5656_v57 = vpack.c.bf16 %v5556_v63, %v5556_v63  ;;  %v5117_v53 = vadd.f32 %v5116_v27, %v4857_v15  ;;  %v7182_v15 = vld [vmem:[%s8568_s29 + $0x730] sm:$0xf]  ;;  %v7729_v63 = vor.u32 %v8402_v61, %v7726_v32 }
 0x41a   : > { %v4036_v0 = vmax.f32 %v11191_v23, %v3803_v47  ;;  %v7183_v11 = vor.u32 %v8305_v18, %v7182_v15 }
 0x41b   : > { %5757 = vst.msk [vmem:[%s9838_s22 + $0x20] sm:$0xf] %vm5748_vm1, %v5656_v57  ;;  %v5353_v45 = vmax.f32 %v4034_v14, %v5117_v53  ;;  %v3546_v31 = vpop.f32.mrf.mxu1  ;;  %4899 = vmatmul.bf16.gmra.mxu0 %v7717_v19 }
 0x41c   : > { %7474 = vmatmul.msk.bf16.gmra.mxu3 %vm818_vm0, %v7179_v33 }
 0x41d   : > { %v5457_v2 = vadd.f32 %v9823_v58, %v5353_v45  ;;  %8023 = vmatmul.msk.bf16.gmra.mxu2 %vm818_vm0, %v7721_v55  ;;  %v8306_v45 = vld [vmem:[%s8568_s29 + $0x744] sm:$0xf] }
 0x41e   : > { %3585 = vmatmul.bf16.gmra.mxu1 %v7175_v12 }
 0x41f   : > { %v5557_v1 = vmax.f32 %v5457_v2, 0.0  ;;  %v3805_v22 = vpop.f32.mrf.mxu3  ;;  %v7192_v2 = vld [vmem:[%s8568_s29 + $0x748] sm:$0xf0] }
 0x420   : > { %v5119_v5 = vpop.f32.mrf.mxu2  ;;  %v4862_v39 = vpop.f32.mrf.mxu0  ;;  %v3806_v27 = vadd.f32 %v3805_v22, %v3546_v31  ;;  %v8405_v22 = vld [vmem:[%s8568_s29 + $0xa54] sm:$0xf0] }
 0x421   : > { %v5657_v36 = vpack.c.bf16 %v5557_v1, %v5557_v1  ;;  %v5120_v10 = vadd.f32 %v5119_v5, %v4860_v59  ;;  %v7732_v1 = vld [vmem:[%s8568_s29 + $0xa50] sm:$0xf]  ;;  %v8404_v5 = vld [vmem:[%s8568_s29 + $0xa54] sm:$0xf] }
 0x422   : > { %v4037_v14 = vmax.f32 %v11192_v26, %v3806_v27  ;;  %v7737_v35 = vor.u32 %v8404_v5, %v7734_v13  ;;  %v8406_v27 = vld [vmem:[%s8568_s29 + $0xa64] sm:$0xf]  ;;  %v11196_v13 = vmax.f32 %v8890_v34, %v8896_v50  ;;  %v7750_v34 = vld [vmem:[%s8568_s29 + $0xa78] sm:$0xf0] }
 0x423   : > { %5758 = vst.msk [vmem:[%s9838_s22 + $0x24] sm:$0xf] %vm5748_vm1, %v5657_v36  ;;  %v5354_v46 = vmax.f32 %v4035_v56, %v5120_v10  ;;  %v3548_v9 = vpop.f32.mrf.mxu1  ;;  %v8307_v56 = vld [vmem:[%s8568_s29 + $0x744] sm:$0xf0] }
 0x424   : > { %v7191_v38 = vor.u32 %v8307_v56, %v7190_v37 }
 0x425   : > { %v5458_v62 = vadd.f32 %v9823_v58, %v5354_v46  ;;  %v7733_v46 = vor.u32 %v8405_v22, %v7732_v1 }
 0x427   : > { %v5558_v41 = vmax.f32 %v5458_v62, 0.0  ;;  %v3807_v6 = vpop.f32.mrf.mxu3 }
 0x428   : > { %v5121_v44 = vpop.f32.mrf.mxu2  ;;  %v4865_v52 = vpop.f32.mrf.mxu0  ;;  %v3808_v31 = vadd.f32 %v3807_v6, %v3548_v9  ;;  %v11194_v6 = vmax.f32 %v8868_v4, %v8874_v25  ;;  %v7742_v4 = vld [vmem:[%s8568_s29 + $0xa68] sm:$0xf0] }
 0x429   : > { %v5658_v29 = vpack.c.bf16 %v5558_v41, %v5558_v41  ;;  %v5122_v7 = vadd.f32 %v5121_v44, %v4862_v39  ;;  %v7195_v39 = vor.u32 %v8306_v45, %v7192_v2  ;;  %v7745_v45 = vor.u32 %v8406_v27, %v7742_v4 }
 0x42a   : > { %v4038_v47 = vmax.f32 %v11193_v30, %v3808_v31 }
 0x42b   : > { %5759 = vst.msk [vmem:[%s9838_s22 + $0x28] sm:$0xf] %vm5748_vm1, %v5658_v29  ;;  %v5355_v48 = vmax.f32 %v4036_v0, %v5122_v7  ;;  %v3551_v16 = vpop.f32.mrf.mxu1  ;;  %4904 = vmatmul.bf16.gmra.mxu0 %v7725_v8  ;;  %v8308_v7 = vld [vmem:[%s8568_s29 + $0x754] sm:$0xf] }
 0x42c   : > { %7475 = vmatmul.msk.bf16.gmra.mxu3 %vm818_vm0, %v7187_v49 }
 0x42d   : > { %v5459_v33 = vadd.f32 %v9823_v58, %v5355_v48  ;;  %8024 = vmatmul.msk.bf16.gmra.mxu2 %vm818_vm0, %v7729_v63  ;;  %v7740_v48 = vld [vmem:[%s8568_s29 + $0xa60] sm:$0xf] }
 0x42e   : > { %3590 = vmatmul.bf16.gmra.mxu1 %v7183_v11  ;;  %v7200_v11 = vld [vmem:[%s8568_s29 + $0x758] sm:$0xf0] }
 0x42f   : > { %v5559_v43 = vmax.f32 %v5459_v33, 0.0  ;;  %v3810_v60 = vpop.f32.mrf.mxu3  ;;  %v7198_v33 = vld [vmem:[%s8568_s29 + $0x750] sm:$0xf]  ;;  %v7203_v26 = vor.u32 %v8308_v7, %v7200_v11  ;;  %v11198_v11 = vld [vmem:[#allocation2_spill] sm:$0xff] }
 0x430   : > { %v5124_v19 = vpop.f32.mrf.mxu2  ;;  %v4867_v59 = vpop.f32.mrf.mxu0  ;;  %v3811_v41 = vadd.f32 %v3810_v60, %v3551_v16  ;;  %v8407_v16 = vld [vmem:[%s8568_s29 + $0xa64] sm:$0xf0] }
 0x431   : > { %v5659_v57 = vpack.c.bf16 %v5559_v43, %v5559_v43  ;;  %v5125_v53 = vadd.f32 %v5124_v19, %v4865_v52  ;;  %v8309_v43 = vld [vmem:[%s8568_s29 + $0x754] sm:$0xf0] }
 0x432   : > { %v4039_v44 = vmax.f32 %v11194_v6, %v3811_v41  ;;  %v7199_v31 = vor.u32 %v8309_v43, %v7198_v33 }
 0x433   : > { %5760 = vst.msk [vmem:[%s9838_s22 + $0x2c] sm:$0xf] %vm5748_vm1, %v5659_v57  ;;  %v5356_v55 = vmax.f32 %v4037_v14, %v5125_v53  ;;  %v3553_v12 = vpop.f32.mrf.mxu1  ;;  %v7741_v14 = vor.u32 %v8407_v16, %v7740_v48  ;;  %v11195_v57 = vmax.f32 %v8876_v42, %v8888_v20  ;;  %v11199_v48 = vmax.f32 %v8912_v3, %v11198_v11  ;;  %v7758_v3 = vld [vmem:[%s8568_s29 + $0xa88] sm:$0xf0] }
 0x434   : > { %v11206_v11 = vld [vmem:[#allocation7_spill] sm:$0xff] }
 0x435   : > { %v5460_v21 = vadd.f32 %v9823_v58, %v5356_v55 }
 0x437   : > { %v5560_v24 = vmax.f32 %v5460_v21, 0.0  ;;  %v3812_v36 = vpop.f32.mrf.mxu3 }
 0x438   : > { %v5126_v10 = vpop.f32.mrf.mxu2  ;;  %v4870_v51 = vpop.f32.mrf.mxu0  ;;  %v3813_v52 = vadd.f32 %v3812_v36, %v3553_v12 }
 0x439   : > { %v5660_v9 = vpack.c.bf16 %v5560_v24, %v5560_v24  ;;  %v5127_v62 = vadd.f32 %v5126_v10, %v4867_v59 }
 0x43a   : > { %v4040_v53 = vmax.f32 %v11195_v57, %v3813_v52  ;;  %v7756_v57 = vld [vmem:[%s8568_s29 + $0xa80] sm:$0xf] }
 0x43b   : > { %5761 = vst.msk [vmem:[%s9838_s22 + $0x30] sm:$0xf] %vm5748_vm1, %v5660_v9  ;;  %v5357_v61 = vmax.f32 %v4038_v47, %v5127_v62  ;;  %v3556_v32 = vpop.f32.mrf.mxu1  ;;  %4909 = vmatmul.bf16.gmra.mxu0 %v7733_v46  ;;  %v8310_v46 = vld [vmem:[%s8568_s29 + $0x764] sm:$0xf]  ;;  %v7208_v9 = vld [vmem:[%s8568_s29 + $0x768] sm:$0xf0] }
 0x43c   : > { %7476 = vmatmul.msk.bf16.gmra.mxu3 %vm818_vm0, %v7195_v39  ;;  %v7748_v62 = vld [vmem:[%s8568_s29 + $0xa70] sm:$0xf] }
 0x43d   : > { %v5461_v15 = vadd.f32 %v9823_v58, %v5357_v61  ;;  %8025 = vmatmul.msk.bf16.gmra.mxu2 %vm818_vm0, %v7737_v35  ;;  %v8408_v35 = vld [vmem:[%s8568_s29 + $0xa74] sm:$0xf]  ;;  %v8311_v61 = vld [vmem:[%s8568_s29 + $0x764] sm:$0xf0] }
 0x43e   : > { %3595 = vmatmul.bf16.gmra.mxu1 %v7191_v38  ;;  %v7206_v38 = vld [vmem:[%s8568_s29 + $0x760] sm:$0xf] }
 0x43f   : > { %v5561_v28 = vmax.f32 %v5461_v15, 0.0  ;;  %v3815_v40 = vpop.f32.mrf.mxu3  ;;  %v7211_v15 = vor.u32 %v8310_v46, %v7208_v9 }
 0x440   : > { %v5129_v18 = vpop.f32.mrf.mxu2  ;;  %v4872_v23 = vpop.f32.mrf.mxu0  ;;  %v3816_v1 = vadd.f32 %v3815_v40, %v3556_v32  ;;  %v11197_v40 = vmax.f32 %v8898_v54, %v8910_v17 }
 0x441   : > { %v5661_v49 = vpack.c.bf16 %v5561_v28, %v5561_v28  ;;  %v5130_v8 = vadd.f32 %v5129_v18, %v4870_v51  ;;  %v8409_v51 = vld [vmem:[%s8568_s29 + $0xa74] sm:$0xf0] }
 0x442   : > { %v4041_v24 = vmax.f32 %v11196_v13, %v3816_v1  ;;  %v7749_v28 = vor.u32 %v8409_v51, %v7748_v62  ;;  %v11203_v51 = vld [vmem:[#allocation5_spill] sm:$0xff] }
 0x443   : > { %5762 = vst.msk [vmem:[%s9838_s22 + $0x34] sm:$0xf] %vm5748_vm1, %v5661_v49  ;;  %v5358_v0 = vmax.f32 %v4039_v44, %v5130_v8  ;;  %v3558_v29 = vpop.f32.mrf.mxu1  ;;  %v7753_v8 = vor.u32 %v8408_v35, %v7750_v34  ;;  %v11204_v35 = vld [vmem:[#allocation6_spill] sm:$0xff] }
 0x444   : > { %v11205_v34 = vmax.f32 %v11203_v51, %v11204_v35  ;;  %v11212_v35 = vld [vmem:[#allocation11_spill] sm:$0xff] }
 0x445   : > { %v5462_v63 = vadd.f32 %v9823_v58, %v5358_v0 }
 0x447   : > { %v5562_v25 = vmax.f32 %v5462_v63, 0.0  ;;  %v3817_v60 = vpop.f32.mrf.mxu3 }
 0x448   : > { %v5131_v19 = vpop.f32.mrf.mxu2  ;;  %v4875_v12 = vpop.f32.mrf.mxu0  ;;  %v3818_v30 = vadd.f32 %v3817_v60, %v3558_v29  ;;  %v8312_v60 = vld [vmem:[%s8568_s29 + $0x774] sm:$0xf] }
 0x449   : > { %v5662_v59 = vpack.c.bf16 %v5562_v25, %v5562_v25  ;;  %v5132_v55 = vadd.f32 %v5131_v19, %v4872_v23  ;;  %v7207_v23 = vor.u32 %v8311_v61, %v7206_v38 }
 0x44a   : > { %v4042_v18 = vmax.f32 %v11197_v40, %v3818_v30 }
 0x44b   : > { %5763 = vst.msk [vmem:[%s9838_s22 + $0x38] sm:$0xf] %vm5748_vm1, %v5662_v59  ;;  %v5359_v21 = vmax.f32 %v4040_v53, %v5132_v55  ;;  %v3561_v2 = vpop.f32.mrf.mxu1  ;;  %4914 = vmatmul.bf16.gmra.mxu0 %v7741_v14  ;;  %v7216_v14 = vld [vmem:[%s8568_s29 + $0x778] sm:$0xf0]  ;;  %v8411_v53 = vld [vmem:[%s8568_s29 + $0xa84] sm:$0xf0] }
 0x44c   : > { %7477 = vmatmul.msk.bf16.gmra.mxu3 %vm818_vm0, %v7203_v26  ;;  %v8410_v59 = vld [vmem:[%s8568_s29 + $0xa84] sm:$0xf]  ;;  %v7757_v1 = vor.u32 %v8411_v53, %v7756_v57 }
 0x44d   : > { %v5463_v22 = vadd.f32 %v9823_v58, %v5359_v21  ;;  %8026 = vmatmul.msk.bf16.gmra.mxu2 %vm818_vm0, %v7745_v45  ;;  %v8313_v45 = vld [vmem:[%s8568_s29 + $0x774] sm:$0xf0] }
 0x44e   : > { %3600 = vmatmul.bf16.gmra.mxu1 %v7199_v31 }
 0x44f   : > { %v5563_v42 = vmax.f32 %v5463_v22, 0.0  ;;  %v3820_v20 = vpop.f32.mrf.mxu3  ;;  %v11200_v22 = vld [vmem:[#allocation3_spill] sm:$0xff] }
 0x450   : > { %v5134_v5 = vpop.f32.mrf.mxu2  ;;  %v4877_v36 = vpop.f32.mrf.mxu0  ;;  %v3821_v7 = vadd.f32 %v3820_v20, %v3561_v2  ;;  %v7219_v2 = vor.u32 %v8312_v60, %v7216_v14 }
 0x451   : > { %v5663_v37 = vpack.c.bf16 %v5563_v42, %v5563_v42  ;;  %v5135_v56 = vadd.f32 %v5134_v5, %v4875_v12  ;;  %v7214_v12 = vld [vmem:[%s8568_s29 + $0x770] sm:$0xf] }
 0x452   : > { %v4043_v16 = vmax.f32 %v11199_v48, %v3821_v7  ;;  %v11201_v42 = vld [vmem:[#allocation4_spill] sm:$0xff]  ;;  %v8315_v7 = vld [vmem:[%s8568_s29 + $0x784] sm:$0xf0] }
 0x453   : > { %5764 = vst.msk [vmem:[%s9838_s22 + $0x3c] sm:$0xf] %vm5748_vm1, %v5663_v37  ;;  %v5360_v10 = vmax.f32 %v4041_v24, %v5135_v56  ;;  %v3563_v39 = vpop.f32.mrf.mxu1  ;;  %v11202_v20 = vmax.f32 %v11200_v22, %v11201_v42  ;;  %v7761_v56 = vor.u32 %v8410_v59, %v7758_v3  ;;  %v11207_v48 = vld [vmem:[#allocation8_spill] sm:$0xff] }
 0x455   : > { %v5464_v47 = vadd.f32 %v9823_v58, %v5360_v10 }
 0x457   : > { %v5564_v50 = vmax.f32 %v5464_v47, 0.0  ;;  %v3822_v32 = vpop.f32.mrf.mxu3 }
 0x458   : > { %v5136_v41 = vpop.f32.mrf.mxu2  ;;  %v4880_v49 = vpop.f32.mrf.mxu0  ;;  %v3823_v19 = vadd.f32 %v3822_v32, %v3563_v39 }
 0x459   : > { %v5664_v6 = vpack.c.bf16 %v5564_v50, %v5564_v50  ;;  %v5137_v44 = vadd.f32 %v5136_v41, %v4877_v36  ;;  %v7215_v36 = vor.u32 %v8313_v45, %v7214_v12  ;;  %v11210_v12 = vld [vmem:[#allocation10_spill] sm:$0xff] }
 0x45a   : > { %v4044_v5 = vmax.f32 %v11202_v20, %v3823_v19  ;;  %v8316_v20 = vld [vmem:[%s8568_s29 + $0x794] sm:$0xf] }
 0x45b   : > { %5765 = vst.msk [vmem:[%s9838_s22 + $0x40] sm:$0xf] %vm5748_vm1, %v5664_v6  ;;  %v5361_v0 = vmax.f32 %v4042_v18, %v5137_v44  ;;  %v3566_v29 = vpop.f32.mrf.mxu1  ;;  %4919 = vmatmul.bf16.gmra.mxu0 %v7749_v28  ;;  %v8314_v28 = vld [vmem:[%s8568_s29 + $0x784] sm:$0xf]  ;;  %v7224_v6 = vld [vmem:[%s8568_s29 + $0x788] sm:$0xf0] }
 0x45c   : > { %7478 = vmatmul.msk.bf16.gmra.mxu3 %vm818_vm0, %v7211_v15  ;;  %v7764_v44 = vld [vmem:[%s8568_s29 + $0xa90] sm:$0xf] }
 0x45d   : > { %v5465_v52 = vadd.f32 %v9823_v58, %v5361_v0  ;;  %8027 = vmatmul.msk.bf16.gmra.mxu2 %vm818_vm0, %v7753_v8  ;;  %v8412_v8 = vld [vmem:[%s8568_s29 + $0xa94] sm:$0xf] }
 0x45e   : > { %3605 = vmatmul.bf16.gmra.mxu1 %v7207_v23  ;;  %v7766_v23 = vld [vmem:[%s8568_s29 + $0xa98] sm:$0xf0] }
 0x45f   : > { %v5565_v54 = vmax.f32 %v5465_v52, 0.0  ;;  %v3825_v17 = vpop.f32.mrf.mxu3 }
 0x460   : > { %v5139_v63 = vpop.f32.mrf.mxu2  ;;  %v4882_v25 = vpop.f32.mrf.mxu0  ;;  %v3826_v46 = vadd.f32 %v3825_v17, %v3566_v29  ;;  %v7222_v29 = vld [vmem:[%s8568_s29 + $0x780] sm:$0xf]  ;;  %v7227_v17 = vor.u32 %v8314_v28, %v7224_v6 }
 0x461   : > { %v5665_v27 = vpack.c.bf16 %v5565_v54, %v5565_v54  ;;  %v5140_v4 = vadd.f32 %v5139_v63, %v4880_v49  ;;  %v8413_v49 = vld [vmem:[%s8568_s29 + $0xa94] sm:$0xf0]  ;;  %v7223_v60 = vor.u32 %v8315_v7, %v7222_v29  ;;  %v11216_v29 = vld [vmem:[#allocation14_spill] sm:$0xff] }
 0x462   : > { %v4045_v50 = vmax.f32 %v11205_v34, %v3826_v46  ;;  %v7765_v63 = vor.u32 %v8413_v49, %v7764_v44  ;;  %v7230_v46 = vld [vmem:[%s8568_s29 + $0x790] sm:$0xf] }
 0x463   : > { %5766 = vst.msk [vmem:[%s9838_s22 + $0x44] sm:$0xf] %vm5748_vm1, %v5665_v27  ;;  %v5362_v33 = vmax.f32 %v4043_v16, %v5140_v4  ;;  %v3568_v43 = vpop.f32.mrf.mxu1  ;;  %v11208_v16 = vmax.f32 %v11206_v11, %v11207_v48  ;;  %v11213_v34 = vld [vmem:[#allocation12_spill] sm:$0xff] }
 0x465   : > { %v5466_v26 = vadd.f32 %v9823_v58, %v5362_v33 }
 0x467   : > { %v5566_v55 = vmax.f32 %v5466_v26, 0.0  ;;  %v3827_v31 = vpop.f32.mrf.mxu3 }
 0x468   : > { %v5141_v21 = vpop.f32.mrf.mxu2  ;;  %v4885_v37 = vpop.f32.mrf.mxu0  ;;  %v3828_v40 = vadd.f32 %v3827_v31, %v3568_v43  ;;  %v7769_v43 = vor.u32 %v8412_v8, %v7766_v23 }
 0x469   : > { %v5666_v13 = vpack.c.bf16 %v5566_v55, %v5566_v55  ;;  %v5142_v24 = vadd.f32 %v5141_v21, %v4882_v25  ;;  %v11209_v55 = vld [vmem:[#allocation9_spill] sm:$0xff] }
 0x46a   : > { %v4046_v27 = vmax.f32 %v11208_v16, %v3828_v40  ;;  %v11211_v45 = vmax.f32 %v11209_v55, %v11210_v12  ;;  %v8318_v16 = vld [vmem:[%s8568_s29 + $0x7a4] sm:$0xf]  ;;  %v11218_v12 = vld [vmem:[#allocation15_spill] sm:$0xff] }
 0x46b   : > { %5767 = vst.msk [vmem:[%s9838_s22 + $0x48] sm:$0xf] %vm5748_vm1, %v5666_v13  ;;  %v5363_v10 = vmax.f32 %v4044_v5, %v5142_v24  ;;  %v3571_v39 = vpop.f32.mrf.mxu1  ;;  %4924 = vmatmul.bf16.gmra.mxu0 %v7757_v1  ;;  %v7232_v24 = vld [vmem:[%s8568_s29 + $0x798] sm:$0xf0] }
 0x46c   : > { %7479 = vmatmul.msk.bf16.gmra.mxu3 %vm818_vm0, %v7219_v2 }
 0x46d   : > { %v5467_v30 = vadd.f32 %v9823_v58, %v5363_v10  ;;  %8028 = vmatmul.msk.bf16.gmra.mxu2 %vm818_vm0, %v7761_v56  ;;  %v8415_v56 = vld [vmem:[%s8568_s29 + $0xaa4] sm:$0xf0]  ;;  %v7774_v10 = vld [vmem:[%s8568_s29 + $0xaa8] sm:$0xf0] }
 0x46e   : > { %3610 = vmatmul.bf16.gmra.mxu1 %v7215_v36  ;;  %v8414_v36 = vld [vmem:[%s8568_s29 + $0xaa4] sm:$0xf] }
 0x46f   : > { %v5567_v47 = vmax.f32 %v5467_v30, 0.0  ;;  %v3830_v9 = vpop.f32.mrf.mxu3  ;;  %v8317_v30 = vld [vmem:[%s8568_s29 + $0x794] sm:$0xf0] }
 0x470   : > { %v5144_v62 = vpop.f32.mrf.mxu2  ;;  %v4887_v32 = vpop.f32.mrf.mxu0  ;;  %v3831_v14 = vadd.f32 %v3830_v9, %v3571_v39  ;;  %v7231_v28 = vor.u32 %v8317_v30, %v7230_v46  ;;  %v11222_v46 = vld [vmem:[#allocation18_spill] sm:$0xff] }
 0x471   : > { %v5667_v38 = vpack.c.bf16 %v5567_v47, %v5567_v47  ;;  %v5145_v61 = vadd.f32 %v5144_v62, %v4885_v37  ;;  %v7772_v37 = vld [vmem:[%s8568_s29 + $0xaa0] sm:$0xf]  ;;  %v7235_v62 = vor.u32 %v8316_v20, %v7232_v24 }
 0x472   : > { %v4047_v31 = vmax.f32 %v11211_v45, %v3831_v14  ;;  %v7773_v51 = vor.u32 %v8415_v56, %v7772_v37  ;;  %v7238_v14 = vld [vmem:[%s8568_s29 + $0x7a0] sm:$0xf]  ;;  %v11219_v45 = vld [vmem:[#allocation16_spill] sm:$0xff] }
 0x473   : > { %5768 = vst.msk [vmem:[%s9838_s22 + $0x4c] sm:$0xf] %vm5748_vm1, %v5667_v38  ;;  %v5364_v41 = vmax.f32 %v4045_v50, %v5145_v61  ;;  %v3573_v15 = vpop.f32.mrf.mxu1  ;;  %v11214_v50 = vmax.f32 %v11212_v35, %v11213_v34  ;;  %v10112_v24 = vld [vmem:[%s10852_s2] ss:$0 sm:$0xff] }
 0x475   : > { %v5468_v18 = vadd.f32 %v9823_v58, %v5364_v41 }
 0x477   : > { %v5568_v0 = vmax.f32 %v5468_v18, 0.0  ;;  %v3832_v52 = vpop.f32.mrf.mxu3 }
 0x478   : > { %v5146_v54 = vpop.f32.mrf.mxu2  ;;  %v4890_v33 = vpop.f32.mrf.mxu0  ;;  %v3833_v5 = vadd.f32 %v3832_v52, %v3573_v15  ;;  %v7777_v15 = vor.u32 %v8414_v36, %v7774_v10 }
 0x479   : > { %v5668_v4 = vpack.c.bf16 %v5568_v0, %v5568_v0  ;;  %v5147_v25 = vadd.f32 %v5146_v54, %v4887_v32  ;;  %v11215_v0 = vld [vmem:[#allocation13_spill] sm:$0xff] }
 0x47a   : > { %v4048_v38 = vmax.f32 %v11214_v50, %v3833_v5  ;;  %v11217_v7 = vmax.f32 %v11215_v0, %v11216_v29  ;;  %v8320_v50 = vld [vmem:[%s8568_s29 + $0x7b4] sm:$0xf]  ;;  %v11224_v29 = vld [vmem:[#allocation19_spill] sm:$0xff] }
 0x47b   : > { %5769 = vst.msk [vmem:[%s9838_s22 + $0x50] sm:$0xf] %vm5748_vm1, %v5668_v4  ;;  %v5365_v19 = vmax.f32 %v4046_v27, %v5147_v25  ;;  %v3576_v26 = vpop.f32.mrf.mxu1  ;;  %4929 = vmatmul.bf16.gmra.mxu0 %v7765_v63  ;;  %v7240_v25 = vld [vmem:[%s8568_s29 + $0x7a8] sm:$0xf0] }
 0x47c   : > { %7480 = vmatmul.msk.bf16.gmra.mxu3 %vm818_vm0, %v7227_v17 }
 0x47d   : > { %v5469_v57 = vadd.f32 %v9823_v58, %v5365_v19  ;;  %8029 = vmatmul.msk.bf16.gmra.mxu2 %vm818_vm0, %v7769_v43  ;;  %v8417_v43 = vld [vmem:[%s8568_s29 + $0xab4] sm:$0xf0]  ;;  %v7782_v19 = vld [vmem:[%s8568_s29 + $0xab8] sm:$0xf0] }
 0x47e   : > { %3615 = vmatmul.bf16.gmra.mxu1 %v7223_v60  ;;  %v8416_v60 = vld [vmem:[%s8568_s29 + $0xab4] sm:$0xf] }
 0x47f   : > { %v5569_v53 = vmax.f32 %v5469_v57, 0.0  ;;  %v3835_v59 = vpop.f32.mrf.mxu3  ;;  %v8319_v57 = vld [vmem:[%s8568_s29 + $0x7a4] sm:$0xf0] }
 0x480   : > { %v5149_v3 = vpop.f32.mrf.mxu2  ;;  %v4892_v1 = vpop.f32.mrf.mxu0  ;;  %v3836_v6 = vadd.f32 %v3835_v59, %v3576_v26 }
 0x481   : > { %v5669_v21 = vpack.c.bf16 %v5569_v53, %v5569_v53  ;;  %v5150_v2 = vadd.f32 %v5149_v3, %v4890_v33  ;;  %v7780_v33 = vld [vmem:[%s8568_s29 + $0xab0] sm:$0xf]  ;;  %v7243_v3 = vor.u32 %v8318_v16, %v7240_v25 }
 0x482   : > { %v4049_v52 = vmax.f32 %v11217_v7, %v3836_v6  ;;  %v7781_v55 = vor.u32 %v8417_v43, %v7780_v33  ;;  %v7246_v6 = vld [vmem:[%s8568_s29 + $0x7b0] sm:$0xf] }
 0x483   : > { %5770 = vst.msk [vmem:[%s9838_s22 + $0x54] sm:$0xf] %vm5748_vm1, %v5669_v21  ;;  %v5366_v22 = vmax.f32 %v4047_v31, %v5150_v2  ;;  %v3578_v42 = vpop.f32.mrf.mxu1  ;;  %v11220_v31 = vmax.f32 %v11218_v12, %v11219_v45  ;;  %v11225_v7 = vld [vmem:[#allocation20_spill] sm:$0xff] }
 0x485   : > { %v5470_v13 = vadd.f32 %v9823_v58, %v5366_v22  ;;  %v7785_v22 = vor.u32 %v8416_v60, %v7782_v19 }
 0x487   : > { %v5570_v39 = vmax.f32 %v5470_v13, 0.0  ;;  %v3837_v47 = vpop.f32.mrf.mxu3 }
 0x488   : > { %v5151_v9 = vpop.f32.mrf.mxu2  ;;  %v4895_v41 = vpop.f32.mrf.mxu0  ;;  %v3838_v27 = vadd.f32 %v3837_v47, %v3578_v42  ;;  %v7239_v42 = vor.u32 %v8319_v57, %v7238_v14  ;;  %v11228_v14 = vld [vmem:[#allocation22_spill] sm:$0xff] }
 0x489   : > { %v5670_v61 = vpack.c.bf16 %v5570_v39, %v5570_v39  ;;  %v5152_v32 = vadd.f32 %v5151_v9, %v4892_v1  ;;  %v11221_v39 = vld [vmem:[#allocation17_spill] sm:$0xff] }
 0x48a   : > { %v4050_v21 = vmax.f32 %v11220_v31, %v3838_v27  ;;  %v11223_v30 = vmax.f32 %v11221_v39, %v11222_v46  ;;  %v8322_v31 = vld [vmem:[%s8568_s29 + $0x7c4] sm:$0xf]  ;;  %v11230_v46 = vld [vmem:[#allocation23_spill] sm:$0xff] }
 0x48b   : > { %5771 = vst.msk [vmem:[%s9838_s22 + $0x58] sm:$0xf] %vm5748_vm1, %v5670_v61  ;;  %v5367_v40 = vmax.f32 %v4048_v38, %v5152_v32  ;;  %v3581_v18 = vpop.f32.mrf.mxu1  ;;  %4934 = vmatmul.bf16.gmra.mxu0 %v7773_v51  ;;  %v7248_v32 = vld [vmem:[%s8568_s29 + $0x7b8] sm:$0xf0] }
 0x48c   : > { %7481 = vmatmul.msk.bf16.gmra.mxu3 %vm818_vm0, %v7235_v62 }
 0x48d   : > { %v5471_v44 = vadd.f32 %v9823_v58, %v5367_v40  ;;  %8030 = vmatmul.msk.bf16.gmra.mxu2 %vm818_vm0, %v7777_v15  ;;  %v8419_v15 = vld [vmem:[%s8568_s29 + $0xac4] sm:$0xf0]  ;;  %v7790_v40 = vld [vmem:[%s8568_s29 + $0xac8] sm:$0xf0] }
 0x48e   : > { %3620 = vmatmul.bf16.gmra.mxu1 %v7231_v28  ;;  %v8418_v28 = vld [vmem:[%s8568_s29 + $0xac4] sm:$0xf] }
 0x48f   : > { %v5571_v49 = vmax.f32 %v5471_v44, 0.0  ;;  %v3840_v8 = vpop.f32.mrf.mxu3  ;;  %v8321_v44 = vld [vmem:[%s8568_s29 + $0x7b4] sm:$0xf0] }
 0x490   : > { %v5154_v23 = vpop.f32.mrf.mxu2  ;;  %v4897_v63 = vpop.f32.mrf.mxu0  ;;  %v3841_v13 = vadd.f32 %v3840_v8, %v3581_v18  ;;  %v7247_v16 = vor.u32 %v8321_v44, %v7246_v6  ;;  %v11234_v6 = vld [vmem:[#allocation26_spill] sm:$0xff] }
 0x491   : > { %v5671_v54 = vpack.c.bf16 %v5571_v49, %v5571_v49  ;;  %v5155_v17 = vadd.f32 %v5154_v23, %v4895_v41  ;;  %v7788_v41 = vld [vmem:[%s8568_s29 + $0xac0] sm:$0xf]  ;;  %v7251_v23 = vor.u32 %v8320_v50, %v7248_v32 }
 0x492   : > { %v4051_v47 = vmax.f32 %v11223_v30, %v3841_v13  ;;  %v7789_v0 = vor.u32 %v8419_v15, %v7788_v41  ;;  %v7254_v13 = vld [vmem:[%s8568_s29 + $0x7c0] sm:$0xf]  ;;  %v11231_v30 = vld [vmem:[#allocation24_spill] sm:$0xff] }
 0x493   : > { %5772 = vst.msk [vmem:[%s9838_s22 + $0x5c] sm:$0xf] %vm5748_vm1, %v5671_v54  ;;  %v5368_v11 = vmax.f32 %v4049_v52, %v5155_v17  ;;  %v3583_v48 = vpop.f32.mrf.mxu1  ;;  %v11226_v52 = vmax.f32 %v11224_v29, %v11225_v7 }
 0x495   : > { %v5472_v4 = vadd.f32 %v9823_v58, %v5368_v11 }
 0x497   : > { %v5572_v26 = vmax.f32 %v5472_v4, 0.0  ;;  %v3842_v53 = vpop.f32.mrf.mxu3 }
 0x498   : > { %v5156_v59 = vpop.f32.mrf.mxu2  ;;  %v4900_v58 = vpop.f32.mrf.mxu0  ;;  %v3843_v38 = vadd.f32 %v3842_v53, %v3583_v48  ;;  %v7793_v48 = vor.u32 %v8418_v28, %v7790_v40 }
 0x499   : > { %v5672_v2 = vpack.c.bf16 %v5572_v26, %v5572_v26  ;;  %v5157_v1 = vadd.f32 %v5156_v59, %v4897_v63  ;;  %v11227_v26 = vld [vmem:[#allocation21_spill] sm:$0xff] }
 0x49a   : > { %v4052_v54 = vmax.f32 %v11226_v52, %v3843_v38  ;;  %v11229_v57 = vmax.f32 %v11227_v26, %v11228_v14  ;;  %v8324_v52 = vld [vmem:[%s8568_s29 + $0x7d4] sm:$0xf]  ;;  %v11236_v14 = vld [vmem:[#allocation27_spill] sm:$0xff] }
 0x49b   : > { %5773 = vst.msk [vmem:[%s9838_s22 + $0x60] sm:$0xf] %vm5748_vm1, %v5672_v2  ;;  %v5369_v20 = vmax.f32 %v4050_v21, %v5157_v1  ;;  %v3586_v5 = vpop.f32.mrf.mxu1  ;;  %4939 = vmatmul.bf16.gmra.mxu0 %v7781_v55  ;;  %v7256_v1 = vld [vmem:[%s8568_s29 + $0x7c8] sm:$0xf0] }
 0x49c   : > { %7482 = vmatmul.msk.bf16.gmra.mxu3 %vm818_vm0, %v7243_v3 }
 0x49d   : > { %v5473_v37 = vadd.f32 %v10112_v24, %v5369_v20  ;;  %8031 = vmatmul.msk.bf16.gmra.mxu2 %vm818_vm0, %v7785_v22  ;;  %v8421_v22 = vld [vmem:[%s8568_s29 + $0xad4] sm:$0xf0]  ;;  %v7798_v20 = vld [vmem:[%s8568_s29 + $0xad8] sm:$0xf0] }
 0x49e   : > { %3625 = vmatmul.bf16.gmra.mxu1 %v7239_v42  ;;  %v8420_v42 = vld [vmem:[%s8568_s29 + $0xad4] sm:$0xf] }
 0x49f   : > { %v5573_v56 = vmax.f32 %v5473_v37, 0.0  ;;  %v3845_v36 = vpop.f32.mrf.mxu3  ;;  %v8323_v37 = vld [vmem:[%s8568_s29 + $0x7c4] sm:$0xf0] }
 0x4a0   : > { %v5159_v10 = vpop.f32.mrf.mxu2  ;;  %v4902_v51 = vpop.f32.mrf.mxu0  ;;  %v3846_v25 = vadd.f32 %v3845_v36, %v3586_v5  ;;  %v7255_v50 = vor.u32 %v8323_v37, %v7254_v13  ;;  %v11240_v13 = vld [vmem:[#allocation30_spill] sm:$0xff] }
 0x4a1   : > { %v5673_v9 = vpack.c.bf16 %v5573_v56, %v5573_v56  ;;  %v5160_v62 = vadd.f32 %v5159_v10, %v4900_v58  ;;  %v7796_v58 = vld [vmem:[%s8568_s29 + $0xad0] sm:$0xf]  ;;  %v7259_v10 = vor.u32 %v8322_v31, %v7256_v1 }
 0x4a2   : > { %v4053_v53 = vmax.f32 %v11229_v57, %v3846_v25  ;;  %v7797_v39 = vor.u32 %v8421_v22, %v7796_v58  ;;  %v7262_v25 = vld [vmem:[%s8568_s29 + $0x7d0] sm:$0xf] }
 0x4a3   : > { %5774 = vst.msk [vmem:[%s9838_s22 + $0x64] sm:$0xf] %vm5748_vm1, %v5673_v9  ;;  %v5370_v35 = vmax.f32 %v4051_v47, %v5160_v62  ;;  %v3588_v34 = vpop.f32.mrf.mxu1  ;;  %v11232_v47 = vmax.f32 %v11230_v46, %v11231_v30  ;;  %v11237_v57 = vld [vmem:[#allocation28_spill] sm:$0xff] }
 0x4a5   : > { %v5474_v61 = vadd.f32 %v10112_v24, %v5370_v35 }
 0x4a7   : > { %v5574_v18 = vmax.f32 %v5474_v61, 0.0  ;;  %v3847_v49 = vpop.f32.mrf.mxu3 }
 0x4a8   : > { %v5161_v8 = vpop.f32.mrf.mxu2  ;;  %v4905_v11 = vpop.f32.mrf.mxu0  ;;  %v3848_v21 = vadd.f32 %v3847_v49, %v3588_v34  ;;  %v7801_v34 = vor.u32 %v8420_v42, %v7798_v20 }
 0x4a9   : > { %v5674_v17 = vpack.c.bf16 %v5574_v18, %v5574_v18  ;;  %v5162_v63 = vadd.f32 %v5161_v8, %v4902_v51  ;;  %v11233_v18 = vld [vmem:[#allocation25_spill] sm:$0xff] }
 0x4aa   : > { %v4054_v9 = vmax.f32 %v11232_v47, %v3848_v21  ;;  %v11235_v44 = vmax.f32 %v11233_v18, %v11234_v6  ;;  %v8326_v47 = vld [vmem:[%s8568_s29 + $0x7e4] sm:$0xf]  ;;  %v11242_v6 = vld [vmem:[#allocation31_spill] sm:$0xff] }
 0x4ab   : > { %5775 = vst.msk [vmem:[%s9838_s22 + $0x68] sm:$0xf] %vm5748_vm1, %v5674_v17  ;;  %v5371_v27 = vmax.f32 %v4052_v54, %v5162_v63  ;;  %v3591_v4 = vpop.f32.mrf.mxu1  ;;  %4944 = vmatmul.bf16.gmra.mxu0 %v7789_v0  ;;  %v7264_v63 = vld [vmem:[%s8568_s29 + $0x7d8] sm:$0xf0] }
 0x4ac   : > { %7483 = vmatmul.msk.bf16.gmra.mxu3 %vm818_vm0, %v7251_v23 }
 0x4ad   : > { %v5475_v33 = vadd.f32 %v10112_v24, %v5371_v27  ;;  %8032 = vmatmul.msk.bf16.gmra.mxu2 %vm818_vm0, %v7793_v48  ;;  %v8423_v48 = vld [vmem:[%s8568_s29 + $0xae4] sm:$0xf0]  ;;  %v7806_v27 = vld [vmem:[%s8568_s29 + $0xae8] sm:$0xf0] }
 0x4ae   : > { %3630 = vmatmul.bf16.gmra.mxu1 %v7247_v16  ;;  %v8422_v16 = vld [vmem:[%s8568_s29 + $0xae4] sm:$0xf] }
 0x4af   : > { %v5575_v43 = vmax.f32 %v5475_v33, 0.0  ;;  %v3850_v60 = vpop.f32.mrf.mxu3  ;;  %v8325_v33 = vld [vmem:[%s8568_s29 + $0x7d4] sm:$0xf0] }
 0x4b0   : > { %v5164_v19 = vpop.f32.mrf.mxu2  ;;  %v4907_v55 = vpop.f32.mrf.mxu0  ;;  %v3851_v32 = vadd.f32 %v3850_v60, %v3591_v4  ;;  %v7263_v31 = vor.u32 %v8325_v33, %v7262_v25  ;;  %v11246_v25 = vld [vmem:[#allocation34_spill] sm:$0xff] }
 0x4b1   : > { %v5675_v59 = vpack.c.bf16 %v5575_v43, %v5575_v43  ;;  %v5165_v3 = vadd.f32 %v5164_v19, %v4905_v11  ;;  %v7804_v11 = vld [vmem:[%s8568_s29 + $0xae0] sm:$0xf]  ;;  %v7267_v19 = vor.u32 %v8324_v52, %v7264_v63 }
 0x4b2   : > { %v4055_v49 = vmax.f32 %v11235_v44, %v3851_v32  ;;  %v7805_v26 = vor.u32 %v8423_v48, %v7804_v11  ;;  %v7270_v32 = vld [vmem:[%s8568_s29 + $0x7e0] sm:$0xf]  ;;  %v11243_v44 = vld [vmem:[#allocation32_spill] sm:$0xff] }
 0x4b3   : > { %5776 = vst.msk [vmem:[%s9838_s22 + $0x6c] sm:$0xf] %vm5748_vm1, %v5675_v59  ;;  %v5372_v12 = vmax.f32 %v4053_v53, %v5165_v3  ;;  %v3593_v45 = vpop.f32.mrf.mxu1  ;;  %v11238_v53 = vmax.f32 %v11236_v14, %v11237_v57 }
 0x4b5   : > { %v5476_v2 = vadd.f32 %v10112_v24, %v5372_v12 }
 0x4b7   : > { %v5576_v5 = vmax.f32 %v5476_v2, 0.0  ;;  %v3852_v56 = vpop.f32.mrf.mxu3 }
 0x4b8   : > { %v5166_v36 = vpop.f32.mrf.mxu2  ;;  %v4910_v35 = vpop.f32.mrf.mxu0  ;;  %v3853_v54 = vadd.f32 %v3852_v56, %v3593_v45  ;;  %v7809_v45 = vor.u32 %v8422_v16, %v7806_v27 }
 0x4b9   : > { %v5676_v62 = vpack.c.bf16 %v5576_v5, %v5576_v5  ;;  %v5167_v51 = vadd.f32 %v5166_v36, %v4907_v55  ;;  %v11239_v5 = vld [vmem:[#allocation29_spill] sm:$0xff] }
 0x4ba   : > { %v4056_v59 = vmax.f32 %v11238_v53, %v3853_v54  ;;  %v11241_v37 = vmax.f32 %v11239_v5, %v11240_v13  ;;  %v8328_v53 = vld [vmem:[%s8568_s29 + $0x7f4] sm:$0xf]  ;;  %v11248_v13 = vld [vmem:[#allocation35_spill] sm:$0xff] }
 0x4bb   : > { %5777 = vst.msk [vmem:[%s9838_s22 + $0x70] sm:$0xf] %vm5748_vm1, %v5676_v62  ;;  %v5373_v38 = vmax.f32 %v4054_v9, %v5167_v51  ;;  %v3596_v61 = vpop.f32.mrf.mxu1  ;;  %4949 = vmatmul.bf16.gmra.mxu0 %v7797_v39  ;;  %v7272_v51 = vld [vmem:[%s8568_s29 + $0x7e8] sm:$0xf0] }
 0x4bc   : > { %7484 = vmatmul.msk.bf16.gmra.mxu3 %vm818_vm0, %v7259_v10 }
 0x4bd   : > { %v5477_v41 = vadd.f32 %v10112_v24, %v5373_v38  ;;  %8033 = vmatmul.msk.bf16.gmra.mxu2 %vm818_vm0, %v7801_v34  ;;  %v8425_v34 = vld [vmem:[%s8568_s29 + $0xaf4] sm:$0xf0]  ;;  %v7814_v38 = vld [vmem:[%s8568_s29 + $0xaf8] sm:$0xf0] }
 0x4be   : > { %3635 = vmatmul.bf16.gmra.mxu1 %v7255_v50  ;;  %v8424_v50 = vld [vmem:[%s8568_s29 + $0xaf4] sm:$0xf] }
 0x4bf   : > { %v5577_v15 = vmax.f32 %v5477_v41, 0.0  ;;  %v3855_v28 = vpop.f32.mrf.mxu3  ;;  %v8327_v41 = vld [vmem:[%s8568_s29 + $0x7e4] sm:$0xf0] }
 0x4c0   : > { %v5169_v40 = vpop.f32.mrf.mxu2  ;;  %v4912_v0 = vpop.f32.mrf.mxu0  ;;  %v3856_v1 = vadd.f32 %v3855_v28, %v3596_v61  ;;  %v7271_v52 = vor.u32 %v8327_v41, %v7270_v32  ;;  %v11252_v32 = vld [vmem:[#allocation38_spill] sm:$0xff] }
 0x4c1   : > { %v5677_v8 = vpack.c.bf16 %v5577_v15, %v5577_v15  ;;  %v5170_v23 = vadd.f32 %v5169_v40, %v4910_v35  ;;  %v7812_v35 = vld [vmem:[%s8568_s29 + $0xaf0] sm:$0xf]  ;;  %v7275_v40 = vor.u32 %v8326_v47, %v7272_v51 }
 0x4c2   : > { %v4057_v56 = vmax.f32 %v11241_v37, %v3856_v1  ;;  %v7813_v18 = vor.u32 %v8425_v34, %v7812_v35  ;;  %v7278_v1 = vld [vmem:[%s8568_s29 + $0x7f0] sm:$0xf] }
 0x4c3   : > { %5778 = vst.msk [vmem:[%s9838_s22 + $0x74] sm:$0xf] %vm5748_vm1, %v5677_v8  ;;  %v5374_v29 = vmax.f32 %v4055_v49, %v5170_v23  ;;  %v3598_v7 = vpop.f32.mrf.mxu1  ;;  %v11244_v49 = vmax.f32 %v11242_v6, %v11243_v44  ;;  %v11249_v37 = vld [vmem:[#allocation36_spill] sm:$0xff] }
 0x4c5   : > { %v5478_v17 = vadd.f32 %v10112_v24, %v5374_v29 }
 0x4c7   : > { %v5578_v4 = vmax.f32 %v5478_v17, 0.0  ;;  %v3857_v43 = vpop.f32.mrf.mxu3 }
 0x4c8   : > { %v5171_v60 = vpop.f32.mrf.mxu2  ;;  %v4915_v12 = vpop.f32.mrf.mxu0  ;;  %v3858_v9 = vadd.f32 %v3857_v43, %v3598_v7  ;;  %v7817_v7 = vor.u32 %v8424_v50, %v7814_v38 }
 0x4c9   : > { %v5678_v3 = vpack.c.bf16 %v5578_v4, %v5578_v4  ;;  %v5172_v55 = vadd.f32 %v5171_v60, %v4912_v0  ;;  %v11245_v4 = vld [vmem:[#allocation33_spill] sm:$0xff] }
 0x4ca   : > { %v4058_v8 = vmax.f32 %v11244_v49, %v3858_v9  ;;  %v11247_v33 = vmax.f32 %v11245_v4, %v11246_v25  ;;  %v8330_v49 = vld [vmem:[%s8568_s29 + $0x804] sm:$0xf]  ;;  %v11254_v25 = vld [vmem:[#allocation39_spill] sm:$0xff] }
 0x4cb   : > { %5779 = vst.msk [vmem:[%s9838_s22 + $0x78] sm:$0xf] %vm5748_vm1, %v5678_v3  ;;  %v5375_v21 = vmax.f32 %v4056_v59, %v5172_v55  ;;  %v3601_v2 = vpop.f32.mrf.mxu1  ;;  %4954 = vmatmul.bf16.gmra.mxu0 %v7805_v26  ;;  %v7280_v55 = vld [vmem:[%s8568_s29 + $0x7f8] sm:$0xf0] }
 0x4cc   : > { %7485 = vmatmul.msk.bf16.gmra.mxu3 %vm818_vm0, %v7267_v19 }
 0x4cd   : > { %v5479_v58 = vadd.f32 %v10112_v24, %v5375_v21  ;;  %8034 = vmatmul.msk.bf16.gmra.mxu2 %vm818_vm0, %v7809_v45  ;;  %v8427_v45 = vld [vmem:[%s8568_s29 + $0xb04] sm:$0xf0]  ;;  %v7822_v21 = vld [vmem:[%s8568_s29 + $0xb08] sm:$0xf0] }
 0x4ce   : > { %3640 = vmatmul.bf16.gmra.mxu1 %v7263_v31  ;;  %v8426_v31 = vld [vmem:[%s8568_s29 + $0xb04] sm:$0xf] }
 0x4cf   : > { %v5579_v22 = vmax.f32 %v5479_v58, 0.0  ;;  %v3860_v42 = vpop.f32.mrf.mxu3  ;;  %v8329_v58 = vld [vmem:[%s8568_s29 + $0x7f4] sm:$0xf0] }
 0x4d0   : > { %v5174_v20 = vpop.f32.mrf.mxu2  ;;  %v4917_v39 = vpop.f32.mrf.mxu0  ;;  %v3861_v63 = vadd.f32 %v3860_v42, %v3601_v2  ;;  %v7279_v47 = vor.u32 %v8329_v58, %v7278_v1  ;;  %v11258_v1 = vld [vmem:[#allocation42_spill] sm:$0xff] }
 0x4d1   : > { %v5679_v36 = vpack.c.bf16 %v5579_v22, %v5579_v22  ;;  %v5175_v10 = vadd.f32 %v5174_v20, %v4915_v12  ;;  %v7820_v12 = vld [vmem:[%s8568_s29 + $0xb00] sm:$0xf]  ;;  %v7283_v20 = vor.u32 %v8328_v53, %v7280_v55 }
 0x4d2   : > { %v4059_v43 = vmax.f32 %v11247_v33, %v3861_v63  ;;  %v7821_v5 = vor.u32 %v8427_v45, %v7820_v12  ;;  %v7286_v63 = vld [vmem:[%s8568_s29 + $0x800] sm:$0xf]  ;;  %v11255_v33 = vld [vmem:[#allocation40_spill] sm:$0xff] }
 0x4d3   : > { %5780 = vst.msk [vmem:[%s9838_s22 + $0x7c] sm:$0xf] %vm5748_vm1, %v5679_v36  ;;  %v5376_v46 = vmax.f32 %v4057_v56, %v5175_v10  ;;  %v3603_v30 = vpop.f32.mrf.mxu1  ;;  %v11250_v56 = vmax.f32 %v11248_v13, %v11249_v37 }
 0x4d5   : > { %v5480_v62 = vadd.f32 %v10112_v24, %v5376_v46 }
 0x4d7   : > { %v5580_v61 = vmax.f32 %v5480_v62, 0.0  ;;  %v3862_v15 = vpop.f32.mrf.mxu3 }
 0x4d8   : > { %v5176_v28 = vpop.f32.mrf.mxu2  ;;  %v4920_v29 = vpop.f32.mrf.mxu0  ;;  %v3863_v59 = vadd.f32 %v3862_v15, %v3603_v30  ;;  %v7825_v30 = vor.u32 %v8426_v31, %v7822_v21 }
 0x4d9   : > { %v5680_v23 = vpack.c.bf16 %v5580_v61, %v5580_v61  ;;  %v5177_v0 = vadd.f32 %v5176_v28, %v4917_v39  ;;  %v11251_v61 = vld [vmem:[#allocation37_spill] sm:$0xff] }
 0x4da   : > { %v4060_v36 = vmax.f32 %v11250_v56, %v3863_v59  ;;  %v11253_v41 = vmax.f32 %v11251_v61, %v11252_v32  ;;  %v8332_v56 = vld [vmem:[%s8568_s29 + $0x814] sm:$0xf]  ;;  %v11260_v32 = vld [vmem:[#allocation43_spill] sm:$0xff] }
 0x4db   : > { %5781 = vst.msk [vmem:[%s9838_s22 + $0x80] sm:$0xf] %vm5748_vm1, %v5680_v23  ;;  %v5377_v54 = vmax.f32 %v4058_v8, %v5177_v0  ;;  %v3606_v17 = vpop.f32.mrf.mxu1  ;;  %4959 = vmatmul.bf16.gmra.mxu0 %v7813_v18  ;;  %v7288_v0 = vld [vmem:[%s8568_s29 + $0x808] sm:$0xf0] }
 0x4dc   : > { %7486 = vmatmul.msk.bf16.gmra.mxu3 %vm818_vm0, %v7275_v40 }
 0x4dd   : > { %v5481_v11 = vadd.f32 %v10112_v24, %v5377_v54  ;;  %8035 = vmatmul.msk.bf16.gmra.mxu2 %vm818_vm0, %v7817_v7  ;;  %v8429_v7 = vld [vmem:[%s8568_s29 + $0xb14] sm:$0xf0]  ;;  %v7830_v54 = vld [vmem:[%s8568_s29 + $0xb18] sm:$0xf0] }
 0x4de   : > { %3645 = vmatmul.bf16.gmra.mxu1 %v7271_v52  ;;  %v8428_v52 = vld [vmem:[%s8568_s29 + $0xb14] sm:$0xf] }
 0x4df   : > { %v5581_v48 = vmax.f32 %v5481_v11, 0.0  ;;  %v3865_v16 = vpop.f32.mrf.mxu3  ;;  %v8331_v11 = vld [vmem:[%s8568_s29 + $0x804] sm:$0xf0] }
 0x4e0   : > { %v5179_v27 = vpop.f32.mrf.mxu2  ;;  %v4922_v26 = vpop.f32.mrf.mxu0  ;;  %v3866_v51 = vadd.f32 %v3865_v16, %v3606_v17  ;;  %v7287_v53 = vor.u32 %v8331_v11, %v7286_v63  ;;  %v11264_v63 = vld [vmem:[#allocation46_spill] sm:$0xff] }
 0x4e1   : > { %v5681_v60 = vpack.c.bf16 %v5581_v48, %v5581_v48  ;;  %v5180_v19 = vadd.f32 %v5179_v27, %v4920_v29  ;;  %v7828_v29 = vld [vmem:[%s8568_s29 + $0xb10] sm:$0xf]  ;;  %v7291_v27 = vor.u32 %v8330_v49, %v7288_v0 }
 0x4e2   : > { %v4061_v15 = vmax.f32 %v11253_v41, %v3866_v51  ;;  %v7829_v4 = vor.u32 %v8429_v7, %v7828_v29  ;;  %v7294_v51 = vld [vmem:[%s8568_s29 + $0x810] sm:$0xf] }
 0x4e3   : > { %5782 = vst.msk [vmem:[%s9838_s22 + $0x84] sm:$0xf] %vm5748_vm1, %v5681_v60  ;;  %v5378_v14 = vmax.f32 %v4059_v43, %v5180_v19  ;;  %v3608_v57 = vpop.f32.mrf.mxu1  ;;  %v11256_v43 = vmax.f32 %v11254_v25, %v11255_v33  ;;  %v11261_v41 = vld [vmem:[#allocation44_spill] sm:$0xff] }
 0x4e5   : > { %v5482_v3 = vadd.f32 %v10112_v24, %v5378_v14 }
 0x4e7   : > { %v5582_v2 = vmax.f32 %v5482_v3, 0.0  ;;  %v3867_v22 = vpop.f32.mrf.mxu3 }
 0x4e8   : > { %v5181_v42 = vpop.f32.mrf.mxu2  ;;  %v4925_v46 = vpop.f32.mrf.mxu0  ;;  %v3868_v8 = vadd.f32 %v3867_v22, %v3608_v57  ;;  %v7833_v57 = vor.u32 %v8428_v52, %v7830_v54 }
 0x4e9   : > { %v5682_v10 = vpack.c.bf16 %v5582_v2, %v5582_v2  ;;  %v5182_v39 = vadd.f32 %v5181_v42, %v4922_v26  ;;  %v11257_v2 = vld [vmem:[#allocation41_spill] sm:$0xff] }
 0x4ea   : > { %v4062_v60 = vmax.f32 %v11256_v43, %v3868_v8  ;;  %v11259_v58 = vmax.f32 %v11257_v2, %v11258_v1  ;;  %v8334_v43 = vld [vmem:[%s8568_s29 + $0x824] sm:$0xf]  ;;  %v11266_v1 = vld [vmem:[#allocation47_spill] sm:$0xff] }
 0x4eb   : > { %5783 = vst.msk [vmem:[%s9838_s22 + $0x88] sm:$0xf] %vm5748_vm1, %v5682_v10  ;;  %v5379_v9 = vmax.f32 %v4060_v36, %v5182_v39  ;;  %v3611_v62 = vpop.f32.mrf.mxu1  ;;  %4964 = vmatmul.bf16.gmra.mxu0 %v7821_v5  ;;  %v7296_v39 = vld [vmem:[%s8568_s29 + $0x818] sm:$0xf0] }
 0x4ec   : > { %7487 = vmatmul.msk.bf16.gmra.mxu3 %vm818_vm0, %v7283_v20 }
 0x4ed   : > { %v5483_v35 = vadd.f32 %v10112_v24, %v5379_v9  ;;  %8036 = vmatmul.msk.bf16.gmra.mxu2 %vm818_vm0, %v7825_v30  ;;  %v8431_v30 = vld [vmem:[%s8568_s29 + $0xb24] sm:$0xf0]  ;;  %v7838_v9 = vld [vmem:[%s8568_s29 + $0xb28] sm:$0xf0] }
 0x4ee   : > { %3650 = vmatmul.bf16.gmra.mxu1 %v7279_v47  ;;  %v8430_v47 = vld [vmem:[%s8568_s29 + $0xb24] sm:$0xf] }
 0x4ef   : > { %v5583_v34 = vmax.f32 %v5483_v35, 0.0  ;;  %v3870_v50 = vpop.f32.mrf.mxu3  ;;  %v8333_v35 = vld [vmem:[%s8568_s29 + $0x814] sm:$0xf0] }
 0x4f0   : > { %v5184_v38 = vpop.f32.mrf.mxu2  ;;  %v4927_v18 = vpop.f32.mrf.mxu0  ;;  %v3871_v55 = vadd.f32 %v3870_v50, %v3611_v62  ;;  %v7295_v49 = vor.u32 %v8333_v35, %v7294_v51  ;;  %v11270_v51 = vld [vmem:[#allocation50_spill] sm:$0xff] }
 0x4f1   : > { %v5683_v28 = vpack.c.bf16 %v5583_v34, %v5583_v34  ;;  %v5185_v40 = vadd.f32 %v5184_v38, %v4925_v46  ;;  %v7836_v46 = vld [vmem:[%s8568_s29 + $0xb20] sm:$0xf]  ;;  %v7299_v38 = vor.u32 %v8332_v56, %v7296_v39 }
 0x4f2   : > { %v4063_v22 = vmax.f32 %v11259_v58, %v3871_v55  ;;  %v7837_v61 = vor.u32 %v8431_v30, %v7836_v46  ;;  %v7302_v55 = vld [vmem:[%s8568_s29 + $0x820] sm:$0xf]  ;;  %v11267_v58 = vld [vmem:[#allocation48_spill] sm:$0xff] }
 0x4f3   : > { %5784 = vst.msk [vmem:[%s9838_s22 + $0x8c] sm:$0xf] %vm5748_vm1, %v5683_v28  ;;  %v5380_v6 = vmax.f32 %v4061_v15, %v5185_v40  ;;  %v3613_v44 = vpop.f32.mrf.mxu1  ;;  %v11262_v15 = vmax.f32 %v11260_v32, %v11261_v41 }
 0x4f5   : > { %v5484_v23 = vadd.f32 %v10112_v24, %v5380_v6 }
 0x4f7   : > { %v5584_v17 = vmax.f32 %v5484_v23, 0.0  ;;  %v3872_v48 = vpop.f32.mrf.mxu3 }
 0x4f8   : > { %v5186_v16 = vpop.f32.mrf.mxu2  ;;  %v4930_v14 = vpop.f32.mrf.mxu0  ;;  %v3873_v36 = vadd.f32 %v3872_v48, %v3613_v44  ;;  %v7841_v44 = vor.u32 %v8430_v47, %v7838_v9 }
 0x4f9   : > { %v5684_v19 = vpack.c.bf16 %v5584_v17, %v5584_v17  ;;  %v5187_v26 = vadd.f32 %v5186_v16, %v4927_v18  ;;  %v11263_v17 = vld [vmem:[#allocation45_spill] sm:$0xff] }
 0x4fa   : > { %v4064_v28 = vmax.f32 %v11262_v15, %v3873_v36  ;;  %v11265_v11 = vmax.f32 %v11263_v17, %v11264_v63  ;;  %v8336_v15 = vld [vmem:[%s8568_s29 + $0x834] sm:$0xf]  ;;  %v11272_v63 = vld [vmem:[#allocation51_spill] sm:$0xff] }
 0x4fb   : > { %5785 = vst.msk [vmem:[%s9838_s22 + $0x90] sm:$0xf] %vm5748_vm1, %v5684_v19  ;;  %v5381_v59 = vmax.f32 %v4062_v60, %v5187_v26  ;;  %v3616_v3 = vpop.f32.mrf.mxu1  ;;  %4969 = vmatmul.bf16.gmra.mxu0 %v7829_v4  ;;  %v7304_v26 = vld [vmem:[%s8568_s29 + $0x828] sm:$0xf0] }
 0x4fc   : > { %7488 = vmatmul.msk.bf16.gmra.mxu3 %vm818_vm0, %v7291_v27 }
 0x4fd   : > { %v5485_v12 = vadd.f32 %v10112_v24, %v5381_v59  ;;  %8037 = vmatmul.msk.bf16.gmra.mxu2 %vm818_vm0, %v7833_v57  ;;  %v8433_v57 = vld [vmem:[%s8568_s29 + $0xb34] sm:$0xf0]  ;;  %v7846_v59 = vld [vmem:[%s8568_s29 + $0xb38] sm:$0xf0] }
 0x4fe   : > { %3655 = vmatmul.bf16.gmra.mxu1 %v7287_v53  ;;  %v8432_v53 = vld [vmem:[%s8568_s29 + $0xb34] sm:$0xf] }
 0x4ff   : > { %v5585_v45 = vmax.f32 %v5485_v12, 0.0  ;;  %v3875_v31 = vpop.f32.mrf.mxu3  ;;  %v8335_v12 = vld [vmem:[%s8568_s29 + $0x824] sm:$0xf0] }
 0x500   : > { %v5189_v21 = vpop.f32.mrf.mxu2  ;;  %v4932_v5 = vpop.f32.mrf.mxu0  ;;  %v3876_v0 = vadd.f32 %v3875_v31, %v3616_v3  ;;  %v7303_v56 = vor.u32 %v8335_v12, %v7302_v55  ;;  %v11276_v55 = vld [vmem:[#allocation54_spill] sm:$0xff] }
 0x501   : > { %v5685_v42 = vpack.c.bf16 %v5585_v45, %v5585_v45  ;;  %v5190_v20 = vadd.f32 %v5189_v21, %v4930_v14  ;;  %v7844_v14 = vld [vmem:[%s8568_s29 + $0xb30] sm:$0xf]  ;;  %v7307_v21 = vor.u32 %v8334_v43, %v7304_v26 }
 0x502   : > { %v4065_v48 = vmax.f32 %v11265_v11, %v3876_v0  ;;  %v7845_v2 = vor.u32 %v8433_v57, %v7844_v14  ;;  %v7310_v0 = vld [vmem:[%s8568_s29 + $0x830] sm:$0xf] }
 0x503   : > { %5786 = vst.msk [vmem:[%s9838_s22 + $0x94] sm:$0xf] %vm5748_vm1, %v5685_v42  ;;  %v5382_v13 = vmax.f32 %v4063_v22, %v5190_v20  ;;  %v3618_v37 = vpop.f32.mrf.mxu1  ;;  %v11268_v22 = vmax.f32 %v11266_v1, %v11267_v58  ;;  %v11273_v11 = vld [vmem:[#allocation52_spill] sm:$0xff] }
 0x505   : > { %v5486_v10 = vadd.f32 %v10112_v24, %v5382_v13 }
 0x507   : > { %v5586_v62 = vmax.f32 %v5486_v10, 0.0  ;;  %v3877_v34 = vpop.f32.mrf.mxu3 }
 0x508   : > { %v5191_v50 = vpop.f32.mrf.mxu2  ;;  %v4935_v6 = vpop.f32.mrf.mxu0  ;;  %v3878_v60 = vadd.f32 %v3877_v34, %v3618_v37  ;;  %v7849_v37 = vor.u32 %v8432_v53, %v7846_v59 }
 0x509   : > { %v5686_v40 = vpack.c.bf16 %v5586_v62, %v5586_v62  ;;  %v5192_v18 = vadd.f32 %v5191_v50, %v4932_v5  ;;  %v11269_v62 = vld [vmem:[#allocation49_spill] sm:$0xff] }
 0x50a   : > { %v4066_v42 = vmax.f32 %v11268_v22, %v3878_v60  ;;  %v11271_v35 = vmax.f32 %v11269_v62, %v11270_v51  ;;  %v8338_v22 = vld [vmem:[%s8568_s29 + $0x844] sm:$0xf]  ;;  %v11278_v51 = vld [vmem:[#allocation55_spill] sm:$0xff] }
 0x50b   : > { %5787 = vst.msk [vmem:[%s9838_s22 + $0x98] sm:$0xf] %vm5748_vm1, %v5686_v40  ;;  %v5383_v8 = vmax.f32 %v4064_v28, %v5192_v18  ;;  %v3621_v23 = vpop.f32.mrf.mxu1  ;;  %4974 = vmatmul.bf16.gmra.mxu0 %v7837_v61  ;;  %v7312_v18 = vld [vmem:[%s8568_s29 + $0x838] sm:$0xf0] }
 0x50c   : > { %7489 = vmatmul.msk.bf16.gmra.mxu3 %vm818_vm0, %v7299_v38 }
 0x50d   : > { %v5487_v29 = vadd.f32 %v10112_v24, %v5383_v8  ;;  %8038 = vmatmul.msk.bf16.gmra.mxu2 %vm818_vm0, %v7841_v44  ;;  %v8435_v44 = vld [vmem:[%s8568_s29 + $0xb44] sm:$0xf0]  ;;  %v7854_v8 = vld [vmem:[%s8568_s29 + $0xb48] sm:$0xf0] }
 0x50e   : > { %3660 = vmatmul.bf16.gmra.mxu1 %v7295_v49  ;;  %v8434_v49 = vld [vmem:[%s8568_s29 + $0xb44] sm:$0xf] }
 0x50f   : > { %v5587_v7 = vmax.f32 %v5487_v29, 0.0  ;;  %v3880_v52 = vpop.f32.mrf.mxu3  ;;  %v8337_v29 = vld [vmem:[%s8568_s29 + $0x834] sm:$0xf0] }
 0x510   : > { %v5194_v54 = vpop.f32.mrf.mxu2  ;;  %v4937_v4 = vpop.f32.mrf.mxu0  ;;  %v3881_v39 = vadd.f32 %v3880_v52, %v3621_v23  ;;  %v7311_v43 = vor.u32 %v8337_v29, %v7310_v0  ;;  %v11282_v0 = vld [vmem:[#allocation58_spill] sm:$0xff] }
 0x511   : > { %v5687_v16 = vpack.c.bf16 %v5587_v7, %v5587_v7  ;;  %v5195_v27 = vadd.f32 %v5194_v54, %v4935_v6  ;;  %v7852_v6 = vld [vmem:[%s8568_s29 + $0xb40] sm:$0xf]  ;;  %v7315_v54 = vor.u32 %v8336_v15, %v7312_v18 }
 0x512   : > { %v4067_v34 = vmax.f32 %v11271_v35, %v3881_v39  ;;  %v7853_v17 = vor.u32 %v8435_v44, %v7852_v6  ;;  %v7318_v39 = vld [vmem:[%s8568_s29 + $0x840] sm:$0xf]  ;;  %v11279_v35 = vld [vmem:[#allocation56_spill] sm:$0xff] }
 0x513   : > { %5788 = vst.msk [vmem:[%s9838_s22 + $0x9c] sm:$0xf] %vm5748_vm1, %v5687_v16  ;;  %v5384_v25 = vmax.f32 %v4065_v48, %v5195_v27  ;;  %v3623_v33 = vpop.f32.mrf.mxu1  ;;  %v11274_v48 = vmax.f32 %v11272_v63, %v11273_v11 }
 0x515   : > { %v5488_v19 = vadd.f32 %v10112_v24, %v5384_v25 }
 0x517   : > { %v5588_v3 = vmax.f32 %v5488_v19, 0.0  ;;  %v3882_v45 = vpop.f32.mrf.mxu3 }
 0x518   : > { %v5196_v31 = vpop.f32.mrf.mxu2  ;;  %v4940_v13 = vpop.f32.mrf.mxu0  ;;  %v3883_v28 = vadd.f32 %v3882_v45, %v3623_v33  ;;  %v7857_v33 = vor.u32 %v8434_v49, %v7854_v8 }
 0x519   : > { %v5688_v20 = vpack.c.bf16 %v5588_v3, %v5588_v3  ;;  %v5197_v5 = vadd.f32 %v5196_v31, %v4937_v4  ;;  %v11275_v3 = vld [vmem:[#allocation53_spill] sm:$0xff] }
 0x51a   : > { %v4068_v16 = vmax.f32 %v11274_v48, %v3883_v28  ;;  %v11277_v12 = vmax.f32 %v11275_v3, %v11276_v55  ;;  %v8340_v48 = vld [vmem:[%s8568_s29 + $0x854] sm:$0xf]  ;;  %v11284_v55 = vld [vmem:[#allocation59_spill] sm:$0xff] }
 0x51b   : > { %5789 = vst.msk [vmem:[%s9838_s22 + $0xa0] sm:$0xf] %vm5748_vm1, %v5688_v20  ;;  %v5385_v36 = vmax.f32 %v4066_v42, %v5197_v5  ;;  %v3626_v10 = vpop.f32.mrf.mxu1  ;;  %4979 = vmatmul.bf16.gmra.mxu0 %v7845_v2  ;;  %v7320_v5 = vld [vmem:[%s8568_s29 + $0x848] sm:$0xf0] }
 0x51c   : > { %7490 = vmatmul.msk.bf16.gmra.mxu3 %vm818_vm0, %v7307_v21 }
 0x51d   : > { %v5489_v46 = vadd.f32 %v10112_v24, %v5385_v36  ;;  %8039 = vmatmul.msk.bf16.gmra.mxu2 %vm818_vm0, %v7849_v37  ;;  %v8437_v37 = vld [vmem:[%s8568_s29 + $0xb54] sm:$0xf0]  ;;  %v7862_v36 = vld [vmem:[%s8568_s29 + $0xb58] sm:$0xf0] }
 0x51e   : > { %3665 = vmatmul.bf16.gmra.mxu1 %v7303_v56  ;;  %v8436_v56 = vld [vmem:[%s8568_s29 + $0xb54] sm:$0xf] }
 0x51f   : > { %v5589_v30 = vmax.f32 %v5489_v46, 0.0  ;;  %v3885_v47 = vpop.f32.mrf.mxu3  ;;  %v8339_v46 = vld [vmem:[%s8568_s29 + $0x844] sm:$0xf0] }
 0x520   : > { %v5199_v9 = vpop.f32.mrf.mxu2  ;;  %v4942_v61 = vpop.f32.mrf.mxu0  ;;  %v3886_v26 = vadd.f32 %v3885_v47, %v3626_v10  ;;  %v7319_v15 = vor.u32 %v8339_v46, %v7318_v39  ;;  %v11288_v39 = vld [vmem:[#allocation62_spill] sm:$0xff] }
 0x521   : > { %v5689_v50 = vpack.c.bf16 %v5589_v30, %v5589_v30  ;;  %v5200_v38 = vadd.f32 %v5199_v9, %v4940_v13  ;;  %v7860_v13 = vld [vmem:[%s8568_s29 + $0xb50] sm:$0xf]  ;;  %v7323_v9 = vor.u32 %v8338_v22, %v7320_v5 }
 0x522   : > { %v4069_v45 = vmax.f32 %v11277_v12, %v3886_v26  ;;  %v7861_v62 = vor.u32 %v8437_v37, %v7860_v13  ;;  %v7326_v26 = vld [vmem:[%s8568_s29 + $0x850] sm:$0xf] }
 0x523   : > { %5790 = vst.msk [vmem:[%s9838_s22 + $0xa4] sm:$0xf] %vm5748_vm1, %v5689_v50  ;;  %v5386_v32 = vmax.f32 %v4067_v34, %v5200_v38  ;;  %v3628_v41 = vpop.f32.mrf.mxu1  ;;  %v11280_v34 = vmax.f32 %v11278_v51, %v11279_v35  ;;  %v11285_v12 = vld [vmem:[#allocation60_spill] sm:$0xff] }
 0x525   : > { %v5490_v40 = vadd.f32 %v10112_v24, %v5386_v32 }
 0x527   : > { %v5590_v23 = vmax.f32 %v5490_v40, 0.0  ;;  %v3887_v7 = vpop.f32.mrf.mxu3 }
 0x528   : > { %v5201_v52 = vpop.f32.mrf.mxu2  ;;  %v4945_v25 = vpop.f32.mrf.mxu0  ;;  %v3888_v42 = vadd.f32 %v3887_v7, %v3628_v41  ;;  %v7865_v41 = vor.u32 %v8436_v56, %v7862_v36 }
 0x529   : > { %v5690_v27 = vpack.c.bf16 %v5590_v23, %v5590_v23  ;;  %v5202_v4 = vadd.f32 %v5201_v52, %v4942_v61  ;;  %v11281_v23 = vld [vmem:[#allocation57_spill] sm:$0xff] }
 0x52a   : > { %v4070_v50 = vmax.f32 %v11280_v34, %v3888_v42  ;;  %v11283_v29 = vmax.f32 %v11281_v23, %v11282_v0  ;;  %v8342_v34 = vld [vmem:[%s8568_s29 + $0x864] sm:$0xf]  ;;  %v11290_v0 = vld [vmem:[#allocation63_spill] sm:$0xff] }
 0x52b   : > { %5791 = vst.msk [vmem:[%s9838_s22 + $0xa8] sm:$0xf] %vm5748_vm1, %v5690_v27  ;;  %v5387_v60 = vmax.f32 %v4068_v16, %v5202_v4  ;;  %v3631_v19 = vpop.f32.mrf.mxu1  ;;  %4984 = vmatmul.bf16.gmra.mxu0 %v7853_v17  ;;  %v7328_v4 = vld [vmem:[%s8568_s29 + $0x858] sm:$0xf0] }
 0x52c   : > { %7491 = vmatmul.msk.bf16.gmra.mxu3 %vm818_vm0, %v7315_v54 }
 0x52d   : > { %v5491_v14 = vadd.f32 %v10112_v24, %v5387_v60  ;;  %8040 = vmatmul.msk.bf16.gmra.mxu2 %vm818_vm0, %v7857_v33  ;;  %v8439_v33 = vld [vmem:[%s8568_s29 + $0xb64] sm:$0xf0]  ;;  %v7870_v60 = vld [vmem:[%s8568_s29 + $0xb68] sm:$0xf0] }
 0x52e   : > { %3670 = vmatmul.bf16.gmra.mxu1 %v7311_v43  ;;  %v8438_v43 = vld [vmem:[%s8568_s29 + $0xb64] sm:$0xf] }
 0x52f   : > { %v5591_v57 = vmax.f32 %v5491_v14, 0.0  ;;  %v3890_v53 = vpop.f32.mrf.mxu3  ;;  %v8341_v14 = vld [vmem:[%s8568_s29 + $0x854] sm:$0xf0] }
 0x530   : > { %v5204_v59 = vpop.f32.mrf.mxu2  ;;  %v4947_v2 = vpop.f32.mrf.mxu0  ;;  %v3891_v18 = vadd.f32 %v3890_v53, %v3631_v19  ;;  %v7327_v22 = vor.u32 %v8341_v14, %v7326_v26  ;;  %v11294_v26 = vld [vmem:[#allocation66_spill] sm:$0xff] }
 0x531   : > { %v5691_v31 = vpack.c.bf16 %v5591_v57, %v5591_v57  ;;  %v5205_v21 = vadd.f32 %v5204_v59, %v4945_v25  ;;  %v7868_v25 = vld [vmem:[%s8568_s29 + $0xb60] sm:$0xf]  ;;  %v7331_v59 = vor.u32 %v8340_v48, %v7328_v4 }
 0x532   : > { %v4071_v7 = vmax.f32 %v11283_v29, %v3891_v18  ;;  %v7869_v3 = vor.u32 %v8439_v33, %v7868_v25  ;;  %v7334_v18 = vld [vmem:[%s8568_s29 + $0x860] sm:$0xf]  ;;  %v11291_v29 = vld [vmem:[#allocation64_spill] sm:$0xff] }
 0x533   : > { %5792 = vst.msk [vmem:[%s9838_s22 + $0xac] sm:$0xf] %vm5748_vm1, %v5691_v31  ;;  %v5388_v1 = vmax.f32 %v4069_v45, %v5205_v21  ;;  %v3633_v58 = vpop.f32.mrf.mxu1  ;;  %v11286_v45 = vmax.f32 %v11284_v55, %v11285_v12 }
 0x535   : > { %v5492_v20 = vadd.f32 %v10112_v24, %v5388_v1 }
 0x537   : > { %v5592_v10 = vmax.f32 %v5492_v20, 0.0  ;;  %v3892_v30 = vpop.f32.mrf.mxu3 }
 0x538   : > { %v5206_v47 = vpop.f32.mrf.mxu2  ;;  %v4950_v32 = vpop.f32.mrf.mxu0  ;;  %v3893_v16 = vadd.f32 %v3892_v30, %v3633_v58  ;;  %v7873_v58 = vor.u32 %v8438_v43, %v7870_v60 }
 0x539   : > { %v5692_v38 = vpack.c.bf16 %v5592_v10, %v5592_v10  ;;  %v5207_v61 = vadd.f32 %v5206_v47, %v4947_v2  ;;  %v11287_v10 = vld [vmem:[#allocation61_spill] sm:$0xff] }
 0x53a   : > { %v4072_v31 = vmax.f32 %v11286_v45, %v3893_v16  ;;  %v11289_v46 = vmax.f32 %v11287_v10, %v11288_v39  ;;  %v8344_v45 = vld [vmem:[%s8568_s29 + $0x874] sm:$0xf]  ;;  %v11296_v39 = vld [vmem:[#allocation67_spill] sm:$0xff] }
 0x53b   : > { %5793 = vst.msk [vmem:[%s9838_s22 + $0xb0] sm:$0xf] %vm5748_vm1, %v5692_v38  ;;  %v5389_v28 = vmax.f32 %v4070_v50, %v5207_v61  ;;  %v3636_v40 = vpop.f32.mrf.mxu1  ;;  %4989 = vmatmul.bf16.gmra.mxu0 %v7861_v62  ;;  %v7336_v61 = vld [vmem:[%s8568_s29 + $0x868] sm:$0xf0] }
 0x53c   : > { %7492 = vmatmul.msk.bf16.gmra.mxu3 %vm818_vm0, %v7323_v9 }
 0x53d   : > { %v5493_v6 = vadd.f32 %v10112_v24, %v5389_v28  ;;  %8041 = vmatmul.msk.bf16.gmra.mxu2 %vm818_vm0, %v7865_v41  ;;  %v8441_v41 = vld [vmem:[%s8568_s29 + $0xb74] sm:$0xf0]  ;;  %v7878_v28 = vld [vmem:[%s8568_s29 + $0xb78] sm:$0xf0] }
 0x53e   : > { %3675 = vmatmul.bf16.gmra.mxu1 %v7319_v15  ;;  %v8440_v15 = vld [vmem:[%s8568_s29 + $0xb74] sm:$0xf] }
 0x53f   : > { %v5593_v44 = vmax.f32 %v5493_v6, 0.0  ;;  %v3895_v49 = vpop.f32.mrf.mxu3  ;;  %v8343_v6 = vld [vmem:[%s8568_s29 + $0x864] sm:$0xf0] }
 0x540   : > { %v5209_v8 = vpop.f32.mrf.mxu2  ;;  %v4952_v17 = vpop.f32.mrf.mxu0  ;;  %v3896_v5 = vadd.f32 %v3895_v49, %v3636_v40  ;;  %v7335_v48 = vor.u32 %v8343_v6, %v7334_v18  ;;  %v11300_v18 = vld [vmem:[#allocation70_spill] sm:$0xff] }
 0x541   : > { %v5693_v52 = vpack.c.bf16 %v5593_v44, %v5593_v44  ;;  %v5210_v54 = vadd.f32 %v5209_v8, %v4950_v32  ;;  %v7876_v32 = vld [vmem:[%s8568_s29 + $0xb70] sm:$0xf]  ;;  %v7339_v8 = vor.u32 %v8342_v34, %v7336_v61  ;;  %v10403_v61 = vld [vmem:[%s10852_s2] ss:$0 sm:$0xff] }
 0x542   : > { %v4073_v30 = vmax.f32 %v11289_v46, %v3896_v5  ;;  %v7877_v23 = vor.u32 %v8441_v41, %v7876_v32  ;;  %v7342_v5 = vld [vmem:[%s8568_s29 + $0x870] sm:$0xf] }
 0x543   : > { %5794 = vst.msk [vmem:[%s9838_s22 + $0xb4] sm:$0xf] %vm5748_vm1, %v5693_v52  ;;  %v5390_v63 = vmax.f32 %v4071_v7, %v5210_v54  ;;  %v3638_v11 = vpop.f32.mrf.mxu1  ;;  %v11292_v7 = vmax.f32 %v11290_v0, %v11291_v29  ;;  %v11297_v46 = vld [vmem:[#allocation68_spill] sm:$0xff] }
 0x545   : > { %v5494_v27 = vadd.f32 %v10112_v24, %v5390_v63 }
 0x547   : > { %v5594_v19 = vmax.f32 %v5494_v27, 0.0  ;;  %v3897_v57 = vpop.f32.mrf.mxu3 }
 0x548   : > { %v5211_v53 = vpop.f32.mrf.mxu2  ;;  %v4955_v1 = vpop.f32.mrf.mxu0  ;;  %v3898_v50 = vadd.f32 %v3897_v57, %v3638_v11  ;;  %v7881_v11 = vor.u32 %v8440_v15, %v7878_v28 }
 0x549   : > { %v5694_v21 = vpack.c.bf16 %v5594_v19, %v5594_v19  ;;  %v5212_v2 = vadd.f32 %v5211_v53, %v4952_v17  ;;  %v11293_v19 = vld [vmem:[#allocation65_spill] sm:$0xff] }
 0x54a   : > { %v4074_v52 = vmax.f32 %v11292_v7, %v3898_v50  ;;  %v11295_v14 = vmax.f32 %v11293_v19, %v11294_v26  ;;  %v8346_v7 = vld [vmem:[%s8568_s29 + $0x884] sm:$0xf]  ;;  %v11302_v26 = vld [vmem:[#allocation71_spill] sm:$0xff] }
 0x54b   : > { %5795 = vst.msk [vmem:[%s9838_s22 + $0xb8] sm:$0xf] %vm5748_vm1, %v5694_v21  ;;  %v5391_v42 = vmax.f32 %v4072_v31, %v5212_v2  ;;  %v3641_v20 = vpop.f32.mrf.mxu1  ;;  %4994 = vmatmul.bf16.gmra.mxu0 %v7869_v3  ;;  %v7344_v2 = vld [vmem:[%s8568_s29 + $0x878] sm:$0xf0] }
 0x54c   : > { %7493 = vmatmul.msk.bf16.gmra.mxu3 %vm818_vm0, %v7331_v59 }
 0x54d   : > { %v5495_v13 = vadd.f32 %v10112_v24, %v5391_v42  ;;  %8042 = vmatmul.msk.bf16.gmra.mxu2 %vm818_vm0, %v7873_v58  ;;  %v8443_v58 = vld [vmem:[%s8568_s29 + $0xb84] sm:$0xf0]  ;;  %v7886_v42 = vld [vmem:[%s8568_s29 + $0xb88] sm:$0xf0] }
 0x54e   : > { %3680 = vmatmul.bf16.gmra.mxu1 %v7327_v22  ;;  %v8442_v22 = vld [vmem:[%s8568_s29 + $0xb84] sm:$0xf] }
 0x54f   : > { %v5595_v37 = vmax.f32 %v5495_v13, 0.0  ;;  %v3900_v56 = vpop.f32.mrf.mxu3  ;;  %v8345_v13 = vld [vmem:[%s8568_s29 + $0x874] sm:$0xf0] }
 0x550   : > { %v5214_v36 = vpop.f32.mrf.mxu2  ;;  %v4957_v62 = vpop.f32.mrf.mxu0  ;;  %v3901_v4 = vadd.f32 %v3900_v56, %v3641_v20 }
 0x551   : > { %v5695_v47 = vpack.c.bf16 %v5595_v37, %v5595_v37  ;;  %v5215_v9 = vadd.f32 %v5214_v36, %v4955_v1  ;;  %v7884_v1 = vld [vmem:[%s8568_s29 + $0xb80] sm:$0xf]  ;;  %v7347_v36 = vor.u32 %v8344_v45, %v7344_v2 }
 0x552   : > { %v4075_v57 = vmax.f32 %v11295_v14, %v3901_v4  ;;  %v7885_v10 = vor.u32 %v8443_v58, %v7884_v1  ;;  %v7350_v4 = vld [vmem:[%s8568_s29 + $0x880] sm:$0xf]  ;;  %v11303_v14 = vld [vmem:[#allocation72_spill] sm:$0xff] }
 0x553   : > { %5796 = vst.msk [vmem:[%s9838_s22 + $0xbc] sm:$0xf] %vm5748_vm1, %v5695_v47  ;;  %v5392_v51 = vmax.f32 %v4073_v30, %v5215_v9  ;;  %v3643_v35 = vpop.f32.mrf.mxu1  ;;  %v11298_v30 = vmax.f32 %v11296_v39, %v11297_v46 }
 0x555   : > { %v5496_v38 = vadd.f32 %v10112_v24, %v5392_v51  ;;  %v7889_v51 = vor.u32 %v8442_v22, %v7886_v42 }
 0x557   : > { %v5596_v40 = vmax.f32 %v5496_v38, 0.0  ;;  %v3902_v44 = vpop.f32.mrf.mxu3 }
 0x558   : > { %v5216_v49 = vpop.f32.mrf.mxu2  ;;  %v4960_v63 = vpop.f32.mrf.mxu0  ;;  %v3903_v31 = vadd.f32 %v3902_v44, %v3643_v35  ;;  %v7343_v35 = vor.u32 %v8345_v13, %v7342_v5  ;;  %v11306_v5 = vld [vmem:[#allocation74_spill] sm:$0xff] }
 0x559   : > { %v5696_v54 = vpack.c.bf16 %v5596_v40, %v5596_v40  ;;  %v5217_v17 = vadd.f32 %v5216_v49, %v4957_v62  ;;  %v11299_v40 = vld [vmem:[#allocation69_spill] sm:$0xff] }
 0x55a   : > { %v4076_v47 = vmax.f32 %v11298_v30, %v3903_v31  ;;  %v11301_v6 = vmax.f32 %v11299_v40, %v11300_v18  ;;  %v8348_v30 = vld [vmem:[%s8568_s29 + $0x894] sm:$0xf]  ;;  %v11308_v18 = vld [vmem:[#allocation75_spill] sm:$0xff] }
 0x55b   : > { %5797 = vst.msk [vmem:[%s9838_s22 + $0xc0] sm:$0xf] %vm5748_vm1, %v5696_v54  ;;  %v5393_v16 = vmax.f32 %v4074_v52, %v5217_v17  ;;  %v3646_v27 = vpop.f32.mrf.mxu1  ;;  %4999 = vmatmul.bf16.gmra.mxu0 %v7877_v23  ;;  %v7352_v17 = vld [vmem:[%s8568_s29 + $0x888] sm:$0xf0] }
 0x55c   : > { %7494 = vmatmul.msk.bf16.gmra.mxu3 %vm818_vm0, %v7339_v8 }
 0x55d   : > { %v5497_v25 = vadd.f32 %v10112_v24, %v5393_v16  ;;  %8043 = vmatmul.msk.bf16.gmra.mxu2 %vm818_vm0, %v7881_v11  ;;  %v8445_v11 = vld [vmem:[%s8568_s29 + $0xb94] sm:$0xf0]  ;;  %v7894_v16 = vld [vmem:[%s8568_s29 + $0xb98] sm:$0xf0] }
 0x55e   : > { %3685 = vmatmul.bf16.gmra.mxu1 %v7335_v48  ;;  %v8444_v48 = vld [vmem:[%s8568_s29 + $0xb94] sm:$0xf] }
 0x55f   : > { %v5597_v33 = vmax.f32 %v5497_v25, 0.0  ;;  %v3905_v43 = vpop.f32.mrf.mxu3  ;;  %v8347_v25 = vld [vmem:[%s8568_s29 + $0x884] sm:$0xf0] }
 0x560   : > { %v5219_v60 = vpop.f32.mrf.mxu2  ;;  %v4962_v3 = vpop.f32.mrf.mxu0  ;;  %v3906_v38 = vadd.f32 %v3905_v43, %v3646_v27  ;;  %v7351_v45 = vor.u32 %v8347_v25, %v7350_v4  ;;  %v11312_v4 = vld [vmem:[#allocation78_spill] sm:$0xff] }
 0x561   : > { %v5697_v53 = vpack.c.bf16 %v5597_v33, %v5597_v33  ;;  %v5220_v59 = vadd.f32 %v5219_v60, %v4960_v63  ;;  %v7892_v63 = vld [vmem:[%s8568_s29 + $0xb90] sm:$0xf]  ;;  %v7355_v60 = vor.u32 %v8346_v7, %v7352_v17 }
 0x562   : > { %v4077_v44 = vmax.f32 %v11301_v6, %v3906_v38  ;;  %v7893_v19 = vor.u32 %v8445_v11, %v7892_v63  ;;  %v7358_v38 = vld [vmem:[%s8568_s29 + $0x890] sm:$0xf] }
 0x563   : > { %5798 = vst.msk [vmem:[%s9838_s22 + $0xc4] sm:$0xf] %vm5748_vm1, %v5697_v53  ;;  %v5394_v55 = vmax.f32 %v4075_v57, %v5220_v59  ;;  %v3648_v12 = vpop.f32.mrf.mxu1  ;;  %v11304_v57 = vmax.f32 %v11302_v26, %v11303_v14  ;;  %v11309_v6 = vld [vmem:[#allocation76_spill] sm:$0xff] }
 0x565   : > { %v5498_v21 = vadd.f32 %v10112_v24, %v5394_v55 }
 0x567   : > { %v5598_v20 = vmax.f32 %v5498_v21, 0.0  ;;  %v3907_v37 = vpop.f32.mrf.mxu3 }
 0x568   : > { %v5221_v56 = vpop.f32.mrf.mxu2  ;;  %v4965_v24 = vpop.f32.mrf.mxu0  ;;  %v3908_v52 = vadd.f32 %v3907_v37, %v3648_v12  ;;  %v7897_v12 = vor.u32 %v8444_v48, %v7894_v16 }
 0x569   : > { %v5698_v9 = vpack.c.bf16 %v5598_v20, %v5598_v20  ;;  %v5222_v62 = vadd.f32 %v5221_v56, %v4962_v3  ;;  %v11305_v20 = vld [vmem:[#allocation73_spill] sm:$0xff] }
 0x56a   : > { %v4078_v53 = vmax.f32 %v11304_v57, %v3908_v52  ;;  %v11307_v13 = vmax.f32 %v11305_v20, %v11306_v5  ;;  %v8350_v57 = vld [vmem:[%s8568_s29 + $0x8a4] sm:$0xf]  ;;  %v11314_v5 = vld [vmem:[#allocation79_spill] sm:$0xff] }
 0x56b   : > { %5799 = vst.msk [vmem:[%s9838_s22 + $0xc8] sm:$0xf] %vm5748_vm1, %v5698_v9  ;;  %v5395_v34 = vmax.f32 %v4076_v47, %v5222_v62  ;;  %v3651_v50 = vpop.f32.mrf.mxu1  ;;  %5004 = vmatmul.bf16.gmra.mxu0 %v7885_v10  ;;  %v7360_v62 = vld [vmem:[%s8568_s29 + $0x898] sm:$0xf0] }
 0x56c   : > { %7495 = vmatmul.msk.bf16.gmra.mxu3 %vm818_vm0, %v7347_v36 }
 0x56d   : > { %v5499_v32 = vadd.f32 %v10403_v61, %v5395_v34  ;;  %8044 = vmatmul.msk.bf16.gmra.mxu2 %vm818_vm0, %v7889_v51  ;;  %v8447_v51 = vld [vmem:[%s8568_s29 + $0xba4] sm:$0xf0]  ;;  %v7902_v34 = vld [vmem:[%s8568_s29 + $0xba8] sm:$0xf0] }
 0x56e   : > { %3690 = vmatmul.bf16.gmra.mxu1 %v7343_v35  ;;  %v8446_v35 = vld [vmem:[%s8568_s29 + $0xba4] sm:$0xf] }
 0x56f   : > { %v5599_v41 = vmax.f32 %v5499_v32, 0.0  ;;  %v3910_v15 = vpop.f32.mrf.mxu3  ;;  %v8349_v32 = vld [vmem:[%s8568_s29 + $0x894] sm:$0xf0] }
 0x570   : > { %v5224_v28 = vpop.f32.mrf.mxu2  ;;  %v4967_v23 = vpop.f32.mrf.mxu0  ;;  %v3911_v2 = vadd.f32 %v3910_v15, %v3651_v50  ;;  %v7359_v7 = vor.u32 %v8349_v32, %v7358_v38  ;;  %v11318_v38 = vld [vmem:[#allocation82_spill] sm:$0xff] }
 0x571   : > { %v5699_v49 = vpack.c.bf16 %v5599_v41, %v5599_v41  ;;  %v5225_v8 = vadd.f32 %v5224_v28, %v4965_v24  ;;  %v7900_v24 = vld [vmem:[%s8568_s29 + $0xba0] sm:$0xf]  ;;  %v7363_v28 = vor.u32 %v8348_v30, %v7360_v62 }
 0x572   : > { %v4079_v37 = vmax.f32 %v11307_v13, %v3911_v2  ;;  %v7901_v40 = vor.u32 %v8447_v51, %v7900_v24  ;;  %v7366_v2 = vld [vmem:[%s8568_s29 + $0x8a0] sm:$0xf]  ;;  %v11315_v13 = vld [vmem:[#allocation80_spill] sm:$0xff] }
 0x573   : > { %5800 = vst.msk [vmem:[%s9838_s22 + $0xcc] sm:$0xf] %vm5748_vm1, %v5699_v49  ;;  %v5396_v0 = vmax.f32 %v4077_v44, %v5225_v8  ;;  %v3653_v29 = vpop.f32.mrf.mxu1  ;;  %v11310_v44 = vmax.f32 %v11308_v18, %v11309_v6 }
 0x575   : > { %v5500_v54 = vadd.f32 %v10403_v61, %v5396_v0 }
 0x577   : > { %v5600_v27 = vmax.f32 %v5500_v54, 0.0  ;;  %v3912_v33 = vpop.f32.mrf.mxu3 }
 0x578   : > { %v5226_v43 = vpop.f32.mrf.mxu2  ;;  %v4970_v55 = vpop.f32.mrf.mxu0  ;;  %v3913_v47 = vadd.f32 %v3912_v33, %v3653_v29  ;;  %v7905_v29 = vor.u32 %v8446_v35, %v7902_v34 }
 0x579   : > { %v5700_v59 = vpack.c.bf16 %v5600_v27, %v5600_v27  ;;  %v5227_v3 = vadd.f32 %v5226_v43, %v4967_v23  ;;  %v11311_v27 = vld [vmem:[#allocation77_spill] sm:$0xff] }
 0x57a   : > { %v4080_v49 = vmax.f32 %v11310_v44, %v3913_v47  ;;  %v11313_v25 = vmax.f32 %v11311_v27, %v11312_v4  ;;  %v8352_v44 = vld [vmem:[%s8568_s29 + $0x8b4] sm:$0xf]  ;;  %v11320_v4 = vld [vmem:[#allocation83_spill] sm:$0xff] }
 0x57b   : > { %5801 = vst.msk [vmem:[%s9838_s22 + $0xd0] sm:$0xf] %vm5748_vm1, %v5700_v59  ;;  %v5397_v31 = vmax.f32 %v4078_v53, %v5227_v3  ;;  %v3656_v21 = vpop.f32.mrf.mxu1  ;;  %5009 = vmatmul.bf16.gmra.mxu0 %v7893_v19  ;;  %v7368_v3 = vld [vmem:[%s8568_s29 + $0x8a8] sm:$0xf0] }
 0x57c   : > { %7496 = vmatmul.msk.bf16.gmra.mxu3 %vm818_vm0, %v7355_v60 }
 0x57d   : > { %v5501_v1 = vadd.f32 %v10403_v61, %v5397_v31  ;;  %8045 = vmatmul.msk.bf16.gmra.mxu2 %vm818_vm0, %v7897_v12  ;;  %v8449_v12 = vld [vmem:[%s8568_s29 + $0xbb4] sm:$0xf0]  ;;  %v7910_v31 = vld [vmem:[%s8568_s29 + $0xbb8] sm:$0xf0] }
 0x57e   : > { %3695 = vmatmul.bf16.gmra.mxu1 %v7351_v45  ;;  %v8448_v45 = vld [vmem:[%s8568_s29 + $0xbb4] sm:$0xf] }
 0x57f   : > { %v5601_v58 = vmax.f32 %v5501_v1, 0.0  ;;  %v3915_v22 = vpop.f32.mrf.mxu3  ;;  %v8351_v1 = vld [vmem:[%s8568_s29 + $0x8a4] sm:$0xf0] }
 0x580   : > { %v5229_v42 = vpop.f32.mrf.mxu2  ;;  %v4972_v10 = vpop.f32.mrf.mxu0  ;;  %v3916_v17 = vadd.f32 %v3915_v22, %v3656_v21  ;;  %v7367_v30 = vor.u32 %v8351_v1, %v7366_v2  ;;  %v11324_v2 = vld [vmem:[#allocation86_spill] sm:$0xff] }
 0x581   : > { %v5701_v56 = vpack.c.bf16 %v5601_v58, %v5601_v58  ;;  %v5230_v36 = vadd.f32 %v5229_v42, %v4970_v55  ;;  %v7908_v55 = vld [vmem:[%s8568_s29 + $0xbb0] sm:$0xf]  ;;  %v7371_v42 = vor.u32 %v8350_v57, %v7368_v3 }
 0x582   : > { %v4081_v33 = vmax.f32 %v11313_v25, %v3916_v17  ;;  %v7909_v20 = vor.u32 %v8449_v12, %v7908_v55  ;;  %v7374_v17 = vld [vmem:[%s8568_s29 + $0x8b0] sm:$0xf] }
 0x583   : > { %5802 = vst.msk [vmem:[%s9838_s22 + $0xd4] sm:$0xf] %vm5748_vm1, %v5701_v56  ;;  %v5398_v39 = vmax.f32 %v4079_v37, %v5230_v36  ;;  %v3658_v46 = vpop.f32.mrf.mxu1  ;;  %v11316_v37 = vmax.f32 %v11314_v5, %v11315_v13  ;;  %v11321_v25 = vld [vmem:[#allocation84_spill] sm:$0xff] }
 0x585   : > { %v5502_v9 = vadd.f32 %v10403_v61, %v5398_v39 }
 0x587   : > { %v5602_v50 = vmax.f32 %v5502_v9, 0.0  ;;  %v3917_v41 = vpop.f32.mrf.mxu3 }
 0x588   : > { %v5231_v15 = vpop.f32.mrf.mxu2  ;;  %v4975_v0 = vpop.f32.mrf.mxu0  ;;  %v3918_v53 = vadd.f32 %v3917_v41, %v3658_v46  ;;  %v7913_v46 = vor.u32 %v8448_v45, %v7910_v31 }
 0x589   : > { %v5702_v8 = vpack.c.bf16 %v5602_v50, %v5602_v50  ;;  %v5232_v23 = vadd.f32 %v5231_v15, %v4972_v10  ;;  %v11317_v50 = vld [vmem:[#allocation81_spill] sm:$0xff] }
 0x58a   : > { %v4082_v56 = vmax.f32 %v11316_v37, %v3918_v53  ;;  %v11319_v32 = vmax.f32 %v11317_v50, %v11318_v38  ;;  %v8354_v37 = vld [vmem:[%s8568_s29 + $0x8c4] sm:$0xf]  ;;  %v11326_v38 = vld [vmem:[#allocation87_spill] sm:$0xff] }
 0x58b   : > { %5803 = vst.msk [vmem:[%s9838_s22 + $0xd8] sm:$0xf] %vm5748_vm1, %v5702_v8  ;;  %v5399_v52 = vmax.f32 %v4080_v49, %v5232_v23  ;;  %v3661_v54 = vpop.f32.mrf.mxu1  ;;  %5014 = vmatmul.bf16.gmra.mxu0 %v7901_v40  ;;  %v7376_v23 = vld [vmem:[%s8568_s29 + $0x8b8] sm:$0xf0] }
 0x58c   : > { %7497 = vmatmul.msk.bf16.gmra.mxu3 %vm818_vm0, %v7363_v28 }
 0x58d   : > { %v5503_v63 = vadd.f32 %v10403_v61, %v5399_v52  ;;  %8046 = vmatmul.msk.bf16.gmra.mxu2 %vm818_vm0, %v7905_v29  ;;  %v8451_v29 = vld [vmem:[%s8568_s29 + $0xbc4] sm:$0xf0]  ;;  %v7918_v52 = vld [vmem:[%s8568_s29 + $0xbc8] sm:$0xf0] }
 0x58e   : > { %3700 = vmatmul.bf16.gmra.mxu1 %v7359_v7  ;;  %v8450_v7 = vld [vmem:[%s8568_s29 + $0xbc4] sm:$0xf] }
 0x58f   : > { %v5603_v11 = vmax.f32 %v5503_v63, 0.0  ;;  %v3920_v48 = vpop.f32.mrf.mxu3  ;;  %v8353_v63 = vld [vmem:[%s8568_s29 + $0x8b4] sm:$0xf0] }
 0x590   : > { %v5234_v16 = vpop.f32.mrf.mxu2  ;;  %v4977_v19 = vpop.f32.mrf.mxu0  ;;  %v3921_v62 = vadd.f32 %v3920_v48, %v3661_v54  ;;  %v7375_v57 = vor.u32 %v8353_v63, %v7374_v17  ;;  %v11330_v17 = vld [vmem:[#allocation90_spill] sm:$0xff] }
 0x591   : > { %v5703_v43 = vpack.c.bf16 %v5603_v11, %v5603_v11  ;;  %v5235_v60 = vadd.f32 %v5234_v16, %v4975_v0  ;;  %v7916_v0 = vld [vmem:[%s8568_s29 + $0xbc0] sm:$0xf]  ;;  %v7379_v16 = vor.u32 %v8352_v44, %v7376_v23 }
 0x592   : > { %v4083_v41 = vmax.f32 %v11319_v32, %v3921_v62  ;;  %v7917_v27 = vor.u32 %v8451_v29, %v7916_v0  ;;  %v7382_v62 = vld [vmem:[%s8568_s29 + $0x8c0] sm:$0xf]  ;;  %v11327_v32 = vld [vmem:[#allocation88_spill] sm:$0xff] }
 0x593   : > { %5804 = vst.msk [vmem:[%s9838_s22 + $0xdc] sm:$0xf] %vm5748_vm1, %v5703_v43  ;;  %v5400_v26 = vmax.f32 %v4081_v33, %v5235_v60  ;;  %v3663_v14 = vpop.f32.mrf.mxu1  ;;  %v11322_v33 = vmax.f32 %v11320_v4, %v11321_v25 }
 0x595   : > { %v5504_v59 = vadd.f32 %v10403_v61, %v5400_v26 }
 0x597   : > { %v5604_v21 = vmax.f32 %v5504_v59, 0.0  ;;  %v3922_v58 = vpop.f32.mrf.mxu3 }
 0x598   : > { %v5236_v22 = vpop.f32.mrf.mxu2  ;;  %v4980_v39 = vpop.f32.mrf.mxu0  ;;  %v3923_v49 = vadd.f32 %v3922_v58, %v3663_v14  ;;  %v7921_v14 = vor.u32 %v8450_v7, %v7918_v52 }
 0x599   : > { %v5704_v36 = vpack.c.bf16 %v5604_v21, %v5604_v21  ;;  %v5237_v10 = vadd.f32 %v5236_v22, %v4977_v19  ;;  %v11323_v21 = vld [vmem:[#allocation85_spill] sm:$0xff] }
 0x59a   : > { %v4084_v43 = vmax.f32 %v11322_v33, %v3923_v49  ;;  %v11325_v1 = vmax.f32 %v11323_v21, %v11324_v2  ;;  %v8356_v33 = vld [vmem:[%s8568_s29 + $0x8d4] sm:$0xf]  ;;  %v11332_v2 = vld [vmem:[#allocation91_spill] sm:$0xff] }
 0x59b   : > { %5805 = vst.msk [vmem:[%s9838_s22 + $0xe0] sm:$0xf] %vm5748_vm1, %v5704_v36  ;;  %v5401_v47 = vmax.f32 %v4082_v56, %v5237_v10  ;;  %v3666_v9 = vpop.f32.mrf.mxu1  ;;  %5019 = vmatmul.bf16.gmra.mxu0 %v7909_v20  ;;  %v7384_v10 = vld [vmem:[%s8568_s29 + $0x8c8] sm:$0xf0] }
 0x59c   : > { %7498 = vmatmul.msk.bf16.gmra.mxu3 %vm818_vm0, %v7371_v42 }
 0x59d   : > { %v5505_v24 = vadd.f32 %v10403_v61, %v5401_v47  ;;  %8047 = vmatmul.msk.bf16.gmra.mxu2 %vm818_vm0, %v7913_v46  ;;  %v8453_v46 = vld [vmem:[%s8568_s29 + $0xbd4] sm:$0xf0]  ;;  %v7926_v47 = vld [vmem:[%s8568_s29 + $0xbd8] sm:$0xf0] }
 0x59e   : > { %3705 = vmatmul.bf16.gmra.mxu1 %v7367_v30  ;;  %v8452_v30 = vld [vmem:[%s8568_s29 + $0xbd4] sm:$0xf] }
 0x59f   : > { %v5605_v51 = vmax.f32 %v5505_v24, 0.0  ;;  %v3925_v35 = vpop.f32.mrf.mxu3  ;;  %v8355_v24 = vld [vmem:[%s8568_s29 + $0x8c4] sm:$0xf0] }
 0x5a0   : > { %v5239_v34 = vpop.f32.mrf.mxu2  ;;  %v4982_v40 = vpop.f32.mrf.mxu0  ;;  %v3926_v3 = vadd.f32 %v3925_v35, %v3666_v9  ;;  %v7383_v44 = vor.u32 %v8355_v24, %v7382_v62  ;;  %v11336_v62 = vld [vmem:[#allocation94_spill] sm:$0xff] }
 0x5a1   : > { %v5705_v15 = vpack.c.bf16 %v5605_v51, %v5605_v51  ;;  %v5240_v28 = vadd.f32 %v5239_v34, %v4980_v39  ;;  %v7924_v39 = vld [vmem:[%s8568_s29 + $0xbd0] sm:$0xf]  ;;  %v7387_v34 = vor.u32 %v8354_v37, %v7384_v10 }
 0x5a2   : > { %v4085_v58 = vmax.f32 %v11325_v1, %v3926_v3  ;;  %v7925_v50 = vor.u32 %v8453_v46, %v7924_v39  ;;  %v7390_v3 = vld [vmem:[%s8568_s29 + $0x8d0] sm:$0xf] }
 0x5a3   : > { %5806 = vst.msk [vmem:[%s9838_s22 + $0xe4] sm:$0xf] %vm5748_vm1, %v5705_v15  ;;  %v5402_v18 = vmax.f32 %v4083_v41, %v5240_v28  ;;  %v3668_v6 = vpop.f32.mrf.mxu1  ;;  %v11328_v41 = vmax.f32 %v11326_v38, %v11327_v32  ;;  %v11333_v1 = vld [vmem:[#allocation92_spill] sm:$0xff] }
 0x5a5   : > { %v5506_v8 = vadd.f32 %v10403_v61, %v5402_v18 }
 0x5a7   : > { %v5606_v54 = vmax.f32 %v5506_v8, 0.0  ;;  %v3927_v11 = vpop.f32.mrf.mxu3 }
 0x5a8   : > { %v5241_v48 = vpop.f32.mrf.mxu2  ;;  %v4985_v26 = vpop.f32.mrf.mxu0  ;;  %v3928_v56 = vadd.f32 %v3927_v11, %v3668_v6  ;;  %v7929_v6 = vor.u32 %v8452_v30, %v7926_v47 }
 0x5a9   : > { %v5706_v60 = vpack.c.bf16 %v5606_v54, %v5606_v54  ;;  %v5242_v19 = vadd.f32 %v5241_v48, %v4982_v40  ;;  %v11329_v54 = vld [vmem:[#allocation89_spill] sm:$0xff] }
 0x5aa   : > { %v4086_v15 = vmax.f32 %v11328_v41, %v3928_v56  ;;  %v11331_v63 = vmax.f32 %v11329_v54, %v11330_v17  ;;  %v8358_v41 = vld [vmem:[%s8568_s29 + $0x8e4] sm:$0xf]  ;;  %v11338_v17 = vld [vmem:[#allocation95_spill] sm:$0xff] }
 0x5ab   : > { %5807 = vst.msk [vmem:[%s9838_s22 + $0xe8] sm:$0xf] %vm5748_vm1, %v5706_v60  ;;  %v5403_v53 = vmax.f32 %v4084_v43, %v5242_v19  ;;  %v3671_v59 = vpop.f32.mrf.mxu1  ;;  %5024 = vmatmul.bf16.gmra.mxu0 %v7917_v27  ;;  %v7392_v19 = vld [vmem:[%s8568_s29 + $0x8d8] sm:$0xf0] }
 0x5ac   : > { %7499 = vmatmul.msk.bf16.gmra.mxu3 %vm818_vm0, %v7379_v16 }
 0x5ad   : > { %v5507_v55 = vadd.f32 %v10403_v61, %v5403_v53  ;;  %8048 = vmatmul.msk.bf16.gmra.mxu2 %vm818_vm0, %v7921_v14  ;;  %v8455_v14 = vld [vmem:[%s8568_s29 + $0xbe4] sm:$0xf0]  ;;  %v7934_v53 = vld [vmem:[%s8568_s29 + $0xbe8] sm:$0xf0] }
 0x5ae   : > { %3710 = vmatmul.bf16.gmra.mxu1 %v7375_v57  ;;  %v8454_v57 = vld [vmem:[%s8568_s29 + $0xbe4] sm:$0xf] }
 0x5af   : > { %v5607_v12 = vmax.f32 %v5507_v55, 0.0  ;;  %v3930_v45 = vpop.f32.mrf.mxu3  ;;  %v8357_v55 = vld [vmem:[%s8568_s29 + $0x8d4] sm:$0xf0] }
 0x5b0   : > { %v5244_v31 = vpop.f32.mrf.mxu2  ;;  %v4987_v20 = vpop.f32.mrf.mxu0  ;;  %v3931_v23 = vadd.f32 %v3930_v45, %v3671_v59  ;;  %v7391_v37 = vor.u32 %v8357_v55, %v7390_v3  ;;  %v11342_v3 = vld [vmem:[#allocation98_spill] sm:$0xff] }
 0x5b1   : > { %v5707_v22 = vpack.c.bf16 %v5607_v12, %v5607_v12  ;;  %v5245_v42 = vadd.f32 %v5244_v31, %v4985_v26  ;;  %v7932_v26 = vld [vmem:[%s8568_s29 + $0xbe0] sm:$0xf]  ;;  %v7395_v31 = vor.u32 %v8356_v33, %v7392_v19 }
 0x5b2   : > { %v4087_v11 = vmax.f32 %v11331_v63, %v3931_v23  ;;  %v7933_v21 = vor.u32 %v8455_v14, %v7932_v26  ;;  %v7398_v23 = vld [vmem:[%s8568_s29 + $0x8e0] sm:$0xf]  ;;  %v11339_v63 = vld [vmem:[#allocation96_spill] sm:$0xff] }
 0x5b3   : > { %5808 = vst.msk [vmem:[%s9838_s22 + $0xec] sm:$0xf] %vm5748_vm1, %v5707_v22  ;;  %v5404_v5 = vmax.f32 %v4085_v58, %v5245_v42  ;;  %v3673_v13 = vpop.f32.mrf.mxu1  ;;  %v11334_v58 = vmax.f32 %v11332_v2, %v11333_v1 }
 0x5b5   : > { %v5508_v36 = vadd.f32 %v10403_v61, %v5404_v5 }
 0x5b7   : > { %v5608_v9 = vmax.f32 %v5508_v36, 0.0  ;;  %v3932_v51 = vpop.f32.mrf.mxu3 }
 0x5b8   : > { %v5246_v35 = vpop.f32.mrf.mxu2  ;;  %v4990_v18 = vpop.f32.mrf.mxu0  ;;  %v3933_v43 = vadd.f32 %v3932_v51, %v3673_v13  ;;  %v7937_v13 = vor.u32 %v8454_v57, %v7934_v53 }
 0x5b9   : > { %v5708_v28 = vpack.c.bf16 %v5608_v9, %v5608_v9  ;;  %v5247_v40 = vadd.f32 %v5246_v35, %v4987_v20  ;;  %v11335_v9 = vld [vmem:[#allocation93_spill] sm:$0xff] }
 0x5ba   : > { %v4088_v22 = vmax.f32 %v11334_v58, %v3933_v43  ;;  %v11337_v24 = vmax.f32 %v11335_v9, %v11336_v62  ;;  %v8360_v58 = vld [vmem:[%s8568_s29 + $0x8f4] sm:$0xf]  ;;  %v11344_v62 = vld [vmem:[#allocation99_spill] sm:$0xff] }
 0x5bb   : > { %5809 = vst.msk [vmem:[%s9838_s22 + $0xf0] sm:$0xf] %vm5748_vm1, %v5708_v28  ;;  %v5405_v49 = vmax.f32 %v4086_v15, %v5247_v40  ;;  %v3676_v8 = vpop.f32.mrf.mxu1  ;;  %5029 = vmatmul.bf16.gmra.mxu0 %v7925_v50  ;;  %v7400_v40 = vld [vmem:[%s8568_s29 + $0x8e8] sm:$0xf0] }
 0x5bc   : > { %7500 = vmatmul.msk.bf16.gmra.mxu3 %vm818_vm0, %v7387_v34 }
 0x5bd   : > { %v5509_v0 = vadd.f32 %v10403_v61, %v5405_v49  ;;  %8049 = vmatmul.msk.bf16.gmra.mxu2 %vm818_vm0, %v7929_v6  ;;  %v8457_v6 = vld [vmem:[%s8568_s29 + $0xbf4] sm:$0xf0]  ;;  %v7942_v49 = vld [vmem:[%s8568_s29 + $0xbf8] sm:$0xf0] }
 0x5be   : > { %3715 = vmatmul.bf16.gmra.mxu1 %v7383_v44  ;;  %v8456_v44 = vld [vmem:[%s8568_s29 + $0xbf4] sm:$0xf] }
 0x5bf   : > { %v5609_v29 = vmax.f32 %v5509_v0, 0.0  ;;  %v3935_v7 = vpop.f32.mrf.mxu3  ;;  %v8359_v0 = vld [vmem:[%s8568_s29 + $0x8e4] sm:$0xf0] }
 0x5c0   : > { %v5249_v52 = vpop.f32.mrf.mxu2  ;;  %v4992_v27 = vpop.f32.mrf.mxu0  ;;  %v3936_v10 = vadd.f32 %v3935_v7, %v3676_v8  ;;  %v7399_v33 = vor.u32 %v8359_v0, %v7398_v23  ;;  %v11348_v23 = vld [vmem:[#allocation102_spill] sm:$0xff] }
 0x5c1   : > { %v5709_v48 = vpack.c.bf16 %v5609_v29, %v5609_v29  ;;  %v5250_v16 = vadd.f32 %v5249_v52, %v4990_v18  ;;  %v7940_v18 = vld [vmem:[%s8568_s29 + $0xbf0] sm:$0xf]  ;;  %v7403_v52 = vor.u32 %v8358_v41, %v7400_v40 }
 0x5c2   : > { %v4089_v51 = vmax.f32 %v11337_v24, %v3936_v10  ;;  %v7941_v54 = vor.u32 %v8457_v6, %v7940_v18  ;;  %v7406_v10 = vld [vmem:[%s8568_s29 + $0x8f0] sm:$0xf] }
 0x5c3   : > { %5810 = vst.msk [vmem:[%s9838_s22 + $0xf4] sm:$0xf] %vm5748_vm1, %v5709_v48  ;;  %v5406_v4 = vmax.f32 %v4087_v11, %v5250_v16  ;;  %v3678_v25 = vpop.f32.mrf.mxu1  ;;  %v11340_v11 = vmax.f32 %v11338_v17, %v11339_v63  ;;  %v11345_v24 = vld [vmem:[#allocation100_spill] sm:$0xff] }
 0x5c5   : > { %v5510_v60 = vadd.f32 %v10403_v61, %v5406_v4 }
 0x5c7   : > { %v5610_v59 = vmax.f32 %v5510_v60, 0.0  ;;  %v3937_v12 = vpop.f32.mrf.mxu3 }
 0x5c8   : > { %v5251_v45 = vpop.f32.mrf.mxu2  ;;  %v4995_v5 = vpop.f32.mrf.mxu0  ;;  %v3938_v15 = vadd.f32 %v3937_v12, %v3678_v25  ;;  %v7945_v25 = vor.u32 %v8456_v44, %v7942_v49 }
 0x5c9   : > { %v5710_v42 = vpack.c.bf16 %v5610_v59, %v5610_v59  ;;  %v5252_v20 = vadd.f32 %v5251_v45, %v4992_v27  ;;  %v11341_v59 = vld [vmem:[#allocation97_spill] sm:$0xff] }
 0x5ca   : > { %v4090_v48 = vmax.f32 %v11340_v11, %v3938_v15  ;;  %v11343_v55 = vmax.f32 %v11341_v59, %v11342_v3  ;;  %v8362_v11 = vld [vmem:[%s8568_s29 + $0x904] sm:$0xf]  ;;  %v11350_v3 = vld [vmem:[#allocation103_spill] sm:$0xff] }
 0x5cb   : > { %5811 = vst.msk [vmem:[%s9838_s22 + $0xf8] sm:$0xf] %vm5748_vm1, %v5710_v42  ;;  %v5407_v56 = vmax.f32 %v4088_v22, %v5252_v20  ;;  %v3681_v36 = vpop.f32.mrf.mxu1  ;;  %5034 = vmatmul.bf16.gmra.mxu0 %v7933_v21  ;;  %v7408_v20 = vld [vmem:[%s8568_s29 + $0x8f8] sm:$0xf0] }
 0x5cc   : > { %7501 = vmatmul.msk.bf16.gmra.mxu3 %vm818_vm0, %v7395_v31 }
 0x5cd   : > { %v5511_v39 = vadd.f32 %v10403_v61, %v5407_v56  ;;  %8050 = vmatmul.msk.bf16.gmra.mxu2 %vm818_vm0, %v7937_v13  ;;  %v8459_v13 = vld [vmem:[%s8568_s29 + $0xc04] sm:$0xf0]  ;;  %v7950_v56 = vld [vmem:[%s8568_s29 + $0xc08] sm:$0xf0] }
 0x5ce   : > { %3720 = vmatmul.bf16.gmra.mxu1 %v7391_v37  ;;  %v8458_v37 = vld [vmem:[%s8568_s29 + $0xc04] sm:$0xf] }
 0x5cf   : > { %v5611_v46 = vmax.f32 %v5511_v39, 0.0  ;;  %v3940_v30 = vpop.f32.mrf.mxu3  ;;  %v8361_v39 = vld [vmem:[%s8568_s29 + $0x8f4] sm:$0xf0] }
 0x5d0   : > { %v5254_v47 = vpop.f32.mrf.mxu2  ;;  %v4997_v50 = vpop.f32.mrf.mxu0  ;;  %v3941_v19 = vadd.f32 %v3940_v30, %v3681_v36  ;;  %v7407_v41 = vor.u32 %v8361_v39, %v7406_v10  ;;  %v11354_v10 = vld [vmem:[#allocation106_spill] sm:$0xff] }
 0x5d1   : > { %v5711_v35 = vpack.c.bf16 %v5611_v46, %v5611_v46  ;;  %v5255_v34 = vadd.f32 %v5254_v47, %v4995_v5  ;;  %v7948_v5 = vld [vmem:[%s8568_s29 + $0xc00] sm:$0xf]  ;;  %v7411_v47 = vor.u32 %v8360_v58, %v7408_v20 }
 0x5d2   : > { %v4091_v12 = vmax.f32 %v11343_v55, %v3941_v19  ;;  %v7949_v9 = vor.u32 %v8459_v13, %v7948_v5  ;;  %v7414_v19 = vld [vmem:[%s8568_s29 + $0x900] sm:$0xf]  ;;  %v11351_v55 = vld [vmem:[#allocation104_spill] sm:$0xff] }
 0x5d3   : > { %5812 = vst.msk [vmem:[%s9838_s22 + $0xfc] sm:$0xf] %vm5748_vm1, %v5711_v35  ;;  %v5408_v38 = vmax.f32 %v4089_v51, %v5255_v34  ;;  %v3683_v32 = vpop.f32.mrf.mxu1  ;;  %v11346_v51 = vmax.f32 %v11344_v62, %v11345_v24 }
 0x5d5   : > { %v5512_v28 = vadd.f32 %v10403_v61, %v5408_v38 }
 0x5d7   : > { %v5612_v8 = vmax.f32 %v5512_v28, 0.0  ;;  %v3942_v29 = vpop.f32.mrf.mxu3 }
 0x5d8   : > { %v5256_v7 = vpop.f32.mrf.mxu2  ;;  %v5000_v4 = vpop.f32.mrf.mxu0  ;;  %v3943_v22 = vadd.f32 %v3942_v29, %v3683_v32  ;;  %v7953_v32 = vor.u32 %v8458_v37, %v7950_v56 }
 0x5d9   : > { %v5712_v16 = vpack.c.bf16 %v5612_v8, %v5612_v8  ;;  %v5257_v27 = vadd.f32 %v5256_v7, %v4997_v50  ;;  %v11347_v8 = vld [vmem:[#allocation101_spill] sm:$0xff] }
 0x5da   : > { %v4092_v35 = vmax.f32 %v11346_v51, %v3943_v22  ;;  %v11349_v0 = vmax.f32 %v11347_v8, %v11348_v23  ;;  %v8364_v51 = vld [vmem:[%s8568_s29 + $0x914] sm:$0xf]  ;;  %v11356_v23 = vld [vmem:[#allocation107_spill] sm:$0xff] }
 0x5db   : > { %5813 = vst.msk [vmem:[%s9838_s22 + $0x100] sm:$0xf] %vm5748_vm1, %v5712_v16  ;;  %v5409_v43 = vmax.f32 %v4090_v48, %v5257_v27  ;;  %v3686_v60 = vpop.f32.mrf.mxu1  ;;  %5039 = vmatmul.bf16.gmra.mxu0 %v7941_v54  ;;  %v7416_v27 = vld [vmem:[%s8568_s29 + $0x908] sm:$0xf0] }
 0x5dc   : > { %7502 = vmatmul.msk.bf16.gmra.mxu3 %vm818_vm0, %v7403_v52 }
 0x5dd   : > { %v5513_v26 = vadd.f32 %v10403_v61, %v5409_v43  ;;  %8051 = vmatmul.msk.bf16.gmra.mxu2 %vm818_vm0, %v7945_v25  ;;  %v8461_v25 = vld [vmem:[%s8568_s29 + $0xc14] sm:$0xf0]  ;;  %v7958_v43 = vld [vmem:[%s8568_s29 + $0xc18] sm:$0xf0] }
 0x5de   : > { %3725 = vmatmul.bf16.gmra.mxu1 %v7399_v33  ;;  %v8460_v33 = vld [vmem:[%s8568_s29 + $0xc14] sm:$0xf] }
 0x5df   : > { %v5613_v14 = vmax.f32 %v5513_v26, 0.0  ;;  %v3945_v57 = vpop.f32.mrf.mxu3  ;;  %v8363_v26 = vld [vmem:[%s8568_s29 + $0x904] sm:$0xf0] }
 0x5e0   : > { %v5259_v53 = vpop.f32.mrf.mxu2  ;;  %v5002_v21 = vpop.f32.mrf.mxu0  ;;  %v3946_v40 = vadd.f32 %v3945_v57, %v3686_v60  ;;  %v7415_v58 = vor.u32 %v8363_v26, %v7414_v19  ;;  %v11360_v19 = vld [vmem:[#allocation110_spill] sm:$0xff] }
 0x5e1   : > { %v5713_v45 = vpack.c.bf16 %v5613_v14, %v5613_v14  ;;  %v5260_v31 = vadd.f32 %v5259_v53, %v5000_v4  ;;  %v7956_v4 = vld [vmem:[%s8568_s29 + $0xc10] sm:$0xf]  ;;  %v7419_v53 = vor.u32 %v8362_v11, %v7416_v27 }
 0x5e2   : > { %v4093_v29 = vmax.f32 %v11349_v0, %v3946_v40  ;;  %v7957_v59 = vor.u32 %v8461_v25, %v7956_v4  ;;  %v7422_v40 = vld [vmem:[%s8568_s29 + $0x910] sm:$0xf] }
 0x5e3   : > { %5814 = vst.msk [vmem:[%s9838_s22 + $0x104] sm:$0xf] %vm5748_vm1, %v5713_v45  ;;  %v5410_v2 = vmax.f32 %v4091_v12, %v5260_v31  ;;  %v3688_v1 = vpop.f32.mrf.mxu1  ;;  %v11352_v12 = vmax.f32 %v11350_v3, %v11351_v55  ;;  %v11357_v0 = vld [vmem:[#allocation108_spill] sm:$0xff] }
 0x5e5   : > { %v5514_v42 = vadd.f32 %v10403_v61, %v5410_v2 }
 0x5e7   : > { %v5614_v36 = vmax.f32 %v5514_v42, 0.0  ;;  %v3947_v46 = vpop.f32.mrf.mxu3 }
 0x5e8   : > { %v5261_v30 = vpop.f32.mrf.mxu2  ;;  %v5005_v38 = vpop.f32.mrf.mxu0  ;;  %v3948_v48 = vadd.f32 %v3947_v46, %v3688_v1  ;;  %v7961_v1 = vor.u32 %v8460_v33, %v7958_v43 }
 0x5e9   : > { %v5714_v34 = vpack.c.bf16 %v5614_v36, %v5614_v36  ;;  %v5262_v50 = vadd.f32 %v5261_v30, %v5002_v21  ;;  %v11353_v36 = vld [vmem:[#allocation105_spill] sm:$0xff] }
 0x5ea   : > { %v4094_v45 = vmax.f32 %v11352_v12, %v3948_v48  ;;  %v11355_v39 = vmax.f32 %v11353_v36, %v11354_v10  ;;  %v8366_v12 = vld [vmem:[%s8568_s29 + $0x924] sm:$0xf]  ;;  %v11362_v10 = vld [vmem:[#allocation111_spill] sm:$0xff] }
 0x5eb   : > { %5815 = vst.msk [vmem:[%s9838_s22 + $0x108] sm:$0xf] %vm5748_vm1, %v5714_v34  ;;  %v5411_v15 = vmax.f32 %v4092_v35, %v5262_v50  ;;  %v3691_v28 = vpop.f32.mrf.mxu1  ;;  %5044 = vmatmul.bf16.gmra.mxu0 %v7949_v9  ;;  %v7424_v50 = vld [vmem:[%s8568_s29 + $0x918] sm:$0xf0] }
 0x5ec   : > { %7503 = vmatmul.msk.bf16.gmra.mxu3 %vm818_vm0, %v7411_v47 }
 0x5ed   : > { %v5515_v18 = vadd.f32 %v10403_v61, %v5411_v15  ;;  %8052 = vmatmul.msk.bf16.gmra.mxu2 %vm818_vm0, %v7953_v32  ;;  %v8463_v32 = vld [vmem:[%s8568_s29 + $0xc24] sm:$0xf0]  ;;  %v7966_v15 = vld [vmem:[%s8568_s29 + $0xc28] sm:$0xf0] }
 0x5ee   : > { %3730 = vmatmul.bf16.gmra.mxu1 %v7407_v41  ;;  %v8462_v41 = vld [vmem:[%s8568_s29 + $0xc24] sm:$0xf] }
 0x5ef   : > { %v5615_v6 = vmax.f32 %v5515_v18, 0.0  ;;  %v3950_v44 = vpop.f32.mrf.mxu3  ;;  %v8365_v18 = vld [vmem:[%s8568_s29 + $0x914] sm:$0xf0] }
 0x5f0   : > { %v5264_v49 = vpop.f32.mrf.mxu2  ;;  %v5007_v54 = vpop.f32.mrf.mxu0  ;;  %v3951_v20 = vadd.f32 %v3950_v44, %v3691_v28  ;;  %v7423_v11 = vor.u32 %v8365_v18, %v7422_v40  ;;  %v11366_v40 = vld [vmem:[#allocation114_spill] sm:$0xff] }
 0x5f1   : > { %v5715_v7 = vpack.c.bf16 %v5615_v6, %v5615_v6  ;;  %v5265_v52 = vadd.f32 %v5264_v49, %v5005_v38  ;;  %v7964_v38 = vld [vmem:[%s8568_s29 + $0xc20] sm:$0xf]  ;;  %v7427_v49 = vor.u32 %v8364_v51, %v7424_v50 }
 0x5f2   : > { %v4095_v46 = vmax.f32 %v11355_v39, %v3951_v20  ;;  %v7965_v8 = vor.u32 %v8463_v32, %v7964_v38  ;;  %v7430_v20 = vld [vmem:[%s8568_s29 + $0x920] sm:$0xf]  ;;  %v11363_v39 = vld [vmem:[#allocation112_spill] sm:$0xff] }
 0x5f3   : > { %5816 = vst.msk [vmem:[%s9838_s22 + $0x10c] sm:$0xf] %vm5748_vm1, %v5715_v7  ;;  %v5412_v17 = vmax.f32 %v4093_v29, %v5265_v52  ;;  %v3693_v63 = vpop.f32.mrf.mxu1  ;;  %v11358_v29 = vmax.f32 %v11356_v23, %v11357_v0 }
 0x5f5   : > { %v5516_v16 = vadd.f32 %v10403_v61, %v5412_v17 }
 0x5f7   : > { %v5616_v60 = vmax.f32 %v5516_v16, 0.0  ;;  %v3952_v14 = vpop.f32.mrf.mxu3 }
 0x5f8   : > { %v5266_v57 = vpop.f32.mrf.mxu2  ;;  %v5010_v2 = vpop.f32.mrf.mxu0  ;;  %v3953_v35 = vadd.f32 %v3952_v14, %v3693_v63  ;;  %v7969_v63 = vor.u32 %v8462_v41, %v7966_v15 }
 0x5f9   : > { %v5716_v31 = vpack.c.bf16 %v5616_v60, %v5616_v60  ;;  %v5267_v21 = vadd.f32 %v5266_v57, %v5007_v54  ;;  %v11359_v60 = vld [vmem:[#allocation109_spill] sm:$0xff] }
 0x5fa   : > { %v4096_v7 = vmax.f32 %v11358_v29, %v3953_v35  ;;  %v11361_v26 = vmax.f32 %v11359_v60, %v11360_v19  ;;  %v8368_v29 = vld [vmem:[%s8568_s29 + $0x934] sm:$0xf]  ;;  %v11368_v19 = vld [vmem:[#allocation115_spill] sm:$0xff] }
 0x5fb   : > { %5817 = vst.msk [vmem:[%s9838_s22 + $0x110] sm:$0xf] %vm5748_vm1, %v5716_v31  ;;  %v5413_v22 = vmax.f32 %v4094_v45, %v5267_v21  ;;  %v3696_v42 = vpop.f32.mrf.mxu1  ;;  %5049 = vmatmul.bf16.gmra.mxu0 %v7957_v59  ;;  %v7432_v21 = vld [vmem:[%s8568_s29 + $0x928] sm:$0xf0] }
 0x5fc   : > { %7504 = vmatmul.msk.bf16.gmra.mxu3 %vm818_vm0, %v7419_v53 }
 0x5fd   : > { %v5517_v5 = vadd.f32 %v10403_v61, %v5413_v22  ;;  %8053 = vmatmul.msk.bf16.gmra.mxu2 %vm818_vm0, %v7961_v1  ;;  %v8465_v1 = vld [vmem:[%s8568_s29 + $0xc34] sm:$0xf0]  ;;  %v7974_v22 = vld [vmem:[%s8568_s29 + $0xc38] sm:$0xf0] }
 0x5fe   : > { %3735 = vmatmul.bf16.gmra.mxu1 %v7415_v58  ;;  %v8464_v58 = vld [vmem:[%s8568_s29 + $0xc34] sm:$0xf] }
 0x5ff   : > { %v5617_v13 = vmax.f32 %v5517_v5, 0.0  ;;  %v3955_v37 = vpop.f32.mrf.mxu3  ;;  %v8367_v5 = vld [vmem:[%s8568_s29 + $0x924] sm:$0xf0] }
 0x600   : > { %v5269_v56 = vpop.f32.mrf.mxu2  ;;  %v5012_v9 = vpop.f32.mrf.mxu0  ;;  %v3956_v27 = vadd.f32 %v3955_v37, %v3696_v42  ;;  %v7431_v51 = vor.u32 %v8367_v5, %v7430_v20  ;;  %v11372_v20 = vld [vmem:[#allocation118_spill] sm:$0xff] }
 0x601   : > { %v5717_v30 = vpack.c.bf16 %v5617_v13, %v5617_v13  ;;  %v5270_v47 = vadd.f32 %v5269_v56, %v5010_v2  ;;  %v7972_v2 = vld [vmem:[%s8568_s29 + $0xc30] sm:$0xf]  ;;  %v7435_v56 = vor.u32 %v8366_v12, %v7432_v21 }
 0x602   : > { %v4097_v14 = vmax.f32 %v11361_v26, %v3956_v27  ;;  %v7973_v36 = vor.u32 %v8465_v1, %v7972_v2  ;;  %v7438_v27 = vld [vmem:[%s8568_s29 + $0x930] sm:$0xf] }
 0x603   : > { %5818 = vst.msk [vmem:[%s9838_s22 + $0x114] sm:$0xf] %vm5748_vm1, %v5717_v30  ;;  %v5414_v62 = vmax.f32 %v4095_v46, %v5270_v47  ;;  %v3698_v24 = vpop.f32.mrf.mxu1  ;;  %v11364_v46 = vmax.f32 %v11362_v10, %v11363_v39  ;;  %v11369_v26 = vld [vmem:[#allocation116_spill] sm:$0xff] }
 0x605   : > { %v5518_v34 = vadd.f32 %v10403_v61, %v5414_v62 }
 0x607   : > { %v5618_v28 = vmax.f32 %v5518_v34, 0.0  ;;  %v3957_v6 = vpop.f32.mrf.mxu3 }
 0x608   : > { %v5271_v44 = vpop.f32.mrf.mxu2  ;;  %v5015_v17 = vpop.f32.mrf.mxu0  ;;  %v3958_v45 = vadd.f32 %v3957_v6, %v3698_v24  ;;  %v7977_v24 = vor.u32 %v8464_v58, %v7974_v22 }
 0x609   : > { %v5718_v52 = vpack.c.bf16 %v5618_v28, %v5618_v28  ;;  %v5272_v54 = vadd.f32 %v5271_v44, %v5012_v9  ;;  %v11365_v28 = vld [vmem:[#allocation113_spill] sm:$0xff] }
 0x60a   : > { %v4098_v30 = vmax.f32 %v11364_v46, %v3958_v45  ;;  %v11367_v18 = vmax.f32 %v11365_v28, %v11366_v40  ;;  %v8370_v46 = vld [vmem:[%s8568_s29 + $0x944] sm:$0xf]  ;;  %v11374_v40 = vld [vmem:[#allocation119_spill] sm:$0xff] }
 0x60b   : > { %5819 = vst.msk [vmem:[%s9838_s22 + $0x118] sm:$0xf] %vm5748_vm1, %v5718_v52  ;;  %v5415_v48 = vmax.f32 %v4096_v7, %v5272_v54  ;;  %v3701_v16 = vpop.f32.mrf.mxu1  ;;  %5054 = vmatmul.bf16.gmra.mxu0 %v7965_v8  ;;  %v7440_v54 = vld [vmem:[%s8568_s29 + $0x938] sm:$0xf0] }
 0x60c   : > { %7505 = vmatmul.msk.bf16.gmra.mxu3 %vm818_vm0, %v7427_v49 }
 0x60d   : > { %v5519_v4 = vadd.f32 %v10403_v61, %v5415_v48  ;;  %8054 = vmatmul.msk.bf16.gmra.mxu2 %vm818_vm0, %v7969_v63  ;;  %v8467_v63 = vld [vmem:[%s8568_s29 + $0xc44] sm:$0xf0]  ;;  %v7982_v48 = vld [vmem:[%s8568_s29 + $0xc48] sm:$0xf0] }
 0x60e   : > { %3740 = vmatmul.bf16.gmra.mxu1 %v7423_v11  ;;  %v8466_v11 = vld [vmem:[%s8568_s29 + $0xc44] sm:$0xf] }
 0x60f   : > { %v5619_v25 = vmax.f32 %v5519_v4, 0.0  ;;  %v3960_v33 = vpop.f32.mrf.mxu3  ;;  %v8369_v4 = vld [vmem:[%s8568_s29 + $0x934] sm:$0xf0] }
 0x610   : > { %v5274_v43 = vpop.f32.mrf.mxu2  ;;  %v5017_v59 = vpop.f32.mrf.mxu0  ;;  %v3961_v50 = vadd.f32 %v3960_v33, %v3701_v16  ;;  %v7439_v12 = vor.u32 %v8369_v4, %v7438_v27  ;;  %v11378_v27 = vld [vmem:[#allocation122_spill] sm:$0xff] }
 0x611   : > { %v5719_v57 = vpack.c.bf16 %v5619_v25, %v5619_v25  ;;  %v5275_v53 = vadd.f32 %v5274_v43, %v5015_v17  ;;  %v7980_v17 = vld [vmem:[%s8568_s29 + $0xc40] sm:$0xf]  ;;  %v7443_v43 = vor.u32 %v8368_v29, %v7440_v54 }
 0x612   : > { %v4099_v6 = vmax.f32 %v11367_v18, %v3961_v50  ;;  %v7981_v60 = vor.u32 %v8467_v63, %v7980_v17  ;;  %v7446_v50 = vld [vmem:[%s8568_s29 + $0x940] sm:$0xf]  ;;  %v11375_v18 = vld [vmem:[#allocation120_spill] sm:$0xff] }
 0x613   : > { %5820 = vst.msk [vmem:[%s9838_s22 + $0x11c] sm:$0xf] %vm5748_vm1, %v5719_v57  ;;  %v5416_v3 = vmax.f32 %v4097_v14, %v5275_v53  ;;  %v3703_v55 = vpop.f32.mrf.mxu1  ;;  %v11370_v14 = vmax.f32 %v11368_v19, %v11369_v26  ;;  %v10694_v54 = vld [vmem:[%s10852_s2] ss:$0 sm:$0xff] }
 0x615   : > { %v5520_v31 = vadd.f32 %v10403_v61, %v5416_v3 }
 0x617   : > { %v5620_v42 = vmax.f32 %v5520_v31, 0.0  ;;  %v3962_v13 = vpop.f32.mrf.mxu3 }
 0x618   : > { %v5276_v37 = vpop.f32.mrf.mxu2  ;;  %v5020_v62 = vpop.f32.mrf.mxu0  ;;  %v3963_v7 = vadd.f32 %v3962_v13, %v3703_v55  ;;  %v7985_v55 = vor.u32 %v8466_v11, %v7982_v48 }
 0x619   : > { %v5720_v47 = vpack.c.bf16 %v5620_v42, %v5620_v42  ;;  %v5277_v9 = vadd.f32 %v5276_v37, %v5017_v59  ;;  %v11371_v42 = vld [vmem:[#allocation117_spill] sm:$0xff] }
 0x61a   : > { %v4100_v57 = vmax.f32 %v11370_v14, %v3963_v7  ;;  %v11373_v5 = vmax.f32 %v11371_v42, %v11372_v20  ;;  %v8372_v14 = vld [vmem:[%s8568_s29 + $0x954] sm:$0xf]  ;;  %v11380_v20 = vld [vmem:[#allocation123_spill] sm:$0xff] }
 0x61b   : > { %5821 = vst.msk [vmem:[%s9838_s22 + $0x120] sm:$0xf] %vm5748_vm1, %v5720_v47  ;;  %v5417_v35 = vmax.f32 %v4098_v30, %v5277_v9  ;;  %v3706_v34 = vpop.f32.mrf.mxu1  ;;  %5059 = vmatmul.bf16.gmra.mxu0 %v7973_v36  ;;  %v7448_v9 = vld [vmem:[%s8568_s29 + $0x948] sm:$0xf0] }
 0x61c   : > { %7506 = vmatmul.msk.bf16.gmra.mxu3 %vm818_vm0, %v7435_v56 }
 0x61d   : > { %v5521_v38 = vadd.f32 %v10403_v61, %v5417_v35  ;;  %8055 = vmatmul.msk.bf16.gmra.mxu2 %vm818_vm0, %v7977_v24  ;;  %v8469_v24 = vld [vmem:[%s8568_s29 + $0xc54] sm:$0xf0]  ;;  %v7990_v35 = vld [vmem:[%s8568_s29 + $0xc58] sm:$0xf0] }
 0x61e   : > { %3745 = vmatmul.bf16.gmra.mxu1 %v7431_v51  ;;  %v8468_v51 = vld [vmem:[%s8568_s29 + $0xc54] sm:$0xf] }
 0x61f   : > { %v5621_v32 = vmax.f32 %v5521_v38, 0.0  ;;  %v3965_v41 = vpop.f32.mrf.mxu3  ;;  %v8371_v38 = vld [vmem:[%s8568_s29 + $0x944] sm:$0xf0] }
 0x620   : > { %v5279_v15 = vpop.f32.mrf.mxu2  ;;  %v5022_v8 = vpop.f32.mrf.mxu0  ;;  %v3966_v21 = vadd.f32 %v3965_v41, %v3706_v34 }
 0x621   : > { %v5721_v44 = vpack.c.bf16 %v5621_v32, %v5621_v32  ;;  %v5280_v49 = vadd.f32 %v5279_v15, %v5020_v62  ;;  %v7988_v62 = vld [vmem:[%s8568_s29 + $0xc50] sm:$0xf]  ;;  %v7451_v15 = vor.u32 %v8370_v46, %v7448_v9 }
 0x622   : > { %v4101_v13 = vmax.f32 %v11373_v5, %v3966_v21  ;;  %v7989_v28 = vor.u32 %v8469_v24, %v7988_v62  ;;  %v7454_v21 = vld [vmem:[%s8568_s29 + $0x950] sm:$0xf] }
 0x623   : > { %5822 = vst.msk [vmem:[%s9838_s22 + $0x124] sm:$0xf] %vm5748_vm1, %v5721_v44  ;;  %v5418_v23 = vmax.f32 %v4099_v6, %v5280_v49  ;;  %v3708_v0 = vpop.f32.mrf.mxu1  ;;  %v11376_v6 = vmax.f32 %v11374_v40, %v11375_v18  ;;  %v11381_v5 = vld [vmem:[#allocation124_spill] sm:$0xff] }
 0x625   : > { %v5522_v52 = vadd.f32 %v10403_v61, %v5418_v23  ;;  %v7993_v23 = vor.u32 %v8468_v51, %v7990_v35 }
 0x627   : > { %v5622_v16 = vmax.f32 %v5522_v52, 0.0  ;;  %v3967_v25 = vpop.f32.mrf.mxu3 }
 0x628   : > { %v5281_v33 = vpop.f32.mrf.mxu2  ;;  %v5025_v3 = vpop.f32.mrf.mxu0  ;;  %v3968_v30 = vadd.f32 %v3967_v25, %v3708_v0  ;;  %v7447_v0 = vor.u32 %v8371_v38, %v7446_v50  ;;  %v11384_v50 = vld [vmem:[#allocation126_spill] sm:$0xff] }
 0x629   : > { %v5722_v53 = vpack.c.bf16 %v5622_v16, %v5622_v16  ;;  %v5282_v59 = vadd.f32 %v5281_v33, %v5022_v8  ;;  %v11377_v16 = vld [vmem:[#allocation121_spill] sm:$0xff] }
 0x62a   : > { %v4102_v44 = vmax.f32 %v11376_v6, %v3968_v30  ;;  %v11379_v4 = vmax.f32 %v11377_v16, %v11378_v27 }
 0x62b   : > { %5823 = vst.msk [vmem:[%s9838_s22 + $0x128] sm:$0xf] %vm5748_vm1, %v5722_v53  ;;  %v5419_v45 = vmax.f32 %v4100_v57, %v5282_v59  ;;  %v3711_v31 = vpop.f32.mrf.mxu1  ;;  %5064 = vmatmul.bf16.gmra.mxu0 %v7981_v60  ;;  %v7456_v59 = vld [vmem:[%s8568_s29 + $0x958] sm:$0x70] }
 0x62c   : > { %7507 = vmatmul.msk.bf16.gmra.mxu3 %vm818_vm0, %v7443_v43 }
 0x62d   : > { %v5523_v2 = vadd.f32 %v10403_v61, %v5419_v45  ;;  %8056 = vmatmul.msk.bf16.gmra.mxu2 %vm818_vm0, %v7985_v55  ;;  %v8471_v55 = vld [vmem:[%s8568_s29 + $0xc64] sm:$0xf0]  ;;  %v7998_v45 = vld [vmem:[%s8568_s29 + $0xc68] sm:$0xf0] }
 0x62e   : > { %3750 = vmatmul.bf16.gmra.mxu1 %v7439_v12  ;;  %v8470_v12 = vld [vmem:[%s8568_s29 + $0xc64] sm:$0xf] }
 0x62f   : > { %v5623_v1 = vmax.f32 %v5523_v2, 0.0  ;;  %v3970_v58 = vpop.f32.mrf.mxu3  ;;  %v8373_v2 = vld [vmem:[%s8568_s29 + $0x954] sm:$0x70] }
 0x630   : > { %v5284_v22 = vpop.f32.mrf.mxu2  ;;  %v5027_v36 = vpop.f32.mrf.mxu0  ;;  %v3971_v52 = vadd.f32 %v3970_v58, %v3711_v31  ;;  %v7455_v46 = vor.u32 %v8373_v2, %v7454_v21 }
 0x631   : > { %v5723_v37 = vpack.c.bf16 %v5623_v1, %v5623_v1  ;;  %v5285_v56 = vadd.f32 %v5284_v22, %v5025_v3  ;;  %v7996_v3 = vld [vmem:[%s8568_s29 + $0xc60] sm:$0xf]  ;;  %v7459_v22 = vor.u32 %v8372_v14, %v7456_v59 }
 0x632   : > { %v4103_v25 = vmax.f32 %v11379_v4, %v3971_v52  ;;  %v7997_v42 = vor.u32 %v8471_v55, %v7996_v3  ;;  %v11390_v59 = vld [vmem:[#allocation130_spill] sm:$0xff] }
 0x633   : > { %5824 = vst.msk [vmem:[%s9838_s22 + $0x12c] sm:$0xf] %vm5748_vm1, %v5723_v37  ;;  %v5420_v10 = vmax.f32 %v4101_v13, %v5285_v56  ;;  %v3713_v39 = vpop.f32.mrf.mxu1  ;;  %v11382_v13 = vmax.f32 %v11380_v20, %v11381_v5  ;;  %v11392_v5 = vld [vmem:[#allocation131_spill] sm:$0xff] }
 0x635   : > { %v5524_v47 = vadd.f32 %v10403_v61, %v5420_v10 }
 0x637   : > { %v5624_v34 = vmax.f32 %v5524_v47, 0.0  ;;  %v3972_v32 = vpop.f32.mrf.mxu3 }
 0x638   : > { %v5286_v41 = vpop.f32.mrf.mxu2  ;;  %v5030_v61 = vpop.f32.mrf.mxu0  ;;  %v3973_v57 = vadd.f32 %v3972_v32, %v3713_v39  ;;  %v8001_v39 = vor.u32 %v8470_v12, %v7998_v45 }
 0x639   : > { %v5724_v49 = vpack.c.bf16 %v5624_v34, %v5624_v34  ;;  %v5287_v8 = vadd.f32 %v5286_v41, %v5027_v36  ;;  %v11383_v34 = vld [vmem:[#allocation125_spill] sm:$0xff] }
 0x63a   : > { %v4104_v37 = vmax.f32 %v11382_v13, %v3973_v57  ;;  %v11385_v38 = vmax.f32 %v11383_v34, %v11384_v50  ;;  %v11393_v13 = vld [vmem:[#allocation132_spill] sm:$0xff]  ;;  %v11396_v34 = vld [vmem:[#allocation134_spill] sm:$0xff] }
 0x63b   : > { %5825 = vst.msk [vmem:[%s9838_s22 + $0x130] sm:$0xf] %vm5748_vm1, %v5724_v49  ;;  %v5421_v29 = vmax.f32 %v4102_v44, %v5287_v8  ;;  %v3716_v7 = vpop.f32.mrf.mxu1  ;;  %5069 = vmatmul.bf16.gmra.mxu0 %v7989_v28  ;;  %v8004_v49 = vld [vmem:[%s8568_s29 + $0xc70] sm:$0xf]  ;;  %v8473_v8 = vld [vmem:[%s8568_s29 + $0xc74] sm:$0x70] }
 0x63c   : > { %7508 = vmatmul.msk.bf16.gmra.mxu3 %vm818_vm0, %v7451_v15  ;;  %v8005_v52 = vor.u32 %v8473_v8, %v8004_v49 }
 0x63d   : > { %v5525_v17 = vadd.f32 %v10694_v54, %v5421_v29  ;;  %8057 = vmatmul.msk.bf16.gmra.mxu2 %vm818_vm0, %v7993_v23  ;;  %v8006_v23 = vld [vmem:[%s8568_s29 + $0xc78] sm:$0x70] }
 0x63e   : > { %3755 = vmatmul.bf16.gmra.mxu1 %v7447_v0 }
 0x63f   : > { %v5625_v63 = vmax.f32 %v5525_v17, 0.0  ;;  %v3975_v11 = vpop.f32.mrf.mxu3  ;;  %v11386_v17 = vld [vmem:[#allocation127_spill] sm:$0xff] }
 0x640   : > { %v5289_v48 = vpop.f32.mrf.mxu2  ;;  %v5032_v60 = vpop.f32.mrf.mxu0  ;;  %v3976_v9 = vadd.f32 %v3975_v11, %v3716_v7 }
 0x641   : > { %v5725_v33 = vpack.c.bf16 %v5625_v63, %v5625_v63  ;;  %v5290_v43 = vadd.f32 %v5289_v48, %v5030_v61  ;;  %v8472_v61 = vld [vmem:[%s8568_s29 + $0xc74] sm:$0xf] }
 0x642   : > { %v4105_v32 = vmax.f32 %v11385_v38, %v3976_v9  ;;  %v11387_v63 = vld [vmem:[#allocation128_spill] sm:$0xff] }
 0x643   : > { %5826 = vst.msk [vmem:[%s9838_s22 + $0x134] sm:$0xf] %vm5748_vm1, %v5725_v33  ;;  %v5422_v19 = vmax.f32 %v4103_v25, %v5290_v43  ;;  %v3718_v26 = vpop.f32.mrf.mxu1  ;;  %v11388_v11 = vmax.f32 %v11386_v17, %v11387_v63  ;;  %v8009_v25 = vor.u32 %v8472_v61, %v8006_v23  ;;  %v11398_v61 = vld [vmem:[#allocation135_spill] sm:$0xff]  ;;  %v11399_v23 = vld [vmem:[#allocation136_spill] sm:$0xff] }
 0x645   : > { %v5526_v53 = vadd.f32 %v10694_v54, %v5422_v19 }
 0x647   : > { %v5626_v31 = vmax.f32 %v5526_v53, 0.0  ;;  %v3977_v1 = vpop.f32.mrf.mxu3  ;;  %v11389_v53 = vld [vmem:[#allocation129_spill] sm:$0xff] }
 0x648   : > { %v5291_v58 = vpop.f32.mrf.mxu2  ;;  %v5035_v10 = vpop.f32.mrf.mxu0  ;;  %v3978_v6 = vadd.f32 %v3977_v1, %v3718_v26  ;;  %v11391_v3 = vmax.f32 %v11389_v53, %v11390_v59 }
 0x649   : > { %v5726_v56 = vpack.c.bf16 %v5626_v31, %v5626_v31  ;;  %v5292_v36 = vadd.f32 %v5291_v58, %v5032_v60 }
 0x64a   : > { %v4106_v48 = vmax.f32 %v11388_v11, %v3978_v6 }
 0x64b   : > { %5827 = vst.msk [vmem:[%s9838_s22 + $0x138] sm:$0xf] %vm5748_vm1, %v5726_v56  ;;  %v5423_v30 = vmax.f32 %v4104_v37, %v5292_v36  ;;  %v3721_v47 = vpop.f32.mrf.mxu1  ;;  %5074 = vmatmul.bf16.gmra.mxu0 %v7997_v42  ;;  %v11394_v37 = vmax.f32 %v11392_v5, %v11393_v13 }
 0x64c   : > { %7509 = vmatmul.msk.bf16.gmra.mxu3 %vm818_vm0, %v7459_v22 }
 0x64d   : > { %v5527_v62 = vadd.f32 %v10694_v54, %v5423_v30  ;;  %8058 = vmatmul.msk.bf16.gmra.mxu2 %vm818_vm0, %v8001_v39 }
 0x64e   : > { %3760 = vmatmul.bf16.gmra.mxu1 %v7455_v46 }
 0x64f   : > { %v5627_v24 = vmax.f32 %v5527_v62, 0.0  ;;  %v3980_v51 = vpop.f32.mrf.mxu3 }
 0x650   : > { %v5294_v35 = vpop.f32.mrf.mxu2  ;;  %v5037_v28 = vpop.f32.mrf.mxu0  ;;  %v3981_v60 = vadd.f32 %v3980_v51, %v3721_v47 }
 0x651   : > { %v5727_v41 = vpack.c.bf16 %v5627_v24, %v5627_v24  ;;  %v5295_v15 = vadd.f32 %v5294_v35, %v5035_v10  ;;  %v11395_v35 = vld [vmem:[#allocation133_spill] sm:$0xff] }
 0x652   : > { %v4107_v55 = vmax.f32 %v11391_v3, %v3981_v60  ;;  %v11397_v50 = vmax.f32 %v11395_v35, %v11396_v34 }
 0x653   : > { %5828 = vst.msk [vmem:[%s9838_s22 + $0x13c] sm:$0xf] %vm5748_vm1, %v5727_v41  ;;  %v5424_v40 = vmax.f32 %v4105_v32, %v5295_v15  ;;  %v3723_v18 = vpop.f32.mrf.mxu1 }
 0x655   : > { %v5528_v44 = vadd.f32 %v10694_v54, %v5424_v40 }
 0x657   : > { %v5628_v0 = vmax.f32 %v5528_v44, 0.0  ;;  %v3982_v29 = vpop.f32.mrf.mxu3 }
 0x658   : > { %v5296_v7 = vpop.f32.mrf.mxu2  ;;  %v5040_v4 = vpop.f32.mrf.mxu0  ;;  %v3983_v1 = vadd.f32 %v3982_v29, %v3723_v18 }
 0x659   : > { %v5728_v16 = vpack.c.bf16 %v5628_v0, %v5628_v0  ;;  %v5297_v27 = vadd.f32 %v5296_v7, %v5037_v28  ;;  %v11400_v0 = vmax.f32 %v11398_v61, %v11399_v23 }
 0x65a   : > { %v4108_v56 = vmax.f32 %v11394_v37, %v3983_v1 }
 0x65b   : > { %5829 = vst.msk [vmem:[%s9838_s22 + $0x140] sm:$0xf] %vm5748_vm1, %v5728_v16  ;;  %v5425_v33 = vmax.f32 %v4106_v48, %v5297_v27  ;;  %v3726_v43 = vpop.f32.mrf.mxu1  ;;  %5079 = vmatmul.bf16.gmra.mxu0 %v8005_v52 }
 0x65d   : > { %v5529_v19 = vadd.f32 %v10694_v54, %v5425_v33  ;;  %8059 = vmatmul.msk.bf16.gmra.mxu2 %vm818_vm0, %v8009_v25  ;;  %v11401_v33 = vld [vmem:[#allocation137_spill] sm:$0xff] }
 0x65f   : > { %v5629_v26 = vmax.f32 %v5529_v19, 0.0  ;;  %v3985_v14 = vpop.f32.mrf.mxu3 }
 0x660   : > { %v5299_v57 = vpop.f32.mrf.mxu2  ;;  %v5042_v31 = vpop.f32.mrf.mxu0  ;;  %v3986_v47 = vadd.f32 %v3985_v14, %v3726_v43  ;;  %v11402_v43 = vld [vmem:[#allocation138_spill] sm:$0xff] }
 0x661   : > { %v5729_v12 = vpack.c.bf16 %v5629_v26, %v5629_v26  ;;  %v5300_v45 = vadd.f32 %v5299_v57, %v5040_v4  ;;  %v11403_v60 = vmax.f32 %v11401_v33, %v11402_v43 }
 0x662   : > { %v4109_v38 = vmax.f32 %v11397_v50, %v3986_v47 }
 0x663   : > { %5830 = vst.msk [vmem:[%s9838_s22 + $0x144] sm:$0xf] %vm5748_vm1, %v5729_v12  ;;  %v5426_v21 = vmax.f32 %v4107_v55, %v5300_v45  ;;  %v3728_v2 = vpop.f32.mrf.mxu1 }
 0x665   : > { %v5530_v58 = vadd.f32 %v10694_v54, %v5426_v21  ;;  %v11404_v21 = vld [vmem:[#allocation139_spill] sm:$0xff] }
 0x667   : > { %v5630_v22 = vmax.f32 %v5530_v58, 0.0  ;;  %v3987_v42 = vpop.f32.mrf.mxu3 }
 0x668   : > { %v5301_v20 = vpop.f32.mrf.mxu2  ;;  %v5045_v39 = vpop.f32.mrf.mxu0  ;;  %v3988_v18 = vadd.f32 %v3987_v42, %v3728_v2  ;;  %v11405_v2 = vld [vmem:[#allocation140_spill] sm:$0xff] }
 0x669   : > { %v5730_v36 = vpack.c.bf16 %v5630_v22, %v5630_v22  ;;  %v5302_v10 = vadd.f32 %v5301_v20, %v5042_v31  ;;  %v11406_v1 = vmax.f32 %v11404_v21, %v11405_v2 }
 0x66a   : > { %v4110_v29 = vmax.f32 %v11400_v0, %v3988_v18 }
 0x66b   : > { %5831 = vst.msk [vmem:[%s9838_s22 + $0x148] sm:$0xf] %vm5748_vm1, %v5730_v36  ;;  %v5427_v46 = vmax.f32 %v4108_v56, %v5302_v10  ;;  %v3731_v30 = vpop.f32.mrf.mxu1 }
 0x66d   : > { %v5531_v9 = vadd.f32 %v10694_v54, %v5427_v46  ;;  %v11407_v46 = vld [vmem:[#allocation141_spill] sm:$0xff] }
 0x66f   : > { %v5631_v62 = vmax.f32 %v5531_v9, 0.0  ;;  %v3990_v24 = vpop.f32.mrf.mxu3 }
 0x670   : > { %v5304_v51 = vpop.f32.mrf.mxu2  ;;  %v5047_v15 = vpop.f32.mrf.mxu0  ;;  %v3991_v48 = vadd.f32 %v3990_v24, %v3731_v30  ;;  %v11408_v30 = vld [vmem:[#allocation142_spill] sm:$0xff] }
 0x671   : > { %v5731_v32 = vpack.c.bf16 %v5631_v62, %v5631_v62  ;;  %v5305_v41 = vadd.f32 %v5304_v51, %v5045_v39  ;;  %v11409_v47 = vmax.f32 %v11407_v46, %v11408_v30 }
 0x672   : > { %v4111_v19 = vmax.f32 %v11403_v60, %v3991_v48 }
 0x673   : > { %5832 = vst.msk [vmem:[%s9838_s22 + $0x14c] sm:$0xf] %vm5748_vm1, %v5731_v32  ;;  %v5428_v28 = vmax.f32 %v4109_v38, %v5305_v41  ;;  %v3733_v40 = vpop.f32.mrf.mxu1 }
 0x675   : > { %v5532_v6 = vadd.f32 %v10694_v54, %v5428_v28  ;;  %v11410_v28 = vld [vmem:[#allocation143_spill] sm:$0xff] }
 0x677   : > { %v5632_v44 = vmax.f32 %v5532_v6, 0.0  ;;  %v3992_v49 = vpop.f32.mrf.mxu3 }
 0x678   : > { %v5306_v8 = vpop.f32.mrf.mxu2  ;;  %v5050_v17 = vpop.f32.mrf.mxu0  ;;  %v3993_v3 = vadd.f32 %v3992_v49, %v3733_v40  ;;  %v11411_v40 = vld [vmem:[#allocation144_spill] sm:$0xff] }
 0x679   : > { %v5732_v7 = vpack.c.bf16 %v5632_v44, %v5632_v44  ;;  %v5307_v52 = vadd.f32 %v5306_v8, %v5047_v15  ;;  %v11412_v18 = vmax.f32 %v11410_v28, %v11411_v40 }
 0x67a   : > { %v4112_v58 = vmax.f32 %v11406_v1, %v3993_v3 }
 0x67b   : > { %5833 = vst.msk [vmem:[%s9838_s22 + $0x150] sm:$0xf] %vm5748_vm1, %v5732_v7  ;;  %v5429_v63 = vmax.f32 %v4110_v29, %v5307_v52  ;;  %v3736_v11 = vpop.f32.mrf.mxu1 }
 0x67d   : > { %v5533_v16 = vadd.f32 %v10694_v54, %v5429_v63  ;;  %v11413_v63 = vld [vmem:[#allocation145_spill] sm:$0xff] }
 0x67f   : > { %v5633_v27 = vmax.f32 %v5533_v16, 0.0  ;;  %v3995_v4 = vpop.f32.mrf.mxu3 }
 0x680   : > { %v5309_v25 = vpop.f32.mrf.mxu2  ;;  %v5052_v57 = vpop.f32.mrf.mxu0  ;;  %v3996_v37 = vadd.f32 %v3995_v4, %v3736_v11  ;;  %v11414_v11 = vld [vmem:[#allocation146_spill] sm:$0xff] }
 0x681   : > { %v5733_v26 = vpack.c.bf16 %v5633_v27, %v5633_v27  ;;  %v5310_v14 = vadd.f32 %v5309_v25, %v5050_v17  ;;  %v11415_v48 = vmax.f32 %v11413_v63, %v11414_v11 }
 0x682   : > { %v4113_v9 = vmax.f32 %v11409_v47, %v3996_v37 }
 0x683   : > { %5834 = vst.msk [vmem:[%s9838_s22 + $0x154] sm:$0xf] %vm5748_vm1, %v5733_v26  ;;  %v5430_v53 = vmax.f32 %v4111_v19, %v5310_v14  ;;  %v3738_v59 = vpop.f32.mrf.mxu1 }
 0x685   : > { %v5534_v55 = vadd.f32 %v10694_v54, %v5430_v53  ;;  %v11416_v53 = vld [vmem:[#allocation147_spill] sm:$0xff] }
 0x687   : > { %v5634_v12 = vmax.f32 %v5534_v55, 0.0  ;;  %v3997_v45 = vpop.f32.mrf.mxu3 }
 0x688   : > { %v5311_v31 = vpop.f32.mrf.mxu2  ;;  %v5055_v20 = vpop.f32.mrf.mxu0  ;;  %v3998_v50 = vadd.f32 %v3997_v45, %v3738_v59  ;;  %v11417_v59 = vld [vmem:[#allocation148_spill] sm:$0xff] }
 0x689   : > { %v5734_v22 = vpack.c.bf16 %v5634_v12, %v5634_v12  ;;  %v5312_v42 = vadd.f32 %v5311_v31, %v5052_v57  ;;  %v11418_v3 = vmax.f32 %v11416_v53, %v11417_v59 }
 0x68a   : > { %v4114_v6 = vmax.f32 %v11412_v18, %v3998_v50 }
 0x68b   : > { %5835 = vst.msk [vmem:[%s9838_s22 + $0x158] sm:$0xf] %vm5748_vm1, %v5734_v22  ;;  %v5431_v5 = vmax.f32 %v4112_v58, %v5312_v42  ;;  %v3741_v13 = vpop.f32.mrf.mxu1 }
 0x68d   : > { %v5535_v56 = vadd.f32 %v10694_v54, %v5431_v5  ;;  %v11419_v5 = vld [vmem:[#allocation149_spill] sm:$0xff] }
 0x68f   : > { %v5635_v36 = vmax.f32 %v5535_v56, 0.0  ;;  %v4000_v10 = vpop.f32.mrf.mxu3 }
 0x690   : > { %v5314_v39 = vpop.f32.mrf.mxu2  ;;  %v5057_v51 = vpop.f32.mrf.mxu0  ;;  %v4001_v0 = vadd.f32 %v4000_v10, %v3741_v13  ;;  %v11420_v13 = vld [vmem:[#allocation150_spill] sm:$0xff] }
 0x691   : > { %v5735_v62 = vpack.c.bf16 %v5635_v36, %v5635_v36  ;;  %v5315_v24 = vadd.f32 %v5314_v39, %v5055_v20  ;;  %v11421_v37 = vmax.f32 %v11419_v5, %v11420_v13 }
 0x692   : > { %v4115_v16 = vmax.f32 %v11415_v48, %v4001_v0 }
 0x693   : > { %5836 = vst.msk [vmem:[%s9838_s22 + $0x15c] sm:$0xf] %vm5748_vm1, %v5735_v62  ;;  %v5432_v35 = vmax.f32 %v4113_v9, %v5315_v24  ;;  %v3743_v34 = vpop.f32.mrf.mxu1  ;;  %v11422_v24 = vld [vmem:[#allocation151_spill] sm:$0xff] }
 0x695   : > { %v5536_v38 = vadd.f32 %v10694_v54, %v5432_v35 }
 0x697   : > { %v5636_v32 = vmax.f32 %v5536_v38, 0.0  ;;  %v4002_v41 = vpop.f32.mrf.mxu3 }
 0x698   : > { %v5316_v15 = vpop.f32.mrf.mxu2  ;;  %v5060_v8 = vpop.f32.mrf.mxu0  ;;  %v4003_v43 = vadd.f32 %v4002_v41, %v3743_v34 }
 0x699   : > { %v5736_v44 = vpack.c.bf16 %v5636_v32, %v5636_v32  ;;  %v5317_v49 = vadd.f32 %v5316_v15, %v5057_v51  ;;  %v11423_v51 = vld [vmem:[#allocation152_spill] sm:$0xff] }
 0x69a   : > { %v4116_v55 = vmax.f32 %v11418_v3, %v4003_v43  ;;  %v11424_v35 = vmax.f32 %v11422_v24, %v11423_v51 }
 0x69b   : > { %5837 = vst.msk [vmem:[%s9838_s22 + $0x160] sm:$0xf] %vm5748_vm1, %v5736_v44  ;;  %v5433_v61 = vmax.f32 %v4114_v6, %v5317_v49  ;;  %v3746_v23 = vpop.f32.mrf.mxu1  ;;  %v11425_v49 = vld [vmem:[#allocation153_spill] sm:$0xff] }
 0x69d   : > { %v5537_v29 = vadd.f32 %v10694_v54, %v5433_v61 }
 0x69f   : > { %v5637_v7 = vmax.f32 %v5537_v29, 0.0  ;;  %v4005_v52 = vpop.f32.mrf.mxu3 }
 0x6a0   : > { %v5319_v17 = vpop.f32.mrf.mxu2  ;;  %v5062_v25 = vpop.f32.mrf.mxu0  ;;  %v4006_v2 = vadd.f32 %v4005_v52, %v3746_v23 }
 0x6a1   : > { %v5737_v27 = vpack.c.bf16 %v5637_v7, %v5637_v7  ;;  %v5320_v4 = vadd.f32 %v5319_v17, %v5060_v8  ;;  %v11426_v8 = vld [vmem:[#allocation154_spill] sm:$0xff] }
 0x6a2   : > { %v4117_v56 = vmax.f32 %v11421_v37, %v4006_v2  ;;  %v11427_v61 = vmax.f32 %v11425_v49, %v11426_v8 }
 0x6a3   : > { %5838 = vst.msk [vmem:[%s9838_s22 + $0x164] sm:$0xf] %vm5748_vm1, %v5737_v27  ;;  %v5434_v33 = vmax.f32 %v4115_v16, %v5320_v4  ;;  %v3748_v19 = vpop.f32.mrf.mxu1  ;;  %v11428_v4 = vld [vmem:[#allocation155_spill] sm:$0xff] }
 0x6a5   : > { %v5538_v60 = vadd.f32 %v10694_v54, %v5434_v33 }
 0x6a7   : > { %v5638_v26 = vmax.f32 %v5538_v60, 0.0  ;;  %v4007_v14 = vpop.f32.mrf.mxu3 }
 0x6a8   : > { %v5321_v57 = vpop.f32.mrf.mxu2  ;;  %v5065_v31 = vpop.f32.mrf.mxu0  ;;  %v4008_v30 = vadd.f32 %v4007_v14, %v3748_v19 }
 0x6a9   : > { %v5738_v12 = vpack.c.bf16 %v5638_v26, %v5638_v26  ;;  %v5322_v45 = vadd.f32 %v5321_v57, %v5062_v25  ;;  %v11429_v25 = vld [vmem:[#allocation156_spill] sm:$0xff] }
 0x6aa   : > { %v4118_v34 = vmax.f32 %v11424_v35, %v4008_v30  ;;  %v11430_v33 = vmax.f32 %v11428_v4, %v11429_v25 }
 0x6ab   : > { %5839 = vst.msk [vmem:[%s9838_s22 + $0x168] sm:$0xf] %vm5748_vm1, %v5738_v12  ;;  %v5435_v21 = vmax.f32 %v4116_v55, %v5322_v45  ;;  %v3751_v22 = vpop.f32.mrf.mxu1  ;;  %v11431_v45 = vld [vmem:[#allocation157_spill] sm:$0xff] }
 0x6ad   : > { %v5539_v1 = vadd.f32 %v10694_v54, %v5435_v21 }
 0x6af   : > { %v5639_v58 = vmax.f32 %v5539_v1, 0.0  ;;  %v4010_v42 = vpop.f32.mrf.mxu3 }
 0x6b0   : > { %v5324_v20 = vpop.f32.mrf.mxu2  ;;  %v5067_v39 = vpop.f32.mrf.mxu0  ;;  %v4011_v40 = vadd.f32 %v4010_v42, %v3751_v22 }
 0x6b1   : > { %v5739_v36 = vpack.c.bf16 %v5639_v58, %v5639_v58  ;;  %v5325_v10 = vadd.f32 %v5324_v20, %v5065_v31  ;;  %v11432_v31 = vld [vmem:[#allocation158_spill] sm:$0xff] }
 0x6b2   : > { %v4119_v23 = vmax.f32 %v11427_v61, %v4011_v40  ;;  %v11433_v21 = vmax.f32 %v11431_v45, %v11432_v31 }
 0x6b3   : > { %5840 = vst.msk [vmem:[%s9838_s22 + $0x16c] sm:$0xf] %vm5748_vm1, %v5739_v36  ;;  %v5436_v46 = vmax.f32 %v4117_v56, %v5325_v10  ;;  %v3753_v38 = vpop.f32.mrf.mxu1  ;;  %v11434_v10 = vld [vmem:[#allocation159_spill] sm:$0xff] }
 0x6b5   : > { %v5540_v47 = vadd.f32 %v10694_v54, %v5436_v46 }
 0x6b7   : > { %v5640_v9 = vmax.f32 %v5540_v47, 0.0  ;;  %v4012_v15 = vpop.f32.mrf.mxu3 }
 0x6b8   : > { %v5326_v62 = vpop.f32.mrf.mxu2  ;;  %v5070_v41 = vpop.f32.mrf.mxu0  ;;  %v4013_v11 = vadd.f32 %v4012_v15, %v3753_v38  ;;  %v11437_v38 = vld [vmem:[#allocation161_spill] sm:$0xff] }
 0x6b9   : > { %v5740_v50 = vpack.c.bf16 %v5640_v9, %v5640_v9  ;;  %v5327_v32 = vadd.f32 %v5326_v62, %v5067_v39  ;;  %v11435_v39 = vld [vmem:[#allocation160_spill] sm:$0xff] }
 0x6ba   : > { %v4120_v43 = vmax.f32 %v11430_v33, %v4013_v11  ;;  %v11436_v46 = vmax.f32 %v11434_v10, %v11435_v39 }
 0x6bb   : > { %5841 = vst.msk [vmem:[%s9838_s22 + $0x170] sm:$0xf] %vm5748_vm1, %v5740_v50  ;;  %v5437_v28 = vmax.f32 %v4118_v34, %v5327_v32  ;;  %v3756_v52 = vpop.f32.mrf.mxu1  ;;  %v11438_v32 = vld [vmem:[#allocation162_spill] sm:$0xff] }
 0x6bd   : > { %v5541_v18 = vadd.f32 %v10694_v54, %v5437_v28 }
 0x6bf   : > { %v5641_v6 = vmax.f32 %v5541_v18, 0.0  ;;  %v4015_v63 = vpop.f32.mrf.mxu3 }
 0x6c0   : > { %v5329_v44 = vpop.f32.mrf.mxu2  ;;  %v5072_v7 = vpop.f32.mrf.mxu0  ;;  %v4016_v57 = vadd.f32 %v4015_v63, %v3756_v52 }
 0x6c1   : > { %v5741_v0 = vpack.c.bf16 %v5641_v6, %v5641_v6  ;;  %v5330_v29 = vadd.f32 %v5329_v44, %v5070_v41  ;;  %v11439_v41 = vmax.f32 %v11437_v38, %v11438_v32 }
 0x6c2   : > { %v4121_v2 = vmax.f32 %v11433_v21, %v4016_v57 }
 0x6c3   : > { %5842 = vst.msk [vmem:[%s9838_s22 + $0x174] sm:$0xf] %vm5748_vm1, %v5741_v0  ;;  %v5438_v17 = vmax.f32 %v4119_v23, %v5330_v29  ;;  %v3758_v53 = vpop.f32.mrf.mxu1  ;;  %v11440_v29 = vld [vmem:[#allocation163_spill] sm:$0xff] }
 0x6c5   : > { %v5542_v48 = vadd.f32 %v10694_v54, %v5438_v17 }
 0x6c7   : > { %v5642_v16 = vmax.f32 %v5542_v48, 0.0  ;;  %v4017_v3 = vpop.f32.mrf.mxu3 }
 0x6c8   : > { %v5331_v27 = vpop.f32.mrf.mxu2  ;;  %v5075_v26 = vpop.f32.mrf.mxu0  ;;  %v4018_v20 = vadd.f32 %v4017_v3, %v3758_v53 }
 0x6c9   : > { %v5742_v60 = vpack.c.bf16 %v5642_v16, %v5642_v16  ;;  %v5332_v19 = vadd.f32 %v5331_v27, %v5072_v7  ;;  %v11441_v7 = vld [vmem:[#allocation164_spill] sm:$0xff] }
 0x6ca   : > { %v4122_v30 = vmax.f32 %v11436_v46, %v4018_v20  ;;  %v11442_v52 = vmax.f32 %v11440_v29, %v11441_v7 }
 0x6cb   : > { %5843 = vst.msk [vmem:[%s9838_s22 + $0x178] sm:$0xf] %vm5748_vm1, %v5742_v60  ;;  %v5439_v14 = vmax.f32 %v4120_v43, %v5332_v19  ;;  %v3761_v13 = vpop.f32.mrf.mxu1 }
 0x6cd   : > { %v5543_v59 = vadd.f32 %v10694_v54, %v5439_v14 }
 0x6cf   : > { %v5643_v55 = vmax.f32 %v5543_v59, 0.0  ;;  %v4020_v56 = vpop.f32.mrf.mxu3 }
 0x6d0   : > { %v5334_v12 = vpop.f32.mrf.mxu2  ;;  %v5077_v42 = vpop.f32.mrf.mxu0  ;;  %v4021_v24 = vadd.f32 %v4020_v56, %v3761_v13 }
 0x6d1   : > { %v5743_v1 = vpack.c.bf16 %v5643_v55, %v5643_v55  ;;  %v5335_v58 = vadd.f32 %v5334_v12, %v5075_v26 }
 0x6d2   : > { %v4123_v15 = vmax.f32 %v11439_v41, %v4021_v24 }
 0x6d3   : > { %5844 = vst.msk [vmem:[%s9838_s22 + $0x17c] sm:$0xf] %vm5748_vm1, %v5743_v1  ;;  %v5440_v22 = vmax.f32 %v4121_v2, %v5335_v58  ;;  %v3763_v18 = vpop.f32.mrf.mxu1 }
 0x6d5   : > { %v5544_v5 = vadd.f32 %v10694_v54, %v5440_v22 }
 0x6d7   : > { %v5644_v37 = vmax.f32 %v5544_v5, 0.0  ;;  %v4022_v6 = vpop.f32.mrf.mxu3 }
 0x6d8   : > { %v5336_v36 = vpop.f32.mrf.mxu2  ;;  %v5080_v35 = vpop.f32.mrf.mxu0  ;;  %v4023_v49 = vadd.f32 %v4022_v6, %v3763_v18 }
 0x6d9   : > { %v5744_v47 = vpack.c.bf16 %v5644_v37, %v5644_v37  ;;  %v5337_v9 = vadd.f32 %v5336_v36, %v5077_v42 }
 0x6da   : > { %v4124_v17 = vmax.f32 %v11442_v52, %v4023_v49 }
 0x6db   : > { %5845 = vst.msk [vmem:[%s9838_s22 + $0x180] sm:$0xf] %vm5748_vm1, %v5744_v47  ;;  %v5441_v62 = vmax.f32 %v4122_v30, %v5337_v9 }
 0x6dd   : > { %v5545_v51 = vadd.f32 %v10694_v54, %v5441_v62 }
 0x6df   : > { %v5645_v34 = vmax.f32 %v5545_v51, 0.0 }
 0x6e0   : > { %v5339_v50 = vpop.f32.mrf.mxu2  ;;  %v5082_v23 = vpop.f32.mrf.mxu0 }
 0x6e1   : > { %v5745_v28 = vpack.c.bf16 %v5645_v34, %v5645_v34  ;;  %v5340_v40 = vadd.f32 %v5339_v50, %v5080_v35 }
 0x6e3   : > { %5846 = vst.msk [vmem:[%s9838_s22 + $0x184] sm:$0xf] %vm5748_vm1, %v5745_v28  ;;  %v5442_v44 = vmax.f32 %v4123_v15, %v5340_v40 }
 0x6e5   : > { %v5546_v8 = vadd.f32 %v10694_v54, %v5442_v44 }
 0x6e7   : > { %v5646_v61 = vmax.f32 %v5546_v8, 0.0 }
 0x6e8   : > { %v5341_v0 = vpop.f32.mrf.mxu2 }
 0x6e9   : > { %v5746_v63 = vpack.c.bf16 %v5646_v61, %v5646_v61  ;;  %v5342_v11 = vadd.f32 %v5341_v0, %v5082_v23 }
 0x6eb   : > { %5847 = vst.msk [vmem:[%s9838_s22 + $0x188] sm:$0xf] %vm5748_vm1, %v5746_v63  ;;  %v5443_v48 = vmax.f32 %v4124_v17, %v5342_v11 }
 0x6ed   : > { %v5547_v16 = vadd.f32 %v10694_v54, %v5443_v48 }
 0x6ef   : > { %v5647_v27 = vmax.f32 %v5547_v16, 0.0 }
 0x6f1   : > { %v5747_v4 = vpack.c.bf16 %v5647_v27, %v5647_v27 }
 0x6f3   : > { %5849 = vst.msk [vmem:[%s9838_s22 + $0x18c] sm:$0x7] %vm5848_vm2, %v5747_v4 }
 0x6f4 PF: > { %s13_s12 = sadd.s32 1, %s8494_s12  }
 0x6f5   : > { %p10_p4 = scmp.ge.s32.totalorder %s13_s12, 4  }
 0x6f7   :  { %12 = sbr.rel (!%p10_p4) target bundleno = 1 (0x1), region = 65 }

// kernel: value_net_forward.3
= control target key start
LH: loop header
LB: loop body
LE: loop exit
PB: predicated region body
PF: predicated region fallthrough
CT: control target
= control target key end

     0   :  { %s5184_s29 = smov 0   ;;  %s6437_s0 = inlined_call_operand.vmem [shape: bf16[2,4,36,512], index: 0, kind: input, shape index: {}]   ;;  %s6438_s1 = inlined_call_operand.vmem [shape: f32[2,1,22], index: 1, kind: input, shape index: {}]   ;;  %s6439_s2 = inlined_call_operand.vmem [shape: f32[2,1,20], index: 2, kind: input, shape index: {}]   ;;  %s6440_s3 = inlined_call_operand.vmem [shape: f32[2,1,64], index: 3, kind: input, shape index: {}]   ;;  %s6441_s4 = inlined_call_operand.vmem [shape: f32[2,1,64], index: 4, kind: input, shape index: {}]   ;;  %s6442_s5 = inlined_call_operand.vmem [shape: bf16[512,64], index: 5, kind: input, shape index: {}]   ;;  %s6443_s6 = inlined_call_operand.vmem [shape: f32[1,64], index: 6, kind: input, shape index: {}]   ;;  %s6444_s7 = inlined_call_operand.vmem [shape: bf16[9,64,64], index: 7, kind: input, shape index: {}]   ;;  %s6445_s8 = inlined_call_operand.vmem [shape: f32[1,64], index: 8, kind: input, shape index: {}]   ;;  %s6446_s9 = inlined_call_operand.vmem [shape: bf16[14,64,64], index: 9, kind: input, shape index: {}]   ;;  %s6447_s10 = inlined_call_operand.vmem [shape: f32[1,64], index: 10, kind: input, shape index: {}]   ;;  %s6448_s11 = inlined_call_operand.vmem [shape: bf16[64,22], index: 11, kind: input, shape index: {}]   ;;  %s6449_s12 = inlined_call_operand.vmem [shape: f32[1,22], index: 12, kind: input, shape index: {}]   ;;  %s6450_s13 = inlined_call_operand.vmem [shape: bf16[22,512], index: 13, kind: input, shape index: {}]   ;;  %s6451_s14 = inlined_call_operand.vmem [shape: bf16[22,512], index: 14, kind: input, shape index: {}]   ;;  %s6452_s15 = inlined_call_operand.vmem [shape: bf16[20,512], index: 15, kind: input, shape index: {}]   ;;  %s6453_s16 = inlined_call_operand.vmem [shape: bf16[64,512], index: 16, kind: input, shape index: {}]   ;;  %s6454_s17 = inlined_call_operand.vmem [shape: f32[1,512], index: 17, kind: input, shape index: {}]   ;;  %s6455_s18 = inlined_call_operand.vmem [shape: bf16[64,16], index: 18, kind: input, shape index: {}]   ;;  %s6456_s19 = inlined_call_operand.vmem [shape: f32[1,16], index: 19, kind: input, shape index: {}]   ;;  %s6457_s20 = inlined_call_operand.vmem [shape: bf16[16,1], index: 20, kind: input, shape index: {}]   ;;  %s6458_s21 = inlined_call_operand.<no memory space> [shape: f32[1,1], index: 21, kind: input, shape index: {}]   ;;  %s6459_s22 = inlined_call_operand.vmem [shape: f32[2,1,1], index: 22, kind: output, shape index: {}]  }
   0x1   :  { %6464 = sst [smem:[#allocation6_spill]] %s6437_s0  ;;  %v27_v0 = vstv %s6458_s21 }
   0x2   :  { %6465 = sst [smem:[#allocation7_spill]] %s6438_s1  ;;  %28 = vst [vmem:[#allocation2] sm:$0x1] %v27_v0 }
   0x3   :  { %6466 = sst [smem:[#allocation8_spill]] %s6439_s2 }
   0x4   :  { %6467 = sst [smem:[#allocation9_spill]] %s6440_s3 }
   0x5   :  { %6468 = sst [smem:[#allocation10_spill]] %s6441_s4 }
   0x6   :  { %6469 = sst [smem:[#allocation11_spill]] %s6442_s5 }
   0x7   :  { %6470 = sst [smem:[#allocation12_spill]] %s6443_s6 }
   0x8 LB: > { %s3802_s30 = sadd.s32 4294967295, %s5064_s29   ;;  %p3806_p0 = scmp.ge.s32.totalorder %s5064_s29, 1  ;;  %s5064_s29 = sphi %s5184_s29, %s34_s29  }
   0x9   : > { %p646_p1 = scmp.lt.s32.totalorder %s5064_s29, 3 }
   0xb   : > { %p647_p2 = pnand %p3806_p0, %p646_p1 }
   0xd   : > { %650 = sbr.rel (%p647_p2) target bundleno = 1361 (0x551), region = 108 }
  0x12   : > { %s6471_s23 = sld [smem:[#allocation11_spill]]  ;;  %p718_p3 = scmp.lt.s32.totalorder %s3802_s30, 1  ;;  %vm1707_vm0 = vcmask 523264   ;;  %vm3134_vm1 = vcmask 1042432   ;;  %vm3337_vm2 = vcmask 1041408   ;;  %vm3130_vm3 = vcmask 179200  }
  0x13   : > { %s6472_s1 = sld [smem:[#allocation6_spill]]  ;;  %vm3333_vm4 = vcmask 162816  }
  0x14   : > { %s6489_s30 = smov (!%p718_p3, %s3802_s30), 1  ;;  %s6482_s26 = sld [smem:[#allocation7_spill]] }
  0x15   : > { %s5027_s24 = smul.u32 320, %s6489_s30  ;;  %s6484_s0 = sld [smem:[#allocation9_spill]] }
  0x16   : > { %s737_s3 = scalar_lea.vmem %s6459_s22, %s6489_s30 }
  0x18   : > { %v5195_v1 = vld [vmem:[%s6471_s23 + $0x38] sm:$0xff]  ;;  %v5217_v5 = vld [vmem:[%s6471_s23 + $0x30] sm:$0xff]  ;;  %v5241_v9 = vld [vmem:[%s6471_s23 + $0x28] sm:$0xff] }
  0x19   : > { %v5200_v2 = vld [vmem:[%s6471_s23 + $0x78] sm:$0xff]  ;;  %1059 = vmatpush.bf16.msra.mxu0 %v5195_v1  ;;  %v5222_v6 = vld [vmem:[%s6471_s23 + $0x70] sm:$0xff]  ;;  %v5246_v10 = vld [vmem:[%s6471_s23 + $0x68] sm:$0xff]  ;;  %s5354_s5 = scalar_lea.vmem %s6472_s1, %s5027_s24 }
  0x1a   : > { %v5205_v3 = vld [vmem:[%s6471_s23 + $0xb8] sm:$0xff]  ;;  %1082 = vmatpush.bf16.msra.mxu1 %v5200_v2  ;;  %v5229_v7 = vld [vmem:[%s6471_s23 + $0xb0] sm:$0xff]  ;;  %v5253_v11 = vld [vmem:[%s6471_s23 + $0xa8] sm:$0xff]  ;;  %s725_s2 = scalar_lea.vmem %s6482_s26, %s6489_s30  ;;  %s6483_s26 = sld [smem:[#allocation8_spill]] }
  0x1b   : > { %v5210_v4 = vld [vmem:[%s6471_s23 + $0xf8] sm:$0xff]  ;;  %1105 = vmatpush.bf16.msra.mxu2 %v5205_v3  ;;  %v5234_v8 = vld [vmem:[%s6471_s23 + $0xf0] sm:$0xff]  ;;  %v5258_v12 = vld [vmem:[%s6471_s23 + $0xe8] sm:$0xff]  ;;  %s731_s21 = scalar_lea.vmem %s6484_s0, %s6489_s30 }
  0x1c   : > { %1128 = vmatpush.bf16.msra.mxu3 %v5210_v4  ;;  %v5265_v13 = vld [vmem:[%s6471_s23 + $0x20] sm:$0xff]  ;;  %v5289_v17 = vld [vmem:[%s6471_s23 + $0x18] sm:$0xff]  ;;  %v5319_v21 = vld [vmem:[%s6471_s23 + $0x10] sm:$0xff] }
  0x1d   : > { %1060 = vmatpush.bf16.msra.mxu0 %v5217_v5  ;;  %v5270_v14 = vld [vmem:[%s6471_s23 + $0x60] sm:$0xff]  ;;  %v5296_v18 = vld [vmem:[%s6471_s23 + $0x58] sm:$0xff]  ;;  %v5324_v22 = vld [vmem:[%s6471_s23 + $0x50] sm:$0xff] }
  0x1e   : > { %1083 = vmatpush.bf16.msra.mxu1 %v5222_v6  ;;  %v5279_v15 = vld [vmem:[%s6471_s23 + $0xa0] sm:$0xff]  ;;  %v5307_v19 = vld [vmem:[%s6471_s23 + $0x98] sm:$0xff]  ;;  %v5332_v23 = vld [vmem:[%s6471_s23 + $0x90] sm:$0xff] }
  0x1f   : > { %1106 = vmatpush.bf16.msra.mxu2 %v5229_v7  ;;  %v5284_v16 = vld [vmem:[%s6471_s23 + $0xe0] sm:$0xff]  ;;  %v5312_v20 = vld [vmem:[%s6471_s23 + $0xd8] sm:$0xff]  ;;  %v5337_v24 = vld [vmem:[%s6471_s23 + $0xd0] sm:$0xff] }
  0x20   : > { %1129 = vmatpush.bf16.msra.mxu3 %v5234_v8  ;;  %v5344_v25 = vld [vmem:[%s6471_s23 + $0x8] sm:$0xff]  ;;  %v5371_v29 = vld [vmem:[%s6471_s23] sm:$0xff]  ;;  %v4868_v34 = vld [vmem:[%s5354_s5 + $0xc] sm:$0xf0] }
  0x21   : > { %1061 = vmatpush.bf16.msra.mxu0 %v5241_v9  ;;  %v5349_v26 = vld [vmem:[%s6471_s23 + $0x48] sm:$0xff]  ;;  %v5376_v30 = vld [vmem:[%s6471_s23 + $0x40] sm:$0xff]  ;;  %v3812_v36 = vld [vmem:[%s5354_s5 + $0x10] sm:$0xf0] }
  0x22   : > { %1084 = vmatpush.bf16.msra.mxu1 %v5246_v10  ;;  %v5361_v27 = vld [vmem:[%s6471_s23 + $0x88] sm:$0xff]  ;;  %v5381_v31 = vld [vmem:[%s6471_s23 + $0x80] sm:$0xff]  ;;  %v4869_v38 = vld [vmem:[%s5354_s5 + $0x14] sm:$0xf0] }
  0x23   : > { %1107 = vmatpush.bf16.msra.mxu2 %v5253_v11  ;;  %v5366_v28 = vld [vmem:[%s6471_s23 + $0xc8] sm:$0xff]  ;;  %v5386_v32 = vld [vmem:[%s6471_s23 + $0xc0] sm:$0xff]  ;;  %v3820_v40 = vld [vmem:[%s5354_s5 + $0x18] sm:$0xf0] }
  0x24   : > { %1130 = vmatpush.bf16.msra.mxu3 %v5258_v12  ;;  %v3810_v33 = vld [vmem:[%s5354_s5] sm:$0xf]  ;;  %v4866_v35 = vld [vmem:[%s5354_s5 + $0x4] sm:$0xf]  ;;  %v3818_v37 = vld [vmem:[%s5354_s5 + $0x8] sm:$0xf] }
  0x25   : > { %1062 = vmatpush.bf16.msra.mxu0 %v5265_v13  ;;  %v4867_v39 = vld [vmem:[%s5354_s5 + $0xc] sm:$0xf]  ;;  %v3811_v41 = vor.u32 %v4868_v34, %v3810_v33  ;;  %v3815_v42 = vor.u32 %v4866_v35, %v3812_v36  ;;  %v3819_v43 = vor.u32 %v4869_v38, %v3818_v37  ;;  %v3826_v45 = vld [vmem:[%s5354_s5 + $0x20] sm:$0xf]  ;;  %v4872_v46 = vld [vmem:[%s5354_s5 + $0x2c] sm:$0xf0] }
  0x26   : > { %1085 = vmatpush.bf16.msra.mxu1 %v5270_v14  ;;  %v3823_v44 = vor.u32 %v4867_v39, %v3820_v40  ;;  %v4870_v47 = vld [vmem:[%s5354_s5 + $0x24] sm:$0xf]  ;;  %v3828_v48 = vld [vmem:[%s5354_s5 + $0x30] sm:$0xf0]  ;;  %v3834_v49 = vld [vmem:[%s5354_s5 + $0x28] sm:$0xf]  ;;  %v3827_v53 = vor.u32 %v4872_v46, %v3826_v45 }
  0x27   : > { %1108 = vmatpush.bf16.msra.mxu2 %v5279_v15  ;;  %v4873_v50 = vld [vmem:[%s5354_s5 + $0x34] sm:$0xf0]  ;;  %v4871_v51 = vld [vmem:[%s5354_s5 + $0x2c] sm:$0xf]  ;;  %v3836_v52 = vld [vmem:[%s5354_s5 + $0x38] sm:$0xf0]  ;;  %v3831_v54 = vor.u32 %v4870_v47, %v3828_v48 }
  0x28   : > { %1131 = vmatpush.bf16.msra.mxu3 %v5284_v16  ;;  %v3835_v55 = vor.u32 %v4873_v50, %v3834_v49  ;;  %v3839_v56 = vor.u32 %v4871_v51, %v3836_v52  ;;  %v811_v57 = vld [vmem:[%s5354_s5 + $0x40] sm:$0x33]  ;;  %v812_v58 = vld [vmem:[%s5354_s5 + $0x48] sm:$0x33]  ;;  %v3980_v35 = vld [vmem:[%s5354_s5 + $0x50] sm:$0xf] }
  0x29   : > { %1063 = vmatpush.bf16.msra.mxu0 %v5289_v17  ;;  %v839_v59 = vunpack.c.l.b16 %v811_v57  ;;  %v840_v60 = vunpack.c.h.b16 %v811_v57  ;;  %v841_v61 = vunpack.c.l.b16 %v812_v58  ;;  %v842_v62 = vunpack.c.h.b16 %v812_v58  ;;  %v4876_v36 = vld [vmem:[%s5354_s5 + $0x5c] sm:$0xf0]  ;;  %v4874_v37 = vld [vmem:[%s5354_s5 + $0x54] sm:$0xf]  ;;  %v3982_v38 = vld [vmem:[%s5354_s5 + $0x60] sm:$0xf0] }
  0x2a   : > { %1086 = vmatpush.bf16.msra.mxu1 %v5296_v18  ;;  %v3988_v39 = vld [vmem:[%s5354_s5 + $0x58] sm:$0xf]  ;;  %v4877_v40 = vld [vmem:[%s5354_s5 + $0x64] sm:$0xf0]  ;;  %v3996_v47 = vld [vmem:[%s5354_s5 + $0x70] sm:$0xf] }
  0x2b   : > { %1109 = vmatpush.bf16.msra.mxu2 %v5307_v19  ;;  %v851_v63 = vpack.c.b16 %v839_v59, %v839_v59  ;;  %v852_v0 = vpack.c.b16 %v840_v60, %v840_v60  ;;  %v853_v33 = vpack.c.b16 %v841_v61, %v841_v61  ;;  %v854_v34 = vpack.c.b16 %v842_v62, %v842_v62  ;;  %v4880_v48 = vld [vmem:[%s5354_s5 + $0x7c] sm:$0xf0]  ;;  %v4878_v49 = vld [vmem:[%s5354_s5 + $0x74] sm:$0xf]  ;;  %v3998_v50 = vld [vmem:[%s5354_s5 + $0x80] sm:$0xf0] }
  0x2c   : > { %1132 = vmatpush.bf16.msra.mxu3 %v5312_v20  ;;  %v3989_v45 = vor.u32 %v4877_v40, %v3988_v39  ;;  %v4004_v51 = vld [vmem:[%s5354_s5 + $0x78] sm:$0xf]  ;;  %v4881_v52 = vld [vmem:[%s5354_s5 + $0x84] sm:$0xf0]  ;;  %v4018_v61 = vld [vmem:[%s5354_s5 + $0xe0] sm:$0x33] }
  0x2d   : > { %1064 = vmatpush.bf16.msra.mxu0 %v5319_v21  ;;  %v4005_v57 = vor.u32 %v4881_v52, %v4004_v51  ;;  %v4019_v62 = vld [vmem:[%s5354_s5 + $0xe8] sm:$0x33]  ;;  %v4066_v51 = vld [vmem:[%s5354_s5 + $0x100] sm:$0xf0]  ;;  %v4072_v52 = vld [vmem:[%s5354_s5 + $0xf8] sm:$0xf] }
  0x2e   : > { %1087 = vmatpush.bf16.msra.mxu1 %v5324_v22 }
  0x2f   : > { %1110 = vmatpush.bf16.msra.mxu2 %v5332_v23 }
  0x30   : > { %1133 = vmatpush.bf16.msra.mxu3 %v5337_v24 }
  0x31   : > { %1065 = vmatpush.bf16.msra.mxu0 %v5344_v25 }
  0x32   : > { %1088 = vmatpush.bf16.msra.mxu1 %v5349_v26 }
  0x33   : > { %1111 = vmatpush.bf16.msra.mxu2 %v5361_v27 }
  0x34   : > { %1134 = vmatpush.bf16.msra.mxu3 %v5366_v28 }
  0x35   : > { %1066 = vmatpush.bf16.msra.mxu0 %v5371_v29 }
  0x36   : > { %1089 = vmatpush.bf16.msra.mxu1 %v5376_v30 }
  0x37   : > { %1112 = vmatpush.bf16.msra.mxu2 %v5381_v31 }
  0x38   : > { %1135 = vmatpush.bf16.msra.mxu3 %v5386_v32  ;;  %1067 = vmatmul.bf16.vlgmr.msra.gmra.mxu0 %v3811_v41  ;;  %v4875_v41 = vld [vmem:[%s5354_s5 + $0x5c] sm:$0xf] }
  0x39   : > { %1090 = vmatmul.bf16.vlgmr.msra.gmra.mxu1 %v3815_v42  ;;  %1216 = vmatpush.bf16.msrb.mxu0 %v5195_v1  ;;  %v3990_v42 = vld [vmem:[%s5354_s5 + $0x68] sm:$0xf0] }
  0x3a   : > { %1113 = vmatmul.bf16.vlgmr.msra.gmra.mxu2 %v3819_v43  ;;  %1239 = vmatpush.bf16.msrb.mxu1 %v5200_v2  ;;  %v3981_v43 = vor.u32 %v4876_v36, %v3980_v35  ;;  %v3993_v46 = vor.u32 %v4875_v41, %v3990_v42 }
  0x3b   : > { %1262 = vmatpush.bf16.msrb.mxu2 %v5205_v3  ;;  %1136 = vmatmul.bf16.vlgmr.msra.gmra.mxu3 %v3823_v44  ;;  %v3985_v44 = vor.u32 %v4874_v37, %v3982_v38 }
  0x3c   : > { %1285 = vmatpush.bf16.msrb.mxu3 %v5210_v4 }
  0x3d   : > { %1217 = vmatpush.bf16.msrb.mxu0 %v5217_v5 }
  0x3e   : > { %1240 = vmatpush.bf16.msrb.mxu1 %v5222_v6 }
  0x3f   : > { %1263 = vmatpush.bf16.msrb.mxu2 %v5229_v7 }
  0x40   : > { %1286 = vmatpush.bf16.msrb.mxu3 %v5234_v8 }
  0x41   : > { %1218 = vmatpush.bf16.msrb.mxu0 %v5241_v9 }
  0x42   : > { %1241 = vmatpush.bf16.msrb.mxu1 %v5246_v10 }
  0x43   : > { %1264 = vmatpush.bf16.msrb.mxu2 %v5253_v11 }
  0x44   : > { %1287 = vmatpush.bf16.msrb.mxu3 %v5258_v12 }
  0x45   : > { %1219 = vmatpush.bf16.msrb.mxu0 %v5265_v13 }
  0x46   : > { %1242 = vmatpush.bf16.msrb.mxu1 %v5270_v14 }
  0x47   : > { %1265 = vmatpush.bf16.msrb.mxu2 %v5279_v15 }
  0x48   : > { %1288 = vmatpush.bf16.msrb.mxu3 %v5284_v16  ;;  %1072 = vmatmul.bf16.gmra.mxu0 %v3827_v53  ;;  %v4879_v53 = vld [vmem:[%s5354_s5 + $0x7c] sm:$0xf] }
  0x49   : > { %1095 = vmatmul.bf16.gmra.mxu1 %v3831_v54  ;;  %1220 = vmatpush.bf16.msrb.mxu0 %v5289_v17  ;;  %v4006_v54 = vld [vmem:[%s5354_s5 + $0x88] sm:$0xf0] }
  0x4a   : > { %1118 = vmatmul.bf16.gmra.mxu2 %v3835_v55  ;;  %1243 = vmatpush.bf16.msrb.mxu1 %v5296_v18  ;;  %v3997_v55 = vor.u32 %v4880_v48, %v3996_v47  ;;  %v4009_v58 = vor.u32 %v4879_v53, %v4006_v54  ;;  %v4064_v48 = vld [vmem:[%s5354_s5 + $0xf0] sm:$0xf]  ;;  %v4893_v53 = vld [vmem:[%s5354_s5 + $0x104] sm:$0xf0]  ;;  %v4891_v54 = vld [vmem:[%s5354_s5 + $0xfc] sm:$0xf] }
  0x4b   : > { %1266 = vmatpush.bf16.msrb.mxu2 %v5307_v19  ;;  %1141 = vmatmul.bf16.gmra.mxu3 %v3839_v56  ;;  %v4001_v56 = vor.u32 %v4878_v49, %v3998_v50  ;;  %v4892_v49 = vld [vmem:[%s5354_s5 + $0xfc] sm:$0xf0]  ;;  %v4890_v50 = vld [vmem:[%s5354_s5 + $0xf4] sm:$0xf] }
  0x4c   : > { %1289 = vmatpush.bf16.msrb.mxu3 %v5312_v20 }
  0x4d   : > { %1221 = vmatpush.bf16.msrb.mxu0 %v5319_v21 }
  0x4e   : > { %1244 = vmatpush.bf16.msrb.mxu1 %v5324_v22 }
  0x4f   : > { %1267 = vmatpush.bf16.msrb.mxu2 %v5332_v23 }
  0x50   : > { %1290 = vmatpush.bf16.msrb.mxu3 %v5337_v24 }
  0x51   : > { %1222 = vmatpush.bf16.msrb.mxu0 %v5344_v25 }
  0x52   : > { %1245 = vmatpush.bf16.msrb.mxu1 %v5349_v26 }
  0x53   : > { %1268 = vmatpush.bf16.msrb.mxu2 %v5361_v27 }
  0x54   : > { %1291 = vmatpush.bf16.msrb.mxu3 %v5366_v28 }
  0x55   : > { %1223 = vmatpush.bf16.msrb.mxu0 %v5371_v29 }
  0x56   : > { %1246 = vmatpush.bf16.msrb.mxu1 %v5376_v30 }
  0x57   : > { %1269 = vmatpush.bf16.msrb.mxu2 %v5381_v31 }
  0x58   : > { %1292 = vmatpush.bf16.msrb.mxu3 %v5386_v32  ;;  %1077 = vmatmul.bf16.gmra.mxu0 %v851_v63  ;;  %v1350_v63 = vunpack.c.l.b16 %v4018_v61 }
  0x59   : > { %1378 = vmatpush.bf16.msra.mxu0 %v5195_v1  ;;  %1100 = vmatmul.bf16.gmra.mxu1 %v852_v0  ;;  %v1351_v0 = vunpack.c.h.b16 %v4018_v61  ;;  %v4060_v61 = vld [vmem:[%s5354_s5 + $0x130] sm:$0x33] }
  0x5a   : > { %1401 = vmatpush.bf16.msra.mxu1 %v5200_v2  ;;  %1123 = vmatmul.bf16.gmra.mxu2 %v853_v33  ;;  %v1352_v33 = vunpack.c.l.b16 %v4019_v62  ;;  %v1362_v35 = vpack.c.b16 %v1350_v63, %v1350_v63 }
  0x5b   : > { %1424 = vmatpush.bf16.msra.mxu2 %v5205_v3  ;;  %1146 = vmatmul.bf16.gmra.mxu3 %v854_v34  ;;  %v1353_v34 = vunpack.c.h.b16 %v4019_v62  ;;  %v1363_v36 = vpack.c.b16 %v1351_v0, %v1351_v0  ;;  %v4061_v62 = vld [vmem:[%s5354_s5 + $0x138] sm:$0x33]  ;;  %v1512_v0 = vunpack.c.l.b16 %v4060_v61 }
  0x5c   : > { %1447 = vmatpush.bf16.msra.mxu3 %v5210_v4  ;;  %v1364_v39 = vpack.c.b16 %v1352_v33, %v1352_v33  ;;  %v1513_v33 = vunpack.c.h.b16 %v4060_v61  ;;  %v5630_v61 = vld [vmem:[%s6444_s7 + $0x78] sm:$0xff] }
  0x5d   : > { %1379 = vmatpush.bf16.msra.mxu0 %v5217_v5  ;;  %v1365_v40 = vpack.c.b16 %v1353_v34, %v1353_v34  ;;  %v1514_v34 = vunpack.c.l.b16 %v4061_v62 }
  0x5e   : > { %1402 = vmatpush.bf16.msra.mxu1 %v5222_v6 }
  0x5f   : > { %1425 = vmatpush.bf16.msra.mxu2 %v5229_v7 }
  0x60   : > { %1448 = vmatpush.bf16.msra.mxu3 %v5234_v8 }
  0x61   : > { %1380 = vmatpush.bf16.msra.mxu0 %v5241_v9 }
  0x62   : > { %1403 = vmatpush.bf16.msra.mxu1 %v5246_v10 }
  0x63   : > { %1426 = vmatpush.bf16.msra.mxu2 %v5253_v11 }
  0x64   : > { %1449 = vmatpush.bf16.msra.mxu3 %v5258_v12 }
  0x65   : > { %1381 = vmatpush.bf16.msra.mxu0 %v5265_v13 }
  0x66   : > { %1404 = vmatpush.bf16.msra.mxu1 %v5270_v14 }
  0x67   : > { %1427 = vmatpush.bf16.msra.mxu2 %v5279_v15 }
  0x68   : > { %1450 = vmatpush.bf16.msra.mxu3 %v5284_v16  ;;  %1224 = vmatmul.bf16.vlgmr.msrb.gmra.mxu0 %v3981_v43 }
  0x69   : > { %1382 = vmatpush.bf16.msra.mxu0 %v5289_v17  ;;  %1247 = vmatmul.bf16.vlgmr.msrb.gmra.mxu1 %v3985_v44 }
  0x6a   : > { %1405 = vmatpush.bf16.msra.mxu1 %v5296_v18  ;;  %1270 = vmatmul.bf16.vlgmr.msrb.gmra.mxu2 %v3989_v45 }
  0x6b   : > { %1428 = vmatpush.bf16.msra.mxu2 %v5307_v19  ;;  %1293 = vmatmul.bf16.vlgmr.msrb.gmra.mxu3 %v3993_v46 }
  0x6c   : > { %1451 = vmatpush.bf16.msra.mxu3 %v5312_v20 }
  0x6d   : > { %1383 = vmatpush.bf16.msra.mxu0 %v5319_v21 }
  0x6e   : > { %1406 = vmatpush.bf16.msra.mxu1 %v5324_v22 }
  0x6f   : > { %1429 = vmatpush.bf16.msra.mxu2 %v5332_v23 }
  0x70   : > { %1452 = vmatpush.bf16.msra.mxu3 %v5337_v24 }
  0x71   : > { %1384 = vmatpush.bf16.msra.mxu0 %v5344_v25 }
  0x72   : > { %1407 = vmatpush.bf16.msra.mxu1 %v5349_v26 }
  0x73   : > { %1430 = vmatpush.bf16.msra.mxu2 %v5361_v27 }
  0x74   : > { %1453 = vmatpush.bf16.msra.mxu3 %v5366_v28 }
  0x75   : > { %1385 = vmatpush.bf16.msra.mxu0 %v5371_v29 }
  0x76   : > { %1408 = vmatpush.bf16.msra.mxu1 %v5376_v30 }
  0x77   : > { %1431 = vmatpush.bf16.msra.mxu2 %v5381_v31 }
  0x78   : > { %1454 = vmatpush.bf16.msra.mxu3 %v5386_v32  ;;  %1229 = vmatmul.bf16.gmra.mxu0 %v3997_v55  ;;  %v4074_v55 = vld [vmem:[%s5354_s5 + $0x108] sm:$0xf0] }
  0x79   : > { %1540 = vmatpush.bf16.msrb.mxu0 %v5195_v1  ;;  %1252 = vmatmul.bf16.gmra.mxu1 %v4001_v56 }
  0x7a   : > { %1563 = vmatpush.bf16.msrb.mxu1 %v5200_v2  ;;  %1275 = vmatmul.bf16.gmra.mxu2 %v4005_v57 }
  0x7b   : > { %1586 = vmatpush.bf16.msrb.mxu2 %v5205_v3  ;;  %1298 = vmatmul.bf16.gmra.mxu3 %v4009_v58  ;;  %v3976_v3 = vld [vmem:[%s5354_s5 + $0x90] sm:$0x33]  ;;  %v4065_v58 = vor.u32 %v4892_v49, %v4064_v48 }
  0x7c   : > { %1609 = vmatpush.bf16.msrb.mxu3 %v5210_v4  ;;  %v3977_v4 = vld [vmem:[%s5354_s5 + $0x98] sm:$0x33]  ;;  %v1188_v1 = vunpack.c.l.b16 %v3976_v3  ;;  %v1189_v2 = vunpack.c.h.b16 %v3976_v3  ;;  %v4069_v3 = vor.u32 %v4890_v50, %v4066_v51 }
  0x7d   : > { %1541 = vmatpush.bf16.msrb.mxu0 %v5217_v5  ;;  %v1190_v59 = vunpack.c.l.b16 %v3977_v4 }
  0x7e   : > { %1564 = vmatpush.bf16.msrb.mxu1 %v5222_v6  ;;  %v1200_v5 = vpack.c.b16 %v1188_v1, %v1188_v1  ;;  %v1201_v6 = vpack.c.b16 %v1189_v2, %v1189_v2  ;;  %v4073_v2 = vor.u32 %v4893_v53, %v4072_v52 }
  0x7f   : > { %1587 = vmatpush.bf16.msrb.mxu2 %v5229_v7  ;;  %v1191_v7 = vunpack.c.h.b16 %v3977_v4 }
  0x80   : > { %1610 = vmatpush.bf16.msrb.mxu3 %v5234_v8  ;;  %v1202_v8 = vpack.c.b16 %v1190_v59, %v1190_v59  ;;  %v4077_v59 = vor.u32 %v4891_v54, %v4074_v55 }
  0x81   : > { %1542 = vmatpush.bf16.msrb.mxu0 %v5241_v9  ;;  %v4022_v9 = vld [vmem:[%s5354_s5 + $0xa0] sm:$0xf] }
  0x82   : > { %1565 = vmatpush.bf16.msrb.mxu1 %v5246_v10  ;;  %v4884_v10 = vld [vmem:[%s5354_s5 + $0xac] sm:$0xf0] }
  0x83   : > { %1588 = vmatpush.bf16.msrb.mxu2 %v5253_v11  ;;  %v1203_v11 = vpack.c.b16 %v1191_v7, %v1191_v7 }
  0x84   : > { %1611 = vmatpush.bf16.msrb.mxu3 %v5258_v12  ;;  %v4882_v12 = vld [vmem:[%s5354_s5 + $0xa4] sm:$0xf] }
  0x85   : > { %1543 = vmatpush.bf16.msrb.mxu0 %v5265_v13  ;;  %v4024_v13 = vld [vmem:[%s5354_s5 + $0xb0] sm:$0xf0] }
  0x86   : > { %1566 = vmatpush.bf16.msrb.mxu1 %v5270_v14  ;;  %v4030_v14 = vld [vmem:[%s5354_s5 + $0xa8] sm:$0xf] }
  0x87   : > { %1589 = vmatpush.bf16.msrb.mxu2 %v5279_v15  ;;  %v4885_v15 = vld [vmem:[%s5354_s5 + $0xb4] sm:$0xf0] }
  0x88   : > { %1612 = vmatpush.bf16.msrb.mxu3 %v5284_v16  ;;  %1234 = vmatmul.bf16.gmra.mxu0 %v1200_v5  ;;  %v4883_v16 = vld [vmem:[%s5354_s5 + $0xac] sm:$0xf] }
  0x89   : > { %1544 = vmatpush.bf16.msrb.mxu0 %v5289_v17  ;;  %1257 = vmatmul.bf16.gmra.mxu1 %v1201_v6  ;;  %v4032_v17 = vld [vmem:[%s5354_s5 + $0xb8] sm:$0xf0] }
  0x8a   : > { %1567 = vmatpush.bf16.msrb.mxu1 %v5296_v18  ;;  %1280 = vmatmul.bf16.gmra.mxu2 %v1202_v8  ;;  %v4023_v18 = vor.u32 %v4884_v10, %v4022_v9 }
  0x8b   : > { %1590 = vmatpush.bf16.msrb.mxu2 %v5307_v19  ;;  %1303 = vmatmul.bf16.gmra.mxu3 %v1203_v11  ;;  %v4027_v19 = vor.u32 %v4882_v12, %v4024_v13  ;;  %v4080_v12 = vld [vmem:[%s5354_s5 + $0x110] sm:$0xf]  ;;  %v4896_v13 = vld [vmem:[%s5354_s5 + $0x11c] sm:$0xf0] }
  0x8c   : > { %1613 = vmatpush.bf16.msrb.mxu3 %v5312_v20  ;;  %v4031_v20 = vor.u32 %v4885_v15, %v4030_v14  ;;  %v4894_v14 = vld [vmem:[%s5354_s5 + $0x114] sm:$0xf]  ;;  %v4082_v15 = vld [vmem:[%s5354_s5 + $0x120] sm:$0xf0] }
  0x8d   : > { %1545 = vmatpush.bf16.msrb.mxu0 %v5319_v21  ;;  %v4035_v21 = vor.u32 %v4883_v16, %v4032_v17  ;;  %v4088_v16 = vld [vmem:[%s5354_s5 + $0x118] sm:$0xf]  ;;  %v4897_v17 = vld [vmem:[%s5354_s5 + $0x124] sm:$0xf0] }
  0x8e   : > { %1568 = vmatpush.bf16.msrb.mxu1 %v5324_v22  ;;  %v4038_v22 = vld [vmem:[%s5354_s5 + $0xc0] sm:$0xf] }
  0x8f   : > { %1591 = vmatpush.bf16.msrb.mxu2 %v5332_v23  ;;  %v4888_v23 = vld [vmem:[%s5354_s5 + $0xcc] sm:$0xf0] }
  0x90   : > { %1614 = vmatpush.bf16.msrb.mxu3 %v5337_v24  ;;  %v4886_v24 = vld [vmem:[%s5354_s5 + $0xc4] sm:$0xf] }
  0x91   : > { %1546 = vmatpush.bf16.msrb.mxu0 %v5344_v25  ;;  %v4040_v25 = vld [vmem:[%s5354_s5 + $0xd0] sm:$0xf0] }
  0x92   : > { %1569 = vmatpush.bf16.msrb.mxu1 %v5349_v26  ;;  %v4046_v26 = vld [vmem:[%s5354_s5 + $0xc8] sm:$0xf] }
  0x93   : > { %1592 = vmatpush.bf16.msrb.mxu2 %v5361_v27  ;;  %v4889_v27 = vld [vmem:[%s5354_s5 + $0xd4] sm:$0xf0] }
  0x94   : > { %1615 = vmatpush.bf16.msrb.mxu3 %v5366_v28  ;;  %v4887_v28 = vld [vmem:[%s5354_s5 + $0xcc] sm:$0xf] }
  0x95   : > { %1547 = vmatpush.bf16.msrb.mxu0 %v5371_v29  ;;  %v4048_v29 = vld [vmem:[%s5354_s5 + $0xd8] sm:$0xf0] }
  0x96   : > { %1570 = vmatpush.bf16.msrb.mxu1 %v5376_v30  ;;  %v4039_v30 = vor.u32 %v4888_v23, %v4038_v22  ;;  %v4051_v60 = vor.u32 %v4887_v28, %v4048_v29  ;;  %v4081_v22 = vor.u32 %v4896_v13, %v4080_v12  ;;  %v4085_v23 = vor.u32 %v4894_v14, %v4082_v15 }
  0x97   : > { %1593 = vmatpush.bf16.msrb.mxu2 %v5381_v31  ;;  %v4043_v31 = vor.u32 %v4886_v24, %v4040_v25 }
  0x98   : > { %1616 = vmatpush.bf16.msrb.mxu3 %v5386_v32  ;;  %1386 = vmatmul.bf16.vlgmr.msra.gmra.mxu0 %v4023_v18  ;;  %v4047_v32 = vor.u32 %v4889_v27, %v4046_v26  ;;  %v4895_v18 = vld [vmem:[%s5354_s5 + $0x11c] sm:$0xf]  ;;  %v4089_v26 = vor.u32 %v4897_v17, %v4088_v16 }
  0x99   : > { %1409 = vmatmul.bf16.vlgmr.msra.gmra.mxu1 %v4027_v19  ;;  %v4090_v19 = vld [vmem:[%s5354_s5 + $0x128] sm:$0xf0]  ;;  %s6476_s5 = sld [smem:[#allocation12_spill]] }
  0x9a   : > { %1432 = vmatmul.bf16.vlgmr.msra.gmra.mxu2 %v4031_v20  ;;  %v4093_v27 = vor.u32 %v4895_v18, %v4090_v19 }
  0x9b   : > { %1455 = vmatmul.bf16.vlgmr.msra.gmra.mxu3 %v4035_v21 }
  0x9c   : > { %1866 = vmatpush.bf16.msra.mxu3 %v5630_v61 }
  0xa8   : > { %1391 = vmatmul.bf16.gmra.mxu0 %v4039_v30 }
  0xa9   : > { %1414 = vmatmul.bf16.gmra.mxu1 %v4043_v31 }
  0xaa   : > { %1437 = vmatmul.bf16.gmra.mxu2 %v4047_v32 }
  0xab   : > { %1460 = vmatmul.bf16.gmra.mxu3 %v4051_v60 }
  0xb5   : > { %v1068_v37 = vpop.f32.mrf.mxu0 }
  0xb6   : > { %v1091_v38 = vpop.f32.mrf.mxu1 }
  0xb7   : > { %v1092_v41 = vadd.f32 %v1091_v38, %v1068_v37  ;;  %v1524_v38 = vpack.c.b16 %v1512_v0, %v1512_v0 }
  0xb8   : > { %1396 = vmatmul.bf16.gmra.mxu0 %v1362_v35  ;;  %v1515_v35 = vunpack.c.h.b16 %v4061_v62 }
  0xb9   : > { %1419 = vmatmul.bf16.gmra.mxu1 %v1363_v36 }
  0xba   : > { %1442 = vmatmul.bf16.gmra.mxu2 %v1364_v39  ;;  %v1525_v39 = vpack.c.b16 %v1513_v33, %v1513_v33 }
  0xbb   : > { %1465 = vmatmul.bf16.gmra.mxu3 %v1365_v40 }
  0xbd   : > { %v1114_v42 = vpop.f32.mrf.mxu2  ;;  %v5546_v45 = vpop.f32.mrf.mxu0 }
  0xbe   : > { %v1137_v43 = vpop.f32.mrf.mxu3  ;;  %v1115_v44 = vadd.f32 %v1114_v42, %v1092_v41  ;;  %v5548_v46 = vpop.f32.mrf.mxu1  ;;  %v1526_v42 = vpack.c.b16 %v1514_v34, %v1514_v34  ;;  %v5644_v34 = vld [vmem:[%s6444_s7 + $0x30] sm:$0xff] }
  0xc0   : > { %v5550_v47 = vadd.f32 %v1137_v43, %v1115_v44  ;;  %v1527_v43 = vpack.c.b16 %v1515_v35, %v1515_v35  ;;  %v5649_v35 = vld [vmem:[%s6444_s7 + $0x10] sm:$0xff] }
  0xc5   : > { %v5560_v56 = vpop.f32.mrf.mxu2  ;;  %v1073_v4 = vpop.f32.mrf.mxu0 }
  0xc6   : > { %v5562_v57 = vpop.f32.mrf.mxu3  ;;  %v1096_v1 = vpop.f32.mrf.mxu1 }
  0xc7   : > { %v1097_v7 = vadd.f32 %v1096_v1, %v1073_v4 }
  0xc8   : > { %1548 = vmatmul.bf16.vlgmr.msrb.gmra.mxu0 %v4065_v58 }
  0xc9   : > { %1571 = vmatmul.bf16.vlgmr.msrb.gmra.mxu1 %v4069_v3 }
  0xca   : > { %1594 = vmatmul.bf16.vlgmr.msrb.gmra.mxu2 %v4073_v2 }
  0xcb   : > { %1617 = vmatmul.bf16.vlgmr.msrb.gmra.mxu3 %v4077_v59 }
  0xcd   : > { %v1119_v5 = vpop.f32.mrf.mxu2  ;;  %v5564_v11 = vpop.f32.mrf.mxu0 }
  0xce   : > { %v1142_v6 = vpop.f32.mrf.mxu3  ;;  %v1120_v8 = vadd.f32 %v1119_v5, %v1097_v7  ;;  %v5566_v9 = vpop.f32.mrf.mxu1 }
  0xd0   : > { %v5568_v10 = vadd.f32 %v1142_v6, %v1120_v8 }
  0xd5   : > { %v5578_v20 = vpop.f32.mrf.mxu2  ;;  %v1078_v24 = vpop.f32.mrf.mxu0 }
  0xd6   : > { %v5580_v21 = vpop.f32.mrf.mxu3  ;;  %v1101_v25 = vpop.f32.mrf.mxu1 }
  0xd7   : > { %v1102_v28 = vadd.f32 %v1101_v25, %v1078_v24 }
  0xd8   : > { %1553 = vmatmul.bf16.gmra.mxu0 %v4081_v22 }
  0xd9   : > { %1576 = vmatmul.bf16.gmra.mxu1 %v4085_v23 }
  0xda   : > { %1599 = vmatmul.bf16.gmra.mxu2 %v4089_v26 }
  0xdb   : > { %1622 = vmatmul.bf16.gmra.mxu3 %v4093_v27  ;;  %v5614_v27 = vld [vmem:[%s6444_s7 + $0x38] sm:$0xff] }
  0xdc   : > { %1715 = vmatpush.bf16.msra.mxu0 %v5614_v27 }
  0xdd   : > { %v1124_v29 = vpop.f32.mrf.mxu2  ;;  %v1080_v32 = vpop.f32.mrf.mxu0 }
  0xde   : > { %v1147_v30 = vpop.f32.mrf.mxu3  ;;  %v1125_v31 = vadd.f32 %v1124_v29, %v1102_v28  ;;  %v1103_v60 = vpop.f32.mrf.mxu1  ;;  %v5620_v32 = vld [vmem:[%s6444_s7 + $0x18] sm:$0xff] }
  0xdf   : > { %v5625_v60 = vld [vmem:[%s6444_s7 + $0x58] sm:$0xff]  ;;  %1755 = vmatpush.bf16.msra.mxu1 %v5620_v32 }
  0xe0   : > { %v5584_v63 = vadd.f32 %v1147_v30, %v1125_v31  ;;  %1808 = vmatpush.bf16.msra.mxu2 %v5625_v60  ;;  %1716 = vmatpush.bf16.msra.mxu0 %v5644_v34 }
  0xe3   : > { %1756 = vmatpush.bf16.msra.mxu1 %v5649_v35 }
  0xe5   : > { %v1126_v36 = vpop.f32.mrf.mxu2  ;;  %v1225_v40 = vpop.f32.mrf.mxu0 }
  0xe6   : > { %v1149_v37 = vpop.f32.mrf.mxu3  ;;  %v1248_v41 = vpop.f32.mrf.mxu1 }
  0xe7   : > { %v1249_v44 = vadd.f32 %v1248_v41, %v1225_v40  ;;  %v5670_v41 = vld [vmem:[%s6444_s7 + $0x70] sm:$0xff] }
  0xe8   : > { %1558 = vmatmul.bf16.gmra.mxu0 %v1524_v38  ;;  %v5660_v38 = vld [vmem:[%s6444_s7 + $0x50] sm:$0xff]  ;;  %1867 = vmatpush.bf16.msra.mxu3 %v5670_v41 }
  0xe9   : > { %1581 = vmatmul.bf16.gmra.mxu1 %v1525_v39  ;;  %1809 = vmatpush.bf16.msra.mxu2 %v5660_v38 }
  0xea   : > { %1604 = vmatmul.bf16.gmra.mxu2 %v1526_v42  ;;  %v5675_v42 = vld [vmem:[%s6444_s7 + $0x28] sm:$0xff] }
  0xeb   : > { %1627 = vmatmul.bf16.gmra.mxu3 %v1527_v43  ;;  %1717 = vmatpush.bf16.msra.mxu0 %v5675_v42 }
  0xed   : > { %v1271_v48 = vpop.f32.mrf.mxu2  ;;  %v5586_v51 = vpop.f32.mrf.mxu0 }
  0xee   : > { %v1294_v49 = vpop.f32.mrf.mxu3  ;;  %v1272_v50 = vadd.f32 %v1271_v48, %v1249_v44  ;;  %v5588_v52 = vpop.f32.mrf.mxu1 }
  0xf0   : > { %v5590_v53 = vadd.f32 %v1294_v49, %v1272_v50  ;;  %v5690_v50 = vld [vmem:[%s6444_s7 + $0x8] sm:$0xff] }
  0xf1   : > { %1757 = vmatpush.bf16.msra.mxu1 %v5690_v50 }
  0xf5   : > { %v5594_v55 = vpop.f32.mrf.mxu2  ;;  %v1230_v3 = vpop.f32.mrf.mxu0 }
  0xf6   : > { %v5596_v58 = vpop.f32.mrf.mxu3  ;;  %v1253_v4 = vpop.f32.mrf.mxu1 }
  0xf7   : > { %v1254_v1 = vadd.f32 %v1253_v4, %v1230_v3 }
  0xfd   : > { %v1276_v2 = vpop.f32.mrf.mxu2  ;;  %v5598_v5 = vpop.f32.mrf.mxu0 }
  0xfe   : > { %v1299_v59 = vpop.f32.mrf.mxu3  ;;  %v1277_v7 = vadd.f32 %v1276_v2, %v1254_v1  ;;  %v5600_v6 = vpop.f32.mrf.mxu1  ;;  %v5700_v1 = vld [vmem:[%s6444_s7] sm:$0xff] }
  0xff   : > { %1758 = vmatpush.bf16.msra.mxu1 %v5700_v1 }
 0x100   : > { %v5602_v8 = vadd.f32 %v1299_v59, %v1277_v7 }
 0x105   : > { %v5606_v13 = vpop.f32.mrf.mxu2  ;;  %v1235_v15 = vpop.f32.mrf.mxu0 }
 0x106   : > { %v5608_v14 = vpop.f32.mrf.mxu3  ;;  %v1258_v16 = vpop.f32.mrf.mxu1 }
 0x107   : > { %v1259_v17 = vadd.f32 %v1258_v16, %v1235_v15 }
 0x10d   : > { %v1281_v18 = vpop.f32.mrf.mxu2  ;;  %v1237_v23 = vpop.f32.mrf.mxu0 }
 0x10e   : > { %v1304_v19 = vpop.f32.mrf.mxu3  ;;  %v1282_v22 = vadd.f32 %v1281_v18, %v1259_v17  ;;  %v1260_v24 = vpop.f32.mrf.mxu1  ;;  %v5711_v23 = vld [vmem:[%s6444_s7 + $0x20] sm:$0xff] }
 0x10f   : > { %1718 = vmatpush.bf16.msra.mxu0 %v5711_v23 }
 0x110   : > { %v1305_v25 = vadd.f32 %v1304_v19, %v1282_v22  ;;  %v5706_v22 = vld [vmem:[%s6444_s7 + $0x48] sm:$0xff] }
 0x111   : > { %1810 = vmatpush.bf16.msra.mxu2 %v5706_v22 }
 0x112   : > { %v1312_v26 = vmax.f32 %v5584_v63, %v1305_v25 }
 0x115   : > { %v1283_v28 = vpop.f32.mrf.mxu2  ;;  %v1387_v30 = vpop.f32.mrf.mxu0 }
 0x116   : > { %v1306_v29 = vpop.f32.mrf.mxu3  ;;  %v1410_v31 = vpop.f32.mrf.mxu1  ;;  %v5720_v28 = vld [vmem:[%s6444_s7 + $0x68] sm:$0xff] }
 0x117   : > { %v5725_v29 = vld [vmem:[%s6444_s7 + $0x40] sm:$0xff]  ;;  %1868 = vmatpush.bf16.msra.mxu3 %v5720_v28 }
 0x118   : > { %1811 = vmatpush.bf16.msra.mxu2 %v5725_v29 }
 0x11d   : > { %v1433_v62 = vpop.f32.mrf.mxu2  ;;  %v5637_v0 = vpop.f32.mrf.mxu0 }
 0x11e   : > { %v5634_v63 = vpop.f32.mrf.mxu3  ;;  %v5639_v33 = vpop.f32.mrf.mxu1 }
 0x11f   : > { %v1413_v54 = vadd.f32 %v5639_v33, %v5637_v0 }
 0x125   : > { %v5653_v36 = vpop.f32.mrf.mxu2  ;;  %v5662_v39 = vpop.f32.mrf.mxu0 }
 0x126   : > { %v5655_v37 = vpop.f32.mrf.mxu3  ;;  %v5664_v40 = vpop.f32.mrf.mxu1  ;;  %v1436_v33 = vadd.f32 %v5653_v36, %v1413_v54 }
 0x127   : > { %v1416_v36 = vadd.f32 %v5664_v40, %v5662_v39 }
 0x12d   : > { %v5679_v43 = vpop.f32.mrf.mxu2  ;;  %v5683_v48 = vpop.f32.mrf.mxu0 }
 0x12e   : > { %v5681_v44 = vpop.f32.mrf.mxu3  ;;  %v5685_v49 = vpop.f32.mrf.mxu1 }
 0x135   : > { %v5693_v3 = vpop.f32.mrf.mxu2  ;;  %v1397_v2 = vpop.f32.mrf.mxu0 }
 0x136   : > { %v5695_v4 = vpop.f32.mrf.mxu3  ;;  %v1420_v59 = vpop.f32.mrf.mxu1 }
 0x137   : > { %v1421_v7 = vadd.f32 %v1420_v59, %v1397_v2  ;;  %v5730_v2 = vld [vmem:[%s6444_s7 + $0x98] sm:$0xff]  ;;  %v1411_v59 = vadd.f32 %v1410_v31, %v1387_v30  ;;  %v5744_v30 = vld [vmem:[%s6444_s7 + $0x60] sm:$0xff] }
 0x138   : > { %1920 = vmatpush.bf16.msrb.mxu0 %v5730_v2  ;;  %6473 = vst [vmem:[#allocation3_spill] sm:$0xff] %v5744_v30  ;;  %1869 = vmatpush.bf16.msra.mxu3 %v5744_v30 }
 0x139   : > { %v1434_v31 = vadd.f32 %v1433_v62, %v1411_v59  ;;  %v1251_v62 = vadd.f32 %v5588_v52, %v5586_v51  ;;  %v1094_v51 = vadd.f32 %v5548_v46, %v5546_v45  ;;  %v5798_v45 = vld [vmem:[%s6476_s5] ss:$0 sm:$0xff]  ;;  %s6487_s5 = sld [smem:[#allocation10_spill]] }
 0x13b   : > { %v1457_v59 = vadd.f32 %v5634_v63, %v1434_v31  ;;  %v5788_v31 = vld [vmem:[%s6444_s7 + $0xd0] sm:$0xff]  ;;  %v1274_v12 = vadd.f32 %v5594_v55, %v1251_v62  ;;  %v1117_v46 = vadd.f32 %v5560_v56, %v1094_v51  ;;  %v6477_v55 = vmax.f32 %v5550_v47, %v5590_v53  ;;  %v5810_v62 = vld [vmem:[%s6444_s7 + $0x80] sm:$0xff]  ;;  %v5825_v47 = vld [vmem:[%s6444_s7 + $0xc8] sm:$0xff] }
 0x13c   : > { %v5820_v56 = vld [vmem:[%s6444_s7 + $0xa0] sm:$0xff] }
 0x13d   : > { %v1443_v15 = vpop.f32.mrf.mxu2  ;;  %v1399_v18 = vpop.f32.mrf.mxu0  ;;  %v1470_v0 = vmax.f32 %v6477_v55, %v1457_v59  ;;  %v1297_v53 = vadd.f32 %v5596_v58, %v1274_v12  ;;  %v1459_v59 = vadd.f32 %v5655_v37, %v1436_v33  ;;  %v5840_v58 = vld [vmem:[%s6444_s7 + $0xe8] sm:$0xff]  ;;  %v5845_v12 = vld [vmem:[%s6444_s7 + $0xc0] sm:$0xff] }
 0x13e   : > { %v1466_v16 = vpop.f32.mrf.mxu3  ;;  %v1444_v17 = vadd.f32 %v1443_v15, %v1421_v7  ;;  %v1422_v19 = vpop.f32.mrf.mxu1  ;;  %v5749_v18 = vld [vmem:[%s6444_s7 + $0x90] sm:$0xff] }
 0x13f   : > { %v5754_v19 = vld [vmem:[%s6444_s7 + $0xb0] sm:$0xff]  ;;  %1921 = vmatpush.bf16.msrb.mxu0 %v5749_v18  ;;  %s734_s6 = scalar_lea.vmem %s6487_s5, %s6489_s30 }
 0x140   : > { %v1467_v24 = vadd.f32 %v1466_v16, %v1444_v17  ;;  %6474 = vst [vmem:[#allocation4_spill] sm:$0xff] %v5754_v19 }
 0x142   : > { %v5715_v25 = vmax.f32 %v1312_v26, %v1467_v24  ;;  %v5736_v26 = vld [vmem:[%s6444_s7 + $0xb8] sm:$0xff] }
 0x143   : > { %1978 = vmatpush.bf16.msrb.mxu1 %v5736_v26  ;;  %v5759_v24 = vld [vmem:[%s6444_s7 + $0xd8] sm:$0xff] }
 0x144   : > { %6475 = vst [vmem:[#allocation5_spill] sm:$0xff] %v5759_v24  ;;  %2032 = vmatpush.bf16.msrb.mxu2 %v5759_v24 }
 0x145   : > { %v1445_v7 = vpop.f32.mrf.mxu2  ;;  %v1549_v16 = vpop.f32.mrf.mxu0 }
 0x146   : > { %v1468_v15 = vpop.f32.mrf.mxu3  ;;  %v1572_v17 = vpop.f32.mrf.mxu1 }
 0x147   : > { %v1573_v7 = vadd.f32 %v1572_v17, %v1549_v16  ;;  %1979 = vmatpush.bf16.msrb.mxu1 %v5754_v19  ;;  %v5771_v15 = vld [vmem:[%s6444_s7 + $0x88] sm:$0xff]  ;;  %v5776_v16 = vld [vmem:[%s6444_s7 + $0xf8] sm:$0xff] }
 0x148   : > { %v5781_v17 = vld [vmem:[%s6444_s7 + $0xa8] sm:$0xff]  ;;  %1922 = vmatpush.bf16.msrb.mxu0 %v5771_v15  ;;  %2090 = vmatpush.bf16.msrb.mxu3 %v5776_v16 }
 0x149   : > { %2033 = vmatpush.bf16.msrb.mxu2 %v5788_v31 }
 0x14b   : > { %1980 = vmatpush.bf16.msrb.mxu1 %v5781_v17 }
 0x14c   : > { %1923 = vmatpush.bf16.msrb.mxu0 %v5810_v62 }
 0x14d   : > { %v1595_v52 = vpop.f32.mrf.mxu2  ;;  %v1551_v19 = vpop.f32.mrf.mxu0  ;;  %2034 = vmatpush.bf16.msrb.mxu2 %v5825_v47 }
 0x14e   : > { %v1618_v63 = vpop.f32.mrf.mxu3  ;;  %v1596_v30 = vadd.f32 %v1595_v52, %v1573_v7  ;;  %v1574_v24 = vpop.f32.mrf.mxu1  ;;  %v5815_v52 = vld [vmem:[%s6444_s7 + $0xf0] sm:$0xff] }
 0x14f   : > { %2091 = vmatpush.bf16.msrb.mxu3 %v5815_v52  ;;  %1981 = vmatpush.bf16.msrb.mxu1 %v5820_v56 }
 0x150   : > { %v1619_v7 = vadd.f32 %v1618_v63, %v1596_v30  ;;  %v1140_v30 = vadd.f32 %v5562_v57, %v1117_v46  ;;  %v1575_v63 = vadd.f32 %v1574_v24, %v1551_v19  ;;  %v1439_v19 = vadd.f32 %v5679_v43, %v1416_v36 }
 0x151   : > { %2035 = vmatpush.bf16.msrb.mxu2 %v5845_v12 }
 0x152   : > { %v1632_v54 = vmax.f32 %v1470_v0, %v1619_v7  ;;  %v1309_v55 = vmax.f32 %v1140_v30, %v1297_v53  ;;  %v1462_v43 = vadd.f32 %v5681_v44, %v1439_v19 }
 0x153   : > { %2092 = vmatpush.bf16.msrb.mxu3 %v5840_v58 }
 0x154   : > { %v1641_v51 = vadd.f32 %v5798_v45, %v1632_v54  ;;  %v1471_v24 = vmax.f32 %v1309_v55, %v1459_v59  ;;  %v5853_v54 = vld [vmem:[%s6444_s7 + $0xe0] sm:$0xff] }
 0x155   : > { %v1597_v39 = vpop.f32.mrf.mxu2  ;;  %v1554_v46 = vpop.f32.mrf.mxu0 }
 0x156   : > { %v1620_v40 = vpop.f32.mrf.mxu3  ;;  %v1646_v0 = vmax.f32 %v1641_v51, 0.0  ;;  %v1598_v57 = vadd.f32 %v1597_v39, %v1575_v63  ;;  %v1577_v37 = vpop.f32.mrf.mxu1  ;;  %v1256_v63 = vadd.f32 %v5600_v6, %v5598_v5 }
 0x157   : > { %v1578_v51 = vadd.f32 %v1577_v37, %v1554_v46  ;;  %2093 = vmatpush.bf16.msrb.mxu3 %v5853_v54 }
 0x158   : > { %v1651_v33 = vpack.c.bf16 %v1646_v0, %v1646_v0  ;;  %v1621_v7 = vadd.f32 %v1620_v40, %v1598_v57  ;;  %v1279_v44 = vadd.f32 %v5606_v13, %v1256_v63 }
 0x15a   : > { %v1674_v53 = vunpack.c.l.b16 %v1651_v33  ;;  %v1633_v30 = vmax.f32 %v1471_v24, %v1621_v7  ;;  %4135 = vmatmul.msk.bf16.vlgmr.msra.gmra.mxu1 %vm1707_vm0, %v1651_v33  ;;  %v1099_v24 = vadd.f32 %v5566_v9, %v5564_v11  ;;  %v1418_v33 = vadd.f32 %v5685_v49, %v5683_v48  ;;  %v5876_v11 = vld [vmem:[%s6444_s7 + $0x118] sm:$0xff] }
 0x15b   : > { %2162 = vmatpush.bf16.msra.mxu1 %v5614_v27  ;;  %v6478_v27 = vmax.f32 %v5568_v10, %v5602_v8  ;;  %v1302_v13 = vadd.f32 %v5608_v14, %v1279_v44  ;;  %v5888_v14 = vld [vmem:[%s6444_s7 + $0x110] sm:$0xff]  ;;  %v5897_v44 = vld [vmem:[%s6444_s7 + $0x108] sm:$0xff] }
 0x15c   : > { %v1675_v36 = vpack.c.b16 %v1674_v53, %v1674_v53  ;;  %v1642_v59 = vadd.f32 %v5798_v45, %v1633_v30 }
 0x15d   : > { %v1600_v39 = vpop.f32.mrf.mxu2  ;;  %v1556_v46 = vpop.f32.mrf.mxu0  ;;  %v1472_v19 = vmax.f32 %v6478_v27, %v1462_v43 }
 0x15e   : > { %v1623_v40 = vpop.f32.mrf.mxu3  ;;  %v1679_v55 = vshll.u32 %v1675_v36, 16  ;;  %v1647_v0 = vmax.f32 %v1642_v59, 0.0  ;;  %v1601_v57 = vadd.f32 %v1600_v39, %v1578_v51  ;;  %v1579_v37 = vpop.f32.mrf.mxu1  ;;  %v1677_v5 = vshrl.u32 %v1675_v36, 16 }
 0x15f   : > { %2163 = vmatpush.bf16.msra.mxu1 %v5644_v34  ;;  %v1122_v51 = vadd.f32 %v5578_v20, %v1099_v24  ;;  %v1441_v59 = vadd.f32 %v5693_v3, %v1418_v33  ;;  %v1580_v43 = vadd.f32 %v1579_v37, %v1556_v46 }
 0x160   : > { %v1681_v6 = vrot.slane %v1679_v55, 1  ;;  %v1652_v7 = vpack.c.bf16 %v1647_v0, %v1647_v0  ;;  %v1624_v30 = vadd.f32 %v1623_v40, %v1601_v57 }
 0x161   : > { %v1145_v20 = vadd.f32 %v5580_v21, %v1122_v51  ;;  %v1464_v3 = vadd.f32 %v5695_v4, %v1441_v59 }
 0x162   : > { %v1682_v9 = vor.u32 %v1681_v6, %v1677_v5  ;;  %v1774_v10 = vunpack.c.l.b16 %v1652_v7  ;;  %v1634_v8 = vmax.f32 %v1472_v19, %v1624_v30 }
 0x163   : > { %2164 = vmatpush.bf16.msra.mxu1 %v5675_v42  ;;  %v1311_v0 = vmax.f32 %v1145_v20, %v1302_v13 }
 0x164   : > { %v1775_v34 = vpack.c.b16 %v1774_v10, %v1674_v53  ;;  %v1827_v48 = vpack.c.b16 %v1774_v10, %v1774_v10  ;;  %v1643_v49 = vadd.f32 %v5798_v45, %v1634_v8  ;;  %4118 = vmatmul.msk.bf16.vlgmr.msra.gmra.mxu0 %vm1707_vm0, %v1682_v9 }
 0x165   : > { %v1602_v36 = vpop.f32.mrf.mxu2  ;;  %2141 = vmatpush.bf16.msra.mxu0 %v5876_v11  ;;  %v1559_v40 = vpop.f32.mrf.mxu0  ;;  %v1473_v37 = vmax.f32 %v1311_v0, %v1464_v3 }
 0x166   : > { %v1625_v63 = vpop.f32.mrf.mxu3  ;;  %v1776_v42 = vrot.slane %v1775_v34, 1  ;;  %v1831_v53 = vshll.u32 %v1827_v48, 16  ;;  %v1648_v39 = vmax.f32 %v1643_v49, 0.0  ;;  %v1582_v55 = vpop.f32.mrf.mxu1  ;;  %v1603_v57 = vadd.f32 %v1602_v36, %v1580_v43 }
 0x167   : > { %2165 = vmatpush.bf16.msra.mxu1 %v5711_v23  ;;  %v1829_v21 = vshrl.u32 %v1827_v48, 16  ;;  %v1583_v8 = vadd.f32 %v1582_v55, %v1559_v40  ;;  %v6481_v40 = vld [vmem:[#allocation3_spill] sm:$0xff]  ;;  %v4945_v55 = vld [vmem:[%s6446_s9 + $0x58] sm:$0xff] }
 0x168   : > { %v1833_v4 = vrot.slane %v1831_v53, 1  ;;  %v1653_v46 = vpack.c.bf16 %v1648_v39, %v1648_v39  ;;  %4160 = vmatmul.msk.bf16.vlgmr.msra.gmra.mxu2 %vm1707_vm0, %v1776_v42  ;;  %v1626_v24 = vadd.f32 %v1625_v63, %v1603_v57  ;;  %v4935_v57 = vld [vmem:[%s6446_s9 + $0x8] sm:$0xff] }
 0x169   : > { %2142 = vmatpush.bf16.msra.mxu0 %v5888_v14  ;;  %2175 = vmatpush.bf16.msra.mxu2 %v5620_v32  ;;  %v5909_v32 = vld [vmem:[%s6444_s7 + $0x100] sm:$0xff] }
 0x16a   : > { %v5899_v27 = vor.u32 %v1833_v4, %v1829_v21  ;;  %v1886_v19 = vunpack.c.l.b16 %v1653_v46  ;;  %v1635_v23 = vmax.f32 %v1473_v37, %v1626_v24  ;;  %v4949_v21 = vld [vmem:[%s6446_s9 + $0x78] sm:$0xff]  ;;  %v4940_v4 = vld [vmem:[%s6446_s9 + $0x30] sm:$0xff]  ;;  %v4934_v37 = vld [vmem:[%s6446_s9] sm:$0xff] }
 0x16b   : > { %v4944_v46 = vld [vmem:[%s6446_s9 + $0x50] sm:$0xff] }
 0x16c   : > { %v1887_v33 = vpack.c.b16 %v1886_v19, %v1774_v10  ;;  %4185 = vmatmul.msk.bf16.vlgmr.msra.gmra.mxu3 %vm1707_vm0, %v5899_v27  ;;  %v1644_v5 = vadd.f32 %v5798_v45, %v1635_v23  ;;  %v4948_v24 = vld [vmem:[%s6446_s9 + $0x70] sm:$0xff]  ;;  %v4947_v23 = vld [vmem:[%s6446_s9 + $0x68] sm:$0xff] }
 0x16d   : > { %v1605_v6 = vpop.f32.mrf.mxu2  ;;  %2143 = vmatpush.bf16.msra.mxu0 %v5897_v44  ;;  %2188 = vmatpush.bf16.msra.mxu3 %v5625_v60  ;;  %v1561_v59 = vpop.f32.mrf.mxu0 }
 0x16e   : > { %v1628_v7 = vpop.f32.mrf.mxu3  ;;  %v1940_v30 = vshrl.u32 %v1887_v33, 16  ;;  %v1943_v51 = vshll.u32 %v1887_v33, 16  ;;  %2176 = vmatpush.bf16.msra.mxu2 %v5649_v35  ;;  %v1584_v9 = vpop.f32.mrf.mxu1  ;;  %v1649_v10 = vmax.f32 %v1644_v5, 0.0  ;;  %v1888_v60 = vrot.slane %v1887_v33, 1  ;;  %v4957_v33 = vld [vmem:[%s6446_s9 + $0xb8] sm:$0xff] }
 0x16f   : > { %v1606_v3 = vadd.f32 %v1605_v6, %v1583_v8  ;;  %v4938_v6 = vld [vmem:[%s6446_s9 + $0x20] sm:$0xff]  ;;  %v4953_v59 = vld [vmem:[%s6446_s9 + $0x98] sm:$0xff] }
 0x170   : > { %v1942_v13 = vrot.slane %v1940_v30, 1  ;;  %v1945_v34 = vrot.slane %v1943_v51, 2  ;;  %v1654_v48 = vpack.c.bf16 %v1649_v10, %v1649_v10  ;;  %v4956_v30 = vld [vmem:[%s6446_s9 + $0xb0] sm:$0xff]  ;;  %v4961_v9 = vld [vmem:[%s6446_s9 + $0xd8] sm:$0xff] }
 0x171   : > { %2144 = vmatpush.bf16.msra.mxu0 %v5909_v32  ;;  %2189 = vmatpush.bf16.msra.mxu3 %v5660_v38  ;;  %v1629_v42 = vadd.f32 %v1628_v7, %v1606_v3  ;;  %v4942_v7 = vld [vmem:[%s6446_s9 + $0x40] sm:$0xff] }
 0x172   : > { %v1946_v49 = vor.u32 %v1945_v34, %v1942_v13  ;;  %2177 = vmatpush.bf16.msra.mxu2 %v5690_v50  ;;  %v1998_v20 = vunpack.c.l.b16 %v1654_v48  ;;  %v4955_v34 = vld [vmem:[%s6446_s9 + $0xa8] sm:$0xff] }
 0x174   : > { %4210 = vmatmul.msk.bf16.vlgmr.msrb.gmra.mxu0 %vm1707_vm0, %v1888_v60  ;;  %4235 = vmatmul.msk.bf16.vlgmr.msrb.gmra.mxu1 %vm1707_vm0, %v1946_v49  ;;  %v1999_v35 = vpack.c.b16 %v1998_v20, %v1886_v19 }
 0x175   : > { %2190 = vmatpush.bf16.msra.mxu3 %v5706_v22  ;;  %2202 = vmatpush.bf16.msrb.mxu0 %v5630_v61  ;;  %v1607_v43 = vpop.f32.mrf.mxu2  ;;  %v1636_v61 = vmax.f32 %v5715_v25, %v1629_v42 }
 0x176   : > { %v1630_v36 = vpop.f32.mrf.mxu3  ;;  %2178 = vmatpush.bf16.msra.mxu2 %v5700_v1  ;;  %2216 = vmatpush.bf16.msrb.mxu1 %v5730_v2  ;;  %v2000_v38 = vrot.slane %v1999_v35, 1  ;;  %v2052_v63 = vshrl.u32 %v1999_v35, 16  ;;  %v2055_v50 = vshll.u32 %v1999_v35, 16  ;;  %v6479_v1 = vld [vmem:[#allocation5_spill] sm:$0xff] }
 0x177   : > { %v1645_v2 = vadd.f32 %v5798_v45, %v1636_v61  ;;  %v4951_v36 = vld [vmem:[%s6446_s9 + $0x88] sm:$0xff]  ;;  %v4958_v61 = vld [vmem:[%s6446_s9 + $0xc0] sm:$0xff] }
 0x178   : > { %v2054_v53 = vrot.slane %v2052_v63, 1  ;;  %v2057_v39 = vrot.slane %v2055_v50, 2  ;;  %4260 = vmatmul.msk.bf16.vlgmr.msrb.gmra.mxu2 %vm1707_vm0, %v2000_v38 }
 0x179   : > { %2191 = vmatpush.bf16.msra.mxu3 %v5725_v29  ;;  %2203 = vmatpush.bf16.msrb.mxu0 %v5670_v41  ;;  %v6480_v29 = vld [vmem:[#allocation4_spill] sm:$0xff]  ;;  %v2109_v41 = vrot.slane %v1999_v35, 2  ;;  %v1650_v25 = vmax.f32 %v1645_v2, 0.0  ;;  %v4954_v35 = vld [vmem:[%s6446_s9 + $0xa0] sm:$0xff] }
 0x17a   : > { %2217 = vmatpush.bf16.msrb.mxu1 %v5749_v18  ;;  %v2058_v22 = vor.u32 %v2057_v39, %v2054_v53  ;;  %2230 = vmatpush.bf16.msrb.mxu2 %v5736_v26  ;;  %v4950_v39 = vld [vmem:[%s6446_s9 + $0x80] sm:$0xff] }
 0x17c   : > { %4285 = vmatmul.msk.bf16.vlgmr.msrb.gmra.mxu3 %vm1707_vm0, %v2058_v22 }
 0x17d   : > { %2204 = vmatpush.bf16.msrb.mxu0 %v5720_v28  ;;  %2258 = vmatpush.bf16.msrb.mxu3 %v6479_v1  ;;  %v1655_v28 = vpack.c.bf16 %v1650_v25, %v1650_v25 }
 0x17e   : > { %2218 = vmatpush.bf16.msrb.mxu1 %v5771_v15  ;;  %2231 = vmatpush.bf16.msrb.mxu2 %v6480_v29 }
 0x17f   : > { %v2241_v26 = vunpack.c.l.b16 %v1655_v28  ;;  %v6052_v28 = vld [vmem:[%s6445_s8] ss:$0 sm:$0xff] }
 0x181   : > { %2205 = vmatpush.bf16.msrb.mxu0 %v6481_v40  ;;  %2259 = vmatpush.bf16.msrb.mxu3 %v5788_v31  ;;  %v2242_v18 = vpack.c.b16 %v2241_v26, %v1998_v20  ;;  %v4960_v20 = vld [vmem:[%s6446_s9 + $0xd0] sm:$0xff] }
 0x182   : > { %2219 = vmatpush.bf16.msrb.mxu1 %v5810_v62  ;;  %2232 = vmatpush.bf16.msrb.mxu2 %v5781_v17 }
 0x183   : > { %v2244_v15 = vshrl.u32 %v2242_v18, 16 }
 0x184   : > { %4310 = vmatmul.msk.bf16.vlgmr.msra.gmra.mxu0 %vm1707_vm0, %v2109_v41  ;;  %4311 = vmatmul.msk.bf16.vlgmr.msra.gmra.mxu1 %vm1707_vm0, %v1888_v60 }
 0x185   : > { %2276 = vmatpush.bf16.msra.mxu0 %v5776_v16  ;;  %2260 = vmatpush.bf16.msrb.mxu3 %v5825_v47  ;;  %v2247_v16 = vshll.u32 %v2242_v18, 16  ;;  %v2246_v17 = vrot.slane %v2244_v15, 1  ;;  %v2286_v62 = vrot.slane %v2244_v15, 2 }
 0x186   : > { %2296 = vmatpush.bf16.msra.mxu1 %v5876_v11  ;;  %2233 = vmatpush.bf16.msrb.mxu2 %v5820_v56  ;;  %v2268_v56 = vrot.slane %v2242_v18, 2 }
 0x187   : > { %v2249_v31 = vrot.slane %v2247_v16, 2 }
 0x188   : > { %4312 = vmatmul.msk.bf16.vlgmr.msra.gmra.mxu2 %vm1707_vm0, %v5899_v27  ;;  %v4943_v27 = vld [vmem:[%s6446_s9 + $0x48] sm:$0xff] }
 0x189   : > { %2277 = vmatpush.bf16.msra.mxu0 %v5815_v52  ;;  %2261 = vmatpush.bf16.msrb.mxu3 %v5845_v12  ;;  %v2250_v45 = vor.u32 %v2249_v31, %v2246_v17  ;;  %v2287_v52 = vrot.slane %v2247_v16, 3  ;;  %v4937_v12 = vld [vmem:[%s6446_s9 + $0x18] sm:$0xff]  ;;  %v4963_v16 = vld [vmem:[%s6446_s9 + $0xe8] sm:$0xff] }
 0x18a   : > { %2297 = vmatpush.bf16.msra.mxu1 %v5888_v14  ;;  %v4941_v14 = vld [vmem:[%s6446_s9 + $0x38] sm:$0xff] }
 0x18b   : > { %v2288_v47 = vor.u32 %v2287_v52, %v2286_v62  ;;  %2363 = vmatpush.bf16.msra.mxu2 %v4941_v14  ;;  %v4973_v62 = vld [vmem:[%s6446_s9 + $0x138] sm:$0xff]  ;;  %v4962_v52 = vld [vmem:[%s6446_s9 + $0xe0] sm:$0xff] }
 0x18c   : > { %4313 = vmatmul.msk.bf16.vlgmr.msra.gmra.mxu3 %vm1707_vm0, %v1946_v49  ;;  %v4952_v49 = vld [vmem:[%s6446_s9 + $0x90] sm:$0xff] }
 0x18d   : > { %2278 = vmatpush.bf16.msra.mxu0 %v5840_v58  ;;  %2403 = vmatpush.bf16.msra.mxu3 %v4937_v12 }
 0x18e   : > { %2298 = vmatpush.bf16.msra.mxu1 %v5897_v44  ;;  %v4939_v44 = vld [vmem:[%s6446_s9 + $0x28] sm:$0xff] }
 0x18f   : > { %2364 = vmatpush.bf16.msra.mxu2 %v4940_v4 }
 0x191   : > { %2279 = vmatpush.bf16.msra.mxu0 %v5853_v54  ;;  %v4936_v54 = vld [vmem:[%s6446_s9 + $0x10] sm:$0xff] }
 0x192   : > { %2299 = vmatpush.bf16.msra.mxu1 %v5909_v32  ;;  %2404 = vmatpush.bf16.msra.mxu3 %v4936_v54  ;;  %v4946_v32 = vld [vmem:[%s6446_s9 + $0x60] sm:$0xff] }
 0x193   : > { %2365 = vmatpush.bf16.msra.mxu2 %v4939_v44 }
 0x194   : > { %4314 = vmatmul.msk.bf16.vlgmr.msrb.gmra.mxu0 %vm1707_vm0, %v2000_v38  ;;  %4315 = vmatmul.msk.bf16.vlgmr.msrb.gmra.mxu1 %vm1707_vm0, %v2058_v22  ;;  %v4959_v38 = vld [vmem:[%s6446_s9 + $0xc8] sm:$0xff]  ;;  %v4965_v22 = vld [vmem:[%s6446_s9 + $0xf8] sm:$0xff] }
 0x195   : > { %2453 = vmatpush.bf16.msrb.mxu0 %v4945_v55  ;;  %v4969_v55 = vld [vmem:[%s6446_s9 + $0x118] sm:$0xff] }
 0x196   : > { %2405 = vmatpush.bf16.msra.mxu3 %v4935_v57  ;;  %2504 = vmatpush.bf16.msrb.mxu1 %v4949_v21 }
 0x197   : > { %2366 = vmatpush.bf16.msra.mxu2 %v4938_v6  ;;  %v4970_v6 = vld [vmem:[%s6446_s9 + $0x120] sm:$0xff] }
 0x198   : > { %4316 = vmatmul.msk.bf16.vlgmr.msrb.gmra.mxu2 %vm1707_vm0, %v2109_v41  ;;  %v4964_v41 = vld [vmem:[%s6446_s9 + $0xf0] sm:$0xff] }
 0x199   : > { %2454 = vmatpush.bf16.msrb.mxu0 %v4944_v46  ;;  %v4971_v46 = vld [vmem:[%s6446_s9 + $0x128] sm:$0xff] }
 0x19a   : > { %2406 = vmatpush.bf16.msra.mxu3 %v4934_v37  ;;  %2505 = vmatpush.bf16.msrb.mxu1 %v4948_v24  ;;  %v4981_v37 = vld [vmem:[%s6446_s9 + $0x178] sm:$0xff] }
 0x19b   : > { %2555 = vmatpush.bf16.msrb.mxu2 %v4953_v59 }
 0x19c   : > { %4317 = vmatmul.msk.bf16.vlgmr.msrb.gmra.mxu3 %vm1707_vm0, %v2250_v45 }
 0x19d   : > { %2455 = vmatpush.bf16.msrb.mxu0 %v4943_v27 }
 0x19e   : > { %2506 = vmatpush.bf16.msrb.mxu1 %v4947_v23  ;;  %2606 = vmatpush.bf16.msrb.mxu3 %v4957_v33  ;;  %v4976_v23 = vld [vmem:[%s6446_s9 + $0x150] sm:$0xff] }
 0x19f   : > { %2556 = vmatpush.bf16.msrb.mxu2 %v4952_v49  ;;  %v4974_v49 = vld [vmem:[%s6446_s9 + $0x140] sm:$0xff] }
 0x1a1   : > { %2456 = vmatpush.bf16.msrb.mxu0 %v4942_v7  ;;  %v4980_v7 = vld [vmem:[%s6446_s9 + $0x170] sm:$0xff] }
 0x1a2   : > { %2507 = vmatpush.bf16.msrb.mxu1 %v4946_v32  ;;  %2607 = vmatpush.bf16.msrb.mxu3 %v4956_v30  ;;  %v4967_v30 = vld [vmem:[%s6446_s9 + $0x108] sm:$0xff] }
 0x1a3   : > { %2557 = vmatpush.bf16.msrb.mxu2 %v4951_v36  ;;  %v4985_v36 = vld [vmem:[%s6446_s9 + $0x198] sm:$0xff] }
 0x1a4   : > { %4318 = vmatmul.msk.bf16.vlgmr.msra.gmra.mxu0 %vm1707_vm0, %v2268_v56  ;;  %4319 = vmatmul.msk.bf16.vlgmr.msra.gmra.mxu1 %vm1707_vm0, %v2288_v47 }
 0x1a5   : > { %2657 = vmatpush.bf16.msra.mxu0 %v4961_v9  ;;  %v4989_v9 = vld [vmem:[%s6446_s9 + $0x1b8] sm:$0xff] }
 0x1a6   : > { %2608 = vmatpush.bf16.msrb.mxu3 %v4955_v34  ;;  %2707 = vmatpush.bf16.msra.mxu1 %v4965_v22 }
 0x1a7   : > { %2558 = vmatpush.bf16.msrb.mxu2 %v4950_v39 }
 0x1a9   : > { %2658 = vmatpush.bf16.msra.mxu0 %v4960_v20 }
 0x1aa   : > { %2609 = vmatpush.bf16.msrb.mxu3 %v4954_v35  ;;  %2708 = vmatpush.bf16.msra.mxu1 %v4964_v41  ;;  %v4978_v35 = vld [vmem:[%s6446_s9 + $0x160] sm:$0xff] }
 0x1ab   : > { %v4986_v41 = vld [vmem:[%s6446_s9 + $0x1a0] sm:$0xff] }
 0x1ad   : > { %2659 = vmatpush.bf16.msra.mxu0 %v4959_v38 }
 0x1ae   : > { %2709 = vmatpush.bf16.msra.mxu1 %v4963_v16 }
 0x1b1   : > { %2660 = vmatpush.bf16.msra.mxu0 %v4958_v61 }
 0x1b2   : > { %2710 = vmatpush.bf16.msra.mxu1 %v4962_v52 }
 0x1d7   : > { %v1760_v58 = vpop.f32.mrf.mxu1 }
 0x1df   : > { %v1762_v11 = vpop.f32.mrf.mxu1 }
 0x1e0   : > { %v4972_v11 = vld [vmem:[%s6446_s9 + $0x130] sm:$0xff] }
 0x1e1   : > { %v1720_v0 = vpop.f32.mrf.mxu0 }
 0x1e2   : > { %v1761_v10 = vadd.f32 %v1760_v58, %v1720_v0  ;;  %v4977_v0 = vld [vmem:[%s6446_s9 + $0x158] sm:$0xff] }
 0x1e9   : > { %v1722_v19 = vpop.f32.mrf.mxu0 }
 0x1ea   : > { %v4968_v19 = vld [vmem:[%s6446_s9 + $0x110] sm:$0xff] }
 0x1eb   : > { %v1813_v5 = vpop.f32.mrf.mxu2 }
 0x1ec   : > { %v1817_v48 = vadd.f32 %v1813_v5, %v1761_v10  ;;  %v4979_v10 = vld [vmem:[%s6446_s9 + $0x168] sm:$0xff] }
 0x1ef   : > { %v1871_v51 = vpop.f32.mrf.mxu3 }
 0x1f0   : > { %v1875_v3 = vadd.f32 %v1871_v51, %v1817_v48  ;;  %v4975_v51 = vld [vmem:[%s6446_s9 + $0x148] sm:$0xff] }
 0x1f1   : > { %v1925_v8 = vpop.f32.mrf.mxu0  ;;  %v1983_v13 = vpop.f32.mrf.mxu1 }
 0x1f2   : > { %v1929_v63 = vadd.f32 %v1925_v8, %v1875_v3  ;;  %v4988_v3 = vld [vmem:[%s6446_s9 + $0x1b0] sm:$0xff] }
 0x1f3   : > { %v1815_v60 = vpop.f32.mrf.mxu2 }
 0x1f4   : > { %v1987_v1 = vadd.f32 %v1983_v13, %v1929_v63  ;;  %v4966_v60 = vld [vmem:[%s6446_s9 + $0x100] sm:$0xff] }
 0x1f7   : > { %v1873_v43 = vpop.f32.mrf.mxu3 }
 0x1f9   : > { %v1927_v50 = vpop.f32.mrf.mxu0  ;;  %v1985_v42 = vpop.f32.mrf.mxu1 }
 0x1fb   : > { %v2037_v53 = vpop.f32.mrf.mxu2 }
 0x1fc   : > { %v2041_v2 = vadd.f32 %v2037_v53, %v1987_v1  ;;  %v4987_v53 = vld [vmem:[%s6446_s9 + $0x1a8] sm:$0xff]  ;;  %v4984_v1 = vld [vmem:[%s6446_s9 + $0x190] sm:$0xff] }
 0x1ff   : > { %v2095_v29 = vpop.f32.mrf.mxu3 }
 0x200   : > { %v2099_v40 = vadd.f32 %v2095_v29, %v2041_v2 }
 0x201   : > { %v2146_v25 = vpop.f32.mrf.mxu0  ;;  %v2167_v26 = vpop.f32.mrf.mxu1 }
 0x202   : > { %v2150_v18 = vadd.f32 %v2146_v25, %v2099_v40  ;;  %v4983_v25 = vld [vmem:[%s6446_s9 + $0x188] sm:$0xff] }
 0x203   : > { %v2039_v15 = vpop.f32.mrf.mxu2 }
 0x204   : > { %v2155_v17 = vadd.f32 %v6052_v28, %v2150_v18 }
 0x206   : > { %v2156_v31 = vmax.f32 %v2155_v17, 0.0 }
 0x207   : > { %v2097_v45 = vpop.f32.mrf.mxu3 }
 0x208   : > { %v2157_v56 = vpack.c.bf16 %v2156_v31, %v2156_v31  ;;  %v4982_v31 = vld [vmem:[%s6446_s9 + $0x180] sm:$0xff] }
 0x209   : > { %v2148_v47 = vpop.f32.mrf.mxu0  ;;  %v2169_v58 = vpop.f32.mrf.mxu1 }
 0x20a   : > { %v2327_v12 = vunpack.c.l.b16 %v2157_v56  ;;  %4361 = vmatmul.msk.bf16.vlgmr.msra.gmra.mxu3 %vm1707_vm0, %v2157_v56 }
 0x20b   : > { %v2180_v54 = vpop.f32.mrf.mxu2  ;;  %2814 = vmatpush.bf16.msra.mxu3 %v4973_v62 }
 0x20c   : > { %v6068_v14 = vpack.c.b16 %v2327_v12, %v2327_v12  ;;  %v2181_v33 = vadd.f32 %v2180_v54, %v2167_v26 }
 0x20e   : > { %v2330_v57 = vshrl.u32 %v6068_v14, 16  ;;  %v2421_v21 = vrot.slane %v6068_v14, 1  ;;  %v2523_v38 = vrot.slane %v6068_v14, 2  ;;  %v2625_v63 = vrot.slane %v6068_v14, 3 }
 0x20f   : > { %v2193_v4 = vpop.f32.mrf.mxu3  ;;  %2815 = vmatpush.bf16.msra.mxu3 %v4972_v11 }
 0x210   : > { %4344 = vmatmul.msk.bf16.vlgmr.msra.gmra.mxu2 %vm1707_vm0, %v2330_v57  ;;  %4386 = vmatmul.msk.bf16.vlgmr.msrb.gmra.mxu0 %vm1707_vm0, %v2421_v21  ;;  %v2472_v27 = vrot.slane %v2330_v57, 1  ;;  %v2197_v32 = vadd.f32 %v2193_v4, %v2181_v33  ;;  %v2574_v48 = vrot.slane %v2330_v57, 2 }
 0x211   : > { %v2207_v24 = vpop.f32.mrf.mxu0  ;;  %v2221_v44 = vpop.f32.mrf.mxu1  ;;  %2763 = vmatpush.bf16.msra.mxu2 %v4969_v55  ;;  %2865 = vmatpush.bf16.msrb.mxu0 %v4977_v0 }
 0x212   : > { %4411 = vmatmul.msk.bf16.vlgmr.msrb.gmra.mxu1 %vm1707_vm0, %v2472_v27  ;;  %v2211_v8 = vadd.f32 %v2207_v24, %v2197_v32 }
 0x213   : > { %v2182_v5 = vpop.f32.mrf.mxu2  ;;  %2816 = vmatpush.bf16.msra.mxu3 %v4971_v46  ;;  %2916 = vmatpush.bf16.msrb.mxu1 %v4981_v37 }
 0x214   : > { %v2225_v43 = vadd.f32 %v2221_v44, %v2211_v8 }
 0x215   : > { %2764 = vmatpush.bf16.msra.mxu2 %v4968_v19  ;;  %2866 = vmatpush.bf16.msrb.mxu0 %v4976_v23  ;;  %v4993_v23 = vld [vmem:[%s6448_s11 + $0x18] sm:$0xff] }
 0x217   : > { %v2195_v59 = vpop.f32.mrf.mxu3  ;;  %2817 = vmatpush.bf16.msra.mxu3 %v4970_v6  ;;  %2917 = vmatpush.bf16.msrb.mxu1 %v4980_v7  ;;  %v4992_v7 = vld [vmem:[%s6448_s11 + $0x10] sm:$0xff] }
 0x218   : > { %v4991_v59 = vld [vmem:[%s6448_s11 + $0x8] sm:$0xff] }
 0x219   : > { %v2209_v13 = vpop.f32.mrf.mxu0  ;;  %v2223_v34 = vpop.f32.mrf.mxu1  ;;  %2765 = vmatpush.bf16.msra.mxu2 %v4967_v30  ;;  %2867 = vmatpush.bf16.msrb.mxu0 %v4975_v51 }
 0x21a   : > { %4461 = vmatmul.msk.bf16.vlgmr.msrb.gmra.mxu3 %vm1707_vm0, %v2574_v48 }
 0x21b   : > { %v2235_v20 = vpop.f32.mrf.mxu2  ;;  %3018 = vmatpush.bf16.msrb.mxu3 %v4989_v9  ;;  %2918 = vmatpush.bf16.msrb.mxu1 %v4979_v10  ;;  %v4990_v10 = vld [vmem:[%s6448_s11] sm:$0xff] }
 0x21c   : > { %v2239_v50 = vadd.f32 %v2235_v20, %v2225_v43 }
 0x21d   : > { %2766 = vmatpush.bf16.msra.mxu2 %v4966_v60  ;;  %2868 = vmatpush.bf16.msrb.mxu0 %v4974_v49  ;;  %v3098_v49 = vld [vmem:[%s6451_s14 + $0x20] sm:$0x77] }
 0x21f   : > { %v2263_v42 = vpop.f32.mrf.mxu3  ;;  %3019 = vmatpush.bf16.msrb.mxu3 %v4988_v3  ;;  %2919 = vmatpush.bf16.msrb.mxu1 %v4978_v35  ;;  %v3115_v3 = vunpack.c.h.b16 %v3098_v49 }
 0x220   : > { %v2267_v39 = vadd.f32 %v2263_v42, %v2239_v50  ;;  %4436 = vmatmul.msk.bf16.vlgmr.msrb.gmra.mxu2 %vm1707_vm0, %v2523_v38  ;;  %4486 = vmatmul.msk.bf16.vlgmr.msra.gmra.mxu0 %vm1707_vm0, %v2625_v63 }
 0x221   : > { %v2281_v61 = vpop.f32.mrf.mxu0  ;;  %v2301_v22 = vpop.f32.mrf.mxu1  ;;  %2967 = vmatpush.bf16.msrb.mxu2 %v4985_v36  ;;  %3072 = vmatpush.bf16.msra.mxu0 %v4993_v23  ;;  %v3123_v43 = vpack.c.b16 %v3115_v3, %v3115_v3 }
 0x222   : > { %v2285_v2 = vadd.f32 %v2281_v61, %v2267_v39 }
 0x223   : > { %v2237_v29 = vpop.f32.mrf.mxu2  ;;  %3020 = vmatpush.bf16.msrb.mxu3 %v4987_v53  ;;  %v3139_v63 = vsel %vm3134_vm1, %v3123_v43, 0 }
 0x224   : > { %v2305_v40 = vadd.f32 %v2301_v22, %v2285_v2 }
 0x225   : > { %2968 = vmatpush.bf16.msrb.mxu2 %v4984_v1  ;;  %3073 = vmatpush.bf16.msra.mxu0 %v4992_v7 }
 0x226   : > { %v2306_v26 = vadd.f32 %v6052_v28, %v2305_v40 }
 0x227   : > { %v2265_v18 = vpop.f32.mrf.mxu3  ;;  %3021 = vmatpush.bf16.msrb.mxu3 %v4986_v41  ;;  %v3028_v41 = vld [vmem:[%s6447_s10] sm:$0x1] }
 0x228   : > { %v2307_v15 = vmax.f32 %v2306_v26, 0.0 }
 0x229   : > { %v2283_v16 = vpop.f32.mrf.mxu0  ;;  %v2303_v17 = vpop.f32.mrf.mxu1  ;;  %2969 = vmatpush.bf16.msrb.mxu2 %v4983_v25  ;;  %3074 = vmatpush.bf16.msra.mxu0 %v4991_v59  ;;  %v4701_v59 = vld [vmem:[%s6450_s13] sm:$0xf] }
 0x22a   : > { %v2308_v45 = vpack.c.bf16 %v2307_v15, %v2307_v15  ;;  %v3099_v17 = vld [vmem:[%s6451_s14 + $0x28] sm:$0x77] }
 0x22c   : > { %v2727_v62 = vunpack.c.l.b16 %v2308_v45  ;;  %4511 = vmatmul.msk.bf16.vlgmr.msra.gmra.mxu1 %vm1707_vm0, %v2308_v45  ;;  %v3116_v45 = vunpack.c.l.b16 %v3099_v17 }
 0x22d   : > { %2970 = vmatpush.bf16.msrb.mxu2 %v4982_v31  ;;  %3075 = vmatpush.bf16.msra.mxu0 %v4990_v10  ;;  %v3114_v31 = vunpack.c.l.b16 %v3098_v49  ;;  %v4709_v10 = vld [vmem:[%s6450_s13 + $0x8] sm:$0xf] }
 0x22e   : > { %v2728_v52 = vpack.c.b16 %v2727_v62, %v2727_v62  ;;  %v3117_v62 = vunpack.c.h.b16 %v3099_v17 }
 0x230   : > { %v2730_v56 = vshrl.u32 %v2728_v52, 16  ;;  %v2782_v47 = vrot.slane %v2728_v52, 1  ;;  %v2884_v58 = vrot.slane %v2728_v52, 2  ;;  %v2986_v12 = vrot.slane %v2728_v52, 3 }
 0x231   : > { %v3122_v52 = vpack.c.b16 %v3114_v31, %v3114_v31  ;;  %v4723_v31 = vld [vmem:[%s6452_s15 + $0x10] sm:$0xf0] }
 0x232   : > { %4536 = vmatmul.msk.bf16.vlgmr.msra.gmra.mxu2 %vm1707_vm0, %v2730_v56  ;;  %4561 = vmatmul.msk.bf16.vlgmr.msra.gmra.mxu3 %vm1707_vm0, %v2782_v47  ;;  %v2833_v28 = vrot.slane %v2730_v56, 1  ;;  %v2935_v54 = vrot.slane %v2730_v56, 2  ;;  %v3124_v56 = vpack.c.b16 %v3116_v45, %v3116_v45  ;;  %v3125_v47 = vpack.c.b16 %v3117_v62, %v3117_v62  ;;  %v4721_v45 = vld [vmem:[%s6452_s15] sm:$0xf]  ;;  %v5004_v62 = vld [vmem:[%s6452_s15 + $0xc] sm:$0xf0] }
 0x233   : > { %3166 = vmatpush.bf16.msra.mxu2 %v3139_v63 }
 0x234   : > { %4586 = vmatmul.msk.bf16.vlgmr.msrb.gmra.mxu0 %vm1707_vm0, %v2833_v28  ;;  %v3136_v28 = vsel %vm3134_vm1, %v3122_v52, 0 }
 0x235   : > { %3153 = vmatpush.bf16.msra.mxu1 %v3136_v28  ;;  %v5005_v28 = vld [vmem:[%s6452_s15 + $0x14] sm:$0xf0] }
 0x23c   : > { %4611 = vmatmul.msk.bf16.vlgmr.msrb.gmra.mxu1 %vm1707_vm0, %v2884_v58  ;;  %v3142_v58 = vsel %vm3134_vm1, %v3124_v56, 0 }
 0x23d   : > { %3179 = vmatpush.bf16.msra.mxu3 %v3142_v58 }
 0x242   : > { %4636 = vmatmul.msk.bf16.vlgmr.msrb.gmra.mxu2 %vm1707_vm0, %v2935_v54  ;;  %4661 = vmatmul.msk.bf16.vlgmr.msrb.gmra.mxu3 %vm1707_vm0, %v2986_v12  ;;  %v3145_v12 = vsel %vm3134_vm1, %v3125_v47, 0  ;;  %v4998_v54 = vld [vmem:[%s6451_s14 + $0x4] sm:$0xf]  ;;  %v4729_v47 = vld [vmem:[%s6452_s15 + $0x8] sm:$0xf] }
 0x243   : > { %3192 = vmatpush.bf16.msrb.mxu0 %v3145_v12 }
 0x28d   : > { %v2408_v11 = vpop.f32.mrf.mxu3  ;;  %v2458_v14 = vpop.f32.mrf.mxu0 }
 0x28f   : > { %v2509_v55 = vpop.f32.mrf.mxu1 }
 0x293   : > { %v2368_v0 = vpop.f32.mrf.mxu2 }
 0x294   : > { %v2409_v44 = vadd.f32 %v2408_v11, %v2368_v0  ;;  %v4683_v11 = vld [vmem:[%s6451_s14 + $0x10] sm:$0xf0]  ;;  %v5000_v0 = vld [vmem:[%s6451_s14 + $0xc] sm:$0xf0] }
 0x295   : > { %v2410_v57 = vpop.f32.mrf.mxu3  ;;  %v2460_v21 = vpop.f32.mrf.mxu0 }
 0x296   : > { %v2462_v19 = vadd.f32 %v2458_v14, %v2409_v44  ;;  %v4681_v14 = vld [vmem:[%s6451_s14] sm:$0xf]  ;;  %v4689_v57 = vld [vmem:[%s6451_s14 + $0x8] sm:$0xf]  ;;  %v5001_v21 = vld [vmem:[%s6451_s14 + $0x14] sm:$0xf0] }
 0x297   : > { %v2511_v4 = vpop.f32.mrf.mxu1 }
 0x298   : > { %v2513_v6 = vadd.f32 %v2509_v55, %v2462_v19  ;;  %v4686_v55 = vor.u32 %v4998_v54, %v4683_v11  ;;  %v4682_v4 = vor.u32 %v5000_v0, %v4681_v14  ;;  %v5003_v54 = vld [vmem:[%s6452_s15 + $0xc] sm:$0xf]  ;;  %v4731_v11 = vld [vmem:[%s6452_s15 + $0x18] sm:$0xf0]  ;;  %v4730_v0 = vor.u32 %v5005_v28, %v4729_v47 }
 0x29a   : > { %3167 = vmatpush.bf16.msra.mxu2 %v4686_v55  ;;  %3154 = vmatpush.bf16.msra.mxu1 %v4682_v4  ;;  %v4722_v55 = vor.u32 %v5004_v62, %v4721_v45  ;;  %v5018_v4 = vld [vmem:[%s6453_s16 + $0x64] sm:$0xf] }
 0x29b   : > { %v2370_v46 = vpop.f32.mrf.mxu2 }
 0x29c   : > { %v4690_v46 = vor.u32 %v5001_v21, %v4689_v57  ;;  %v4734_v57 = vor.u32 %v5003_v54, %v4731_v11  ;;  %v3082_v21 = vld [vmem:[%s725_s2] sm:$0x1]  ;;  %s728_s2 = scalar_lea.vmem %s6483_s26, %s6489_s30 }
 0x29d   : > { %v2611_v37 = vpop.f32.mrf.mxu3  ;;  %v2662_v24 = vpop.f32.mrf.mxu0 }
 0x29e   : > { %3180 = vmatpush.bf16.msra.mxu3 %v4690_v46  ;;  %v4791_v46 = vld [vmem:[%s6453_s16 + $0x70] sm:$0xf0] }
 0x2a3   : > { %v2560_v27 = vpop.f32.mrf.mxu2 }
 0x2a4   : > { %v2564_v30 = vadd.f32 %v2560_v27, %v2513_v6  ;;  %v3091_v27 = vld [vmem:[%s6450_s13 + $0x20] sm:$0x77]  ;;  %v4703_v6 = vld [vmem:[%s6450_s13 + $0x10] sm:$0xf0] }
 0x2a5   : > { %v2613_v33 = vpop.f32.mrf.mxu3  ;;  %v2664_v5 = vpop.f32.mrf.mxu0  ;;  %v3214_v19 = vunpack.c.h.b16 %v3091_v27  ;;  %v3213_v23 = vunpack.c.l.b16 %v3091_v27  ;;  %v3086_v27 = vpack.c.bf16 %v3082_v21, %v3082_v21 }
 0x2a6   : > { %v2615_v9 = vadd.f32 %v2611_v37, %v2564_v30  ;;  %v4999_v37 = vld [vmem:[%s6451_s14 + $0xc] sm:$0xf]  ;;  %v4994_v5 = vld [vmem:[%s6450_s13 + $0x4] sm:$0xf] }
 0x2a7   : > { %v3092_v33 = vld [vmem:[%s6450_s13 + $0x28] sm:$0x77]  ;;  %v3222_v30 = vpack.c.b16 %v3214_v19, %v3214_v19  ;;  %v4706_v3 = vor.u32 %v4994_v5, %v4703_v6  ;;  %v5021_v19 = vld [vmem:[%s6453_s16 + $0x74] sm:$0xf0]  ;;  %v4794_v5 = vor.u32 %v5018_v4, %v4791_v46 }
 0x2a8   : > { %v2666_v34 = vadd.f32 %v2662_v24, %v2615_v9  ;;  %v4691_v24 = vld [vmem:[%s6451_s14 + $0x18] sm:$0xf0]  ;;  %v3215_v7 = vunpack.c.l.b16 %v3092_v33  ;;  %v4996_v9 = vld [vmem:[%s6450_s13 + $0xc] sm:$0xf0] }
 0x2a9   : > { %v2712_v32 = vpop.f32.mrf.mxu1  ;;  %v4694_v44 = vor.u32 %v4999_v37, %v4691_v24  ;;  %v3236_v49 = vsel %vm3134_vm1, %v3222_v30, 0  ;;  %v4789_v37 = vld [vmem:[%s6453_s16 + $0x60] sm:$0xf]  ;;  %v5020_v24 = vld [vmem:[%s6453_s16 + $0x6c] sm:$0xf0] }
 0x2aa   : > { %v2716_v20 = vadd.f32 %v2712_v32, %v2666_v34  ;;  %v3216_v32 = vunpack.c.h.b16 %v3092_v33  ;;  %v4997_v34 = vld [vmem:[%s6450_s13 + $0x14] sm:$0xf0]  ;;  %3263 = vmatpush.bf16.msrb.mxu2 %v3236_v49  ;;  %v4799_v33 = vld [vmem:[%s6453_s16 + $0x78] sm:$0xf0]  ;;  %v4790_v6 = vor.u32 %v5020_v24, %v4789_v37  ;;  %v5010_v49 = vld [vmem:[%s6453_s16 + $0x24] sm:$0xf] }
 0x2ab   : > { %v2562_v51 = vpop.f32.mrf.mxu2  ;;  %3193 = vmatpush.bf16.msrb.mxu0 %v4694_v44  ;;  %v4797_v44 = vld [vmem:[%s6453_s16 + $0x68] sm:$0xf] }
 0x2ac   : > { %v3221_v51 = vpack.c.b16 %v3213_v23, %v3213_v23  ;;  %v5019_v23 = vld [vmem:[%s6453_s16 + $0x6c] sm:$0xf]  ;;  %v4798_v30 = vor.u32 %v5021_v19, %v4797_v44 }
 0x2ae   : > { %3264 = vmatpush.bf16.msrb.mxu2 %v4706_v3 }
 0x2b1   : > { %v2714_v8 = vpop.f32.mrf.mxu1  ;;  %v2870_v13 = vpop.f32.mrf.mxu0 }
 0x2b2   : > { %v3223_v8 = vpack.c.b16 %v3215_v7, %v3215_v7  ;;  %v5014_v7 = vld [vmem:[%s6453_s16 + $0x44] sm:$0xf] }
 0x2b5   : > { %v2768_v48 = vpop.f32.mrf.mxu2  ;;  %v2819_v60 = vpop.f32.mrf.mxu3 }
 0x2b6   : > { %v2772_v35 = vadd.f32 %v2768_v48, %v2716_v20  ;;  %v4995_v48 = vld [vmem:[%s6450_s13 + $0xc] sm:$0xf]  ;;  %v3233_v20 = vsel %vm3134_vm1, %v3221_v51, 0  ;;  %v4802_v51 = vor.u32 %v5019_v23, %v4799_v33 }
 0x2b7   : > { %3250 = vmatpush.bf16.msrb.mxu1 %v3233_v20  ;;  %v4759_v20 = vld [vmem:[%s6453_s16 + $0x30] sm:$0xf0] }
 0x2b8   : > { %v2823_v50 = vadd.f32 %v2819_v60, %v2772_v35  ;;  %v4711_v60 = vld [vmem:[%s6450_s13 + $0x18] sm:$0xf0]  ;;  %v3239_v35 = vsel %vm3134_vm1, %v3223_v8, 0  ;;  %v5017_v8 = vld [vmem:[%s6453_s16 + $0x54] sm:$0xf0] }
 0x2b9   : > { %v2872_v36 = vpop.f32.mrf.mxu0  ;;  %v2921_v38 = vpop.f32.mrf.mxu1  ;;  %3276 = vmatpush.bf16.msrb.mxu3 %v3239_v35  ;;  %v4714_v63 = vor.u32 %v4995_v48, %v4711_v60 }
 0x2ba   : > { %v2874_v39 = vadd.f32 %v2870_v13, %v2823_v50  ;;  %v3224_v13 = vpack.c.b16 %v3216_v32, %v3216_v32  ;;  %v4702_v36 = vor.u32 %v4996_v9, %v4701_v59  ;;  %v3040_v50 = vld [vmem:[%s6449_s12] sm:$0x1]  ;;  %v4775_v32 = vld [vmem:[%s6453_s16 + $0x50] sm:$0xf0]  ;;  %v5016_v9 = vld [vmem:[%s6453_s16 + $0x4c] sm:$0xf0] }
 0x2bb   : > { %v4773_v59 = vld [vmem:[%s6453_s16 + $0x40] sm:$0xf]  ;;  %v4778_v48 = vor.u32 %v5014_v7, %v4775_v32 }
 0x2bc   : > { %v2925_v22 = vadd.f32 %v2921_v38, %v2874_v39  ;;  %v3242_v43 = vsel %vm3134_vm1, %v3224_v13, 0  ;;  %v4710_v38 = vor.u32 %v4997_v34, %v4709_v10  ;;  %3251 = vmatpush.bf16.msrb.mxu1 %v4702_v36  ;;  %v4781_v10 = vld [vmem:[%s6453_s16 + $0x48] sm:$0xf]  ;;  %v5015_v13 = vld [vmem:[%s6453_s16 + $0x4c] sm:$0xf]  ;;  %v4774_v60 = vor.u32 %v5016_v9, %v4773_v59 }
 0x2bd   : > { %v2770_v42 = vpop.f32.mrf.mxu2  ;;  %v2821_v53 = vpop.f32.mrf.mxu3  ;;  %v4783_v34 = vld [vmem:[%s6453_s16 + $0x58] sm:$0xf0]  ;;  %v4782_v3 = vor.u32 %v5017_v8, %v4781_v10  ;;  %v5012_v36 = vld [vmem:[%s6453_s16 + $0x2c] sm:$0xf0]  ;;  %v3562_v7 = vld [vmem:[%s6454_s17] sm:$0xf] }
 0x2be   : > { %3277 = vmatpush.bf16.msrb.mxu3 %v4710_v38  ;;  %v3301_v53 = vld [vmem:[%s6452_s15 + $0x20] sm:$0x33]  ;;  %v4786_v35 = vor.u32 %v5015_v13, %v4783_v34  ;;  %v4765_v38 = vld [vmem:[%s6453_s16 + $0x28] sm:$0xf]  ;;  %v3564_v10 = vperm.slane %v3562_v7, 0  ;;  %v3567_v34 = vperm.slane %v3562_v7, 3 }
 0x2c1   : > { %v2923_v61 = vpop.f32.mrf.mxu1 }
 0x2c2   : > { %v3302_v61 = vld [vmem:[%s6452_s15 + $0x28] sm:$0x33] }
 0x2c5   : > { %v2972_v1 = vpop.f32.mrf.mxu2  ;;  %v3023_v2 = vpop.f32.mrf.mxu3 }
 0x2c6   : > { %v2976_v29 = vadd.f32 %v2972_v1, %v2925_v22  ;;  %v3318_v22 = vunpack.c.h.b16 %v3301_v53  ;;  %v3317_v1 = vunpack.c.l.b16 %v3301_v53  ;;  %v4762_v53 = vor.u32 %v5010_v49, %v4759_v20 }
 0x2c8   : > { %v3027_v40 = vadd.f32 %v3023_v2, %v2976_v29  ;;  %v3319_v2 = vunpack.c.l.b16 %v3302_v61  ;;  %v3320_v29 = vunpack.c.h.b16 %v3302_v61  ;;  %v5006_v61 = vld [vmem:[%s6453_s16 + $0x4] sm:$0xf] }
 0x2ca   : > { %v3029_v25 = vadd.f32 %v3028_v41, %v3027_v40  ;;  %v3326_v41 = vpack.c.b16 %v3318_v22, %v3318_v22  ;;  %v3325_v40 = vpack.c.b16 %v3317_v1, %v3317_v1  ;;  %v4743_v22 = vld [vmem:[%s6453_s16 + $0x10] sm:$0xf0] }
 0x2cc   : > { %5038 = vtanh.f32 %v3029_v25  ;;  %v3342_v52 = vsel %vm3337_vm2, %v3326_v41, 0  ;;  %v3339_v56 = vsel %vm3337_vm2, %v3325_v40, 0  ;;  %v5008_v41 = vld [vmem:[%s6453_s16 + $0xc] sm:$0xf0]  ;;  %v4749_v40 = vld [vmem:[%s6453_s16 + $0x8] sm:$0xf] }
 0x2cd   : > { %v2974_v26 = vpop.f32.mrf.mxu2  ;;  %v3025_v18 = vpop.f32.mrf.mxu3 }
 0x2ce   : > { %v3327_v26 = vpack.c.b16 %v3319_v2, %v3319_v2  ;;  %v3328_v18 = vpack.c.b16 %v3320_v29, %v3320_v29  ;;  %v4741_v29 = vld [vmem:[%s6453_s16] sm:$0xf] }
 0x2d0   : > { %v3345_v58 = vsel %vm3337_vm2, %v3327_v26, 0  ;;  %v3348_v12 = vsel %vm3337_vm2, %v3328_v18, 0  ;;  %v5007_v26 = vld [vmem:[%s6453_s16 + $0xc] sm:$0xf]  ;;  %v4751_v18 = vld [vmem:[%s6453_s16 + $0x18] sm:$0xf0] }
 0x2d1   : > { %v4754_v45 = vor.u32 %v5007_v26, %v4751_v18  ;;  %vm3700_vm2 = vcmask 130048  }
 0x2d2   : > { %v5039_v15 = vpop.eup %5038 }
 0x2d3   : > { %v3031_v16 = vpack.c.bf16 %v5039_v15, %v5039_v15 }
 0x2d5   : > { %4678 = vmatmul.msk.bf16.vlgmr.msra.gmra.mxu0 %vm1707_vm0, %v3031_v16  ;;  %v5002_v16 = vld [vmem:[%s6452_s15 + $0x4] sm:$0xf] }
 0x2d6   : > { %3289 = vmatpush.bf16.msra.mxu0 %v3242_v43  ;;  %v4726_v14 = vor.u32 %v5002_v16, %v4723_v31  ;;  %v4757_v43 = vld [vmem:[%s6453_s16 + $0x20] sm:$0xf]  ;;  %v4746_v16 = vor.u32 %v5006_v61, %v4743_v22 }
 0x2da   : > { %3290 = vmatpush.bf16.msra.mxu0 %v4714_v63  ;;  %v5013_v63 = vld [vmem:[%s6453_s16 + $0x34] sm:$0xf0] }
 0x2db   : > { %v4766_v1 = vor.u32 %v5013_v63, %v4765_v38  ;;  %v3565_v38 = vperm.slane %v3562_v7, 1 }
 0x352   : > { %v3077_v42 = vpop.f32.mrf.mxu0 }
 0x353   : > { %v3078_v39 = vadd.f32 %v3077_v42, %v3040_v50  ;;  %v5011_v50 = vld [vmem:[%s6453_s16 + $0x2c] sm:$0xf]  ;;  %v4767_v42 = vld [vmem:[%s6453_s16 + $0x38] sm:$0xf0] }
 0x354   : > { %v4770_v2 = vor.u32 %v5011_v50, %v4767_v42  ;;  %v5025_v42 = vld [vmem:[%s6455_s18 + $0x18] sm:$0xff] }
 0x355   : > { %5040 = vtanh.f32 %v3078_v39  ;;  %v4758_v39 = vor.u32 %v5012_v36, %v4757_v43 }
 0x35a   : > { %v3079_v25 = vpop.f32.mrf.mxu0 }
 0x35b   : > { %v5041_v15 = vpop.eup %5040  ;;  %v5009_v25 = vld [vmem:[%s6453_s16 + $0x14] sm:$0xf0] }
 0x35c   : > { %v3093_v17 = vpack.c.bf16 %v5041_v15, %v5041_v15  ;;  %v3083_v15 = vld [vmem:[%s728_s2] sm:$0x1]  ;;  %v4750_v31 = vor.u32 %v5009_v25, %v4749_v40 }
 0x35d   : > { %v3296_v62 = vpack.c.bf16 %v3083_v15, %v3083_v15 }
 0x35e   : > { %4695 = vmatmul.msk.bf16.vlgmr.msra.gmra.mxu1 %vm3130_vm3, %v3093_v17  ;;  %4696 = vmatmul.msk.bf16.vlgmr.msra.gmra.mxu2 %vm3130_vm3, %v3093_v17 }
 0x35f   : > { %4697 = vmatmul.msk.bf16.vlgmr.msra.gmra.mxu3 %vm3130_vm3, %v3093_v17  ;;  %4698 = vmatmul.msk.bf16.vlgmr.msrb.gmra.mxu0 %vm3130_vm3, %v3093_v17  ;;  %v4742_v17 = vor.u32 %v5008_v41, %v4741_v29  ;;  %v5023_v41 = vld [vmem:[%s6455_s18 + $0x8] sm:$0xff] }
 0x360   : > { %3369 = vmatpush.bf16.msra.mxu2 %v3342_v52  ;;  %3356 = vmatpush.bf16.msra.mxu1 %v3339_v56  ;;  %v3084_v52 = vld [vmem:[%s731_s21] sm:$0x1] }
 0x361   : > { %3382 = vmatpush.bf16.msra.mxu3 %v3345_v58  ;;  %3395 = vmatpush.bf16.msrb.mxu0 %v3348_v12  ;;  %v3406_v56 = vpack.c.bf16 %v3084_v52, %v3084_v52 }
 0x364   : > { %3370 = vmatpush.bf16.msra.mxu2 %v4726_v14  ;;  %3357 = vmatpush.bf16.msra.mxu1 %v4722_v55 }
 0x365   : > { %3383 = vmatpush.bf16.msra.mxu3 %v4730_v0  ;;  %3396 = vmatpush.bf16.msrb.mxu0 %v4734_v57 }
 0x36e   : > { %4715 = vmatmul.msk.bf16.vlgmr.msrb.gmra.mxu1 %vm3130_vm3, %v3086_v27  ;;  %4716 = vmatmul.msk.bf16.vlgmr.msrb.gmra.mxu2 %vm3130_vm3, %v3086_v27 }
 0x36f   : > { %4717 = vmatmul.msk.bf16.vlgmr.msrb.gmra.mxu3 %vm3130_vm3, %v3086_v27  ;;  %4718 = vmatmul.msk.bf16.vlgmr.msra.gmra.mxu0 %vm3130_vm3, %v3086_v27  ;;  %vm3717_vm3 = vcmask 0  }
 0x370   : > { %3523 = vmatpush.bf16.msrb.mxu2 %v4794_v5  ;;  %3510 = vmatpush.bf16.msrb.mxu1 %v4790_v6 }
 0x371   : > { %3536 = vmatpush.bf16.msrb.mxu3 %v4798_v30  ;;  %3549 = vmatpush.bf16.msra.mxu0 %v4802_v51 }
 0x374   : > { %3524 = vmatpush.bf16.msrb.mxu2 %v4778_v48  ;;  %3511 = vmatpush.bf16.msrb.mxu1 %v4774_v60 }
 0x375   : > { %3537 = vmatpush.bf16.msrb.mxu3 %v4782_v3  ;;  %3550 = vmatpush.bf16.msra.mxu0 %v4786_v35 }
 0x378   : > { %3525 = vmatpush.bf16.msrb.mxu2 %v4762_v53  ;;  %3512 = vmatpush.bf16.msrb.mxu1 %v4758_v39 }
 0x379   : > { %3538 = vmatpush.bf16.msrb.mxu3 %v4766_v1  ;;  %3551 = vmatpush.bf16.msra.mxu0 %v4770_v2  ;;  %v5024_v2 = vld [vmem:[%s6455_s18 + $0x10] sm:$0xff] }
 0x37c   : > { %3526 = vmatpush.bf16.msrb.mxu2 %v4746_v16  ;;  %3513 = vmatpush.bf16.msrb.mxu1 %v4742_v17  ;;  %v5022_v16 = vld [vmem:[%s6455_s18] sm:$0xff] }
 0x37d   : > { %3539 = vmatpush.bf16.msrb.mxu3 %v4750_v31  ;;  %3552 = vmatpush.bf16.msra.mxu0 %v4754_v45 }
 0x37e   : > { %4735 = vmatmul.msk.bf16.vlgmr.msra.gmra.mxu1 %vm3333_vm4, %v3296_v62  ;;  %4736 = vmatmul.msk.bf16.vlgmr.msra.gmra.mxu2 %vm3333_vm4, %v3296_v62 }
 0x37f   : > { %4737 = vmatmul.msk.bf16.vlgmr.msra.gmra.mxu3 %vm3333_vm4, %v3296_v62  ;;  %4738 = vmatmul.msk.bf16.vlgmr.msrb.gmra.mxu0 %vm3333_vm4, %v3296_v62 }
 0x380   : > { %3680 = vmatpush.bf16.msra.mxu1 %v5025_v42 }
 0x384   : > { %3681 = vmatpush.bf16.msra.mxu1 %v5024_v2 }
 0x388   : > { %3682 = vmatpush.bf16.msra.mxu1 %v5023_v41 }
 0x38c   : > { %3683 = vmatpush.bf16.msra.mxu1 %v5022_v16 }
 0x38e   : > { %4803 = vmatmul.msk.bf16.vlgmr.msrb.gmra.mxu1 %vm1707_vm0, %v3406_v56  ;;  %4804 = vmatmul.msk.bf16.vlgmr.msrb.gmra.mxu2 %vm1707_vm0, %v3406_v56 }
 0x38f   : > { %4805 = vmatmul.msk.bf16.vlgmr.msrb.gmra.mxu3 %vm1707_vm0, %v3406_v56  ;;  %4806 = vmatmul.msk.bf16.vlgmr.msra.gmra.mxu0 %vm1707_vm0, %v3406_v56 }
 0x3db   : > { %v3156_v47 = vpop.f32.mrf.mxu1 }
 0x3dc   : > { %v3195_v28 = vpop.f32.mrf.mxu0 }
 0x3e1   : > { %v3169_v58 = vpop.f32.mrf.mxu2 }
 0x3e2   : > { %v6395_v12 = vpop.f32.mrf.mxu3 }
 0x3e3   : > { %v3158_v54 = vpop.f32.mrf.mxu1 }
 0x3e4   : > { %v3197_v11 = vpop.f32.mrf.mxu0  ;;  %v3566_v54 = vperm.slane %v3562_v7, 2 }
 0x3e9   : > { %v3171_v14 = vpop.f32.mrf.mxu2 }
 0x3ea   : > { %v3184_v55 = vpop.f32.mrf.mxu3 }
 0x3eb   : > { %v3253_v0 = vpop.f32.mrf.mxu1 }
 0x3ec   : > { %v3292_v57 = vpop.f32.mrf.mxu0  ;;  %v3254_v32 = vadd.f32 %v3253_v0, %v3156_v47  ;;  %v5026_v47 = vld [vmem:[%s6457_s20] sm:$0xff] }
 0x3ed   : > { %v3293_v30 = vadd.f32 %v3292_v57, %v3195_v28  ;;  %3711 = vmatpush.bf16.msra.mxu2 %v5026_v47 }
 0x3f1   : > { %v3266_v21 = vpop.f32.mrf.mxu2 }
 0x3f2   : > { %v3279_v4 = vpop.f32.mrf.mxu3  ;;  %v3267_v20 = vadd.f32 %v3266_v21, %v3169_v58 }
 0x3f3   : > { %v3255_v46 = vpop.f32.mrf.mxu1  ;;  %v3280_v45 = vadd.f32 %v3279_v4, %v6395_v12 }
 0x3f4   : > { %v3294_v37 = vpop.f32.mrf.mxu0 }
 0x3f9   : > { %v3268_v24 = vpop.f32.mrf.mxu2 }
 0x3fa   : > { %v3281_v44 = vpop.f32.mrf.mxu3 }
 0x3fb   : > { %v3359_v27 = vpop.f32.mrf.mxu1 }
 0x3fc   : > { %v3398_v19 = vpop.f32.mrf.mxu0  ;;  %v3402_v59 = vadd.f32 %v3359_v27, %v3254_v32 }
 0x3fd   : > { %v3405_v8 = vadd.f32 %v3398_v19, %v3293_v30  ;;  %v3085_v30 = vld [vmem:[%s734_s6] sm:$0x1] }
 0x401   : > { %v3372_v23 = vpop.f32.mrf.mxu2 }
 0x402   : > { %v3385_v33 = vpop.f32.mrf.mxu3  ;;  %v3403_v43 = vadd.f32 %v3372_v23, %v3267_v20 }
 0x403   : > { %v3361_v5 = vpop.f32.mrf.mxu1  ;;  %v3404_v56 = vadd.f32 %v3385_v33, %v3280_v45 }
 0x404   : > { %v3400_v6 = vpop.f32.mrf.mxu0 }
 0x409   : > { %v3374_v51 = vpop.f32.mrf.mxu2 }
 0x40a   : > { %v3387_v9 = vpop.f32.mrf.mxu3 }
 0x40b   : > { %v3515_v13 = vpop.f32.mrf.mxu1 }
 0x40c   : > { %v3558_v48 = vadd.f32 %v3515_v13, %v3402_v59  ;;  %v3554_v60 = vpop.f32.mrf.mxu0 }
 0x40d   : > { %v3561_v49 = vadd.f32 %v3554_v60, %v3405_v8 }
 0x40e   : > { %v3572_v3 = vadd.f32 %v3564_v10, %v3558_v48 }
 0x40f   : > { %v3575_v35 = vadd.f32 %v3567_v34, %v3561_v49 }
 0x410   : > { %v4807_v36 = vmul.f32 -1.442695, %v3572_v3 }
 0x411   : > { %v4809_v63 = vmul.f32 -1.442695, %v3575_v35  ;;  %v3528_v50 = vpop.f32.mrf.mxu2 }
 0x412   : > { %5042 = vpow2.f32 %v4807_v36  ;;  %v3559_v53 = vadd.f32 %v3528_v50, %v3403_v43  ;;  %v3541_v39 = vpop.f32.mrf.mxu3  ;;  %v3648_v50 = vld [vmem:[%s6456_s19] sm:$0x1] }
 0x413   : > { %5044 = vpow2.f32 %v4809_v63  ;;  %v3517_v61 = vpop.f32.mrf.mxu1  ;;  %v3560_v58 = vadd.f32 %v3541_v39, %v3404_v56 }
 0x414   : > { %v3573_v22 = vadd.f32 %v3565_v38, %v3559_v53  ;;  %v3556_v1 = vpop.f32.mrf.mxu0 }
 0x415   : > { %v3574_v12 = vadd.f32 %v3566_v54, %v3560_v58  ;;  %v3693_v1 = vld [vmem:[#allocation2] sm:$0x1] }
 0x416   : > { %v4808_v29 = vmul.f32 -1.442695, %v3573_v22 }
 0x418   : > { %v5043_v40 = vpop.eup %5042  ;;  %5046 = vpow2.f32 %v4808_v29 }
 0x419   : > { %v5045_v25 = vpop.eup %5044  ;;  %v3579_v26 = vadd.f32 1.0, %v5043_v40  ;;  %v3530_v18 = vpop.f32.mrf.mxu2 }
 0x41a   : > { %v3543_v15 = vpop.f32.mrf.mxu3  ;;  %v3618_v17 = vadd.f32 1.0, %v5045_v25 }
 0x41b   : > { %5048 = vrcp.f32 %v3579_v26  ;;  %v3591_v46 = vand.u32 2147483648, %v3579_v26  ;;  %vm3585_vm6 = vweird.f32 %v3579_v26  ;;  %v3589_v24 = vand.u32 2147483647, %v3579_v26 }
 0x41c   : > { %5050 = vrcp.f32 %v3618_v17  ;;  %v3630_v49 = vand.u32 2147483648, %v3618_v17  ;;  %vm3624_vm14 = vweird.f32 %v3618_v17  ;;  %v3628_v20 = vand.u32 2147483647, %v3618_v17 }
 0x41d   : > { %v3592_v6 = vor.u32 1.1754944e-38, %v3591_v46  ;;  %vm3590_vm10 = vcmp.eq.f32.partialorder %v3589_v24, 8.507059e+37 }
 0x41e   : > { %v5047_v31 = vpop.eup %5046  ;;  %v3631_v35 = vor.u32 1.1754944e-38, %v3630_v49  ;;  %vm3629_vm1 = vcmp.eq.f32.partialorder %v3628_v20, 8.507059e+37 }
 0x41f   : > { %v3598_v62 = vadd.f32 1.0, %v5047_v31 }
 0x421   : > { %v5049_v52 = vpop.eup %5048  ;;  %5052 = vrcp.f32 %v3598_v62  ;;  %v3610_v44 = vand.u32 2147483648, %v3598_v62  ;;  %v3608_v33 = vand.u32 2147483647, %v3598_v62  ;;  %vm3604_vm9 = vweird.f32 %v3598_v62 }
 0x422   : > { %v3581_v28 = vmul.f32 %v5049_v52, %v3579_v26  ;;  %v5051_v14 = vpop.eup %5050  ;;  %vm3586_vm5 = vweird.f32 %v5049_v52  ;;  %5054 = vtanh.f32 %v3574_v12 }
 0x423   : > { %v3620_v4 = vmul.f32 %v5051_v14, %v3618_v17  ;;  %vm6416_vm7 = vmor %vm3585_vm6, %vm3586_vm5  ;;  %v3611_v32 = vor.u32 1.1754944e-38, %v3610_v44  ;;  %vm3609_vm12 = vcmp.eq.f32.partialorder %v3608_v33, 8.507059e+37  ;;  %vm3625_vm13 = vweird.f32 %v5051_v14 }
 0x424   : > { %v3582_v11 = vsub.f32 1.0, %v3581_v28  ;;  %vm3626_vm15 = vmor %vm3624_vm14, %vm3625_vm13 }
 0x425   : > { %v3621_v5 = vsub.f32 1.0, %v3620_v4 }
 0x426   : > { %v3583_v55 = vmul.f32 %v5049_v52, %v3582_v11 }
 0x427   : > { %v5053_v0 = vpop.eup %5052  ;;  %v3622_v10 = vmul.f32 %v5051_v14, %v3621_v5 }
 0x428   : > { %v3600_v57 = vmul.f32 %v5053_v0, %v3598_v62  ;;  %v3584_v21 = vadd.f32 %v5049_v52, %v3583_v55  ;;  %vm3605_vm8 = vweird.f32 %v5053_v0  ;;  %v5055_v9 = vpop.eup %5054 }
 0x429   : > { %vm3606_vm11 = vmor %vm3604_vm9, %vm3605_vm8  ;;  %v3623_v60 = vadd.f32 %v5051_v14, %v3622_v10 }
 0x42a   : > { %v3601_v37 = vsub.f32 1.0, %v3600_v57  ;;  %v3588_v23 = vsel %vm6416_vm7, %v5049_v52, %v3584_v21 }
 0x42b   : > { %v3593_v51 = vsel %vm3590_vm10, %v3592_v6, %v3588_v23  ;;  %v3627_v3 = vsel %vm3626_vm15, %v5051_v14, %v3623_v60 }
 0x42c   : > { %v3602_v19 = vmul.f32 %v5053_v0, %v3601_v37  ;;  %v3635_v34 = vmul.f32 %v5055_v9, %v3593_v51  ;;  %v3632_v36 = vsel %vm3629_vm1, %v3631_v35, %v3627_v3 }
 0x42e   : > { %v3603_v7 = vadd.f32 %v5053_v0, %v3602_v19 }
 0x430   : > { %v3607_v59 = vsel %vm3606_vm11, %v5053_v0, %v3603_v7 }
 0x431   : > { %v3612_v8 = vsel %vm3609_vm12, %v3611_v32, %v3607_v59 }
 0x432   : > { %v3634_v13 = vmul.f32 %v3612_v8, %v3085_v30 }
 0x434   : > { %v3636_v48 = vadd.f32 %v3635_v34, %v3634_v13 }
 0x436   : > { %5056 = vtanh.f32 %v3636_v48 }
 0x43c   : > { %v5057_v43 = vpop.eup %5056 }
 0x43d   : > { %v3638_v38 = vmul.f32 %v5057_v43, %v3632_v36 }
 0x43f   : > { %v3639_v63 = vpack.c.bf16 %v3638_v38, %v3638_v38 }
 0x441   : > { %4826 = vmatmul.msk.bf16.vlgmr.msra.gmra.mxu1 %vm1707_vm0, %v3639_v63 }
 0x4be   : > { %v3685_v42 = vpop.f32.mrf.mxu1 }
 0x4bf   : > { %v3686_v53 = vadd.f32 %v3685_v42, %v3648_v50 }
 0x4c1   : > { %v3689_v39 = vmax.f32 %v3686_v53, 0.0 }
 0x4c3   : > { %v3690_v61 = vpack.c.bf16 %v3689_v39, %v3689_v39 }
 0x4c5   : > { %4831 = vmatmul.msk.bf16.vlgmr.msra.gmra.mxu2 %vm3700_vm2, %v3690_v61 }
 0x4c6   : > { %v3687_v22 = vpop.f32.mrf.mxu1 }
 0x548   : > { %v3713_v2 = vpop.f32.mrf.mxu2 }
 0x549   : > { %v3714_v29 = vadd.f32 %v3713_v2, %v3693_v1 }
 0x54b   : > { %3718 = vst.msk [vmem:[%s737_s3] sm:$0x1] %vm3717_vm3, %v3714_v29 }
 0x550   : > { %v3715_v41 = vpop.f32.mrf.mxu2 }
 0x551 PF: > { %s34_s29 = sadd.s32 1, %s5064_s29  }
 0x552   : > { %p31_p4 = scmp.ge.s32.totalorder %s34_s29, 4  }
 0x554   :  { %33 = sbr.rel (!%p31_p4) target bundleno = 8 (0x8), region = 174 }

</bundles_post_ra>
